<compile_context>
chip_gen: v6e
topology: v6e:2x2x1
jax: 0.10.0
libtpu: 0.0.40
codegen_flags: <defaults>
</compile_context>

<pallas_src>
import jax
import jax.numpy as jnp
import numpy as np
from jax import lax
from jax.experimental import pallas as pl
from jax.experimental.pallas import tpu as pltpu

LANES = 128


def _se_basic_block_kernel(xc_ref, xd_ref, w1_ref, w2_ref, cst_ref,
                           o_ref, pad_ref, patch_ref, o2_ref):
    """One image per grid step.

    xc_ref    : (H, W, C)        f32   input image (conv1 operand)
    xd_ref    : (HW*C/128, 128)  f32   same image, lane-dense residual view
    w1_ref    : (9C, C)          bf16  conv1 weights, rows ordered (dy, dx, cin)
    w2_ref    : (9C, C)          bf16  conv2 weights with the BN2 scale folded in
    cst_ref   : (4 + 3*Cr, 128)  f32   packed small constants (see prepare_params)
    o_ref     : (HW*C/128, 128)  f32   lane-dense output view
    pad_ref   : (H+2, W+2, C)    f32   zero-padded activation scratch (shared by both convs)
    patch_ref : (HW, 9C)         bf16  im2col patch scratch (shared by both convs)
    o2_ref    : (HW/8, 8, C)     f32   conv2 output staging for the dense epilogue
    """
    H, W, C = xc_ref.shape
    HW = H * W
    rows = o_ref.shape[0]              # HW * C // 128
    rep = LANES // C                   # pixels packed per dense lane-row
    Cr = (cst_ref.shape[0] - 4) // 3

    # --- zero the padding border once per step; both convs reuse it. ---
    # (Do NOT gate this on program_id == 0: under megacore "parallel" sharding
    #  the second core never runs id 0 and would read stale VMEM.)
    zrow = jnp.zeros((1, W + 2, C), jnp.float32)
    zcol = jnp.zeros((H + 2, 1, C), jnp.float32)
    pad_ref[0:1, :, :] = zrow
    pad_ref[H + 1:H + 2, :, :] = zrow
    pad_ref[:, 0:1, :] = zcol
    pad_ref[:, W + 1:W + 2, :] = zcol

    def im2col():
        # In-place tap stores (no 9-way concatenate): column block t = 3*dy + dx
        # of the patch matrix holds the (dy, dx)-shifted, bf16-cast image.
        for dy in range(3):
            for dx in range(3):
                t = 3 * dy + dx
                patch_ref[:, t * C:(t + 1) * C] = (
                    pad_ref[dy:dy + H, dx:dx + W, :]
                    .reshape(HW, C).astype(jnp.bfloat16))

    # --- conv1 -> relu -> bn1 (module order: relu BEFORE bn1) ---
    pad_ref[1:H + 1, 1:W + 1, :] = xc_ref[...]
    im2col()
    a1 = jnp.dot(patch_ref[...], w1_ref[...], preferred_element_type=jnp.float32)
    s1 = cst_ref[0:1, 0:C]
    b1 = cst_ref[1:2, 0:C]
    a1 = jnp.maximum(a1, 0.0) * s1 + b1                         # (HW, C) f32

    # --- conv2 (BN2 scale folded into w2; BN2 bias added in the epilogue) ---
    # The zero border already matches conv2's zero padding of the BN1 output.
    pad_ref[1:H + 1, 1:W + 1, :] = a1.reshape(H, W, C)
    im2col()
    out2 = jnp.dot(patch_ref[...], w2_ref[...], preferred_element_type=jnp.float32)
    o2_ref[...] = out2.reshape(rows, rep, C)                    # stage for dense view

    # --- SE: global avg pool (+ BN2 bias) -> fc1 -> relu -> fc2 -> sigmoid ---
    b2 = cst_ref[2:3, 0:C]                                      # (1, C)
    y = jnp.mean(out2, axis=0, keepdims=True) + b2              # (1, C)
    fc1wT = cst_ref[4:4 + Cr, 0:C]                              # (Cr, C)
    fc1b = cst_ref[4 + Cr:4 + 2 * Cr, 0:1]                      # (Cr, 1)
    fc2w = cst_ref[4 + 2 * Cr:4 + 3 * Cr, 0:C]                  # (Cr, C)
    fc2b = cst_ref[3:4, 0:C]                                    # (1, C)
    h = jnp.maximum(jnp.sum(y * fc1wT, axis=1, keepdims=True) + fc1b, 0.0)
    s = jax.nn.sigmoid(jnp.sum(h * fc2w, axis=0, keepdims=True) + fc2b)   # (1, C)

    # --- lane-dense epilogue: BN2 bias + SE scale + residual + relu + store ---
    out2_d = jnp.concatenate(
        [o2_ref[:, q:q + 1, :].reshape(rows, C) for q in range(rep)], axis=-1)
    s_d = jnp.concatenate([s] * rep, axis=-1)                   # (1, 128)
    b2_d = cst_ref[2:3, :]                                      # (1, 128) pre-tiled
    o = (out2_d + b2_d) * s_d + xd_ref[...]
    o_ref[...] = jnp.maximum(o, 0.0).astype(o_ref.dtype)


def prepare_params(params):
    """One-time parameter preprocessing (kept out of the per-call path)."""
    C = params["w1"].shape[2]
    Cr = params["fc1_w"].shape[1]
    assert LANES % C == 0
    rep = LANES // C
    K9 = 9 * C

    w1_flat = params["w1"].reshape(K9, C).astype(jnp.bfloat16)
    # BN2's per-output-channel scale folds into conv2's weights (conv2 is linear).
    # BN1 cannot be folded into conv1 because relu sits between them.
    w2_fold = (params["w2"] * params["bn2_s"][None, None, None, :]
               ).reshape(K9, C).astype(jnp.bfloat16)

    def row(v):   # a (C,) vector placed in the first C lanes of a 128-lane row
        return jnp.zeros((LANES,), jnp.float32).at[:C].set(v)

    # Packed small constants, one (4 + 3*Cr, 128) f32 block:
    #   row 0: bn1 scale | 1: bn1 bias | 2: bn2 bias tiled lane-dense | 3: fc2 bias
    #   rows 4..4+Cr   : fc1_w^T rows
    #   rows 4+Cr..    : fc1 bias (broadcast across the row)
    #   rows 4+2Cr..   : fc2_w rows
    consts = jnp.stack(
        [row(params["bn1_s"]), row(params["bn1_b"]),
         jnp.tile(params["bn2_b"], rep), row(params["fc2_b"])]
        + [row(params["fc1_w"][:, j]) for j in range(Cr)]
        + [jnp.full((LANES,), params["fc1_b"][j], jnp.float32) for j in range(Cr)]
        + [row(params["fc2_w"][j]) for j in range(Cr)],
        axis=0)
    return {"w1": w1_flat, "w2": w2_fold, "consts": consts}


@jax.jit
def se_basic_block(x, w1_flat, w2_fold, consts):
    """x: (B, H, W, C) float32 NHWC. Returns (B, H, W, C) float32."""
    B, H, W, C = x.shape
    assert (H * W * C) % LANES == 0 and LANES % C == 0
    rows = H * W * C // LANES
    K9 = 9 * C
    x_dense = x.reshape(B, rows, LANES)          # free reshape: same HBM layout

    grid_spec = pltpu.PrefetchScalarGridSpec(
        num_scalar_prefetch=0,
        grid=(B,),
        in_specs=[
            pl.BlockSpec((None, H, W, C), lambda b: (b, 0, 0, 0)),   # conv1 input
            pl.BlockSpec((None, rows, LANES), lambda b: (b, 0, 0)),  # dense residual
            pl.BlockSpec((K9, C), lambda b: (0, 0)),                 # w1 (bf16)
            pl.BlockSpec((K9, C), lambda b: (0, 0)),                 # w2 * bn2_scale (bf16)
            pl.BlockSpec(consts.shape, lambda b: (0, 0)),            # packed constants
        ],
        out_specs=pl.BlockSpec((None, rows, LANES), lambda b: (b, 0, 0)),
        scratch_shapes=[
            pltpu.VMEM((H + 2, W + 2, C), jnp.float32),     # shared padded activations
            pltpu.VMEM((H * W, K9), jnp.bfloat16),          # shared im2col patches
            pltpu.VMEM((rows, LANES // C, C), jnp.float32), # conv2 output staging
        ],
    )

    out = pl.pallas_call(
        _se_basic_block_kernel,
        out_shape=jax.ShapeDtypeStruct((B, rows, LANES), jnp.float32),
        grid_spec=grid_spec,
        compiler_params=pltpu.CompilerParams(
            dimension_semantics=("parallel",)),   # one image per TensorCore on v7x
    )(x, x_dense, w1_flat, w2_fold, consts)
    return out.reshape(B, H, W, C)


def _ref_forward(x, params):
    """Pure-JAX f32 reference (module semantics) for verification."""
    def conv(inp, w):
        return lax.conv_general_dilated(
            inp, w, window_strides=(1, 1), padding=((1, 1), (1, 1)),
            dimension_numbers=("NHWC", "HWIO", "NHWC"))

    out = conv(x, params["w1"])
    out = jax.nn.relu(out)
    out = out * params["bn1_s"] + params["bn1_b"]
    out = conv(out, params["w2"])
    out = out * params["bn2_s"] + params["bn2_b"]
    y = out.mean(axis=(1, 2))                                   # (B, C)
    y = jax.nn.relu(y @ params["fc1_w"] + params["fc1_b"])
    y = jax.nn.sigmoid(y @ params["fc2_w"] + params["fc2_b"])
    out = out * y[:, None, None, :]
    return jax.nn.relu(out + x)


def make_params(key, channels, reduction=8):
    C, Cr = channels, channels // reduction
    ks = jax.random.split(key, 12)
    eps = 1e-5

    w1 = jax.random.normal(ks[0], (3, 3, C, C), jnp.float32) * 0.1   # HWIO
    w2 = jax.random.normal(ks[1], (3, 3, C, C), jnp.float32) * 0.1

    # BatchNorm params + running stats, folded into per-channel scale/bias (eval mode).
    def fold_bn(kg, kb, km, kv):
        gamma = 1.0 + 0.2 * jax.random.normal(kg, (C,), jnp.float32)
        beta = 0.1 * jax.random.normal(kb, (C,), jnp.float32)
        mean = 0.1 * jax.random.normal(km, (C,), jnp.float32)
        var = 0.5 + jax.random.uniform(kv, (C,), jnp.float32)
        scale = gamma / jnp.sqrt(var + eps)
        bias = beta - mean * scale
        return scale, bias

    bn1_s, bn1_b = fold_bn(ks[2], ks[3], ks[4], ks[5])
    bn2_s, bn2_b = fold_bn(ks[6], ks[7], ks[8], ks[9])

    fc1_w = jax.random.normal(ks[10], (C, Cr), jnp.float32) * 0.2
    fc1_b = jnp.full((Cr,), 0.05, jnp.float32)
    fc2_w = jax.random.normal(ks[11], (Cr, C), jnp.float32) * 0.2
    fc2_b = jnp.full((C,), -0.05, jnp.float32)

    return {
        "w1": w1, "w2": w2,
        "bn1_s": bn1_s, "bn1_b": bn1_b, "bn2_s": bn2_s, "bn2_b": bn2_b,
        "fc1_w": fc1_w, "fc1_b": fc1_b, "fc2_w": fc2_w, "fc2_b": fc2_b,
    }


if __name__ == "__main__":
    B, C, H, W = 2, 16, 16, 16          # inplanes == planes == 16, stride=1, reduction=8
    key = jax.random.PRNGKey(0)
    kx, kp = jax.random.split(key)

    # NCHW-equivalent input, built directly in NHWC kernel layout.
    x = jax.random.normal(kx, (B, H, W, C), jnp.float32)
    params = make_params(kp, C, reduction=8)

    prepped = prepare_params(params)    # one-time parameter preprocessing
    out = se_basic_block(x, prepped["w1"], prepped["w2"], prepped["consts"])
    out = jax.block_until_ready(out)

    ref = _ref_forward(x, params)
    # Conv matmuls run with bf16 operands on the MXU (f32 accumulation), so we
    # compare against the exact-f32 reference with a bf16-appropriate tolerance.
    np.testing.assert_allclose(np.asarray(out), np.asarray(ref), rtol=5e-2, atol=5e-2)

    print("KERNEL_OK")
</pallas_src>

<mosaic_0001>
module attributes {stable_mosaic.version = 11 : i64} {
  func.func @_se_basic_block_kernel(%arg0: i32, %arg1: memref<1x16x16x16xf32, #tpu.memory_space<vmem>>, %arg2: memref<1x32x128xf32, #tpu.memory_space<vmem>>, %arg3: memref<144x16xbf16, #tpu.memory_space<vmem>>, %arg4: memref<144x16xbf16, #tpu.memory_space<vmem>>, %arg5: memref<10x128xf32, #tpu.memory_space<vmem>>, %arg6: memref<1x32x128xf32, #tpu.memory_space<vmem>>, %arg7: memref<18x18x16xf32, #tpu.memory_space<vmem>>, %arg8: memref<256x144xbf16, #tpu.memory_space<vmem>>, %arg9: memref<32x8x16xf32, #tpu.memory_space<vmem>>) attributes {dimension_semantics = [#tpu.dimension_semantics<parallel>], iteration_bounds = array<i64: 2>, scalar_prefetch = 0 : i64, scratch_operands = 3 : i64, tpu.core_type = #tpu.core_type<tc>, window_params = [{transform_indices = @transform_0, window_bounds = array<i64: 1, 16, 16, 16>}, {transform_indices = @transform_1, window_bounds = array<i64: 1, 32, 128>}, {pipeline_mode = #tpu.pipeline_mode<synchronous>, transform_indices = @transform_2, window_bounds = array<i64: 144, 16>}, {pipeline_mode = #tpu.pipeline_mode<synchronous>, transform_indices = @transform_3, window_bounds = array<i64: 144, 16>}, {pipeline_mode = #tpu.pipeline_mode<synchronous>, transform_indices = @transform_4, window_bounds = array<i64: 10, 128>}, {transform_indices = @transform_5, window_bounds = array<i64: 1, 32, 128>}]} {
    %cst = arith.constant 0.000000e+00 : f32
    %0 = vector.broadcast %cst : f32 to vector<1x18x16xf32>
    %cst_0 = arith.constant 0.000000e+00 : f32
    %1 = vector.broadcast %cst_0 : f32 to vector<18x1x16xf32>
    %c0 = arith.constant 0 : index
    %c0_1 = arith.constant 0 : index
    %c0_2 = arith.constant 0 : index
    %2 = vector.load %arg7[%c0, %c0_1, %c0_2] : memref<18x18x16xf32, #tpu.memory_space<vmem>>, vector<1x18x16xf32>
    tpu.vector_store %arg7[%c0, %c0_1, %c0_2], %0 {strides = array<i32>} : memref<18x18x16xf32, #tpu.memory_space<vmem>>, vector<1x18x16xf32>,
    %c17 = arith.constant 17 : index
    %c0_3 = arith.constant 0 : index
    %c0_4 = arith.constant 0 : index
    %3 = vector.load %arg7[%c17, %c0_3, %c0_4] : memref<18x18x16xf32, #tpu.memory_space<vmem>>, vector<1x18x16xf32>
    tpu.vector_store %arg7[%c17, %c0_3, %c0_4], %0 {strides = array<i32>} : memref<18x18x16xf32, #tpu.memory_space<vmem>>, vector<1x18x16xf32>,
    %c0_5 = arith.constant 0 : index
    %c0_6 = arith.constant 0 : index
    %c0_7 = arith.constant 0 : index
    %4 = vector.load %arg7[%c0_5, %c0_6, %c0_7] : memref<18x18x16xf32, #tpu.memory_space<vmem>>, vector<18x1x16xf32>
    tpu.vector_store %arg7[%c0_5, %c0_6, %c0_7], %1 {strides = array<i32>} : memref<18x18x16xf32, #tpu.memory_space<vmem>>, vector<18x1x16xf32>,
    %c0_8 = arith.constant 0 : index
    %c17_9 = arith.constant 17 : index
    %c0_10 = arith.constant 0 : index
    %5 = vector.load %arg7[%c0_8, %c17_9, %c0_10] : memref<18x18x16xf32, #tpu.memory_space<vmem>>, vector<18x1x16xf32>
    tpu.vector_store %arg7[%c0_8, %c17_9, %c0_10], %1 {strides = array<i32>} : memref<18x18x16xf32, #tpu.memory_space<vmem>>, vector<18x1x16xf32>,
    %c0_11 = arith.constant 0 : index
    %c0_12 = arith.constant 0 : index
    %c0_13 = arith.constant 0 : index
    %c0_14 = arith.constant 0 : index
    %6 = vector.load %arg1[%c0_11, %c0_12, %c0_13, %c0_14] : memref<1x16x16x16xf32, #tpu.memory_space<vmem>>, vector<1x16x16x16xf32>
    %7 = vector.shape_cast %6 : vector<1x16x16x16xf32> to vector<16x16x16xf32>
    %c1 = arith.constant 1 : index
    %c1_15 = arith.constant 1 : index
    %c0_16 = arith.constant 0 : index
    %8 = vector.load %arg7[%c1, %c1_15, %c0_16] : memref<18x18x16xf32, #tpu.memory_space<vmem>>, vector<16x16x16xf32>
    tpu.vector_store %arg7[%c1, %c1_15, %c0_16], %7 {strides = array<i32>} : memref<18x18x16xf32, #tpu.memory_space<vmem>>, vector<16x16x16xf32>,
    %c0_17 = arith.constant 0 : index
    %c0_18 = arith.constant 0 : index
    %c0_19 = arith.constant 0 : index
    %9 = vector.load %arg7[%c0_17, %c0_18, %c0_19] : memref<18x18x16xf32, #tpu.memory_space<vmem>>, vector<16x16x16xf32>
    %10 = vector.shape_cast %9 : vector<16x16x16xf32> to vector<256x16xf32>
    %11 = arith.truncf %10 : vector<256x16xf32> to vector<256x16xbf16>
    %c0_20 = arith.constant 0 : index
    %c0_21 = arith.constant 0 : index
    %12 = vector.load %arg8[%c0_20, %c0_21] : memref<256x144xbf16, #tpu.memory_space<vmem>>, vector<256x16xbf16>
    tpu.vector_store %arg8[%c0_20, %c0_21], %11 {strides = array<i32>} : memref<256x144xbf16, #tpu.memory_space<vmem>>, vector<256x16xbf16>,
    %c0_22 = arith.constant 0 : index
    %c1_23 = arith.constant 1 : index
    %c0_24 = arith.constant 0 : index
    %13 = vector.load %arg7[%c0_22, %c1_23, %c0_24] : memref<18x18x16xf32, #tpu.memory_space<vmem>>, vector<16x16x16xf32>
    %14 = vector.shape_cast %13 : vector<16x16x16xf32> to vector<256x16xf32>
    %15 = arith.truncf %14 : vector<256x16xf32> to vector<256x16xbf16>
    %c0_25 = arith.constant 0 : index
    %c16 = arith.constant 16 : index
    %16 = vector.load %arg8[%c0_25, %c16] : memref<256x144xbf16, #tpu.memory_space<vmem>>, vector<256x16xbf16>
    tpu.vector_store %arg8[%c0_25, %c16], %15 {strides = array<i32>} : memref<256x144xbf16, #tpu.memory_space<vmem>>, vector<256x16xbf16>,
    %c0_26 = arith.constant 0 : index
    %c2 = arith.constant 2 : index
    %c0_27 = arith.constant 0 : index
    %17 = vector.load %arg7[%c0_26, %c2, %c0_27] : memref<18x18x16xf32, #tpu.memory_space<vmem>>, vector<16x16x16xf32>
    %18 = vector.shape_cast %17 : vector<16x16x16xf32> to vector<256x16xf32>
    %19 = arith.truncf %18 : vector<256x16xf32> to vector<256x16xbf16>
    %c0_28 = arith.constant 0 : index
    %c32 = arith.constant 32 : index
    %20 = vector.load %arg8[%c0_28, %c32] : memref<256x144xbf16, #tpu.memory_space<vmem>>, vector<256x16xbf16>
    tpu.vector_store %arg8[%c0_28, %c32], %19 {strides = array<i32>} : memref<256x144xbf16, #tpu.memory_space<vmem>>, vector<256x16xbf16>,
    %c1_29 = arith.constant 1 : index
    %c0_30 = arith.constant 0 : index
    %c0_31 = arith.constant 0 : index
    %21 = vector.load %arg7[%c1_29, %c0_30, %c0_31] : memref<18x18x16xf32, #tpu.memory_space<vmem>>, vector<16x16x16xf32>
    %22 = vector.shape_cast %21 : vector<16x16x16xf32> to vector<256x16xf32>
    %23 = arith.truncf %22 : vector<256x16xf32> to vector<256x16xbf16>
    %c0_32 = arith.constant 0 : index
    %c48 = arith.constant 48 : index
    %24 = vector.load %arg8[%c0_32, %c48] : memref<256x144xbf16, #tpu.memory_space<vmem>>, vector<256x16xbf16>
    tpu.vector_store %arg8[%c0_32, %c48], %23 {strides = array<i32>} : memref<256x144xbf16, #tpu.memory_space<vmem>>, vector<256x16xbf16>,
    %c1_33 = arith.constant 1 : index
    %c1_34 = arith.constant 1 : index
    %c0_35 = arith.constant 0 : index
    %25 = vector.load %arg7[%c1_33, %c1_34, %c0_35] : memref<18x18x16xf32, #tpu.memory_space<vmem>>, vector<16x16x16xf32>
    %26 = vector.shape_cast %25 : vector<16x16x16xf32> to vector<256x16xf32>
    %27 = arith.truncf %26 : vector<256x16xf32> to vector<256x16xbf16>
    %c0_36 = arith.constant 0 : index
    %c64 = arith.constant 64 : index
    %28 = vector.load %arg8[%c0_36, %c64] : memref<256x144xbf16, #tpu.memory_space<vmem>>, vector<256x16xbf16>
    tpu.vector_store %arg8[%c0_36, %c64], %27 {strides = array<i32>} : memref<256x144xbf16, #tpu.memory_space<vmem>>, vector<256x16xbf16>,
    %c1_37 = arith.constant 1 : index
    %c2_38 = arith.constant 2 : index
    %c0_39 = arith.constant 0 : index
    %29 = vector.load %arg7[%c1_37, %c2_38, %c0_39] : memref<18x18x16xf32, #tpu.memory_space<vmem>>, vector<16x16x16xf32>
    %30 = vector.shape_cast %29 : vector<16x16x16xf32> to vector<256x16xf32>
    %31 = arith.truncf %30 : vector<256x16xf32> to vector<256x16xbf16>
    %c0_40 = arith.constant 0 : index
    %c80 = arith.constant 80 : index
    %32 = vector.load %arg8[%c0_40, %c80] : memref<256x144xbf16, #tpu.memory_space<vmem>>, vector<256x16xbf16>
    tpu.vector_store %arg8[%c0_40, %c80], %31 {strides = array<i32>} : memref<256x144xbf16, #tpu.memory_space<vmem>>, vector<256x16xbf16>,
    %c2_41 = arith.constant 2 : index
    %c0_42 = arith.constant 0 : index
    %c0_43 = arith.constant 0 : index
    %33 = vector.load %arg7[%c2_41, %c0_42, %c0_43] : memref<18x18x16xf32, #tpu.memory_space<vmem>>, vector<16x16x16xf32>
    %34 = vector.shape_cast %33 : vector<16x16x16xf32> to vector<256x16xf32>
    %35 = arith.truncf %34 : vector<256x16xf32> to vector<256x16xbf16>
    %c0_44 = arith.constant 0 : index
    %c96 = arith.constant 96 : index
    %36 = vector.load %arg8[%c0_44, %c96] : memref<256x144xbf16, #tpu.memory_space<vmem>>, vector<256x16xbf16>
    tpu.vector_store %arg8[%c0_44, %c96], %35 {strides = array<i32>} : memref<256x144xbf16, #tpu.memory_space<vmem>>, vector<256x16xbf16>,
    %c2_45 = arith.constant 2 : index
    %c1_46 = arith.constant 1 : index
    %c0_47 = arith.constant 0 : index
    %37 = vector.load %arg7[%c2_45, %c1_46, %c0_47] : memref<18x18x16xf32, #tpu.memory_space<vmem>>, vector<16x16x16xf32>
    %38 = vector.shape_cast %37 : vector<16x16x16xf32> to vector<256x16xf32>
    %39 = arith.truncf %38 : vector<256x16xf32> to vector<256x16xbf16>
    %c0_48 = arith.constant 0 : index
    %c112 = arith.constant 112 : index
    %40 = vector.load %arg8[%c0_48, %c112] : memref<256x144xbf16, #tpu.memory_space<vmem>>, vector<256x16xbf16>
    tpu.vector_store %arg8[%c0_48, %c112], %39 {strides = array<i32>} : memref<256x144xbf16, #tpu.memory_space<vmem>>, vector<256x16xbf16>,
    %c2_49 = arith.constant 2 : index
    %c2_50 = arith.constant 2 : index
    %c0_51 = arith.constant 0 : index
    %41 = vector.load %arg7[%c2_49, %c2_50, %c0_51] : memref<18x18x16xf32, #tpu.memory_space<vmem>>, vector<16x16x16xf32>
    %42 = vector.shape_cast %41 : vector<16x16x16xf32> to vector<256x16xf32>
    %43 = arith.truncf %42 : vector<256x16xf32> to vector<256x16xbf16>
    %c0_52 = arith.constant 0 : index
    %c128 = arith.constant 128 : index
    %44 = vector.load %arg8[%c0_52, %c128] : memref<256x144xbf16, #tpu.memory_space<vmem>>, vector<256x16xbf16>
    tpu.vector_store %arg8[%c0_52, %c128], %43 {strides = array<i32>} : memref<256x144xbf16, #tpu.memory_space<vmem>>, vector<256x16xbf16>,
    %c0_53 = arith.constant 0 : index
    %c0_54 = arith.constant 0 : index
    %45 = vector.load %arg8[%c0_53, %c0_54] : memref<256x144xbf16, #tpu.memory_space<vmem>>, vector<256x144xbf16>
    %c0_55 = arith.constant 0 : index
    %c0_56 = arith.constant 0 : index
    %46 = vector.load %arg3[%c0_55, %c0_56] : memref<144x16xbf16, #tpu.memory_space<vmem>>, vector<144x16xbf16>
    %cst_57 = arith.constant dense<0.000000e+00> : vector<256x16xf32>
    %47 = tpu.matmul %45, %46, %cst_57 {dimension_numbers = #tpu.dot_dimension_numbers<[1], [0], [0], [1], [0, 0, 1, 1], [], []>} : vector<256x144xbf16>, vector<144x16xbf16>, vector<256x16xf32> -> vector<256x16xf32>
    %c0_58 = arith.constant 0 : index
    %c0_59 = arith.constant 0 : index
    %48 = vector.load %arg5[%c0_58, %c0_59] : memref<10x128xf32, #tpu.memory_space<vmem>>, vector<1x16xf32>
    %c1_60 = arith.constant 1 : index
    %c0_61 = arith.constant 0 : index
    %49 = vector.load %arg5[%c1_60, %c0_61] : memref<10x128xf32, #tpu.memory_space<vmem>>, vector<1x16xf32>
    %cst_62 = arith.constant 0.000000e+00 : f32
    %50 = vector.broadcast %cst_62 : f32 to vector<256x16xf32>
    %51 = arith.maximumf %47, %50 : vector<256x16xf32>
    %52 = vector.broadcast %48 : vector<1x16xf32> to vector<256x16xf32>
    %53 = arith.mulf %51, %52 : vector<256x16xf32>
    %54 = vector.broadcast %49 : vector<1x16xf32> to vector<256x16xf32>
    %55 = arith.addf %53, %54 : vector<256x16xf32>
    %56 = vector.shape_cast %55 : vector<256x16xf32> to vector<16x16x16xf32>
    %c1_63 = arith.constant 1 : index
    %c1_64 = arith.constant 1 : index
    %c0_65 = arith.constant 0 : index
    %57 = vector.load %arg7[%c1_63, %c1_64, %c0_65] : memref<18x18x16xf32, #tpu.memory_space<vmem>>, vector<16x16x16xf32>
    tpu.vector_store %arg7[%c1_63, %c1_64, %c0_65], %56 {strides = array<i32>} : memref<18x18x16xf32, #tpu.memory_space<vmem>>, vector<16x16x16xf32>,
    %c0_66 = arith.constant 0 : index
    %c0_67 = arith.constant 0 : index
    %c0_68 = arith.constant 0 : index
    %58 = vector.load %arg7[%c0_66, %c0_67, %c0_68] : memref<18x18x16xf32, #tpu.memory_space<vmem>>, vector<16x16x16xf32>
    %59 = vector.shape_cast %58 : vector<16x16x16xf32> to vector<256x16xf32>
    %60 = arith.truncf %59 : vector<256x16xf32> to vector<256x16xbf16>
    %c0_69 = arith.constant 0 : index
    %c0_70 = arith.constant 0 : index
    %61 = vector.load %arg8[%c0_69, %c0_70] : memref<256x144xbf16, #tpu.memory_space<vmem>>, vector<256x16xbf16>
    tpu.vector_store %arg8[%c0_69, %c0_70], %60 {strides = array<i32>} : memref<256x144xbf16, #tpu.memory_space<vmem>>, vector<256x16xbf16>,
    %c0_71 = arith.constant 0 : index
    %c1_72 = arith.constant 1 : index
    %c0_73 = arith.constant 0 : index
    %62 = vector.load %arg7[%c0_71, %c1_72, %c0_73] : memref<18x18x16xf32, #tpu.memory_space<vmem>>, vector<16x16x16xf32>
    %63 = vector.shape_cast %62 : vector<16x16x16xf32> to vector<256x16xf32>
    %64 = arith.truncf %63 : vector<256x16xf32> to vector<256x16xbf16>
    %c0_74 = arith.constant 0 : index
    %c16_75 = arith.constant 16 : index
    %65 = vector.load %arg8[%c0_74, %c16_75] : memref<256x144xbf16, #tpu.memory_space<vmem>>, vector<256x16xbf16>
    tpu.vector_store %arg8[%c0_74, %c16_75], %64 {strides = array<i32>} : memref<256x144xbf16, #tpu.memory_space<vmem>>, vector<256x16xbf16>,
    %c0_76 = arith.constant 0 : index
    %c2_77 = arith.constant 2 : index
    %c0_78 = arith.constant 0 : index
    %66 = vector.load %arg7[%c0_76, %c2_77, %c0_78] : memref<18x18x16xf32, #tpu.memory_space<vmem>>, vector<16x16x16xf32>
    %67 = vector.shape_cast %66 : vector<16x16x16xf32> to vector<256x16xf32>
    %68 = arith.truncf %67 : vector<256x16xf32> to vector<256x16xbf16>
    %c0_79 = arith.constant 0 : index
    %c32_80 = arith.constant 32 : index
    %69 = vector.load %arg8[%c0_79, %c32_80] : memref<256x144xbf16, #tpu.memory_space<vmem>>, vector<256x16xbf16>
    tpu.vector_store %arg8[%c0_79, %c32_80], %68 {strides = array<i32>} : memref<256x144xbf16, #tpu.memory_space<vmem>>, vector<256x16xbf16>,
    %c1_81 = arith.constant 1 : index
    %c0_82 = arith.constant 0 : index
    %c0_83 = arith.constant 0 : index
    %70 = vector.load %arg7[%c1_81, %c0_82, %c0_83] : memref<18x18x16xf32, #tpu.memory_space<vmem>>, vector<16x16x16xf32>
    %71 = vector.shape_cast %70 : vector<16x16x16xf32> to vector<256x16xf32>
    %72 = arith.truncf %71 : vector<256x16xf32> to vector<256x16xbf16>
    %c0_84 = arith.constant 0 : index
    %c48_85 = arith.constant 48 : index
    %73 = vector.load %arg8[%c0_84, %c48_85] : memref<256x144xbf16, #tpu.memory_space<vmem>>, vector<256x16xbf16>
    tpu.vector_store %arg8[%c0_84, %c48_85], %72 {strides = array<i32>} : memref<256x144xbf16, #tpu.memory_space<vmem>>, vector<256x16xbf16>,
    %c1_86 = arith.constant 1 : index
    %c1_87 = arith.constant 1 : index
    %c0_88 = arith.constant 0 : index
    %74 = vector.load %arg7[%c1_86, %c1_87, %c0_88] : memref<18x18x16xf32, #tpu.memory_space<vmem>>, vector<16x16x16xf32>
    %75 = vector.shape_cast %74 : vector<16x16x16xf32> to vector<256x16xf32>
    %76 = arith.truncf %75 : vector<256x16xf32> to vector<256x16xbf16>
    %c0_89 = arith.constant 0 : index
    %c64_90 = arith.constant 64 : index
    %77 = vector.load %arg8[%c0_89, %c64_90] : memref<256x144xbf16, #tpu.memory_space<vmem>>, vector<256x16xbf16>
    tpu.vector_store %arg8[%c0_89, %c64_90], %76 {strides = array<i32>} : memref<256x144xbf16, #tpu.memory_space<vmem>>, vector<256x16xbf16>,
    %c1_91 = arith.constant 1 : index
    %c2_92 = arith.constant 2 : index
    %c0_93 = arith.constant 0 : index
    %78 = vector.load %arg7[%c1_91, %c2_92, %c0_93] : memref<18x18x16xf32, #tpu.memory_space<vmem>>, vector<16x16x16xf32>
    %79 = vector.shape_cast %78 : vector<16x16x16xf32> to vector<256x16xf32>
    %80 = arith.truncf %79 : vector<256x16xf32> to vector<256x16xbf16>
    %c0_94 = arith.constant 0 : index
    %c80_95 = arith.constant 80 : index
    %81 = vector.load %arg8[%c0_94, %c80_95] : memref<256x144xbf16, #tpu.memory_space<vmem>>, vector<256x16xbf16>
    tpu.vector_store %arg8[%c0_94, %c80_95], %80 {strides = array<i32>} : memref<256x144xbf16, #tpu.memory_space<vmem>>, vector<256x16xbf16>,
    %c2_96 = arith.constant 2 : index
    %c0_97 = arith.constant 0 : index
    %c0_98 = arith.constant 0 : index
    %82 = vector.load %arg7[%c2_96, %c0_97, %c0_98] : memref<18x18x16xf32, #tpu.memory_space<vmem>>, vector<16x16x16xf32>
    %83 = vector.shape_cast %82 : vector<16x16x16xf32> to vector<256x16xf32>
    %84 = arith.truncf %83 : vector<256x16xf32> to vector<256x16xbf16>
    %c0_99 = arith.constant 0 : index
    %c96_100 = arith.constant 96 : index
    %85 = vector.load %arg8[%c0_99, %c96_100] : memref<256x144xbf16, #tpu.memory_space<vmem>>, vector<256x16xbf16>
    tpu.vector_store %arg8[%c0_99, %c96_100], %84 {strides = array<i32>} : memref<256x144xbf16, #tpu.memory_space<vmem>>, vector<256x16xbf16>,
    %c2_101 = arith.constant 2 : index
    %c1_102 = arith.constant 1 : index
    %c0_103 = arith.constant 0 : index
    %86 = vector.load %arg7[%c2_101, %c1_102, %c0_103] : memref<18x18x16xf32, #tpu.memory_space<vmem>>, vector<16x16x16xf32>
    %87 = vector.shape_cast %86 : vector<16x16x16xf32> to vector<256x16xf32>
    %88 = arith.truncf %87 : vector<256x16xf32> to vector<256x16xbf16>
    %c0_104 = arith.constant 0 : index
    %c112_105 = arith.constant 112 : index
    %89 = vector.load %arg8[%c0_104, %c112_105] : memref<256x144xbf16, #tpu.memory_space<vmem>>, vector<256x16xbf16>
    tpu.vector_store %arg8[%c0_104, %c112_105], %88 {strides = array<i32>} : memref<256x144xbf16, #tpu.memory_space<vmem>>, vector<256x16xbf16>,
    %c2_106 = arith.constant 2 : index
    %c2_107 = arith.constant 2 : index
    %c0_108 = arith.constant 0 : index
    %90 = vector.load %arg7[%c2_106, %c2_107, %c0_108] : memref<18x18x16xf32, #tpu.memory_space<vmem>>, vector<16x16x16xf32>
    %91 = vector.shape_cast %90 : vector<16x16x16xf32> to vector<256x16xf32>
    %92 = arith.truncf %91 : vector<256x16xf32> to vector<256x16xbf16>
    %c0_109 = arith.constant 0 : index
    %c128_110 = arith.constant 128 : index
    %93 = vector.load %arg8[%c0_109, %c128_110] : memref<256x144xbf16, #tpu.memory_space<vmem>>, vector<256x16xbf16>
    tpu.vector_store %arg8[%c0_109, %c128_110], %92 {strides = array<i32>} : memref<256x144xbf16, #tpu.memory_space<vmem>>, vector<256x16xbf16>,
    %c0_111 = arith.constant 0 : index
    %c0_112 = arith.constant 0 : index
    %94 = vector.load %arg8[%c0_111, %c0_112] : memref<256x144xbf16, #tpu.memory_space<vmem>>, vector<256x144xbf16>
    %c0_113 = arith.constant 0 : index
    %c0_114 = arith.constant 0 : index
    %95 = vector.load %arg4[%c0_113, %c0_114] : memref<144x16xbf16, #tpu.memory_space<vmem>>, vector<144x16xbf16>
    %cst_115 = arith.constant dense<0.000000e+00> : vector<256x16xf32>
    %96 = tpu.matmul %94, %95, %cst_115 {dimension_numbers = #tpu.dot_dimension_numbers<[1], [0], [0], [1], [0, 0, 1, 1], [], []>} : vector<256x144xbf16>, vector<144x16xbf16>, vector<256x16xf32> -> vector<256x16xf32>
    %97 = vector.shape_cast %96 : vector<256x16xf32> to vector<32x8x16xf32>
    %c0_116 = arith.constant 0 : index
    %c0_117 = arith.constant 0 : index
    %c0_118 = arith.constant 0 : index
    %98 = vector.load %arg9[%c0_116, %c0_117, %c0_118] : memref<32x8x16xf32, #tpu.memory_space<vmem>>, vector<32x8x16xf32>
    tpu.vector_store %arg9[%c0_116, %c0_117, %c0_118], %97 {strides = array<i32>} : memref<32x8x16xf32, #tpu.memory_space<vmem>>, vector<32x8x16xf32>,
    %c2_119 = arith.constant 2 : index
    %c0_120 = arith.constant 0 : index
    %99 = vector.load %arg5[%c2_119, %c0_120] : memref<10x128xf32, #tpu.memory_space<vmem>>, vector<1x16xf32>
    %cst_121 = arith.constant dense<0.000000e+00> : vector<16xf32>
    %100 = vector.multi_reduction <add>, %96, %cst_121 [0] : vector<256x16xf32> to vector<16xf32>
    %101 = vector.shape_cast %100 : vector<16xf32> to vector<1x16xf32>
    %cst_122 = arith.constant 2.560000e+02 : f32
    %102 = vector.broadcast %cst_122 : f32 to vector<1x16xf32>
    %103 = arith.divf %101, %102 : vector<1x16xf32>
    %104 = arith.addf %103, %99 : vector<1x16xf32>
    %c4 = arith.constant 4 : index
    %c0_123 = arith.constant 0 : index
    %105 = vector.load %arg5[%c4, %c0_123] : memref<10x128xf32, #tpu.memory_space<vmem>>, vector<2x16xf32>
    %c6 = arith.constant 6 : index
    %c0_124 = arith.constant 0 : index
    %106 = vector.load %arg5[%c6, %c0_124] : memref<10x128xf32, #tpu.memory_space<vmem>>, vector<2x1xf32>
    %c8 = arith.constant 8 : index
    %c0_125 = arith.constant 0 : index
    %107 = vector.load %arg5[%c8, %c0_125] : memref<10x128xf32, #tpu.memory_space<vmem>>, vector<2x16xf32>
    %c3 = arith.constant 3 : index
    %c0_126 = arith.constant 0 : index
    %108 = vector.load %arg5[%c3, %c0_126] : memref<10x128xf32, #tpu.memory_space<vmem>>, vector<1x16xf32>
    %109 = vector.broadcast %104 : vector<1x16xf32> to vector<2x16xf32>
    %110 = arith.mulf %109, %105 : vector<2x16xf32>
    %cst_127 = arith.constant dense<0.000000e+00> : vector<2xf32>
    %111 = vector.multi_reduction <add>, %110, %cst_127 [1] : vector<2x16xf32> to vector<2xf32>
    %112 = vector.shape_cast %111 : vector<2xf32> to vector<2x1xf32>
    %113 = arith.addf %112, %106 : vector<2x1xf32>
    %cst_128 = arith.constant 0.000000e+00 : f32
    %114 = vector.broadcast %cst_128 : f32 to vector<2x1xf32>
    %115 = arith.maximumf %113, %114 : vector<2x1xf32>
    %116 = vector.broadcast %115 : vector<2x1xf32> to vector<2x16xf32>
    %117 = arith.mulf %116, %107 : vector<2x16xf32>
    %cst_129 = arith.constant dense<0.000000e+00> : vector<16xf32>
    %118 = vector.multi_reduction <add>, %117, %cst_129 [0] : vector<2x16xf32> to vector<16xf32>
    %119 = vector.shape_cast %118 : vector<16xf32> to vector<1x16xf32>
    %120 = arith.addf %119, %108 : vector<1x16xf32>
    %121 = arith.negf %120 : vector<1x16xf32>
    %122 = math.exp %121 : vector<1x16xf32>
    %cst_130 = arith.constant 1.000000e+00 : f32
    %123 = vector.broadcast %cst_130 : f32 to vector<1x16xf32>
    %124 = arith.addf %123, %122 : vector<1x16xf32>
    %125 = arith.divf %123, %124 : vector<1x16xf32>
    %c0_131 = arith.constant 0 : index
    %c0_132 = arith.constant 0 : index
    %c0_133 = arith.constant 0 : index
    %126 = vector.load %arg9[%c0_131, %c0_132, %c0_133] : memref<32x8x16xf32, #tpu.memory_space<vmem>>, vector<32x1x16xf32>
    %127 = vector.shape_cast %126 : vector<32x1x16xf32> to vector<32x16xf32>
    %c0_134 = arith.constant 0 : index
    %c1_135 = arith.constant 1 : index
    %c0_136 = arith.constant 0 : index
    %128 = vector.load %arg9[%c0_134, %c1_135, %c0_136] : memref<32x8x16xf32, #tpu.memory_space<vmem>>, vector<32x1x16xf32>
    %129 = vector.shape_cast %128 : vector<32x1x16xf32> to vector<32x16xf32>
    %c0_137 = arith.constant 0 : index
    %c2_138 = arith.constant 2 : index
    %c0_139 = arith.constant 0 : index
    %130 = vector.load %arg9[%c0_137, %c2_138, %c0_139] : memref<32x8x16xf32, #tpu.memory_space<vmem>>, vector<32x1x16xf32>
    %131 = vector.shape_cast %130 : vector<32x1x16xf32> to vector<32x16xf32>
    %c0_140 = arith.constant 0 : index
    %c3_141 = arith.constant 3 : index
    %c0_142 = arith.constant 0 : index
    %132 = vector.load %arg9[%c0_140, %c3_141, %c0_142] : memref<32x8x16xf32, #tpu.memory_space<vmem>>, vector<32x1x16xf32>
    %133 = vector.shape_cast %132 : vector<32x1x16xf32> to vector<32x16xf32>
    %c0_143 = arith.constant 0 : index
    %c4_144 = arith.constant 4 : index
    %c0_145 = arith.constant 0 : index
    %134 = vector.load %arg9[%c0_143, %c4_144, %c0_145] : memref<32x8x16xf32, #tpu.memory_space<vmem>>, vector<32x1x16xf32>
    %135 = vector.shape_cast %134 : vector<32x1x16xf32> to vector<32x16xf32>
    %c0_146 = arith.constant 0 : index
    %c5 = arith.constant 5 : index
    %c0_147 = arith.constant 0 : index
    %136 = vector.load %arg9[%c0_146, %c5, %c0_147] : memref<32x8x16xf32, #tpu.memory_space<vmem>>, vector<32x1x16xf32>
    %137 = vector.shape_cast %136 : vector<32x1x16xf32> to vector<32x16xf32>
    %c0_148 = arith.constant 0 : index
    %c6_149 = arith.constant 6 : index
    %c0_150 = arith.constant 0 : index
    %138 = vector.load %arg9[%c0_148, %c6_149, %c0_150] : memref<32x8x16xf32, #tpu.memory_space<vmem>>, vector<32x1x16xf32>
    %139 = vector.shape_cast %138 : vector<32x1x16xf32> to vector<32x16xf32>
    %c0_151 = arith.constant 0 : index
    %c7 = arith.constant 7 : index
    %c0_152 = arith.constant 0 : index
    %140 = vector.load %arg9[%c0_151, %c7, %c0_152] : memref<32x8x16xf32, #tpu.memory_space<vmem>>, vector<32x1x16xf32>
    %141 = vector.shape_cast %140 : vector<32x1x16xf32> to vector<32x16xf32>
    %142 = tpu.concatenate %127, %129, %131, %133, %135, %137, %139, %141 in 1 : vector<32x16xf32>, vector<32x16xf32>, vector<32x16xf32>, vector<32x16xf32>, vector<32x16xf32>, vector<32x16xf32>, vector<32x16xf32>, vector<32x16xf32> -> vector<32x128xf32>
    %143 = tpu.concatenate %125, %125, %125, %125, %125, %125, %125, %125 in 1 : vector<1x16xf32>, vector<1x16xf32>, vector<1x16xf32>, vector<1x16xf32>, vector<1x16xf32>, vector<1x16xf32>, vector<1x16xf32>, vector<1x16xf32> -> vector<1x128xf32>
    %c2_153 = arith.constant 2 : index
    %c0_154 = arith.constant 0 : index
    %144 = vector.load %arg5[%c2_153, %c0_154] : memref<10x128xf32, #tpu.memory_space<vmem>>, vector<1x128xf32>
    %145 = vector.broadcast %144 : vector<1x128xf32> to vector<32x128xf32>
    %146 = arith.addf %142, %145 : vector<32x128xf32>
    %147 = vector.broadcast %143 : vector<1x128xf32> to vector<32x128xf32>
    %148 = arith.mulf %146, %147 : vector<32x128xf32>
    %c0_155 = arith.constant 0 : index
    %c0_156 = arith.constant 0 : index
    %c0_157 = arith.constant 0 : index
    %149 = vector.load %arg2[%c0_155, %c0_156, %c0_157] : memref<1x32x128xf32, #tpu.memory_space<vmem>>, vector<1x32x128xf32>
    %150 = vector.shape_cast %149 : vector<1x32x128xf32> to vector<32x128xf32>
    %151 = arith.addf %148, %150 : vector<32x128xf32>
    %cst_158 = arith.constant 0.000000e+00 : f32
    %152 = vector.broadcast %cst_158 : f32 to vector<32x128xf32>
    %153 = arith.maximumf %151, %152 : vector<32x128xf32>
    %c0_159 = arith.constant 0 : index
    %c0_160 = arith.constant 0 : index
    %c0_161 = arith.constant 0 : index
    %154 = vector.load %arg6[%c0_159, %c0_160, %c0_161] : memref<1x32x128xf32, #tpu.memory_space<vmem>>, vector<1x32x128xf32>
    %155 = vector.shape_cast %154 : vector<1x32x128xf32> to vector<32x128xf32>
    %156 = vector.shape_cast %153 : vector<32x128xf32> to vector<1x32x128xf32>
    tpu.vector_store %arg6[%c0_159, %c0_160, %c0_161], %156 {strides = array<i32>} : memref<1x32x128xf32, #tpu.memory_space<vmem>>, vector<1x32x128xf32>,
    return
  }
  func.func @transform_0(%arg0: i32) -> (i32, i32, i32, i32) {
    %c0_i32 = arith.constant 0 : i32
    %c0_i32_0 = arith.constant 0 : i32
    %c0_i32_1 = arith.constant 0 : i32
    %c0_i32_2 = arith.constant 0 : i32
    return %arg0, %c0_i32, %c0_i32_0, %c0_i32_1 : i32, i32, i32, i32
  }
  func.func @transform_1(%arg0: i32) -> (i32, i32, i32) {
    %c0_i32 = arith.constant 0 : i32
    %c0_i32_0 = arith.constant 0 : i32
    %c0_i32_1 = arith.constant 0 : i32
    return %arg0, %c0_i32, %c0_i32_0 : i32, i32, i32
  }
  func.func @transform_2(%arg0: i32) -> (i32, i32) {
    %c0_i32 = arith.constant 0 : i32
    %c0_i32_0 = arith.constant 0 : i32
    %c0_i32_1 = arith.constant 0 : i32
    return %c0_i32, %c0_i32_0 : i32, i32
  }
  func.func @transform_3(%arg0: i32) -> (i32, i32) {
    %c0_i32 = arith.constant 0 : i32
    %c0_i32_0 = arith.constant 0 : i32
    %c0_i32_1 = arith.constant 0 : i32
    return %c0_i32, %c0_i32_0 : i32, i32
  }
  func.func @transform_4(%arg0: i32) -> (i32, i32) {
    %c0_i32 = arith.constant 0 : i32
    %c0_i32_0 = arith.constant 0 : i32
    %c0_i32_1 = arith.constant 0 : i32
    return %c0_i32, %c0_i32_0 : i32, i32
  }
  func.func @transform_5(%arg0: i32) -> (i32, i32, i32) {
    %c0_i32 = arith.constant 0 : i32
    %c0_i32_0 = arith.constant 0 : i32
    %c0_i32_1 = arith.constant 0 : i32
    return %arg0, %c0_i32, %c0_i32_0 : i32, i32, i32
  }
}

</mosaic_0001>

<bundles_post_ra>
// kernel: se_basic_block.1
= control target key start
LH: loop header
LB: loop body
LE: loop exit
PB: predicated region body
PF: predicated region fallthrough
CT: control target
= control target key end

     0   :  { %s8544_s18 = smov 0   ;;  %s11146_s0 = inlined_call_operand.vmem [shape: f32[2,16,16,16], index: 0, kind: input, shape index: {}]   ;;  %s11147_s1 = inlined_call_operand.vmem [shape: f32[2,32,128], index: 1, kind: input, shape index: {}]   ;;  %s11148_s2 = inlined_call_operand.vmem [shape: bf16[144,16], index: 2, kind: input, shape index: {}]   ;;  %s11149_s3 = inlined_call_operand.vmem [shape: bf16[144,16], index: 3, kind: input, shape index: {}]   ;;  %s11150_s4 = inlined_call_operand.vmem [shape: f32[10,128], index: 4, kind: input, shape index: {}]   ;;  %s11151_s5 = inlined_call_operand.vmem [shape: f32[2,32,128], index: 5, kind: output, shape index: {}]  }
   0x1 LB: > { %s7126_s19 = sadd.s32 4294967295, %s8503_s18   ;;  %p7130_p0 = scmp.ge.s32.totalorder %s8503_s18, 1  ;;  %s8503_s18 = sphi %s8544_s18, %s15_s18  }
   0x2   : > { %p197_p1 = scmp.lt.s32.totalorder %s8503_s18, 3 }
   0x4   : > { %p198_p2 = pnand %p7130_p0, %p197_p1 }
   0x5   : > { %p8554_p3 = scmp.lt.s32.totalorder (!%p198_p2), %s7126_s19, 1  ;;  %s8506_s25 = smov (!%p198_p2), 16  }
   0x6   : > { %201 = sbr.rel (%p198_p2) target bundleno = 1737 (0x6c9), region = 40  ;;  %s8508_s9 = smov (!%p198_p2), 32  }
   0x7   : > { %s8509_s12 = smov (!%p198_p2), 48   ;;  %s8510_s15 = smov (!%p198_p2), 64  }
   0x8   : > { %s8511_s20 = smov (!%p198_p2), 80   ;;  %s8512_s23 = smov (!%p198_p2), 96  }
   0x9   : > { %s8513_s28 = smov (!%p198_p2), 112  }
   0xb   : > { %vm246_vm0 = vcmask 130048   ;;  %vm249_vm1 = vcmask 123904   ;;  %vm255_vm2 = vcmask 122880   ;;  %v8505_v0 = vmov 0.0   ;;  %s11154_s19 = smov (!%p8554_p3, %s7126_s19), 1 }
   0xc   : > { %247 = vst.msk [vmem:[#allocation2] sm:$0xff] %vm246_vm0, %v8505_v0  ;;  %248 = vst.msk [vmem:[#allocation2 + $0x8] sm:$0xff] %vm246_vm0, %v8505_v0  ;;  %s7832_s21 = sshll.u32 %s11154_s19, 8  ;;  %vm517_vm3 = vcmask 125952   ;;  %vm774_vm4 = vcmask 257152   ;;  %vm1031_vm5 = vcmask 388352  }
   0xd   : > { %252 = vst.msk [vmem:[#allocation2 + $0x198] sm:$0xff] %vm246_vm0, %v8505_v0  ;;  %253 = vst.msk [vmem:[#allocation2 + $0x1a0] sm:$0xff] %vm246_vm0, %v8505_v0  ;;  %s8610_s24 = scalar_lea.vmem %s11146_s0, %s7832_s21  ;;  %vm1288_vm6 = vcmask 519552   ;;  %vm1545_vm7 = vcmask 650752   ;;  %vm1802_vm8 = vcmask 781952   ;;  %vm2060_vm9 = vcmask 913152  }
   0xe   : > { %250 = vst.msk [vmem:[#allocation2 + $0x10] sm:$0x3] %vm249_vm1, %v8505_v0  ;;  %254 = vst.msk [vmem:[#allocation2 + $0x1a8] sm:$0x3] %vm249_vm1, %v8505_v0  ;;  %v292_v1 = vld [vmem:[%s8610_s24] sm:$0xff]  ;;  %v294_v2 = vld [vmem:[%s8610_s24 + $0x10] sm:$0xff] }
   0xf   : > { %257 = vst.msk [vmem:[#allocation2 + $0x18] sm:$0x1] %vm255_vm2, %v8505_v0  ;;  %258 = vst.msk [vmem:[#allocation2 + $0x30] sm:$0x1] %vm255_vm2, %v8505_v0  ;;  %v293_v3 = vld [vmem:[%s8610_s24 + $0x8] sm:$0xff]  ;;  %v296_v4 = vld [vmem:[%s8610_s24 + $0x20] sm:$0xff] }
  0x10   : > { %259 = vst.msk [vmem:[#allocation2 + $0x48] sm:$0x1] %vm255_vm2, %v8505_v0  ;;  %260 = vst.msk [vmem:[#allocation2 + $0x60] sm:$0x1] %vm255_vm2, %v8505_v0  ;;  %v295_v5 = vld [vmem:[%s8610_s24 + $0x18] sm:$0xff]  ;;  %v298_v6 = vld [vmem:[%s8610_s24 + $0x30] sm:$0xff] }
  0x11   : > { %261 = vst.msk [vmem:[#allocation2 + $0x78] sm:$0x1] %vm255_vm2, %v8505_v0  ;;  %262 = vst.msk [vmem:[#allocation2 + $0x90] sm:$0x1] %vm255_vm2, %v8505_v0  ;;  %v297_v9 = vld [vmem:[%s8610_s24 + $0x28] sm:$0xff]  ;;  %v300_v11 = vld [vmem:[%s8610_s24 + $0x40] sm:$0xff] }
  0x12   : > { %263 = vst.msk [vmem:[#allocation2 + $0xa8] sm:$0x1] %vm255_vm2, %v8505_v0  ;;  %264 = vst.msk [vmem:[#allocation2 + $0xc0] sm:$0x1] %vm255_vm2, %v8505_v0  ;;  %v299_v12 = vld [vmem:[%s8610_s24 + $0x38] sm:$0xff]  ;;  %v302_v13 = vld [vmem:[%s8610_s24 + $0x50] sm:$0xff] }
  0x13   : > { %265 = vst.msk [vmem:[#allocation2 + $0xd8] sm:$0x1] %vm255_vm2, %v8505_v0  ;;  %266 = vst.msk [vmem:[#allocation2 + $0xf0] sm:$0x1] %vm255_vm2, %v8505_v0  ;;  %v550_v7 = vld [vmem:[#allocation2 + $0x1] sm:$0xff]  ;;  %v303_v16 = vld [vmem:[%s8610_s24 + $0x58] sm:$0xff] }
  0x14   : > { %267 = vst.msk [vmem:[#allocation2 + $0x108] sm:$0x1] %vm255_vm2, %v8505_v0  ;;  %268 = vst.msk [vmem:[#allocation2 + $0x120] sm:$0x1] %vm255_vm2, %v8505_v0  ;;  %v7867_v10 = vpack.c.bf16 %v550_v7, %v550_v7  ;;  %v301_v14 = vld [vmem:[%s8610_s24 + $0x48] sm:$0xff]  ;;  %v304_v15 = vld [vmem:[%s8610_s24 + $0x60] sm:$0xff] }
  0x15   : > { %269 = vst.msk [vmem:[#allocation2 + $0x138] sm:$0x1] %vm255_vm2, %v8505_v0  ;;  %270 = vst.msk [vmem:[#allocation2 + $0x150] sm:$0x1] %vm255_vm2, %v8505_v0  ;;  %v551_v8 = vld [vmem:[#allocation2 + $0x9] sm:$0xff]  ;;  %v308_v20 = vld [vmem:[%s8610_s24 + $0x80] sm:$0xff] }
  0x16   : > { %271 = vst.msk [vmem:[#allocation2 + $0x168] sm:$0x1] %vm255_vm2, %v8505_v0  ;;  %272 = vst.msk [vmem:[#allocation2 + $0x180] sm:$0x1] %vm255_vm2, %v8505_v0  ;;  %678 = vrot.lane.b32.xlu0 %v7867_v10, %s8506_s25  ;;  %v7868_v17 = vpack.c.bf16 %v551_v8, %v551_v8  ;;  %v306_v18 = vld [vmem:[%s8610_s24 + $0x70] sm:$0xff]  ;;  %v305_v19 = vld [vmem:[%s8610_s24 + $0x68] sm:$0xff] }
  0x17   : > { %275 = vst.msk [vmem:[#allocation2 + $0x29] sm:$0x1] %vm255_vm2, %v8505_v0  ;;  %276 = vst.msk [vmem:[#allocation2 + $0x41] sm:$0x1] %vm255_vm2, %v8505_v0  ;;  %v307_v21 = vld [vmem:[%s8610_s24 + $0x78] sm:$0xff]  ;;  %v309_v22 = vld [vmem:[%s8610_s24 + $0x88] sm:$0xff] }
  0x18   : > { %277 = vst.msk [vmem:[#allocation2 + $0x59] sm:$0x1] %vm255_vm2, %v8505_v0  ;;  %278 = vst.msk [vmem:[#allocation2 + $0x71] sm:$0x1] %vm255_vm2, %v8505_v0  ;;  %v358_v24 = vld [vmem:[#allocation2 + $0x8] sm:$0xff]  ;;  %vm2317_vm10 = vcmask 1044352  }
  0x19   : > { %279 = vst.msk [vmem:[#allocation2 + $0x89] sm:$0x1] %vm255_vm2, %v8505_v0  ;;  %280 = vst.msk [vmem:[#allocation2 + $0xa1] sm:$0x1] %vm255_vm2, %v8505_v0  ;;  %v8651_v29 = vpack.c.bf16 %v358_v24, %v358_v24  ;;  %vm6198_vm11 = vcmask 1041409   ;;  %vm6201_vm12 = vcmask 1042434  }
  0x1a   : > { %281 = vst.msk [vmem:[#allocation2 + $0xb9] sm:$0x1] %vm255_vm2, %v8505_v0  ;;  %282 = vst.msk [vmem:[#allocation2 + $0xd1] sm:$0x1] %vm255_vm2, %v8505_v0  ;;  %680 = vrot.lane.b32.xlu0 %v7868_v17, %s8506_s25  ;;  %vm6204_vm13 = vcmask 1043459   ;;  %vm6207_vm14 = vcmask 1044484  }
  0x1b   : > { %283 = vst.msk [vmem:[#allocation2 + $0xe9] sm:$0x1] %vm255_vm2, %v8505_v0  ;;  %284 = vst.msk [vmem:[#allocation2 + $0x101] sm:$0x1] %vm255_vm2, %v8505_v0  ;;  %vm6210_vm15 = vcmask 1045509  }
  0x1c   : > { %285 = vst.msk [vmem:[#allocation2 + $0x119] sm:$0x1] %vm255_vm2, %v8505_v0  ;;  %286 = vst.msk [vmem:[#allocation2 + $0x131] sm:$0x1] %vm255_vm2, %v8505_v0 }
  0x1d   : > { %287 = vst.msk [vmem:[#allocation2 + $0x149] sm:$0x1] %vm255_vm2, %v8505_v0  ;;  %288 = vst.msk [vmem:[#allocation2 + $0x161] sm:$0x1] %vm255_vm2, %v8505_v0 }
  0x1e   : > { %289 = vst.msk [vmem:[#allocation2 + $0x179] sm:$0x1] %vm255_vm2, %v8505_v0  ;;  %290 = vst.msk [vmem:[#allocation2 + $0x191] sm:$0x1] %vm255_vm2, %v8505_v0 }
  0x1f   : > { %256 = vst.msk [vmem:[#allocation2] sm:$0x1] %vm255_vm2, %v8505_v0  ;;  %273 = vst.msk [vmem:[#allocation2 + $0x198] sm:$0x1] %vm255_vm2, %v8505_v0 }
  0x20   : > { %274 = vst.msk [vmem:[#allocation2 + $0x11] sm:$0x1] %vm255_vm2, %v8505_v0  ;;  %291 = vst.msk [vmem:[#allocation2 + $0x1a9] sm:$0x1] %vm255_vm2, %v8505_v0  ;;  %vm6213_vm2 = vcmask 1046534  }
  0x21   : > { %325 = vst.msk [vmem:[#allocation2 + $0x19] sm:$0xff] %vm246_vm0, %v292_v1  ;;  %327 = vst.msk [vmem:[#allocation2 + $0x31] sm:$0xff] %vm246_vm0, %v294_v2 }
  0x22   : > { %326 = vst.msk [vmem:[#allocation2 + $0x21] sm:$0xff] %vm246_vm0, %v293_v3  ;;  %329 = vst.msk [vmem:[#allocation2 + $0x49] sm:$0xff] %vm246_vm0, %v296_v4 }
  0x23   : > { %328 = vst.msk [vmem:[#allocation2 + $0x39] sm:$0xff] %vm246_vm0, %v295_v5  ;;  %331 = vst.msk [vmem:[#allocation2 + $0x61] sm:$0xff] %vm246_vm0, %v298_v6 }
  0x24   : > { %330 = vst.msk [vmem:[#allocation2 + $0x51] sm:$0xff] %vm246_vm0, %v297_v9  ;;  %333 = vst.msk [vmem:[#allocation2 + $0x79] sm:$0xff] %vm246_vm0, %v300_v11 }
  0x25   : > { %332 = vst.msk [vmem:[#allocation2 + $0x69] sm:$0xff] %vm246_vm0, %v299_v12  ;;  %335 = vst.msk [vmem:[#allocation2 + $0x91] sm:$0xff] %vm246_vm0, %v302_v13 }
  0x26   : > { %334 = vst.msk [vmem:[#allocation2 + $0x81] sm:$0xff] %vm246_vm0, %v301_v14  ;;  %337 = vst.msk [vmem:[#allocation2 + $0xa9] sm:$0xff] %vm246_vm0, %v304_v15  ;;  %v357_v23 = vld [vmem:[#allocation2] sm:$0xff] }
  0x27   : > { %336 = vst.msk [vmem:[#allocation2 + $0x99] sm:$0xff] %vm246_vm0, %v303_v16  ;;  %339 = vst.msk [vmem:[#allocation2 + $0xc1] sm:$0xff] %vm246_vm0, %v306_v18  ;;  %v8649_v28 = vpack.c.bf16 %v357_v23, %v357_v23 }
  0x28   : > { %338 = vst.msk [vmem:[#allocation2 + $0xb1] sm:$0xff] %vm246_vm0, %v305_v19  ;;  %341 = vst.msk [vmem:[#allocation2 + $0xd9] sm:$0xff] %vm246_vm0, %v308_v20  ;;  %v552_v25 = vld [vmem:[#allocation2 + $0x19] sm:$0xff]  ;;  %v554_v26 = vld [vmem:[#allocation2 + $0x31] sm:$0xff] }
  0x29   : > { %340 = vst.msk [vmem:[#allocation2 + $0xc9] sm:$0xff] %vm246_vm0, %v307_v21  ;;  %342 = vst.msk [vmem:[#allocation2 + $0xe1] sm:$0xff] %vm246_vm0, %v309_v22  ;;  %v553_v27 = vld [vmem:[#allocation2 + $0x21] sm:$0xff]  ;;  %v8654_v30 = vpack.c.bf16 %v552_v25, %v552_v25  ;;  %v8656_v31 = vpack.c.bf16 %v554_v26, %v554_v26  ;;  %v556_v32 = vld [vmem:[#allocation2 + $0x49] sm:$0xff] }
  0x2a   : > { %v1064_v34 = vld [vmem:[#allocation2 + $0x18] sm:$0xff]  ;;  %518 = vst.msk [vmem:[#allocation3] sm:$0xf] %vm517_vm3, %v8649_v28  ;;  %519 = vst.msk [vmem:[#allocation3 + $0x8] sm:$0xf] %vm517_vm3, %v8651_v29  ;;  %v8664_v35 = vpack.c.bf16 %v553_v27, %v553_v27  ;;  %v8674_v42 = vpack.c.bf16 %v556_v32, %v556_v32  ;;  %v558_v45 = vld [vmem:[#allocation2 + $0x61] sm:$0xff] }
  0x2b   : > { %v2352_v33 = vld [vmem:[#allocation2 + $0x4a] sm:$0xff]  ;;  %682 = vrot.lane.b32.xlu1 %v8654_v30, %s8506_s25  ;;  %v8668_v38 = vpack.c.bf16 %v1064_v34, %v1064_v34  ;;  %v555_v39 = vld [vmem:[#allocation2 + $0x39] sm:$0xff]  ;;  %686 = vrot.lane.b32.xlu0 %v8656_v31, %s8506_s25  ;;  %v8696_v55 = vpack.c.bf16 %v558_v45, %v558_v45 }
  0x2c   : > { %v8666_v36 = vpack.c.bf16 %v2352_v33, %v2352_v33  ;;  %v2354_v37 = vld [vmem:[#allocation2 + $0x62] sm:$0xff]  ;;  %v8688_v48 = vpack.c.bf16 %v555_v39, %v555_v39  ;;  %v557_v51 = vld [vmem:[#allocation2 + $0x51] sm:$0xff]  ;;  %v560_v56 = vld [vmem:[#allocation2 + $0x79] sm:$0xff] }
  0x2d   : > { %v8670_v40 = vpack.c.bf16 %v2354_v37, %v2354_v37  ;;  %v2356_v41 = vld [vmem:[#allocation2 + $0x7a] sm:$0xff]  ;;  %520 = vst.msk [vmem:[#allocation3 + $0x10] sm:$0xf] %vm517_vm3, %v8668_v38  ;;  %v1836_v59 = vld [vmem:[#allocation2 + $0x30] sm:$0xff]  ;;  %v1838_v0 = vld [vmem:[#allocation2 + $0x48] sm:$0xff]  ;;  %v8706_v1 = vpack.c.bf16 %v557_v51, %v557_v51  ;;  %v8727_v15 = vpack.c.bf16 %v560_v56, %v560_v56 }
  0x2e   : > { %v8676_v43 = vpack.c.bf16 %v2356_v41, %v2356_v41  ;;  %v2358_v44 = vld [vmem:[#allocation2 + $0x92] sm:$0xff]  ;;  %2512 = vst.msk [vmem:[#allocation3 + $0x14] sm:$0xf] %vm517_vm3, %v8666_v36  ;;  %v1065_v54 = vld [vmem:[#allocation2 + $0x20] sm:$0xff]  ;;  %v559_v60 = vld [vmem:[#allocation2 + $0x69] sm:$0xff]  ;;  %v8701_v61 = vpack.c.bf16 %v1836_v59, %v1836_v59  ;;  %v8712_v4 = vpack.c.bf16 %v1838_v0, %v1838_v0 }
  0x2f   : > { %v8682_v46 = vpack.c.bf16 %v2358_v44, %v2358_v44  ;;  %v2360_v47 = vld [vmem:[#allocation2 + $0xaa] sm:$0xff]  ;;  %2514 = vst.msk [vmem:[#allocation3 + $0x24] sm:$0xf] %vm517_vm3, %v8670_v40  ;;  %684 = vrot.lane.b32.xlu1 %v8664_v35, %s8506_s25  ;;  %690 = vrot.lane.b32.xlu0 %v8674_v42, %s8506_s25  ;;  %v8698_v58 = vpack.c.bf16 %v1065_v54, %v1065_v54  ;;  %v1837_v62 = vld [vmem:[#allocation2 + $0x38] sm:$0xff]  ;;  %v1840_v7 = vld [vmem:[#allocation2 + $0x60] sm:$0xff] }
  0x30   : > { %v8101_v49 = vpack.c.bf16 %v2360_v47, %v2360_v47  ;;  %v2362_v50 = vld [vmem:[#allocation2 + $0xc2] sm:$0xff]  ;;  %2516 = vst.msk [vmem:[#allocation3 + $0x34] sm:$0xf] %vm517_vm3, %v8676_v43  ;;  %v2364_v53 = vld [vmem:[#allocation2 + $0xda] sm:$0xff]  ;;  %v1580_v63 = vld [vmem:[#allocation2 + $0x32] sm:$0xff]  ;;  %v8708_v2 = vpack.c.bf16 %v1837_v62, %v1837_v62  ;;  %v8721_v11 = vpack.c.bf16 %v1840_v7, %v1840_v7  ;;  %v8755_v33 = vpack.c.bf16 %v559_v60, %v559_v60 }
  0x31   : > { %v8103_v52 = vpack.c.bf16 %v2362_v50, %v2362_v50  ;;  %2518 = vst.msk [vmem:[#allocation3 + $0x44] sm:$0xf] %vm517_vm3, %v8682_v46  ;;  %v8105_v57 = vpack.c.bf16 %v2364_v53, %v2364_v53  ;;  %v8710_v3 = vpack.c.bf16 %v1580_v63, %v1580_v63  ;;  %v1581_v5 = vld [vmem:[#allocation2 + $0x3a] sm:$0xff]  ;;  %v1839_v6 = vld [vmem:[#allocation2 + $0x50] sm:$0xff]  ;;  %521 = vst.msk [vmem:[#allocation3 + $0x18] sm:$0xf] %vm517_vm3, %v8698_v58 }
  0x32   : > { %2520 = vst.msk [vmem:[#allocation3 + $0x54] sm:$0xf] %vm517_vm3, %v8101_v49  ;;  %v562_v8 = vld [vmem:[#allocation2 + $0x91] sm:$0xff]  ;;  %v8717_v9 = vpack.c.bf16 %v1581_v5, %v1581_v5  ;;  %v8719_v10 = vpack.c.bf16 %v1839_v6, %v1839_v6  ;;  %v1841_v13 = vld [vmem:[#allocation2 + $0x68] sm:$0xff]  ;;  %522 = vst.msk [vmem:[#allocation3 + $0x20] sm:$0xf] %vm517_vm3, %v8701_v61 }
  0x33   : > { %2522 = vst.msk [vmem:[#allocation3 + $0x64] sm:$0xf] %vm517_vm3, %v8103_v52  ;;  %688 = vrot.lane.b32.xlu1 %v8688_v48, %s8506_s25  ;;  %2524 = vst.msk [vmem:[#allocation3 + $0x74] sm:$0xf] %vm517_vm3, %v8105_v57  ;;  %v1583_v12 = vld [vmem:[#allocation2 + $0x52] sm:$0xff]  ;;  %694 = vrot.lane.b32.xlu0 %v8696_v55, %s8506_s25  ;;  %v8731_v17 = vpack.c.bf16 %v1841_v13, %v1841_v13  ;;  %v1585_v19 = vld [vmem:[#allocation2 + $0x6a] sm:$0xff]  ;;  %v8779_v47 = vpack.c.bf16 %v562_v8, %v562_v8 }
  0x34   : > { %v1842_v14 = vld [vmem:[#allocation2 + $0x78] sm:$0xff]  ;;  %v8729_v16 = vpack.c.bf16 %v1583_v12, %v1583_v12  ;;  %524 = vst.msk [vmem:[#allocation3 + $0x30] sm:$0xf] %vm517_vm3, %v8712_v4  ;;  %523 = vst.msk [vmem:[#allocation3 + $0x28] sm:$0xf] %vm517_vm3, %v8708_v2  ;;  %v1843_v20 = vld [vmem:[#allocation2 + $0x80] sm:$0xff]  ;;  %v8743_v23 = vpack.c.bf16 %v1585_v19, %v1585_v19 }
  0x35   : > { %v8735_v18 = vpack.c.bf16 %v1842_v14, %v1842_v14  ;;  %v369_v21 = vld [vmem:[#allocation2 + $0x90] sm:$0xff]  ;;  %2510 = vst.msk [vmem:[#allocation3 + $0x4] sm:$0xf] %vm517_vm3, %v8710_v3  ;;  %v561_v22 = vld [vmem:[#allocation2 + $0x81] sm:$0xff]  ;;  %526 = vst.msk [vmem:[#allocation3 + $0x40] sm:$0xf] %vm517_vm3, %v8721_v11  ;;  %v8747_v24 = vpack.c.bf16 %v1843_v20, %v1843_v20 }
  0x36   : > { %525 = vst.msk [vmem:[#allocation3 + $0x38] sm:$0xf] %vm517_vm3, %v8719_v10  ;;  %v8749_v25 = vpack.c.bf16 %v369_v21, %v369_v21  ;;  %v371_v26 = vld [vmem:[#allocation2 + $0xa8] sm:$0xff]  ;;  %v370_v27 = vld [vmem:[#allocation2 + $0x98] sm:$0xff]  ;;  %v373_v32 = vld [vmem:[#allocation2 + $0xc0] sm:$0xff]  ;;  %v8791_v52 = vpack.c.bf16 %v561_v22, %v561_v22  ;;  %v8507_v8 = vmov 0  }
  0x37   : > { %2511 = vst.msk [vmem:[#allocation3 + $0xc] sm:$0xf] %vm517_vm3, %v8717_v9  ;;  %692 = vrot.lane.b32.xlu1 %v8706_v1, %s8506_s25  ;;  %2513 = vst.msk [vmem:[#allocation3 + $0x1c] sm:$0xf] %vm517_vm3, %v8729_v16  ;;  %v8763_v34 = vpack.c.bf16 %v371_v26, %v371_v26  ;;  %v8765_v37 = vpack.c.bf16 %v370_v27, %v370_v27  ;;  %v8767_v39 = vpack.c.bf16 %v373_v32, %v373_v32  ;;  %v372_v41 = vld [vmem:[#allocation2 + $0xb0] sm:$0xff]  ;;  %v563_v49 = vld [vmem:[#allocation2 + $0x99] sm:$0xff] }
  0x38   : > { %528 = vst.msk [vmem:[#allocation3 + $0x50] sm:$0xf] %vm517_vm3, %v8735_v18  ;;  %527 = vst.msk [vmem:[#allocation3 + $0x48] sm:$0xf] %vm517_vm3, %v8731_v17  ;;  %v564_v44 = vld [vmem:[#allocation2 + $0xa9] sm:$0xff]  ;;  %v8775_v45 = vpack.c.bf16 %v372_v41, %v372_v41  ;;  %698 = vrot.lane.b32.xlu0 %v8727_v15, %s8506_s25  ;;  %v375_v50 = vld [vmem:[#allocation2 + $0xd8] sm:$0xff]  ;;  %v8809_v0 = vpack.c.bf16 %v563_v49, %v563_v49  ;;  %2838 = vmatprep.subr.bf16.mxu0 %v8507_v8 }
  0x39   : > { %2515 = vst.msk [vmem:[#allocation3 + $0x2c] sm:$0xf] %vm517_vm3, %v8743_v23  ;;  %530 = vst.msk [vmem:[#allocation3 + $0x60] sm:$0xf] %vm517_vm3, %v8749_v25  ;;  %v374_v51 = vld [vmem:[#allocation2 + $0xc8] sm:$0xff]  ;;  %v8793_v53 = vpack.c.bf16 %v375_v50, %v375_v50  ;;  %v8799_v59 = vpack.c.bf16 %v564_v44, %v564_v44  ;;  %v565_v62 = vld [vmem:[#allocation2 + $0xb1] sm:$0xff]  ;;  %5609 = vmatprep.subr.bf16.mxu1 %v8507_v8  ;;  %8428 = vset.pattern.permute.xlu1 %v8507_v8 }
  0x3a   : > { %529 = vst.msk [vmem:[#allocation3 + $0x58] sm:$0xf] %vm517_vm3, %v8747_v24  ;;  %532 = vst.msk [vmem:[#allocation3 + $0x70] sm:$0xf] %vm517_vm3, %v8763_v34  ;;  %v8795_v54 = vpack.c.bf16 %v374_v51, %v374_v51  ;;  %v566_v56 = vld [vmem:[#allocation2 + $0xc1] sm:$0xff]  ;;  %v8430_v6 = vld [vmem:[%s11148_s2 + $0x38] sm:$0xff]   ;;  %v8826_v13 = vpack.c.bf16 %v565_v62, %v565_v62  ;;  %8429 = vset.pattern.permute.xlu0 %v8507_v8 }
  0x3b   : > { %531 = vst.msk [vmem:[#allocation3 + $0x68] sm:$0xf] %vm517_vm3, %v8765_v37  ;;  %534 = vst.msk [vmem:[#allocation3 + $0x80] sm:$0xf] %vm517_vm3, %v8767_v39  ;;  %696 = vrot.lane.b32.xlu1 %v8755_v33, %s8506_s25  ;;  %v1587_v57 = vld [vmem:[#allocation2 + $0x82] sm:$0xff]  ;;  %v7883_v7 = vpack.c.bf16 %v566_v56, %v566_v56  ;;  %v568_v12 = vld [vmem:[#allocation2 + $0xd9] sm:$0xff]  ;;  %2839 = vmatpush1.bf16.msra.mxu0 %v8430_v6 }
  0x3c   : > { %533 = vst.msk [vmem:[#allocation3 + $0x78] sm:$0xf] %vm517_vm3, %v8775_v45  ;;  %702 = vrot.lane.b32.xlu0 %v8779_v47, %s8506_s25  ;;  %536 = vst.msk [vmem:[#allocation3 + $0x90] sm:$0xf] %vm517_vm3, %v8793_v53  ;;  %v8805_v60 = vpack.c.bf16 %v1587_v57, %v1587_v57  ;;  %v376_v63 = vld [vmem:[#allocation2 + $0xe0] sm:$0xff]  ;;  %2840 = vmatprep.subr.bf16.mxu0 %v8507_v8  ;;  %v567_v14 = vld [vmem:[#allocation2 + $0xc9] sm:$0xff]  ;;  %v7885_v20 = vpack.c.bf16 %v568_v12, %v568_v12 }
  0x3d   : > { %535 = vst.msk [vmem:[#allocation3 + $0x88] sm:$0xf] %vm517_vm3, %v8795_v54  ;;  %v8813_v5 = vpack.c.bf16 %v376_v63, %v376_v63  ;;  %v8431_v19 = vld [vmem:[%s11148_s2 + $0x30] sm:$0xff]   ;;  %v807_v21 = vld [vmem:[#allocation2 + $0x2] sm:$0xff]  ;;  %v7884_v22 = vpack.c.bf16 %v567_v14, %v567_v14  ;;  %v8434_v51 = vld [vmem:[%s11148_s2 + $0x18] sm:$0xff]  }
  0x3e   : > { %2517 = vst.msk [vmem:[#allocation3 + $0x3c] sm:$0xf] %vm517_vm3, %v8805_v60  ;;  %v569_v26 = vld [vmem:[#allocation2 + $0xe1] sm:$0xff]  ;;  %v7899_v32 = vpack.c.bf16 %v807_v21, %v807_v21  ;;  %v808_v44 = vld [vmem:[#allocation2 + $0xa] sm:$0xff]  ;;  %v1591_v12 = vld [vmem:[#allocation2 + $0xb2] sm:$0xff] }
  0x3f   : > { %700 = vrot.lane.b32.xlu1 %v8791_v52, %s8506_s25  ;;  %537 = vst.msk [vmem:[#allocation3 + $0x98] sm:$0xf] %vm517_vm3, %v8813_v5  ;;  %2841 = vmatpush1.bf16.msra.mxu0 %v8431_v19  ;;  %v8432_v27 = vld [vmem:[%s11148_s2 + $0x28] sm:$0xff]   ;;  %v7886_v41 = vpack.c.bf16 %v569_v26, %v569_v26  ;;  %v8433_v49 = vld [vmem:[%s11148_s2 + $0x20] sm:$0xff]   ;;  %v7900_v50 = vpack.c.bf16 %v808_v44, %v808_v44  ;;  %v8435_v57 = vld [vmem:[%s11148_s2 + $0x10] sm:$0xff]  }
  0x40   : > { %706 = vrot.lane.b32.xlu0 %v8799_v59, %s8506_s25  ;;  %2842 = vmatprep.subr.bf16.mxu0 %v8507_v8  ;;  %v1578_v56 = vld [vmem:[#allocation2 + $0x1a] sm:$0xff]  ;;  %v8898_v14 = vpack.c.bf16 %v1591_v12, %v1591_v12  ;;  %v314_v12 = vld [vmem:[%s8610_s24 + $0xb0] sm:$0xff] }
  0x41   : > { %v1589_v62 = vld [vmem:[#allocation2 + $0x9a] sm:$0xff]  ;;  %v7995_v63 = vpack.c.bf16 %v1578_v56, %v1578_v56  ;;  %347 = vst.msk [vmem:[#allocation2 + $0x121] sm:$0xff] %vm246_vm0, %v314_v12 }
  0x42   : > { %v8862_v6 = vpack.c.bf16 %v1589_v62, %v1589_v62  ;;  %2521 = vst.msk [vmem:[#allocation3 + $0x5c] sm:$0xf] %vm517_vm3, %v8898_v14 }
  0x43   : > { %704 = vrot.lane.b32.xlu1 %v8809_v0, %s8506_s25  ;;  %2843 = vmatpush1.bf16.msra.mxu0 %v8432_v27 }
  0x44   : > { %710 = vrot.lane.b32.xlu0 %v7883_v7, %s8506_s25  ;;  %2844 = vmatprep.subr.bf16.mxu0 %v8507_v8  ;;  %2519 = vst.msk [vmem:[#allocation3 + $0x4c] sm:$0xf] %vm517_vm3, %v8862_v6  ;;  %v8436_v7 = vld [vmem:[%s11148_s2 + $0x8] sm:$0xff]  }
  0x47   : > { %708 = vrot.lane.b32.xlu1 %v8826_v13, %s8506_s25  ;;  %2845 = vmatpush1.bf16.msra.mxu0 %v8433_v49  ;;  %v313_v49 = vld [vmem:[%s8610_s24 + $0xa8] sm:$0xff] }
  0x48   : > { %714 = vrot.lane.b32.xlu0 %v7885_v20, %s8506_s25  ;;  %2846 = vmatprep.subr.bf16.mxu0 %v8507_v8  ;;  %346 = vst.msk [vmem:[#allocation2 + $0x111] sm:$0xff] %vm246_vm0, %v313_v49  ;;  %v1590_v49 = vld [vmem:[#allocation2 + $0xaa] sm:$0xff] }
  0x4b   : > { %712 = vrot.lane.b32.xlu1 %v7884_v22, %s8506_s25  ;;  %2847 = vmatpush1.bf16.msra.mxu0 %v8434_v51  ;;  %v312_v22 = vld [vmem:[%s8610_s24 + $0xa0] sm:$0xff] }
  0x4c   : > { %935 = vrot.lane.b32.xlu0 %v7899_v32, %s8508_s9  ;;  %2848 = vmatprep.subr.bf16.mxu0 %v8507_v8  ;;  %345 = vst.msk [vmem:[#allocation2 + $0x109] sm:$0xff] %vm246_vm0, %v312_v22 }
  0x4f   : > { %716 = vrot.lane.b32.xlu1 %v7886_v41, %s8506_s25  ;;  %2849 = vmatpush1.bf16.msra.mxu0 %v8435_v57 }
  0x50   : > { %1192 = vrot.lane.b32.xlu0 %v8668_v38, %s8509_s12  ;;  %2850 = vmatprep.subr.bf16.mxu0 %v8507_v8  ;;  %v1579_v38 = vld [vmem:[#allocation2 + $0x22] sm:$0xff] }
  0x53   : > { %937 = vrot.lane.b32.xlu1 %v7900_v50, %s8508_s9  ;;  %2851 = vmatpush1.bf16.msra.mxu0 %v8436_v7 }
  0x54   : > { %1449 = vrot.lane.b32.xlu0 %v8654_v30, %s8510_s15  ;;  %v7996_v30 = vpack.c.bf16 %v1579_v38, %v1579_v38  ;;  %2852 = vmatprep.subr.bf16.mxu0 %v8507_v8 }
  0x57   : > { %1194 = vrot.lane.b32.xlu1 %v8698_v58, %s8509_s12  ;;  %v8437_v58 = vld [vmem:[%s11148_s2] sm:$0xff]  }
  0x58   : > { %1706 = vrot.lane.b32.xlu0 %v7995_v63, %s8511_s20  ;;  %2853 = vmatpush1.bf16.msra.mxu0 %v8437_v58 }
  0x59   : > { %2868 = vmatprep.subr.bf16.mxu0 %v8507_v8 }
  0x5b   : > { %1451 = vrot.lane.b32.xlu1 %v8664_v35, %s8510_s15  ;;  %v8438_v35 = vld [vmem:[%s11148_s2 + $0x40] sm:$0xff]  }
  0x5c   : > { %1964 = vrot.lane.b32.xlu0 %v8701_v61, %s8512_s23  ;;  %2869 = vmatpush2.bf16.msra.mxu0 %v8438_v35 }
  0x5f   : > { %1708 = vrot.lane.b32.xlu1 %v7996_v30, %s8511_s20 }
  0x60   : > { %2221 = vrot.lane.b32.xlu0 %v8656_v31, %s8513_s28 }
  0x63   : > { %1966 = vrot.lane.b32.xlu1 %v8708_v2, %s8512_s23 }
  0x64   : > { %939 = vrot.lane.b32.xlu0 %v7995_v63, %s8508_s9 }
  0x67   : > { %2223 = vrot.lane.b32.xlu1 %v8688_v48, %s8513_s28 }
  0x68   : > { %1196 = vrot.lane.b32.xlu0 %v8701_v61, %s8509_s12 }
  0x6b   : > { %941 = vrot.lane.b32.xlu1 %v7996_v30, %s8508_s9 }
  0x6c   : > { %1453 = vrot.lane.b32.xlu0 %v8656_v31, %s8510_s15  ;;  %v1593_v31 = vld [vmem:[#allocation2 + $0xca] sm:$0xff] }
  0x6f   : > { %1198 = vrot.lane.b32.xlu1 %v8708_v2, %s8509_s12 }
  0x70   : > { %1710 = vrot.lane.b32.xlu0 %v8710_v3, %s8511_s20 }
  0x73   : > { %1455 = vrot.lane.b32.xlu1 %v8688_v48, %s8510_s15  ;;  %v8926_v48 = vpack.c.bf16 %v1593_v31, %v1593_v31 }
  0x74   : > { %1968 = vrot.lane.b32.xlu0 %v8712_v4, %s8512_s23 }
  0x75   : > { %2523 = vst.msk [vmem:[#allocation3 + $0x6c] sm:$0xf] %vm517_vm3, %v8926_v48 }
  0x77   : > { %1712 = vrot.lane.b32.xlu1 %v8717_v9, %s8511_s20 }
  0x78   : > { %2225 = vrot.lane.b32.xlu0 %v8674_v42, %s8513_s28 }
  0x7b   : > { %1970 = vrot.lane.b32.xlu1 %v8719_v10, %s8512_s23 }
  0x7c   : > { %943 = vrot.lane.b32.xlu0 %v8710_v3, %s8508_s9 }
  0x7f   : > { %2227 = vrot.lane.b32.xlu1 %v8706_v1, %s8513_s28 }
  0x80   : > { %1200 = vrot.lane.b32.xlu0 %v8712_v4, %s8509_s12 }
  0x83   : > { %945 = vrot.lane.b32.xlu1 %v8717_v9, %s8508_s9 }
  0x84   : > { %1457 = vrot.lane.b32.xlu0 %v8674_v42, %s8510_s15  ;;  %v310_v42 = vld [vmem:[%s8610_s24 + $0x90] sm:$0xff] }
  0x85   : > { %343 = vst.msk [vmem:[#allocation2 + $0xf1] sm:$0xff] %vm246_vm0, %v310_v42  ;;  %v2368_v42 = vld [vmem:[#allocation2 + $0x10a] sm:$0xff] }
  0x87   : > { %1202 = vrot.lane.b32.xlu1 %v8719_v10, %s8509_s12 }
  0x88   : > { %1714 = vrot.lane.b32.xlu0 %v8666_v36, %s8511_s20  ;;  %v679_v61 = vpop.permute.xlu0 %678 }
  0x89   : > { %775 = vst.msk [vmem:[#allocation3] sm:$0xf] %vm774_vm4, %v679_v61 }
  0x8b   : > { %1459 = vrot.lane.b32.xlu1 %v8706_v1, %s8510_s15  ;;  %v311_v1 = vld [vmem:[%s8610_s24 + $0x98] sm:$0xff] }
  0x8c   : > { %1972 = vrot.lane.b32.xlu0 %v8721_v11, %s8512_s23  ;;  %344 = vst.msk [vmem:[#allocation2 + $0xf9] sm:$0xff] %vm246_vm0, %v311_v1  ;;  %v1852_v2 = vld [vmem:[#allocation2 + $0xf0] sm:$0xff]  ;;  %v681_v3 = vpop.permute.xlu0 %680  ;;  %v9063_v1 = vpack.c.bf16 %v2368_v42, %v2368_v42 }
  0x8d   : > { %v8957_v4 = vpack.c.bf16 %v1852_v2, %v1852_v2  ;;  %776 = vst.msk [vmem:[#allocation3 + $0x8] sm:$0xf] %vm774_vm4, %v681_v3  ;;  %v315_v2 = vld [vmem:[%s8610_s24 + $0xb8] sm:$0xff] }
  0x8e   : > { %348 = vst.msk [vmem:[#allocation2 + $0x129] sm:$0xff] %vm246_vm0, %v315_v2 }
  0x8f   : > { %1716 = vrot.lane.b32.xlu1 %v8729_v16, %s8511_s20  ;;  %538 = vst.msk [vmem:[#allocation3 + $0xa0] sm:$0xf] %vm517_vm3, %v8957_v4  ;;  %2528 = vst.msk [vmem:[#allocation3 + $0x94] sm:$0xf] %vm517_vm3, %v9063_v1 }
  0x90   : > { %2229 = vrot.lane.b32.xlu0 %v8696_v55, %s8513_s28 }
  0x93   : > { %1974 = vrot.lane.b32.xlu1 %v8731_v17, %s8512_s23  ;;  %v2366_v27 = vld [vmem:[#allocation2 + $0xf2] sm:$0xff]  ;;  %v1597_v57 = vld [vmem:[#allocation2 + $0xfa] sm:$0xff] }
  0x94   : > { %947 = vrot.lane.b32.xlu0 %v8666_v36, %s8508_s9  ;;  %v1595_v36 = vld [vmem:[#allocation2 + $0xe2] sm:$0xff]  ;;  %v9001_v44 = vpack.c.bf16 %v2366_v27, %v2366_v27  ;;  %v9018_v62 = vpack.c.bf16 %v1597_v57, %v1597_v57 }
  0x95   : > { %v8962_v10 = vpack.c.bf16 %v1595_v36, %v1595_v36 }
  0x96   : > { %2526 = vst.msk [vmem:[#allocation3 + $0x84] sm:$0xf] %vm517_vm3, %v9001_v44  ;;  %2527 = vst.msk [vmem:[#allocation3 + $0x8c] sm:$0xf] %vm517_vm3, %v9018_v62 }
  0x97   : > { %2231 = vrot.lane.b32.xlu1 %v8755_v33, %s8513_s28  ;;  %2525 = vst.msk [vmem:[#allocation3 + $0x7c] sm:$0xf] %vm517_vm3, %v8962_v10 }
  0x98   : > { %1204 = vrot.lane.b32.xlu0 %v8721_v11, %s8509_s12 }
  0x9b   : > { %949 = vrot.lane.b32.xlu1 %v8729_v16, %s8508_s9  ;;  %v1853_v16 = vld [vmem:[#allocation2 + $0xf8] sm:$0xff] }
  0x9c   : > { %1461 = vrot.lane.b32.xlu0 %v8696_v55, %s8510_s15  ;;  %v8974_v19 = vpack.c.bf16 %v1853_v16, %v1853_v16 }
  0x9d   : > { %v683_v9 = vpop.permute.xlu1 %682  ;;  %v687_v11 = vpop.permute.xlu0 %686 }
  0x9e   : > { %777 = vst.msk [vmem:[#allocation3 + $0x10] sm:$0xf] %vm774_vm4, %v683_v9  ;;  %779 = vst.msk [vmem:[#allocation3 + $0x20] sm:$0xf] %vm774_vm4, %v687_v11  ;;  %v1599_v9 = vld [vmem:[#allocation2 + $0x112] sm:$0xff] }
  0x9f   : > { %1206 = vrot.lane.b32.xlu1 %v8731_v17, %s8509_s12  ;;  %539 = vst.msk [vmem:[#allocation3 + $0xa8] sm:$0xf] %vm517_vm3, %v8974_v19  ;;  %v9080_v11 = vpack.c.bf16 %v1599_v9, %v1599_v9 }
  0xa0   : > { %1718 = vrot.lane.b32.xlu0 %v8670_v40, %s8511_s20 }
  0xa1   : > { %v685_v55 = vpop.permute.xlu1 %684  ;;  %v691_v20 = vpop.permute.xlu0 %690  ;;  %2529 = vst.msk [vmem:[#allocation3 + $0x9c] sm:$0xf] %vm517_vm3, %v9080_v11 }
  0xa2   : > { %778 = vst.msk [vmem:[#allocation3 + $0x18] sm:$0xf] %vm774_vm4, %v685_v55  ;;  %781 = vst.msk [vmem:[#allocation3 + $0x30] sm:$0xf] %vm774_vm4, %v691_v20 }
  0xa3   : > { %1463 = vrot.lane.b32.xlu1 %v8755_v33, %s8510_s15 }
  0xa4   : > { %1976 = vrot.lane.b32.xlu0 %v8735_v18, %s8512_s23 }
  0xa5   : > { %v689_v17 = vpop.permute.xlu1 %688  ;;  %v695_v21 = vpop.permute.xlu0 %694 }
  0xa6   : > { %780 = vst.msk [vmem:[#allocation3 + $0x28] sm:$0xf] %vm774_vm4, %v689_v17  ;;  %783 = vst.msk [vmem:[#allocation3 + $0x40] sm:$0xf] %vm774_vm4, %v695_v21 }
  0xa7   : > { %1720 = vrot.lane.b32.xlu1 %v8743_v23, %s8511_s20 }
  0xa8   : > { %2233 = vrot.lane.b32.xlu0 %v8727_v15, %s8513_s28 }
  0xa9   : > { %v693_v33 = vpop.permute.xlu1 %692 }
  0xaa   : > { %782 = vst.msk [vmem:[#allocation3 + $0x38] sm:$0xf] %vm774_vm4, %v693_v33  ;;  %v699_v26 = vpop.permute.xlu0 %698 }
  0xab   : > { %1978 = vrot.lane.b32.xlu1 %v8747_v24, %s8512_s23  ;;  %785 = vst.msk [vmem:[#allocation3 + $0x50] sm:$0xf] %vm774_vm4, %v699_v26 }
  0xac   : > { %951 = vrot.lane.b32.xlu0 %v8670_v40, %s8508_s9  ;;  %v1854_v40 = vld [vmem:[#allocation2 + $0x108] sm:$0xff] }
  0xad   : > { %v697_v32 = vpop.permute.xlu1 %696  ;;  %v9013_v56 = vpack.c.bf16 %v1854_v40, %v1854_v40 }
  0xae   : > { %784 = vst.msk [vmem:[#allocation3 + $0x48] sm:$0xf] %vm774_vm4, %v697_v32  ;;  %v703_v41 = vpop.permute.xlu0 %702 }
  0xaf   : > { %2235 = vrot.lane.b32.xlu1 %v8791_v52, %s8513_s28  ;;  %787 = vst.msk [vmem:[#allocation3 + $0x60] sm:$0xf] %vm774_vm4, %v703_v41 }
  0xb0   : > { %1208 = vrot.lane.b32.xlu0 %v8735_v18, %s8509_s12  ;;  %540 = vst.msk [vmem:[#allocation3 + $0xb0] sm:$0xf] %vm517_vm3, %v9013_v56 }
  0xb1   : > { %v701_v50 = vpop.permute.xlu1 %700 }
  0xb2   : > { %786 = vst.msk [vmem:[#allocation3 + $0x58] sm:$0xf] %vm774_vm4, %v701_v50  ;;  %v707_v51 = vpop.permute.xlu0 %706  ;;  %v316_v50 = vld [vmem:[%s8610_s24 + $0xc0] sm:$0xff] }
  0xb3   : > { %953 = vrot.lane.b32.xlu1 %v8743_v23, %s8508_s9  ;;  %789 = vst.msk [vmem:[#allocation3 + $0x70] sm:$0xf] %vm774_vm4, %v707_v51  ;;  %v1855_v23 = vld [vmem:[#allocation2 + $0x110] sm:$0xff]  ;;  %v8007_v51 = vpack.c.bf16 %v1590_v49, %v1590_v49 }
  0xb4   : > { %1465 = vrot.lane.b32.xlu0 %v8727_v15, %s8510_s15  ;;  %v9030_v38 = vpack.c.bf16 %v1855_v23, %v1855_v23  ;;  %349 = vst.msk [vmem:[#allocation2 + $0x139] sm:$0xff] %vm246_vm0, %v316_v50 }
  0xb5   : > { %v705_v18 = vpop.permute.xlu1 %704 }
  0xb6   : > { %788 = vst.msk [vmem:[#allocation3 + $0x68] sm:$0xf] %vm774_vm4, %v705_v18  ;;  %v711_v63 = vpop.permute.xlu0 %710 }
  0xb7   : > { %1210 = vrot.lane.b32.xlu1 %v8747_v24, %s8509_s12  ;;  %791 = vst.msk [vmem:[#allocation3 + $0x80] sm:$0xf] %vm774_vm4, %v711_v63  ;;  %v317_v63 = vld [vmem:[%s8610_s24 + $0xc8] sm:$0xff] }
  0xb8   : > { %1722 = vrot.lane.b32.xlu0 %v8676_v43, %s8511_s20  ;;  %541 = vst.msk [vmem:[#allocation3 + $0xb8] sm:$0xf] %vm517_vm3, %v9030_v38 }
  0xb9   : > { %v709_v15 = vpop.permute.xlu1 %708  ;;  %350 = vst.msk [vmem:[#allocation2 + $0x141] sm:$0xff] %vm246_vm0, %v317_v63  ;;  %v1594_v63 = vld [vmem:[#allocation2 + $0xda] sm:$0xff] }
  0xba   : > { %790 = vst.msk [vmem:[#allocation3 + $0x78] sm:$0xf] %vm774_vm4, %v709_v15  ;;  %v715_v7 = vpop.permute.xlu0 %714  ;;  %v2105_v15 = vld [vmem:[#allocation2 + $0xc1] sm:$0xff] }
  0xbb   : > { %1467 = vrot.lane.b32.xlu1 %v8791_v52, %s8510_s15  ;;  %793 = vst.msk [vmem:[#allocation3 + $0x90] sm:$0xf] %vm774_vm4, %v715_v7 }
  0xbc   : > { %1980 = vrot.lane.b32.xlu0 %v8749_v25, %s8512_s23 }
  0xbd   : > { %v713_v24 = vpop.permute.xlu1 %712 }
  0xbe   : > { %792 = vst.msk [vmem:[#allocation3 + $0x88] sm:$0xf] %vm774_vm4, %v713_v24  ;;  %v936_v30 = vpop.permute.xlu0 %935 }
  0xbf   : > { %1724 = vrot.lane.b32.xlu1 %v8805_v60, %s8511_s20  ;;  %1032 = vst.msk [vmem:[#allocation3] sm:$0xf] %vm1031_vm5, %v936_v30  ;;  %v8071_v30 = vpack.c.bf16 %v2105_v15, %v2105_v15 }
  0xc0   : > { %2237 = vrot.lane.b32.xlu0 %v8779_v47, %s8513_s28 }
  0xc1   : > { %v717_v52 = vpop.permute.xlu1 %716 }
  0xc2   : > { %794 = vst.msk [vmem:[#allocation3 + $0x98] sm:$0xf] %vm774_vm4, %v717_v52  ;;  %v1193_v58 = vpop.permute.xlu0 %1192 }
  0xc3   : > { %1982 = vrot.lane.b32.xlu1 %v8765_v37, %s8512_s23  ;;  %1289 = vst.msk [vmem:[#allocation3] sm:$0xf] %vm1288_vm6, %v1193_v58 }
  0xc4   : > { %955 = vrot.lane.b32.xlu0 %v8676_v43, %s8508_s9 }
  0xc5   : > { %v938_v35 = vpop.permute.xlu1 %937 }
  0xc6   : > { %1033 = vst.msk [vmem:[#allocation3 + $0x8] sm:$0xf] %vm1031_vm5, %v938_v35  ;;  %v1450_v31 = vpop.permute.xlu0 %1449  ;;  %v2106_v35 = vld [vmem:[#allocation2 + $0xc9] sm:$0xff] }
  0xc7   : > { %2239 = vrot.lane.b32.xlu1 %v8809_v0, %s8513_s28  ;;  %1546 = vst.msk [vmem:[#allocation3] sm:$0xf] %vm1545_vm7, %v1450_v31  ;;  %v8072_v42 = vpack.c.bf16 %v2106_v35, %v2106_v35 }
  0xc8   : > { %1212 = vrot.lane.b32.xlu0 %v8749_v25, %s8509_s12  ;;  %v1856_v25 = vld [vmem:[#allocation2 + $0x120] sm:$0xff] }
  0xc9   : > { %v1195_v61 = vpop.permute.xlu1 %1194 }
  0xca   : > { %1290 = vst.msk [vmem:[#allocation3 + $0x8] sm:$0xf] %vm1288_vm6, %v1195_v61  ;;  %v1707_v43 = vpop.permute.xlu0 %1706 }
  0xcb   : > { %957 = vrot.lane.b32.xlu1 %v8805_v60, %s8508_s9  ;;  %1803 = vst.msk [vmem:[#allocation3] sm:$0xf] %vm1802_vm8, %v1707_v43  ;;  %v9075_v60 = vpack.c.bf16 %v1856_v25, %v1856_v25 }
  0xcc   : > { %1469 = vrot.lane.b32.xlu0 %v8779_v47, %s8510_s15 }
  0xcd   : > { %v1452_v3 = vpop.permute.xlu1 %1451  ;;  %542 = vst.msk [vmem:[#allocation3 + $0xc0] sm:$0xf] %vm517_vm3, %v9075_v60 }
  0xce   : > { %1547 = vst.msk [vmem:[#allocation3 + $0x8] sm:$0xf] %vm1545_vm7, %v1452_v3  ;;  %v1965_v36 = vpop.permute.xlu0 %1964 }
  0xcf   : > { %1214 = vrot.lane.b32.xlu1 %v8765_v37, %s8509_s12  ;;  %2061 = vst.msk [vmem:[#allocation3] sm:$0xf] %vm2060_vm9, %v1965_v36  ;;  %v1857_v37 = vld [vmem:[#allocation2 + $0x128] sm:$0xff] }
  0xd0   : > { %1726 = vrot.lane.b32.xlu0 %v8682_v46, %s8511_s20  ;;  %v9092_v20 = vpack.c.bf16 %v1857_v37, %v1857_v37 }
  0xd1   : > { %v1709_v47 = vpop.permute.xlu1 %1708 }
  0xd2   : > { %1804 = vst.msk [vmem:[#allocation3 + $0x8] sm:$0xf] %vm1802_vm8, %v1709_v47  ;;  %v2222_v16 = vpop.permute.xlu0 %2221  ;;  %v1592_v47 = vld [vmem:[#allocation2 + $0xc2] sm:$0xff] }
  0xd3   : > { %1471 = vrot.lane.b32.xlu1 %v8809_v0, %s8510_s15  ;;  %2318 = vst.msk [vmem:[#allocation3] sm:$0xf] %vm2317_vm10, %v2222_v16 }
  0xd4   : > { %1984 = vrot.lane.b32.xlu0 %v8763_v34, %s8512_s23  ;;  %543 = vst.msk [vmem:[#allocation3 + $0xc8] sm:$0xf] %vm517_vm3, %v9092_v20 }
  0xd5   : > { %v1967_v55 = vpop.permute.xlu1 %1966 }
  0xd6   : > { %2062 = vst.msk [vmem:[#allocation3 + $0x8] sm:$0xf] %vm2060_vm9, %v1967_v55  ;;  %v940_v17 = vpop.permute.xlu0 %939  ;;  %v8009_v55 = vpack.c.bf16 %v1592_v47, %v1592_v47 }
  0xd7   : > { %1728 = vrot.lane.b32.xlu1 %v8862_v6, %s8511_s20  ;;  %1034 = vst.msk [vmem:[#allocation3 + $0x10] sm:$0xf] %vm1031_vm5, %v940_v17 }
  0xd8   : > { %2241 = vrot.lane.b32.xlu0 %v8799_v59, %s8513_s28  ;;  %v1333_v59 = vld [vmem:[#allocation2 + $0xa9] sm:$0xff] }
  0xd9   : > { %v2224_v0 = vpop.permute.xlu1 %2223  ;;  %v7975_v32 = vpack.c.bf16 %v1333_v59, %v1333_v59  ;;  %v319_v59 = vld [vmem:[%s8610_s24 + $0xd8] sm:$0xff] }
  0xda   : > { %2319 = vst.msk [vmem:[#allocation3 + $0x8] sm:$0xf] %vm2317_vm10, %v2224_v0  ;;  %v2542_v21 = vld [vmem:[#allocation3] sm:$0xff]  ;;  %v1197_v33 = vpop.permute.xlu0 %1196 }
  0xdb   : > { %1986 = vrot.lane.b32.xlu1 %v8775_v45, %s8512_s23  ;;  %3297 = vst.msk [vmem:[#allocation3] sm:$0xf] %vm517_vm3, %v8649_v28 }
  0xdc   : > { %1291 = vst.msk [vmem:[#allocation3 + $0x10] sm:$0xf] %vm1288_vm6, %v1197_v33  ;;  %959 = vrot.lane.b32.xlu0 %v8682_v46, %s8508_s9 }
  0xdd   : > { %v942_v22 = vpop.permute.xlu1 %941  ;;  %352 = vst.msk [vmem:[#allocation2 + $0x159] sm:$0xff] %vm246_vm0, %v319_v59 }
  0xde   : > { %1035 = vst.msk [vmem:[#allocation3 + $0x18] sm:$0xf] %vm1031_vm5, %v942_v22  ;;  %v1454_v26 = vpop.permute.xlu0 %1453 }
  0xdf   : > { %2243 = vrot.lane.b32.xlu1 %v8826_v13, %s8513_s28  ;;  %1548 = vst.msk [vmem:[#allocation3 + $0x10] sm:$0xf] %vm1545_vm7, %v1454_v26  ;;  %v2370_v13 = vld [vmem:[#allocation2 + $0x122] sm:$0xff] }
  0xe0   : > { %1216 = vrot.lane.b32.xlu0 %v8763_v34, %s8509_s12  ;;  %v1334_v34 = vld [vmem:[#allocation2 + $0xb1] sm:$0xff]  ;;  %v9129_v18 = vpack.c.bf16 %v2370_v13, %v2370_v13 }
  0xe1   : > { %v2543_v27 = vld [vmem:[#allocation3 + $0x8] sm:$0xff]  ;;  %v1199_v28 = vpop.permute.xlu1 %1198 }
  0xe2   : > { %3298 = vst.msk [vmem:[#allocation3 + $0x8] sm:$0xf] %vm517_vm3, %v8651_v29  ;;  %v7426_v46 = vcombine.high %v2542_v21, %v2543_v27  ;;  %v7425_v41 = vcombine.low %v2542_v21, %v2543_v27  ;;  %v1711_v40 = vpop.permute.xlu0 %1710  ;;  %2530 = vst.msk [vmem:[#allocation3 + $0xa4] sm:$0xf] %vm517_vm3, %v9129_v18  ;;  %v2107_v21 = vld [vmem:[#allocation2 + $0xd9] sm:$0xff] }
  0xe3   : > { %1292 = vst.msk [vmem:[#allocation3 + $0x18] sm:$0xf] %vm1288_vm6, %v1199_v28  ;;  %961 = vrot.lane.b32.xlu1 %v8862_v6, %s8508_s9  ;;  %v7976_v6 = vpack.c.bf16 %v1334_v34, %v1334_v34  ;;  %v8073_v26 = vpack.c.bf16 %v2107_v21, %v2107_v21  ;;  %v2108_v28 = vld [vmem:[#allocation2 + $0xe1] sm:$0xff]  ;;  %v2111_v21 = vld [vmem:[#allocation2 + $0x109] sm:$0xff] }
  0xe4   : > { %1805 = vst.msk [vmem:[#allocation3 + $0x10] sm:$0xf] %vm1802_vm8, %v1711_v40  ;;  %7466 = vmatprep.mubr.msk.bf16.mxu0 %vm246_vm0, %v7426_v46  ;;  %1473 = vrot.lane.b32.xlu0 %v7975_v32, %s8510_s15  ;;  %v1603_v32 = vld [vmem:[#allocation2 + $0x142] sm:$0xff]  ;;  %v8074_v50 = vpack.c.bf16 %v2108_v28, %v2108_v28 }
  0xe5   : > { %2871 = vmatmul.mubr.bf16.vlgmr.msra.gmra.mxu0 %v7425_v41  ;;  %v1456_v29 = vpop.permute.xlu1 %1455  ;;  %v9190_v41 = vpack.c.bf16 %v1603_v32, %v1603_v32 }
  0xe6   : > { %1549 = vst.msk [vmem:[#allocation3 + $0x18] sm:$0xf] %vm1545_vm7, %v1456_v29  ;;  %v1969_v57 = vpop.permute.xlu0 %1968 }
  0xe7   : > { %1218 = vrot.lane.b32.xlu1 %v8775_v45, %s8509_s12  ;;  %2063 = vst.msk [vmem:[#allocation3 + $0x10] sm:$0xf] %vm2060_vm9, %v1969_v57  ;;  %v1601_v45 = vld [vmem:[#allocation2 + $0x12a] sm:$0xff] }
  0xe8   : > { %1730 = vrot.lane.b32.xlu0 %v8007_v51, %s8511_s20  ;;  %v9142_v52 = vpack.c.bf16 %v1601_v45, %v1601_v45  ;;  %2533 = vst.msk [vmem:[#allocation3 + $0xbc] sm:$0xf] %vm517_vm3, %v9190_v41  ;;  %v2109_v45 = vld [vmem:[#allocation2 + $0xf1] sm:$0xff] }
  0xe9   : > { %v1713_v23 = vpop.permute.xlu1 %1712  ;;  %v9222_v35 = vpack.c.bf16 %v2109_v45, %v2109_v45 }
  0xea   : > { %1806 = vst.msk [vmem:[#allocation3 + $0x18] sm:$0xf] %vm1802_vm8, %v1713_v23  ;;  %v2226_v7 = vpop.permute.xlu0 %2225 }
  0xeb   : > { %1475 = vrot.lane.b32.xlu1 %v7976_v6, %s8510_s15  ;;  %2320 = vst.msk [vmem:[#allocation3 + $0x10] sm:$0xf] %vm2317_vm10, %v2226_v7 }
  0xec   : > { %1988 = vrot.lane.b32.xlu0 %v8767_v39, %s8512_s23  ;;  %2531 = vst.msk [vmem:[#allocation3 + $0xac] sm:$0xf] %vm517_vm3, %v9142_v52 }
  0xed   : > { %v1971_v24 = vpop.permute.xlu1 %1970 }
  0xee   : > { %2064 = vst.msk [vmem:[#allocation3 + $0x18] sm:$0xf] %vm2060_vm9, %v1971_v24  ;;  %v944_v58 = vpop.permute.xlu0 %943  ;;  %v320_v24 = vld [vmem:[%s8610_s24 + $0xe0] sm:$0xff] }
  0xef   : > { %1732 = vrot.lane.b32.xlu1 %v8898_v14, %s8511_s20  ;;  %1036 = vst.msk [vmem:[#allocation3 + $0x20] sm:$0xf] %vm1031_vm5, %v944_v58 }
  0xf0   : > { %2245 = vrot.lane.b32.xlu0 %v8071_v30, %s8513_s28  ;;  %353 = vst.msk [vmem:[#allocation2 + $0x169] sm:$0xff] %vm246_vm0, %v320_v24 }
  0xf1   : > { %v2228_v12 = vpop.permute.xlu1 %2227 }
  0xf2   : > { %2321 = vst.msk [vmem:[#allocation3 + $0x18] sm:$0xf] %vm2317_vm10, %v2228_v12  ;;  %v1201_v31 = vpop.permute.xlu0 %1200  ;;  %v2544_v43 = vld [vmem:[#allocation3 + $0x10] sm:$0xff] }
  0xf3   : > { %1990 = vrot.lane.b32.xlu1 %v8795_v54, %s8512_s23  ;;  %1293 = vst.msk [vmem:[#allocation3 + $0x20] sm:$0xf] %vm1288_vm6, %v1201_v31 }
  0xf4   : > { %963 = vrot.lane.b32.xlu0 %v8007_v51, %s8508_s9 }
  0xf5   : > { %v946_v61 = vpop.permute.xlu1 %945 }
  0xf6   : > { %1037 = vst.msk [vmem:[#allocation3 + $0x28] sm:$0xf] %vm1031_vm5, %v946_v61  ;;  %v1458_v2 = vpop.permute.xlu0 %1457  ;;  %v321_v61 = vld [vmem:[%s8610_s24 + $0xe8] sm:$0xff] }
  0xf7   : > { %2247 = vrot.lane.b32.xlu1 %v8072_v42, %s8513_s28  ;;  %1550 = vst.msk [vmem:[#allocation3 + $0x20] sm:$0xf] %vm1545_vm7, %v1458_v2 }
  0xf8   : > { %1220 = vrot.lane.b32.xlu0 %v8767_v39, %s8509_s12  ;;  %v318_v39 = vld [vmem:[%s8610_s24 + $0xd0] sm:$0xff]  ;;  %354 = vst.msk [vmem:[#allocation2 + $0x171] sm:$0xff] %vm246_vm0, %v321_v61 }
  0xf9   : > { %v2545_v3 = vld [vmem:[#allocation3 + $0x18] sm:$0xff]  ;;  %v1203_v25 = vpop.permute.xlu1 %1202  ;;  %351 = vst.msk [vmem:[#allocation2 + $0x151] sm:$0xff] %vm246_vm0, %v318_v39 }
  0xfa   : > { %1294 = vst.msk [vmem:[#allocation3 + $0x28] sm:$0xf] %vm1288_vm6, %v1203_v25  ;;  %v7428_v36 = vcombine.high %v2544_v43, %v2545_v3  ;;  %v7427_v9 = vcombine.low %v2544_v43, %v2545_v3  ;;  %v1715_v16 = vpop.permute.xlu0 %1714  ;;  %v1605_v25 = vld [vmem:[#allocation2 + $0x15a] sm:$0xff] }
  0xfb   : > { %965 = vrot.lane.b32.xlu1 %v8898_v14, %s8508_s9  ;;  %1807 = vst.msk [vmem:[#allocation3 + $0x20] sm:$0xf] %vm1802_vm8, %v1715_v16  ;;  %v2372_v14 = vld [vmem:[#allocation2 + $0x13a] sm:$0xff] }
  0xfc   : > { %7467 = vmatprep.mubr.msk.bf16.mxu0 %vm246_vm0, %v7428_v36  ;;  %1477 = vrot.lane.b32.xlu0 %v8071_v30, %s8510_s15  ;;  %v9176_v22 = vpack.c.bf16 %v2372_v14, %v2372_v14 }
  0xfd   : > { %v1460_v37 = vpop.permute.xlu1 %1459  ;;  %2879 = vmatmul.mubr.bf16.gmra.mxu0 %v7427_v9  ;;  %v9243_v9 = vpack.c.bf16 %v1605_v25, %v1605_v25 }
  0xfe   : > { %1551 = vst.msk [vmem:[#allocation3 + $0x28] sm:$0xf] %vm1545_vm7, %v1460_v37  ;;  %v1973_v17 = vpop.permute.xlu0 %1972 }
  0xff   : > { %1222 = vrot.lane.b32.xlu1 %v8795_v54, %s8509_s12  ;;  %2065 = vst.msk [vmem:[#allocation3 + $0x20] sm:$0xf] %vm2060_vm9, %v1973_v17  ;;  %v2376_v28 = vld [vmem:[#allocation2 + $0x16a] sm:$0xff] }
 0x100   : > { %1734 = vrot.lane.b32.xlu0 %v8009_v55, %s8511_s20  ;;  %2532 = vst.msk [vmem:[#allocation3 + $0xb4] sm:$0xf] %vm517_vm3, %v9176_v22  ;;  %v2374_v58 = vld [vmem:[#allocation2 + $0x152] sm:$0xff]  ;;  %2535 = vst.msk [vmem:[#allocation3 + $0xcc] sm:$0xf] %vm517_vm3, %v9243_v9 }
 0x101   : > { %v1717_v0 = vpop.permute.xlu1 %1716  ;;  %v9227_v31 = vpack.c.bf16 %v2374_v58, %v2374_v58 }
 0x102   : > { %1808 = vst.msk [vmem:[#allocation3 + $0x28] sm:$0xf] %vm1802_vm8, %v1717_v0  ;;  %v2230_v33 = vpop.permute.xlu0 %2229 }
 0x103   : > { %1479 = vrot.lane.b32.xlu1 %v8072_v42, %s8510_s15  ;;  %2322 = vst.msk [vmem:[#allocation3 + $0x20] sm:$0xf] %vm2317_vm10, %v2230_v33  ;;  %v2110_v42 = vld [vmem:[#allocation2 + $0xf9] sm:$0xff] }
 0x104   : > { %1992 = vrot.lane.b32.xlu0 %v8793_v53, %s8512_s23  ;;  %2534 = vst.msk [vmem:[#allocation3 + $0xc4] sm:$0xf] %vm517_vm3, %v9227_v31  ;;  %v9239_v3 = vpack.c.bf16 %v2110_v42, %v2110_v42 }
 0x105   : > { %v1975_v54 = vpop.permute.xlu1 %1974 }
 0x106   : > { %2066 = vst.msk [vmem:[#allocation3 + $0x28] sm:$0xf] %vm2060_vm9, %v1975_v54  ;;  %v948_v27 = vpop.permute.xlu0 %947  ;;  %v322_v54 = vld [vmem:[%s8610_s24 + $0xf0] sm:$0xff] }
 0x107   : > { %1736 = vrot.lane.b32.xlu1 %v8926_v48, %s8511_s20  ;;  %1038 = vst.msk [vmem:[#allocation3 + $0x30] sm:$0xf] %vm1031_vm5, %v948_v27  ;;  %v2112_v27 = vld [vmem:[#allocation2 + $0x111] sm:$0xff] }
 0x108   : > { %2249 = vrot.lane.b32.xlu0 %v8073_v26, %s8513_s28  ;;  %355 = vst.msk [vmem:[#allocation2 + $0x181] sm:$0xff] %vm246_vm0, %v322_v54 }
 0x109   : > { %v2232_v46 = vpop.permute.xlu1 %2231 }
 0x10a   : > { %2323 = vst.msk [vmem:[#allocation3 + $0x28] sm:$0xf] %vm2317_vm10, %v2232_v46  ;;  %v1205_v49 = vpop.permute.xlu0 %1204  ;;  %v2546_v34 = vld [vmem:[#allocation3 + $0x20] sm:$0xff] }
 0x10b   : > { %1994 = vrot.lane.b32.xlu1 %v8813_v5, %s8512_s23  ;;  %1295 = vst.msk [vmem:[#allocation3 + $0x30] sm:$0xf] %vm1288_vm6, %v1205_v49  ;;  %v9285_v49 = vpack.c.bf16 %v2112_v27, %v2112_v27 }
 0x10c   : > { %967 = vrot.lane.b32.xlu0 %v8009_v55, %s8508_s9 }
 0x10d   : > { %v950_v40 = vpop.permute.xlu1 %949 }
 0x10e   : > { %1039 = vst.msk [vmem:[#allocation3 + $0x38] sm:$0xf] %vm1031_vm5, %v950_v40  ;;  %v1462_v13 = vpop.permute.xlu0 %1461  ;;  %v323_v40 = vld [vmem:[%s8610_s24 + $0xf8] sm:$0xff] }
 0x10f   : > { %2251 = vrot.lane.b32.xlu1 %v8074_v50, %s8513_s28  ;;  %1552 = vst.msk [vmem:[#allocation3 + $0x30] sm:$0xf] %vm1545_vm7, %v1462_v13 }
 0x110   : > { %1224 = vrot.lane.b32.xlu0 %v8793_v53, %s8509_s12  ;;  %v8011_v53 = vpack.c.bf16 %v1594_v63, %v1594_v63  ;;  %356 = vst.msk [vmem:[#allocation2 + $0x189] sm:$0xff] %vm246_vm0, %v323_v40 }
 0x111   : > { %v2547_v29 = vld [vmem:[#allocation3 + $0x28] sm:$0xff]  ;;  %v1207_v51 = vpop.permute.xlu1 %1206 }
 0x112   : > { %1296 = vst.msk [vmem:[#allocation3 + $0x38] sm:$0xf] %vm1288_vm6, %v1207_v51  ;;  %v7430_v57 = vcombine.high %v2546_v34, %v2547_v29  ;;  %v7429_v6 = vcombine.low %v2546_v34, %v2547_v29  ;;  %v1719_v23 = vpop.permute.xlu0 %1718  ;;  %v1607_v51 = vld [vmem:[#allocation2 + $0x172] sm:$0xff] }
 0x113   : > { %969 = vrot.lane.b32.xlu1 %v8926_v48, %s8508_s9  ;;  %1809 = vst.msk [vmem:[#allocation3 + $0x30] sm:$0xf] %vm1802_vm8, %v1719_v23  ;;  %v9302_v63 = vpack.c.bf16 %v1607_v51, %v1607_v51 }
 0x114   : > { %7468 = vmatprep.mubr.msk.bf16.mxu0 %vm246_vm0, %v7430_v57  ;;  %1481 = vrot.lane.b32.xlu0 %v8073_v26, %s8510_s15 }
 0x115   : > { %v1464_v15 = vpop.permute.xlu1 %1463  ;;  %2887 = vmatmul.mubr.bf16.gmra.mxu0 %v7429_v6  ;;  %2537 = vst.msk [vmem:[#allocation3 + $0xdc] sm:$0xf] %vm517_vm3, %v9302_v63 }
 0x116   : > { %1553 = vst.msk [vmem:[#allocation3 + $0x38] sm:$0xf] %vm1545_vm7, %v1464_v15  ;;  %v1977_v7 = vpop.permute.xlu0 %1976 }
 0x117   : > { %1226 = vrot.lane.b32.xlu1 %v8813_v5, %s8509_s12  ;;  %2067 = vst.msk [vmem:[#allocation3 + $0x30] sm:$0xf] %vm2060_vm9, %v1977_v7 }
 0x118   : > { %1738 = vrot.lane.b32.xlu0 %v8011_v53, %s8511_s20 }
 0x119   : > { %v1721_v48 = vpop.permute.xlu1 %1720 }
 0x11a   : > { %1810 = vst.msk [vmem:[#allocation3 + $0x38] sm:$0xf] %vm1802_vm8, %v1721_v48  ;;  %v2234_v30 = vpop.permute.xlu0 %2233 }
 0x11b   : > { %1483 = vrot.lane.b32.xlu1 %v8074_v50, %s8510_s15  ;;  %2324 = vst.msk [vmem:[#allocation3 + $0x30] sm:$0xf] %vm2317_vm10, %v2234_v30  ;;  %v9287_v50 = vpack.c.bf16 %v2376_v28, %v2376_v28  ;;  %v2116_v28 = vld [vmem:[#allocation2 + $0x141] sm:$0xff] }
 0x11c   : > { %1996 = vrot.lane.b32.xlu0 %v8957_v4, %s8512_s23 }
 0x11d   : > { %v1979_v5 = vpop.permute.xlu1 %1978  ;;  %2536 = vst.msk [vmem:[#allocation3 + $0xd4] sm:$0xf] %vm517_vm3, %v9287_v50 }
 0x11e   : > { %2068 = vst.msk [vmem:[#allocation3 + $0x38] sm:$0xf] %vm2060_vm9, %v1979_v5  ;;  %v952_v12 = vpop.permute.xlu0 %951  ;;  %v2114_v5 = vld [vmem:[#allocation2 + $0x129] sm:$0xff] }
 0x11f   : > { %1740 = vrot.lane.b32.xlu1 %v8962_v10, %s8511_s20  ;;  %1040 = vst.msk [vmem:[#allocation3 + $0x40] sm:$0xf] %vm1031_vm5, %v952_v12 }
 0x120   : > { %2253 = vrot.lane.b32.xlu0 %v9222_v35, %s8513_s28 }
 0x121   : > { %v2236_v43 = vpop.permute.xlu1 %2235 }
 0x122   : > { %2325 = vst.msk [vmem:[#allocation3 + $0x38] sm:$0xf] %vm2317_vm10, %v2236_v43  ;;  %v1209_v2 = vpop.permute.xlu0 %1208  ;;  %v2548_v47 = vld [vmem:[#allocation3 + $0x30] sm:$0xff]  ;;  %v9342_v43 = vpack.c.bf16 %v2114_v5, %v2114_v5 }
 0x123   : > { %1998 = vrot.lane.b32.xlu1 %v8974_v19, %s8512_s23  ;;  %1297 = vst.msk [vmem:[#allocation3 + $0x40] sm:$0xf] %vm1288_vm6, %v1209_v2 }
 0x124   : > { %971 = vrot.lane.b32.xlu0 %v8011_v53, %s8508_s9 }
 0x125   : > { %v954_v36 = vpop.permute.xlu1 %953 }
 0x126   : > { %1041 = vst.msk [vmem:[#allocation3 + $0x48] sm:$0xf] %vm1031_vm5, %v954_v36  ;;  %v1466_v16 = vpop.permute.xlu0 %1465 }
 0x127   : > { %2255 = vrot.lane.b32.xlu1 %v9239_v3, %s8513_s28  ;;  %1554 = vst.msk [vmem:[#allocation3 + $0x40] sm:$0xf] %vm1545_vm7, %v1466_v16 }
 0x128   : > { %1228 = vrot.lane.b32.xlu0 %v8957_v4, %s8509_s12 }
 0x129   : > { %v2549_v37 = vld [vmem:[#allocation3 + $0x38] sm:$0xff]  ;;  %v1211_v55 = vpop.permute.xlu1 %1210 }
 0x12a   : > { %1298 = vst.msk [vmem:[#allocation3 + $0x48] sm:$0xf] %vm1288_vm6, %v1211_v55  ;;  %v7432_v39 = vcombine.high %v2548_v47, %v2549_v37  ;;  %v7431_v17 = vcombine.low %v2548_v47, %v2549_v37  ;;  %v1723_v14 = vpop.permute.xlu0 %1722  ;;  %v1609_v37 = vld [vmem:[#allocation2 + $0x18a] sm:$0xff] }
 0x12b   : > { %973 = vrot.lane.b32.xlu1 %v8962_v10, %s8508_s9  ;;  %1811 = vst.msk [vmem:[#allocation3 + $0x40] sm:$0xf] %vm1802_vm8, %v1723_v14 }
 0x12c   : > { %7469 = vmatprep.mubr.msk.bf16.mxu0 %vm246_vm0, %v7432_v39  ;;  %1485 = vrot.lane.b32.xlu0 %v9222_v35, %s8510_s15  ;;  %v9358_v39 = vpack.c.bf16 %v1609_v37, %v1609_v37 }
 0x12d   : > { %v1468_v0 = vpop.permute.xlu1 %1467  ;;  %2895 = vmatmul.mubr.bf16.gmra.mxu0 %v7431_v17 }
 0x12e   : > { %1555 = vst.msk [vmem:[#allocation3 + $0x48] sm:$0xf] %vm1545_vm7, %v1468_v0  ;;  %v1981_v4 = vpop.permute.xlu0 %1980 }
 0x12f   : > { %1230 = vrot.lane.b32.xlu1 %v8974_v19, %s8509_s12  ;;  %2069 = vst.msk [vmem:[#allocation3 + $0x40] sm:$0xf] %vm2060_vm9, %v1981_v4  ;;  %v9272_v19 = vpack.c.bf16 %v2111_v21, %v2111_v21  ;;  %v1858_v4 = vld [vmem:[#allocation2 + $0x138] sm:$0xff] }
 0x130   : > { %1742 = vrot.lane.b32.xlu0 %v9001_v44, %s8511_s20  ;;  %2539 = vst.msk [vmem:[#allocation3 + $0xec] sm:$0xf] %vm517_vm3, %v9358_v39  ;;  %v2115_v21 = vld [vmem:[#allocation2 + $0x139] sm:$0xff] }
 0x131   : > { %v1725_v10 = vpop.permute.xlu1 %1724 }
 0x132   : > { %1812 = vst.msk [vmem:[#allocation3 + $0x48] sm:$0xf] %vm1802_vm8, %v1725_v10  ;;  %v2238_v33 = vpop.permute.xlu0 %2237 }
 0x133   : > { %1487 = vrot.lane.b32.xlu1 %v9239_v3, %s8510_s15  ;;  %2326 = vst.msk [vmem:[#allocation3 + $0x40] sm:$0xf] %vm2317_vm10, %v2238_v33 }
 0x134   : > { %2000 = vrot.lane.b32.xlu0 %v9013_v56, %s8512_s23 }
 0x135   : > { %v1983_v59 = vpop.permute.xlu1 %1982 }
 0x136   : > { %2070 = vst.msk [vmem:[#allocation3 + $0x48] sm:$0xf] %vm2060_vm9, %v1983_v59  ;;  %v956_v26 = vpop.permute.xlu0 %955  ;;  %v1859_v59 = vld [vmem:[#allocation2 + $0x140] sm:$0xff] }
 0x137   : > { %1744 = vrot.lane.b32.xlu1 %v9018_v62, %s8511_s20  ;;  %1042 = vst.msk [vmem:[#allocation3 + $0x50] sm:$0xf] %vm1031_vm5, %v956_v26  ;;  %v8050_v27 = vpack.c.bf16 %v1859_v59, %v1859_v59 }
 0x138   : > { %2257 = vrot.lane.b32.xlu0 %v9272_v19, %s8513_s28 }
 0x139   : > { %v2240_v32 = vpop.permute.xlu1 %2239 }
 0x13a   : > { %2327 = vst.msk [vmem:[#allocation3 + $0x48] sm:$0xf] %vm2317_vm10, %v2240_v32  ;;  %v1213_v46 = vpop.permute.xlu0 %1212  ;;  %v2550_v13 = vld [vmem:[#allocation3 + $0x40] sm:$0xff] }
 0x13b   : > { %2002 = vrot.lane.b32.xlu1 %v9030_v38, %s8512_s23  ;;  %1299 = vst.msk [vmem:[#allocation3 + $0x50] sm:$0xf] %vm1288_vm6, %v1213_v46 }
 0x13c   : > { %718 = vrot.lane.b32.xlu0 %v9222_v35, %s8506_s25  ;;  %v2378_v35 = vld [vmem:[#allocation2 + $0x182] sm:$0xff] }
 0x13d   : > { %v958_v34 = vpop.permute.xlu1 %957  ;;  %v9344_v2 = vpack.c.bf16 %v2378_v35, %v2378_v35 }
 0x13e   : > { %1043 = vst.msk [vmem:[#allocation3 + $0x58] sm:$0xf] %vm1031_vm5, %v958_v34  ;;  %v1470_v29 = vpop.permute.xlu0 %1469 }
 0x13f   : > { %2259 = vrot.lane.b32.xlu1 %v9285_v49, %s8513_s28  ;;  %1556 = vst.msk [vmem:[#allocation3 + $0x50] sm:$0xf] %vm1545_vm7, %v1470_v29 }
 0x140   : > { %975 = vrot.lane.b32.xlu0 %v9001_v44, %s8508_s9  ;;  %2538 = vst.msk [vmem:[#allocation3 + $0xe4] sm:$0xf] %vm517_vm3, %v9344_v2 }
 0x141   : > { %v2551_v57 = vld [vmem:[#allocation3 + $0x48] sm:$0xff]  ;;  %v1215_v6 = vpop.permute.xlu1 %1214 }
 0x142   : > { %1300 = vst.msk [vmem:[#allocation3 + $0x58] sm:$0xf] %vm1288_vm6, %v1215_v6  ;;  %v7434_v23 = vcombine.high %v2550_v13, %v2551_v57  ;;  %v7433_v15 = vcombine.low %v2550_v13, %v2551_v57  ;;  %v1727_v53 = vpop.permute.xlu0 %1726  ;;  %v9395_v13 = vpack.c.bf16 %v2116_v28, %v2116_v28 }
 0x143   : > { %720 = vrot.lane.b32.xlu1 %v9239_v3, %s8506_s25  ;;  %1813 = vst.msk [vmem:[#allocation3 + $0x50] sm:$0xf] %vm1802_vm8, %v1727_v53  ;;  %v1860_v53 = vld [vmem:[#allocation2 + $0x150] sm:$0xff] }
 0x144   : > { %7470 = vmatprep.mubr.msk.bf16.mxu0 %vm246_vm0, %v7434_v23  ;;  %1232 = vrot.lane.b32.xlu0 %v9013_v56, %s8509_s12 }
 0x145   : > { %v1472_v44 = vpop.permute.xlu1 %1471  ;;  %2903 = vmatmul.mubr.bf16.gmra.mxu0 %v7433_v15 }
 0x146   : > { %1557 = vst.msk [vmem:[#allocation3 + $0x58] sm:$0xf] %vm1545_vm7, %v1472_v44  ;;  %v1985_v7 = vpop.permute.xlu0 %1984 }
 0x147   : > { %977 = vrot.lane.b32.xlu1 %v9018_v62, %s8508_s9  ;;  %2071 = vst.msk [vmem:[#allocation3 + $0x50] sm:$0xf] %vm2060_vm9, %v1985_v7  ;;  %v2113_v62 = vld [vmem:[#allocation2 + $0x121] sm:$0xff] }
 0x148   : > { %1489 = vrot.lane.b32.xlu0 %v9272_v19, %s8510_s15 }
 0x149   : > { %v1729_v48 = vpop.permute.xlu1 %1728 }
 0x14a   : > { %1814 = vst.msk [vmem:[#allocation3 + $0x58] sm:$0xf] %vm1802_vm8, %v1729_v48  ;;  %v2242_v45 = vpop.permute.xlu0 %2241  ;;  %v8051_v48 = vpack.c.bf16 %v1860_v53, %v1860_v53 }
 0x14b   : > { %1234 = vrot.lane.b32.xlu1 %v9030_v38, %s8509_s12  ;;  %2328 = vst.msk [vmem:[#allocation3 + $0x50] sm:$0xf] %vm2317_vm10, %v2242_v45  ;;  %v9331_v38 = vpack.c.bf16 %v2113_v62, %v2113_v62  ;;  %v383_v62 = vld [vmem:[#allocation2 + $0x138] sm:$0xff] }
 0x14c   : > { %1746 = vrot.lane.b32.xlu0 %v9063_v1, %s8511_s20 }
 0x14d   : > { %v1987_v56 = vpop.permute.xlu1 %1986 }
 0x14e   : > { %2072 = vst.msk [vmem:[#allocation3 + $0x58] sm:$0xf] %vm2060_vm9, %v1987_v56  ;;  %v960_v24 = vpop.permute.xlu0 %959 }
 0x14f   : > { %1491 = vrot.lane.b32.xlu1 %v9285_v49, %s8510_s15  ;;  %1044 = vst.msk [vmem:[#allocation3 + $0x60] sm:$0xf] %vm1031_vm5, %v960_v24  ;;  %v384_v24 = vld [vmem:[#allocation2 + $0x140] sm:$0xff] }
 0x150   : > { %2004 = vrot.lane.b32.xlu0 %v9075_v60, %s8512_s23 }
 0x151   : > { %v2244_v30 = vpop.permute.xlu1 %2243 }
 0x152   : > { %2329 = vst.msk [vmem:[#allocation3 + $0x58] sm:$0xf] %vm2317_vm10, %v2244_v30  ;;  %v1217_v58 = vpop.permute.xlu0 %1216  ;;  %v2552_v42 = vld [vmem:[#allocation3 + $0x50] sm:$0xff]  ;;  %v1861_v30 = vld [vmem:[#allocation2 + $0x158] sm:$0xff] }
 0x153   : > { %1748 = vrot.lane.b32.xlu1 %v9080_v11, %s8511_s20  ;;  %1301 = vst.msk [vmem:[#allocation3 + $0x60] sm:$0xf] %vm1288_vm6, %v1217_v58  ;;  %v7862_v58 = vpack.c.bf16 %v384_v24, %v384_v24 }
 0x154   : > { %2261 = vrot.lane.b32.xlu0 %v9331_v38, %s8513_s28 }
 0x155   : > { %v962_v12 = vpop.permute.xlu1 %961  ;;  %545 = vst.msk [vmem:[#allocation3 + $0xd8] sm:$0xf] %vm517_vm3, %v7862_v58 }
 0x156   : > { %1045 = vst.msk [vmem:[#allocation3 + $0x68] sm:$0xf] %vm1031_vm5, %v962_v12  ;;  %v1474_v61 = vpop.permute.xlu0 %1473 }
 0x157   : > { %2006 = vrot.lane.b32.xlu1 %v9092_v20, %s8512_s23  ;;  %1558 = vst.msk [vmem:[#allocation3 + $0x60] sm:$0xf] %vm1545_vm7, %v1474_v61 }
 0x158   : > { %722 = vrot.lane.b32.xlu0 %v9272_v19, %s8506_s25  ;;  %v9385_v19 = vpack.c.bf16 %v2115_v21, %v2115_v21 }
 0x159   : > { %v2553_v3 = vld [vmem:[#allocation3 + $0x58] sm:$0xff]  ;;  %v1219_v25 = vpop.permute.xlu1 %1218 }
 0x15a   : > { %1302 = vst.msk [vmem:[#allocation3 + $0x68] sm:$0xf] %vm1288_vm6, %v1219_v25  ;;  %v7436_v36 = vcombine.high %v2552_v42, %v2553_v3  ;;  %v7435_v47 = vcombine.low %v2552_v42, %v2553_v3  ;;  %v1731_v16 = vpop.permute.xlu0 %1730  ;;  %v8052_v3 = vpack.c.bf16 %v1861_v30, %v1861_v30  ;;  %v2118_v25 = vld [vmem:[#allocation2 + $0x159] sm:$0xff] }
 0x15b   : > { %2263 = vrot.lane.b32.xlu1 %v9342_v43, %s8513_s28  ;;  %1815 = vst.msk [vmem:[#allocation3 + $0x60] sm:$0xf] %vm1802_vm8, %v1731_v16  ;;  %v9441_v16 = vpack.c.bf16 %v2118_v25, %v2118_v25 }
 0x15c   : > { %7471 = vmatprep.mubr.msk.bf16.mxu0 %vm246_vm0, %v7436_v36  ;;  %979 = vrot.lane.b32.xlu0 %v9063_v1, %s8508_s9 }
 0x15d   : > { %v1476_v55 = vpop.permute.xlu1 %1475  ;;  %2911 = vmatmul.mubr.bf16.gmra.mxu0 %v7435_v47 }
 0x15e   : > { %1559 = vst.msk [vmem:[#allocation3 + $0x68] sm:$0xf] %vm1545_vm7, %v1476_v55  ;;  %v1989_v17 = vpop.permute.xlu0 %1988 }
 0x15f   : > { %724 = vrot.lane.b32.xlu1 %v9285_v49, %s8506_s25  ;;  %2073 = vst.msk [vmem:[#allocation3 + $0x60] sm:$0xf] %vm2060_vm9, %v1989_v17 }
 0x160   : > { %1236 = vrot.lane.b32.xlu0 %v9075_v60, %s8509_s12 }
 0x161   : > { %v1733_v14 = vpop.permute.xlu1 %1732 }
 0x162   : > { %1816 = vst.msk [vmem:[#allocation3 + $0x68] sm:$0xf] %vm1802_vm8, %v1733_v14  ;;  %v2246_v1 = vpop.permute.xlu0 %2245 }
 0x163   : > { %981 = vrot.lane.b32.xlu1 %v9080_v11, %s8508_s9  ;;  %2330 = vst.msk [vmem:[#allocation3 + $0x60] sm:$0xf] %vm2317_vm10, %v2246_v1  ;;  %v8049_v11 = vpack.c.bf16 %v1858_v4, %v1858_v4  ;;  %v1862_v4 = vld [vmem:[#allocation2 + $0x168] sm:$0xff] }
 0x164   : > { %1493 = vrot.lane.b32.xlu0 %v9331_v38, %s8510_s15  ;;  %v8053_v21 = vpack.c.bf16 %v1862_v4, %v1862_v4  ;;  %v387_v4 = vld [vmem:[#allocation2 + $0x168] sm:$0xff] }
 0x165   : > { %v1991_v0 = vpop.permute.xlu1 %1990 }
 0x166   : > { %2074 = vst.msk [vmem:[#allocation3 + $0x68] sm:$0xf] %vm2060_vm9, %v1991_v0  ;;  %v964_v10 = vpop.permute.xlu0 %963 }
 0x167   : > { %1238 = vrot.lane.b32.xlu1 %v9092_v20, %s8509_s12  ;;  %1046 = vst.msk [vmem:[#allocation3 + $0x70] sm:$0xf] %vm1031_vm5, %v964_v10 }
 0x168   : > { %1750 = vrot.lane.b32.xlu0 %v9129_v18, %s8511_s20 }
 0x169   : > { %v2248_v60 = vpop.permute.xlu1 %2247 }
 0x16a   : > { %2331 = vst.msk [vmem:[#allocation3 + $0x68] sm:$0xf] %vm2317_vm10, %v2248_v60  ;;  %v1221_v33 = vpop.permute.xlu0 %1220  ;;  %v2554_v54 = vld [vmem:[#allocation3 + $0x60] sm:$0xff] }
 0x16b   : > { %1495 = vrot.lane.b32.xlu1 %v9342_v43, %s8510_s15  ;;  %1303 = vst.msk [vmem:[#allocation3 + $0x70] sm:$0xf] %vm1288_vm6, %v1221_v33 }
 0x16c   : > { %2008 = vrot.lane.b32.xlu0 %v8049_v11, %s8512_s23 }
 0x16d   : > { %v966_v20 = vpop.permute.xlu1 %965 }
 0x16e   : > { %1047 = vst.msk [vmem:[#allocation3 + $0x78] sm:$0xf] %vm1031_vm5, %v966_v20  ;;  %v1478_v26 = vpop.permute.xlu0 %1477  ;;  %v2119_v20 = vld [vmem:[#allocation2 + $0x169] sm:$0xff] }
 0x16f   : > { %1752 = vrot.lane.b32.xlu1 %v9142_v52, %s8511_s20  ;;  %1560 = vst.msk [vmem:[#allocation3 + $0x70] sm:$0xf] %vm1545_vm7, %v1478_v26  ;;  %v386_v26 = vld [vmem:[#allocation2 + $0x158] sm:$0xff] }
 0x170   : > { %2265 = vrot.lane.b32.xlu0 %v9385_v19, %s8513_s28 }
 0x171   : > { %v2555_v32 = vld [vmem:[#allocation3 + $0x68] sm:$0xff]  ;;  %v1223_v46 = vpop.permute.xlu1 %1222 }
 0x172   : > { %1304 = vst.msk [vmem:[#allocation3 + $0x78] sm:$0xf] %vm1288_vm6, %v1223_v46  ;;  %v7438_v49 = vcombine.high %v2554_v54, %v2555_v32  ;;  %v7437_v40 = vcombine.low %v2554_v54, %v2555_v32  ;;  %v1735_v34 = vpop.permute.xlu0 %1734  ;;  %v385_v54 = vld [vmem:[#allocation2 + $0x150] sm:$0xff]  ;;  %v7864_v32 = vpack.c.bf16 %v386_v26, %v386_v26 }
 0x173   : > { %2010 = vrot.lane.b32.xlu1 %v8050_v27, %s8512_s23  ;;  %1817 = vst.msk [vmem:[#allocation3 + $0x70] sm:$0xf] %vm1802_vm8, %v1735_v34  ;;  %v7863_v28 = vpack.c.bf16 %v385_v54, %v385_v54  ;;  %v9479_v34 = vpack.c.bf16 %v2119_v20, %v2119_v20 }
 0x174   : > { %7472 = vmatprep.mubr.msk.bf16.mxu0 %vm246_vm0, %v7438_v49  ;;  %726 = vrot.lane.b32.xlu0 %v9331_v38, %s8506_s25  ;;  %v7861_v38 = vpack.c.bf16 %v383_v62, %v383_v62  ;;  %v9477_v49 = vld [vmem:[%s11150_s4] ss:$0 sm:$0xff]  ;;  %547 = vst.msk [vmem:[#allocation3 + $0xe8] sm:$0xf] %vm517_vm3, %v7864_v32 }
 0x175   : > { %v1480_v29 = vpop.permute.xlu1 %1479  ;;  %2919 = vmatmul.mubr.bf16.gmra.mxu0 %v7437_v40  ;;  %546 = vst.msk [vmem:[#allocation3 + $0xe0] sm:$0xf] %vm517_vm3, %v7863_v28 }
 0x176   : > { %1561 = vst.msk [vmem:[#allocation3 + $0x78] sm:$0xf] %vm1545_vm7, %v1480_v29  ;;  %v1993_v51 = vpop.permute.xlu0 %1992  ;;  %v9487_v29 = vld [vmem:[%s11150_s4 + $0x1] ss:$0 sm:$0xff] }
 0x177   : > { %2267 = vrot.lane.b32.xlu1 %v9395_v13, %s8513_s28  ;;  %2075 = vst.msk [vmem:[#allocation3 + $0x70] sm:$0xf] %vm2060_vm9, %v1993_v51 }
 0x178   : > { %983 = vrot.lane.b32.xlu0 %v9129_v18, %s8508_s9  ;;  %544 = vst.msk [vmem:[#allocation3 + $0xd0] sm:$0xf] %vm517_vm3, %v7861_v38 }
 0x179   : > { %v1737_v57 = vpop.permute.xlu1 %1736 }
 0x17a   : > { %1818 = vst.msk [vmem:[#allocation3 + $0x78] sm:$0xf] %vm1802_vm8, %v1737_v57  ;;  %v2250_v6 = vpop.permute.xlu0 %2249 }
 0x17b   : > { %728 = vrot.lane.b32.xlu1 %v9342_v43, %s8506_s25  ;;  %2332 = vst.msk [vmem:[#allocation3 + $0x70] sm:$0xf] %vm2317_vm10, %v2250_v6 }
 0x17c   : > { %1240 = vrot.lane.b32.xlu0 %v8049_v11, %s8509_s12 }
 0x17d   : > { %v1995_v23 = vpop.permute.xlu1 %1994 }
 0x17e   : > { %2076 = vst.msk [vmem:[#allocation3 + $0x78] sm:$0xf] %vm2060_vm9, %v1995_v23  ;;  %v968_v15 = vpop.permute.xlu0 %967 }
 0x17f   : > { %985 = vrot.lane.b32.xlu1 %v9142_v52, %s8508_s9  ;;  %1048 = vst.msk [vmem:[#allocation3 + $0x80] sm:$0xf] %vm1031_vm5, %v968_v15  ;;  %v2117_v52 = vld [vmem:[#allocation2 + $0x151] sm:$0xff] }
 0x180   : > { %1497 = vrot.lane.b32.xlu0 %v9385_v19, %s8510_s15  ;;  %v9428_v12 = vpack.c.bf16 %v2117_v52, %v2117_v52  ;;  %v2120_v15 = vld [vmem:[#allocation2 + $0x171] sm:$0xff] }
 0x181   : > { %v2252_v18 = vpop.permute.xlu1 %2251 }
 0x182   : > { %2333 = vst.msk [vmem:[#allocation3 + $0x78] sm:$0xf] %vm2317_vm10, %v2252_v18  ;;  %v1225_v44 = vpop.permute.xlu0 %1224  ;;  %v2556_v45 = vld [vmem:[#allocation3 + $0x70] sm:$0xff] }
 0x183   : > { %1242 = vrot.lane.b32.xlu1 %v8050_v27, %s8509_s12  ;;  %1305 = vst.msk [vmem:[#allocation3 + $0x80] sm:$0xf] %vm1288_vm6, %v1225_v44  ;;  %v1863_v27 = vld [vmem:[#allocation2 + $0x170] sm:$0xff] }
 0x184   : > { %1754 = vrot.lane.b32.xlu0 %v9176_v22, %s8511_s20  ;;  %v8054_v6 = vpack.c.bf16 %v1863_v27, %v1863_v27 }
 0x185   : > { %v970_v7 = vpop.permute.xlu1 %969 }
 0x186   : > { %1049 = vst.msk [vmem:[#allocation3 + $0x88] sm:$0xf] %vm1031_vm5, %v970_v7  ;;  %v1482_v56 = vpop.permute.xlu0 %1481 }
 0x187   : > { %1499 = vrot.lane.b32.xlu1 %v9395_v13, %s8510_s15  ;;  %1562 = vst.msk [vmem:[#allocation3 + $0x80] sm:$0xf] %vm1545_vm7, %v1482_v56 }
 0x188   : > { %2012 = vrot.lane.b32.xlu0 %v8051_v48, %s8512_s23 }
 0x189   : > { %v2557_v5 = vld [vmem:[#allocation3 + $0x78] sm:$0xff]  ;;  %v1227_v35 = vpop.permute.xlu1 %1226 }
 0x18a   : > { %1306 = vst.msk [vmem:[#allocation3 + $0x88] sm:$0xf] %vm1288_vm6, %v1227_v35  ;;  %v7440_v42 = vcombine.high %v2556_v45, %v2557_v5  ;;  %v7439_v61 = vcombine.low %v2556_v45, %v2557_v5  ;;  %v1739_v43 = vpop.permute.xlu0 %1738  ;;  %v9498_v45 = vpack.c.bf16 %v2120_v15, %v2120_v15 }
 0x18b   : > { %1756 = vrot.lane.b32.xlu1 %v9190_v41, %s8511_s20  ;;  %1819 = vst.msk [vmem:[#allocation3 + $0x80] sm:$0xf] %vm1802_vm8, %v1739_v43 }
 0x18c   : > { %7473 = vmatprep.mubr.msk.bf16.mxu0 %vm246_vm0, %v7440_v42  ;;  %2269 = vrot.lane.b32.xlu0 %v9428_v12, %s8513_s28 }
 0x18d   : > { %v1484_v36 = vpop.permute.xlu1 %1483  ;;  %2927 = vmatmul.mubr.bf16.gmra.mxu0 %v7439_v61 }
 0x18e   : > { %1563 = vst.msk [vmem:[#allocation3 + $0x88] sm:$0xf] %vm1545_vm7, %v1484_v36  ;;  %v1997_v47 = vpop.permute.xlu0 %1996 }
 0x18f   : > { %2014 = vrot.lane.b32.xlu1 %v8052_v3, %s8512_s23  ;;  %2077 = vst.msk [vmem:[#allocation3 + $0x80] sm:$0xf] %vm2060_vm9, %v1997_v47 }
 0x190   : > { %730 = vrot.lane.b32.xlu0 %v9385_v19, %s8506_s25 }
 0x191   : > { %v1741_v37 = vpop.permute.xlu1 %1740 }
 0x192   : > { %1820 = vst.msk [vmem:[#allocation3 + $0x88] sm:$0xf] %vm1802_vm8, %v1741_v37  ;;  %v2254_v55 = vpop.permute.xlu0 %2253 }
 0x193   : > { %2271 = vrot.lane.b32.xlu1 %v9441_v16, %s8513_s28  ;;  %2334 = vst.msk [vmem:[#allocation3 + $0x80] sm:$0xf] %vm2317_vm10, %v2254_v55 }
 0x194   : > { %987 = vrot.lane.b32.xlu0 %v9176_v22, %s8508_s9 }
 0x195   : > { %v1999_v17 = vpop.permute.xlu1 %1998 }
 0x196   : > { %2078 = vst.msk [vmem:[#allocation3 + $0x88] sm:$0xf] %vm2060_vm9, %v1999_v17  ;;  %v972_v14 = vpop.permute.xlu0 %971 }
 0x197   : > { %732 = vrot.lane.b32.xlu1 %v9395_v13, %s8506_s25  ;;  %1050 = vst.msk [vmem:[#allocation3 + $0x90] sm:$0xf] %vm1031_vm5, %v972_v14 }
 0x198   : > { %1244 = vrot.lane.b32.xlu0 %v8051_v48, %s8509_s12 }
 0x199   : > { %v2256_v1 = vpop.permute.xlu1 %2255 }
 0x19a   : > { %2335 = vst.msk [vmem:[#allocation3 + $0x88] sm:$0xf] %vm2317_vm10, %v2256_v1  ;;  %v1229_v0 = vpop.permute.xlu0 %1228  ;;  %v2558_v10 = vld [vmem:[#allocation3 + $0x80] sm:$0xff]  ;;  %v2121_v1 = vld [vmem:[#allocation2 + $0x181] sm:$0xff] }
 0x19b   : > { %989 = vrot.lane.b32.xlu1 %v9190_v41, %s8508_s9  ;;  %1307 = vst.msk [vmem:[#allocation3 + $0x90] sm:$0xf] %vm1288_vm6, %v1229_v0  ;;  %v8087_v20 = vpack.c.bf16 %v2121_v1, %v2121_v1  ;;  %v2123_v1 = vld [vmem:[#allocation2 + $0x199] sm:$0xff] }
 0x19c   : > { %1501 = vrot.lane.b32.xlu0 %v9428_v12, %s8510_s15 }
 0x19d   : > { %v974_v22 = vpop.permute.xlu1 %973 }
 0x19e   : > { %1051 = vst.msk [vmem:[#allocation3 + $0x98] sm:$0xf] %vm1031_vm5, %v974_v22  ;;  %v1486_v60 = vpop.permute.xlu0 %1485 }
 0x19f   : > { %1246 = vrot.lane.b32.xlu1 %v8052_v3, %s8509_s12  ;;  %1564 = vst.msk [vmem:[#allocation3 + $0x90] sm:$0xf] %vm1545_vm7, %v1486_v60 }
 0x1a0   : > { %1758 = vrot.lane.b32.xlu0 %v9227_v31, %s8511_s20 }
 0x1a1   : > { %v2559_v11 = vld [vmem:[#allocation3 + $0x88] sm:$0xff]  ;;  %v1231_v41 = vpop.permute.xlu1 %1230 }
 0x1a2   : > { %1308 = vst.msk [vmem:[#allocation3 + $0x98] sm:$0xf] %vm1288_vm6, %v1231_v41  ;;  %v7442_v33 = vcombine.high %v2558_v10, %v2559_v11  ;;  %v7441_v59 = vcombine.low %v2558_v10, %v2559_v11  ;;  %v1743_v19 = vpop.permute.xlu0 %1742  ;;  %v388_v10 = vld [vmem:[#allocation2 + $0x170] sm:$0xff]  ;;  %v1865_v11 = vld [vmem:[#allocation2 + $0x188] sm:$0xff]  ;;  %v7865_v41 = vpack.c.bf16 %v387_v4, %v387_v4  ;;  %v1867_v4 = vld [vmem:[#allocation2 + $0x1a0] sm:$0xff] }
 0x1a3   : > { %1503 = vrot.lane.b32.xlu1 %v9441_v16, %s8510_s15  ;;  %1821 = vst.msk [vmem:[#allocation3 + $0x90] sm:$0xf] %vm1802_vm8, %v1743_v19  ;;  %v8056_v28 = vpack.c.bf16 %v1865_v11, %v1865_v11  ;;  %v8089_v11 = vpack.c.bf16 %v2123_v1, %v2123_v1 }
 0x1a4   : > { %7474 = vmatprep.mubr.msk.bf16.mxu0 %vm246_vm0, %v7442_v33  ;;  %2016 = vrot.lane.b32.xlu0 %v8053_v21, %s8512_s23  ;;  %548 = vst.msk [vmem:[#allocation3 + $0xf0] sm:$0xf] %vm517_vm3, %v7865_v41 }
 0x1a5   : > { %v2872_v46 = vpop.f32.mrf.mxu0  ;;  %v1488_v40 = vpop.permute.xlu1 %1487  ;;  %2935 = vmatmul.mubr.bf16.gmra.mxu0 %v7441_v59 }
 0x1a6   : > { %v3001_v13 = vmax.f32 %v2872_v46, 0.0  ;;  %1565 = vst.msk [vmem:[#allocation3 + $0x98] sm:$0xf] %vm1545_vm7, %v1488_v40  ;;  %v2001_v51 = vpop.permute.xlu0 %2000  ;;  %v2122_v46 = vld [vmem:[#allocation2 + $0x189] sm:$0xff] }
 0x1a7   : > { %v2874_v57 = vpop.f32.mrf.mxu0  ;;  %1760 = vrot.lane.b32.xlu1 %v9243_v9, %s8511_s20  ;;  %2079 = vst.msk [vmem:[#allocation3 + $0x90] sm:$0xf] %vm2060_vm9, %v2001_v51 }
 0x1a8   : > { %v3037_v23 = vmul.f32 %v9477_v49, %v3001_v13  ;;  %2273 = vrot.lane.b32.xlu0 %v9479_v34, %s8513_s28  ;;  %v9557_v57 = vpack.c.bf16 %v2122_v46, %v2122_v46  ;;  %v3330_v46 = vld [vmem:[#allocation2 + $0x9] sm:$0xff] }
 0x1a9   : > { %v2875_v18 = vpop.f32.mrf.mxu0  ;;  %v1745_v53 = vpop.permute.xlu1 %1744 }
 0x1aa   : > { %v3073_v44 = vadd.f32 %v9487_v29, %v3037_v23  ;;  %v3002_v7 = vmax.f32 %v2875_v18, 0.0  ;;  %1822 = vst.msk [vmem:[#allocation3 + $0x98] sm:$0xf] %vm1802_vm8, %v1745_v53  ;;  %v2258_v48 = vpop.permute.xlu0 %2257 }
 0x1ab   : > { %v2877_v52 = vpop.f32.mrf.mxu0  ;;  %2018 = vrot.lane.b32.xlu1 %v8054_v6, %s8512_s23  ;;  %2336 = vst.msk [vmem:[#allocation3 + $0x90] sm:$0xf] %vm2317_vm10, %v2258_v48 }
 0x1ac   : > { %3105 = vst.msk [vmem:[#allocation2 + $0x19] sm:$0xff] %vm246_vm0, %v3073_v44  ;;  %v3038_v56 = vmul.f32 %v9477_v49, %v3002_v7  ;;  %734 = vrot.lane.b32.xlu0 %v9428_v12, %s8506_s25 }
 0x1ad   : > { %v2003_v62 = vpop.permute.xlu1 %2002 }
 0x1ae   : > { %v3074_v24 = vadd.f32 %v9487_v29, %v3038_v56  ;;  %2080 = vst.msk [vmem:[#allocation3 + $0x98] sm:$0xf] %vm2060_vm9, %v2003_v62  ;;  %v719_v30 = vpop.permute.xlu0 %718 }
 0x1af   : > { %2275 = vrot.lane.b32.xlu1 %v9498_v45, %s8513_s28  ;;  %795 = vst.msk [vmem:[#allocation3 + $0xa0] sm:$0xf] %vm774_vm4, %v719_v30 }
 0x1b0   : > { %3106 = vst.msk [vmem:[#allocation2 + $0x21] sm:$0xff] %vm246_vm0, %v3074_v24  ;;  %991 = vrot.lane.b32.xlu0 %v9227_v31, %s8508_s9 }
 0x1b1   : > { %v2260_v38 = vpop.permute.xlu1 %2259 }
 0x1b2   : > { %2337 = vst.msk [vmem:[#allocation3 + $0x98] sm:$0xf] %vm2317_vm10, %v2260_v38  ;;  %v976_v58 = vpop.permute.xlu0 %975  ;;  %v2560_v31 = vld [vmem:[#allocation3 + $0x90] sm:$0xff] }
 0x1b3   : > { %736 = vrot.lane.b32.xlu1 %v9441_v16, %s8506_s25  ;;  %v3841_v5 = vld [vmem:[#allocation2 + $0x18] sm:$0xff]  ;;  %1052 = vst.msk [vmem:[#allocation3 + $0xa0] sm:$0xf] %vm1031_vm5, %v976_v58  ;;  %v1864_v16 = vld [vmem:[#allocation2 + $0x180] sm:$0xff] }
 0x1b4   : > { %v9517_v35 = vpack.c.bf16 %v3841_v5, %v3841_v5  ;;  %1248 = vrot.lane.b32.xlu0 %v8053_v21, %s8509_s12  ;;  %v8055_v17 = vpack.c.bf16 %v1864_v16, %v1864_v16  ;;  %v7866_v21 = vpack.c.bf16 %v388_v10, %v388_v10  ;;  %v2380_v5 = vld [vmem:[#allocation2 + $0x19a] sm:$0xff] }
 0x1b5   : > { %v721_v12 = vpop.permute.xlu1 %720  ;;  %v8439_v10 = vld [vmem:[%s11149_s3 + $0x38] sm:$0xff]  }
 0x1b6   : > { %796 = vst.msk [vmem:[#allocation3 + $0xa8] sm:$0xf] %vm774_vm4, %v721_v12  ;;  %v1233_v42 = vpop.permute.xlu0 %1232  ;;  %5610 = vmatpush1.bf16.msra.mxu1 %v8439_v10  ;;  %v8445_v10 = vld [vmem:[%s11149_s3 + $0x8] sm:$0xff]  }
 0x1b7   : > { %3299 = vst.msk [vmem:[#allocation3 + $0x10] sm:$0xf] %vm517_vm3, %v9517_v35  ;;  %993 = vrot.lane.b32.xlu1 %v9243_v9, %s8508_s9  ;;  %v3842_v61 = vld [vmem:[#allocation2 + $0x20] sm:$0xff]  ;;  %549 = vst.msk [vmem:[#allocation3 + $0xf8] sm:$0xf] %vm517_vm3, %v7866_v21  ;;  %5611 = vmatprep.subr.bf16.mxu1 %v8507_v8 }
 0x1b8   : > { %1309 = vst.msk [vmem:[#allocation3 + $0xa0] sm:$0xf] %vm1288_vm6, %v1233_v42  ;;  %v9526_v43 = vpack.c.bf16 %v3842_v61, %v3842_v61  ;;  %1505 = vrot.lane.b32.xlu0 %v9479_v34, %s8510_s15  ;;  %v1866_v42 = vld [vmem:[#allocation2 + $0x198] sm:$0xff]  ;;  %v2381_v61 = vld [vmem:[#allocation2 + $0x1a2] sm:$0xff] }
 0x1b9   : > { %v2561_v3 = vld [vmem:[#allocation3 + $0x98] sm:$0xff]  ;;  %v978_v25 = vpop.permute.xlu1 %977 }
 0x1ba   : > { %1053 = vst.msk [vmem:[#allocation3 + $0xa8] sm:$0xf] %vm1031_vm5, %v978_v25  ;;  %v7444_v36 = vcombine.high %v2560_v31, %v2561_v3  ;;  %v7443_v47 = vcombine.low %v2560_v31, %v2561_v3  ;;  %v1490_v37 = vpop.permute.xlu0 %1489  ;;  %v3329_v21 = vld [vmem:[#allocation2 + $0x1] sm:$0xff] }
 0x1bb   : > { %3300 = vst.msk [vmem:[#allocation3 + $0x18] sm:$0xf] %vm517_vm3, %v9526_v43  ;;  %1250 = vrot.lane.b32.xlu1 %v8054_v6, %s8509_s12 }
 0x1bc   : > { %1566 = vst.msk [vmem:[#allocation3 + $0xa0] sm:$0xf] %vm1545_vm7, %v1490_v37  ;;  %7475 = vmatprep.mubr.msk.bf16.mxu0 %vm246_vm0, %v7444_v36  ;;  %1762 = vrot.lane.b32.xlu0 %v9287_v50, %s8511_s20 }
 0x1bd   : > { %v1235_v9 = vpop.permute.xlu1 %1234  ;;  %v2880_v55 = vpop.f32.mrf.mxu0  ;;  %2943 = vmatmul.mubr.bf16.gmra.mxu0 %v7443_v47  ;;  %v8121_v47 = vpack.c.bf16 %v2380_v5, %v2380_v5 }
 0x1be   : > { %1310 = vst.msk [vmem:[#allocation3 + $0xa8] sm:$0xf] %vm1288_vm6, %v1235_v9  ;;  %v3003_v14 = vmax.f32 %v2880_v55, 0.0  ;;  %v1747_v0 = vpop.permute.xlu0 %1746  ;;  %v8057_v9 = vpack.c.bf16 %v1866_v42, %v1866_v42  ;;  %v8122_v55 = vpack.c.bf16 %v2381_v61, %v2381_v61 }
 0x1bf   : > { %1507 = vrot.lane.b32.xlu1 %v9498_v45, %s8510_s15  ;;  %v2882_v22 = vpop.f32.mrf.mxu0  ;;  %1823 = vst.msk [vmem:[#allocation3 + $0xa0] sm:$0xf] %vm1802_vm8, %v1747_v0 }
 0x1c0   : > { %v3039_v60 = vmul.f32 %v9477_v49, %v3003_v14  ;;  %2020 = vrot.lane.b32.xlu0 %v8055_v17, %s8512_s23  ;;  %2540 = vst.msk [vmem:[#allocation3 + $0xf4] sm:$0xf] %vm517_vm3, %v8121_v47  ;;  %2541 = vst.msk [vmem:[#allocation3 + $0xfc] sm:$0xf] %vm517_vm3, %v8122_v55 }
 0x1c1   : > { %v1492_v33 = vpop.permute.xlu1 %1491  ;;  %v2883_v59 = vpop.f32.mrf.mxu0 }
 0x1c2   : > { %v3075_v19 = vadd.f32 %v9487_v29, %v3039_v60  ;;  %1567 = vst.msk [vmem:[#allocation3 + $0xa8] sm:$0xf] %vm1545_vm7, %v1492_v33  ;;  %v3004_v54 = vmax.f32 %v2883_v59, 0.0  ;;  %v2005_v26 = vpop.permute.xlu0 %2004  ;;  %v8058_v59 = vpack.c.bf16 %v1867_v4, %v1867_v4 }
 0x1c3   : > { %1764 = vrot.lane.b32.xlu1 %v9302_v63, %s8511_s20  ;;  %v2885_v27 = vpop.f32.mrf.mxu0  ;;  %2081 = vst.msk [vmem:[#allocation3 + $0xa0] sm:$0xf] %vm2060_vm9, %v2005_v26  ;;  %v8155_v26 = vpack.c.bf16 %v3329_v21, %v3329_v21 }
 0x1c4   : > { %3107 = vst.msk [vmem:[#allocation2 + $0x31] sm:$0xff] %vm246_vm0, %v3075_v19  ;;  %v3040_v32 = vmul.f32 %v9477_v49, %v3004_v54  ;;  %2277 = vrot.lane.b32.xlu0 %v8087_v20, %s8513_s28  ;;  %v8440_v19 = vld [vmem:[%s11149_s3 + $0x30] sm:$0xff]   ;;  %v3585_v27 = vld [vmem:[#allocation2 + $0x2] sm:$0xff] }
 0x1c5   : > { %v1749_v40 = vpop.permute.xlu1 %1748  ;;  %5612 = vmatpush1.bf16.msra.mxu1 %v8440_v19 }
 0x1c6   : > { %v3076_v13 = vadd.f32 %v9487_v29, %v3040_v32  ;;  %1824 = vst.msk [vmem:[#allocation3 + $0xa8] sm:$0xf] %vm1802_vm8, %v1749_v40  ;;  %v2262_v51 = vpop.permute.xlu0 %2261  ;;  %5613 = vmatprep.subr.bf16.mxu1 %v8507_v8  ;;  %v8441_v40 = vld [vmem:[%s11149_s3 + $0x28] sm:$0xff]  }
 0x1c7   : > { %2022 = vrot.lane.b32.xlu1 %v8056_v28, %s8512_s23  ;;  %2338 = vst.msk [vmem:[#allocation3 + $0xa0] sm:$0xf] %vm2317_vm10, %v2262_v51 }
 0x1c8   : > { %3108 = vst.msk [vmem:[#allocation2 + $0x39] sm:$0xff] %vm246_vm0, %v3076_v13  ;;  %738 = vrot.lane.b32.xlu0 %v9479_v34, %s8506_s25 }
 0x1c9   : > { %v2007_v6 = vpop.permute.xlu1 %2006  ;;  %5614 = vmatpush1.bf16.msra.mxu1 %v8441_v40 }
 0x1ca   : > { %2082 = vst.msk [vmem:[#allocation3 + $0xa8] sm:$0xf] %vm2060_vm9, %v2007_v6  ;;  %v723_v23 = vpop.permute.xlu0 %722  ;;  %5615 = vmatprep.subr.bf16.mxu1 %v8507_v8 }
 0x1cb   : > { %2279 = vrot.lane.b32.xlu1 %v9557_v57, %s8513_s28  ;;  %v3141_v15 = vld [vmem:[#allocation2 + $0x30] sm:$0xff]  ;;  %797 = vst.msk [vmem:[#allocation3 + $0xb0] sm:$0xf] %vm774_vm4, %v723_v23  ;;  %v8156_v23 = vpack.c.bf16 %v3330_v46, %v3330_v46 }
 0x1cc   : > { %v8127_v18 = vpack.c.bf16 %v3141_v15, %v3141_v15  ;;  %995 = vrot.lane.b32.xlu0 %v9287_v50, %s8508_s9  ;;  %v3586_v15 = vld [vmem:[#allocation2 + $0xa] sm:$0xff] }
 0x1cd   : > { %v2264_v53 = vpop.permute.xlu1 %2263  ;;  %v4609_v4 = vld [vmem:[#allocation2 + $0x30] sm:$0xff] }
 0x1ce   : > { %2339 = vst.msk [vmem:[#allocation3 + $0xa8] sm:$0xf] %vm2317_vm10, %v2264_v53  ;;  %v980_v34 = vpop.permute.xlu0 %979  ;;  %v2562_v24 = vld [vmem:[#allocation3 + $0xa0] sm:$0xff] }
 0x1cf   : > { %3301 = vst.msk [vmem:[#allocation3 + $0x20] sm:$0xf] %vm517_vm3, %v8127_v18  ;;  %740 = vrot.lane.b32.xlu1 %v9498_v45, %s8506_s25  ;;  %v4355_v44 = vld [vmem:[#allocation2 + $0x32] sm:$0xff]  ;;  %v4356_v7 = vld [vmem:[#allocation2 + $0x3a] sm:$0xff] }
 0x1d0   : > { %1054 = vst.msk [vmem:[#allocation3 + $0xb0] sm:$0xf] %vm1031_vm5, %v980_v34  ;;  %v3142_v48 = vld [vmem:[#allocation2 + $0x38] sm:$0xff]  ;;  %1252 = vrot.lane.b32.xlu0 %v8055_v17, %s8509_s12  ;;  %v9575_v56 = vpack.c.bf16 %v4355_v44, %v4355_v44  ;;  %v9577_v50 = vpack.c.bf16 %v4356_v7, %v4356_v7  ;;  %v8442_v44 = vld [vmem:[%s11149_s3 + $0x20] sm:$0xff]  }
 0x1d1   : > { %v725_v52 = vpop.permute.xlu1 %724  ;;  %v8128_v62 = vpack.c.bf16 %v3142_v48, %v3142_v48  ;;  %5616 = vmatpush1.bf16.msra.mxu1 %v8442_v44 }
 0x1d2   : > { %798 = vst.msk [vmem:[#allocation3 + $0xb8] sm:$0xf] %vm774_vm4, %v725_v52  ;;  %v1237_v30 = vpop.permute.xlu0 %1236  ;;  %5617 = vmatprep.subr.bf16.mxu1 %v8507_v8 }
 0x1d3   : > { %997 = vrot.lane.b32.xlu1 %v9302_v63, %s8508_s9  ;;  %5281 = vst.msk [vmem:[#allocation3 + $0x4] sm:$0xf] %vm517_vm3, %v9575_v56  ;;  %5282 = vst.msk [vmem:[#allocation3 + $0xc] sm:$0xf] %vm517_vm3, %v9577_v50 }
 0x1d4   : > { %3302 = vst.msk [vmem:[#allocation3 + $0x28] sm:$0xf] %vm517_vm3, %v8128_v62  ;;  %1509 = vrot.lane.b32.xlu0 %v8087_v20, %s8510_s15  ;;  %v2124_v20 = vld [vmem:[#allocation2 + $0x1a1] sm:$0xff] }
 0x1d5   : > { %1311 = vst.msk [vmem:[#allocation3 + $0xb0] sm:$0xf] %vm1288_vm6, %v1237_v30  ;;  %v2563_v45 = vld [vmem:[#allocation3 + $0xa8] sm:$0xff]  ;;  %v982_v38 = vpop.permute.xlu1 %981  ;;  %v2888_v58 = vpop.f32.mrf.mxu0  ;;  %v8188_v30 = vpack.c.bf16 %v3586_v15, %v3586_v15 }
 0x1d6   : > { %1055 = vst.msk [vmem:[#allocation3 + $0xb8] sm:$0xf] %vm1031_vm5, %v982_v38  ;;  %v3005_v12 = vmax.f32 %v2888_v58, 0.0  ;;  %v7446_v63 = vcombine.high %v2562_v24, %v2563_v45  ;;  %v7445_v31 = vcombine.low %v2562_v24, %v2563_v45  ;;  %v1494_v3 = vpop.permute.xlu0 %1493  ;;  %v4097_v45 = vld [vmem:[#allocation2 + $0x19] sm:$0xff] }
 0x1d7   : > { %1254 = vrot.lane.b32.xlu1 %v8056_v28, %s8509_s12  ;;  %v2890_v25 = vpop.f32.mrf.mxu0  ;;  %1568 = vst.msk [vmem:[#allocation3 + $0xb0] sm:$0xf] %vm1545_vm7, %v1494_v3  ;;  %v8090_v28 = vpack.c.bf16 %v2124_v20, %v2124_v20  ;;  %v8443_v38 = vld [vmem:[%s11149_s3 + $0x18] sm:$0xff]   ;;  %v9657_v61 = vpack.c.bf16 %v4097_v45, %v4097_v45  ;;  %v8446_v20 = vld [vmem:[%s11149_s3] sm:$0xff]  }
 0x1d8   : > { %v3041_v36 = vmul.f32 %v9477_v49, %v3005_v12  ;;  %7476 = vmatprep.mubr.msk.bf16.mxu0 %vm246_vm0, %v7446_v63  ;;  %1766 = vrot.lane.b32.xlu0 %v9344_v2, %s8511_s20  ;;  %v4353_v25 = vld [vmem:[#allocation2 + $0x1a] sm:$0xff] }
 0x1d9   : > { %v1239_v16 = vpop.permute.xlu1 %1238  ;;  %v2891_v37 = vpop.f32.mrf.mxu0  ;;  %2951 = vmatmul.mubr.bf16.gmra.mxu0 %v7445_v31  ;;  %5618 = vmatpush1.bf16.msra.mxu1 %v8443_v38 }
 0x1da   : > { %v3077_v17 = vadd.f32 %v9487_v29, %v3041_v36  ;;  %1312 = vst.msk [vmem:[#allocation3 + $0xb8] sm:$0xf] %vm1288_vm6, %v1239_v16  ;;  %v3006_v14 = vmax.f32 %v2891_v37, 0.0  ;;  %v1751_v0 = vpop.permute.xlu0 %1750  ;;  %5619 = vmatprep.subr.bf16.mxu1 %v8507_v8 }
 0x1db   : > { %1511 = vrot.lane.b32.xlu1 %v9557_v57, %s8510_s15  ;;  %v2893_v22 = vpop.f32.mrf.mxu0  ;;  %1825 = vst.msk [vmem:[#allocation3 + $0xb0] sm:$0xf] %vm1802_vm8, %v1751_v0  ;;  %v8187_v57 = vpack.c.bf16 %v3585_v27, %v3585_v27 }
 0x1dc   : > { %3109 = vst.msk [vmem:[#allocation2 + $0x49] sm:$0xff] %vm246_vm0, %v3077_v17  ;;  %v3042_v2 = vmul.f32 %v9477_v49, %v3006_v14  ;;  %2024 = vrot.lane.b32.xlu0 %v8057_v9, %s8512_s23  ;;  %v4098_v14 = vld [vmem:[#allocation2 + $0x21] sm:$0xff]  ;;  %v9671_v22 = vpack.c.bf16 %v4353_v25, %v4353_v25 }
 0x1dd   : > { %v1496_v60 = vpop.permute.xlu1 %1495 }
 0x1de   : > { %v3078_v41 = vadd.f32 %v9487_v29, %v3042_v2  ;;  %1569 = vst.msk [vmem:[#allocation3 + $0xb8] sm:$0xf] %vm1545_vm7, %v1496_v60  ;;  %v2009_v33 = vpop.permute.xlu0 %2008 }
 0x1df   : > { %1768 = vrot.lane.b32.xlu1 %v9358_v39, %s8511_s20  ;;  %2083 = vst.msk [vmem:[#allocation3 + $0xb0] sm:$0xf] %vm2060_vm9, %v2009_v33  ;;  %v8315_v33 = vpack.c.bf16 %v4609_v4, %v4609_v4 }
 0x1e0   : > { %3110 = vst.msk [vmem:[#allocation2 + $0x51] sm:$0xff] %vm246_vm0, %v3078_v41  ;;  %2281 = vrot.lane.b32.xlu0 %v8089_v11, %s8513_s28  ;;  %v4354_v41 = vld [vmem:[#allocation2 + $0x22] sm:$0xff] }
 0x1e1   : > { %v1753_v54 = vpop.permute.xlu1 %1752 }
 0x1e2   : > { %1826 = vst.msk [vmem:[#allocation3 + $0xb8] sm:$0xf] %vm1802_vm8, %v1753_v54  ;;  %v2266_v39 = vpop.permute.xlu0 %2265  ;;  %v8284_v54 = vpack.c.bf16 %v4354_v41, %v4354_v41 }
 0x1e3   : > { %2026 = vrot.lane.b32.xlu1 %v8058_v59, %s8512_s23  ;;  %v3143_v32 = vld [vmem:[#allocation2 + $0x48] sm:$0xff]  ;;  %2340 = vst.msk [vmem:[#allocation3 + $0xb0] sm:$0xf] %vm2317_vm10, %v2266_v39  ;;  %v4865_v59 = vld [vmem:[#allocation2 + $0x31] sm:$0xff] }
 0x1e4   : > { %v8129_v13 = vpack.c.bf16 %v3143_v32, %v3143_v32  ;;  %3457 = vrot.lane.b32.xlu0 %v8155_v26, %s8506_s25  ;;  %v4610_v26 = vld [vmem:[#allocation2 + $0x38] sm:$0xff]  ;;  %v9695_v39 = vpack.c.bf16 %v4865_v59, %v4865_v59  ;;  %v8447_v32 = vld [vmem:[%s11149_s3 + $0x40] sm:$0xff]  }
 0x1e5   : > { %v2011_v51 = vpop.permute.xlu1 %2010 }
 0x1e6   : > { %2084 = vst.msk [vmem:[#allocation3 + $0xb8] sm:$0xf] %vm2060_vm9, %v2011_v51  ;;  %v727_v6 = vpop.permute.xlu0 %726  ;;  %v4866_v51 = vld [vmem:[#allocation2 + $0x39] sm:$0xff] }
 0x1e7   : > { %3303 = vst.msk [vmem:[#allocation3 + $0x30] sm:$0xf] %vm517_vm3, %v8129_v13  ;;  %2283 = vrot.lane.b32.xlu1 %v8090_v28, %s8513_s28  ;;  %v4357_v18 = vld [vmem:[#allocation2 + $0x4a] sm:$0xff]  ;;  %v4358_v34 = vld [vmem:[#allocation2 + $0x52] sm:$0xff]  ;;  %v8316_v13 = vpack.c.bf16 %v4610_v26, %v4610_v26 }
 0x1e8   : > { %799 = vst.msk [vmem:[#allocation3 + $0xc0] sm:$0xf] %vm774_vm4, %v727_v6  ;;  %v9633_v53 = vpack.c.bf16 %v4357_v18, %v4357_v18  ;;  %v3144_v7 = vld [vmem:[#allocation2 + $0x50] sm:$0xff]  ;;  %3713 = vrot.lane.b32.xlu0 %v8187_v57, %s8508_s9  ;;  %v9639_v52 = vpack.c.bf16 %v4358_v34, %v4358_v34  ;;  %v9712_v34 = vpack.c.bf16 %v4866_v51, %v4866_v51 }
 0x1e9   : > { %v2268_v48 = vpop.permute.xlu1 %2267  ;;  %v8130_v62 = vpack.c.bf16 %v3144_v7, %v3144_v7  ;;  %v4868_v26 = vld [vmem:[#allocation2 + $0x51] sm:$0xff] }
 0x1ea   : > { %2341 = vst.msk [vmem:[#allocation3 + $0xb8] sm:$0xf] %vm2317_vm10, %v2268_v48  ;;  %v984_v24 = vpop.permute.xlu0 %983  ;;  %v2564_v63 = vld [vmem:[#allocation3 + $0xb0] sm:$0xff] }
 0x1eb   : > { %5283 = vst.msk [vmem:[#allocation3 + $0x14] sm:$0xf] %vm517_vm3, %v9633_v53  ;;  %3459 = vrot.lane.b32.xlu1 %v8156_v23, %s8506_s25  ;;  %5284 = vst.msk [vmem:[#allocation3 + $0x1c] sm:$0xf] %vm517_vm3, %v9639_v52 }
 0x1ec   : > { %3304 = vst.msk [vmem:[#allocation3 + $0x38] sm:$0xf] %vm517_vm3, %v8130_v62  ;;  %3969 = vrot.lane.b32.xlu0 %v9517_v35, %s8509_s12  ;;  %v8444_v35 = vld [vmem:[%s11149_s3 + $0x10] sm:$0xff]  }
 0x1ed   : > { %1056 = vst.msk [vmem:[#allocation3 + $0xc0] sm:$0xf] %vm1031_vm5, %v984_v24  ;;  %v729_v58 = vpop.permute.xlu1 %728  ;;  %v2896_v5 = vpop.f32.mrf.mxu0  ;;  %5620 = vmatpush1.bf16.msra.mxu1 %v8444_v35 }
 0x1ee   : > { %800 = vst.msk [vmem:[#allocation3 + $0xc8] sm:$0xf] %vm774_vm4, %v729_v58  ;;  %v3007_v12 = vmax.f32 %v2896_v5, 0.0  ;;  %v1241_v31 = vpop.permute.xlu0 %1240  ;;  %5621 = vmatprep.subr.bf16.mxu1 %v8507_v8 }
 0x1ef   : > { %3715 = vrot.lane.b32.xlu1 %v8188_v30, %s8508_s9  ;;  %v2898_v42 = vpop.f32.mrf.mxu0  ;;  %1313 = vst.msk [vmem:[#allocation3 + $0xc0] sm:$0xf] %vm1288_vm6, %v1241_v31 }
 0x1f0   : > { %v3043_v3 = vmul.f32 %v9477_v49, %v3007_v12  ;;  %4225 = vrot.lane.b32.xlu0 %v9657_v61, %s8510_s15 }
 0x1f1   : > { %v2565_v36 = vld [vmem:[#allocation3 + $0xb8] sm:$0xff]  ;;  %v986_v47 = vpop.permute.xlu1 %985  ;;  %v2899_v16 = vpop.f32.mrf.mxu0  ;;  %5622 = vmatpush1.bf16.msra.mxu1 %v8445_v10  ;;  %v4612_v10 = vld [vmem:[#allocation2 + $0x50] sm:$0xff] }
 0x1f2   : > { %v3079_v37 = vadd.f32 %v9487_v29, %v3043_v3  ;;  %1057 = vst.msk [vmem:[#allocation3 + $0xc8] sm:$0xf] %vm1031_vm5, %v986_v47  ;;  %v3008_v9 = vmax.f32 %v2899_v16, 0.0  ;;  %v7448_v55 = vcombine.high %v2564_v63, %v2565_v36  ;;  %v7447_v17 = vcombine.low %v2564_v63, %v2565_v36  ;;  %v1498_v1 = vpop.permute.xlu0 %1497  ;;  %5623 = vmatprep.subr.bf16.mxu1 %v8507_v8 }
 0x1f3   : > { %3971 = vrot.lane.b32.xlu1 %v9526_v43, %s8509_s12  ;;  %v2901_v0 = vpop.f32.mrf.mxu0  ;;  %1570 = vst.msk [vmem:[#allocation3 + $0xc0] sm:$0xf] %vm1545_vm7, %v1498_v1  ;;  %v8252_v43 = vpack.c.bf16 %v4098_v14, %v4098_v14 }
 0x1f4   : > { %3111 = vst.msk [vmem:[#allocation2 + $0x61] sm:$0xff] %vm246_vm0, %v3079_v37  ;;  %v3044_v2 = vmul.f32 %v9477_v49, %v3008_v9  ;;  %7477 = vmatprep.mubr.msk.bf16.mxu0 %vm246_vm0, %v7448_v55  ;;  %4481 = vrot.lane.b32.xlu0 %v9671_v22, %s8511_s20  ;;  %v4611_v55 = vld [vmem:[#allocation2 + $0x48] sm:$0xff] }
 0x1f5   : > { %v1243_v60 = vpop.permute.xlu1 %1242  ;;  %2959 = vmatmul.mubr.bf16.gmra.mxu0 %v7447_v17  ;;  %5624 = vmatpush1.bf16.msra.mxu1 %v8446_v20  ;;  %v8317_v1 = vpack.c.bf16 %v4611_v55, %v4611_v55  ;;  %v8318_v20 = vpack.c.bf16 %v4612_v10, %v4612_v10 }
 0x1f6   : > { %v3080_v11 = vadd.f32 %v9487_v29, %v3044_v2  ;;  %1314 = vst.msk [vmem:[#allocation3 + $0xc8] sm:$0xf] %vm1288_vm6, %v1243_v60  ;;  %v1755_v21 = vpop.permute.xlu0 %1754  ;;  %5639 = vmatprep.subr.bf16.mxu1 %v8507_v8 }
 0x1f7   : > { %4227 = vrot.lane.b32.xlu1 %v8252_v43, %s8510_s15  ;;  %1827 = vst.msk [vmem:[#allocation3 + $0xc0] sm:$0xf] %vm1802_vm8, %v1755_v21 }
 0x1f8   : > { %3112 = vst.msk [vmem:[#allocation2 + $0x69] sm:$0xff] %vm246_vm0, %v3080_v11  ;;  %4737 = vrot.lane.b32.xlu0 %v8315_v33, %s8512_s23 }
 0x1f9   : > { %v1500_v19 = vpop.permute.xlu1 %1499  ;;  %5640 = vmatpush2.bf16.msra.mxu1 %v8447_v32 }
 0x1fa   : > { %1571 = vst.msk [vmem:[#allocation3 + $0xc8] sm:$0xf] %vm1545_vm7, %v1500_v19  ;;  %v2013_v27 = vpop.permute.xlu0 %2012 }
 0x1fb   : > { %4483 = vrot.lane.b32.xlu1 %v8284_v54, %s8511_s20  ;;  %v3145_v28 = vld [vmem:[#allocation2 + $0x60] sm:$0xff]  ;;  %2085 = vst.msk [vmem:[#allocation3 + $0xc0] sm:$0xf] %vm2060_vm9, %v2013_v27 }
 0x1fc   : > { %v8131_v46 = vpack.c.bf16 %v3145_v28, %v3145_v28  ;;  %4993 = vrot.lane.b32.xlu0 %v9695_v39, %s8513_s28 }
 0x1fd   : > { %v1757_v40 = vpop.permute.xlu1 %1756 }
 0x1fe   : > { %1828 = vst.msk [vmem:[#allocation3 + $0xc8] sm:$0xf] %vm1802_vm8, %v1757_v40  ;;  %v2270_v8 = vpop.permute.xlu0 %2269 }
 0x1ff   : > { %3305 = vst.msk [vmem:[#allocation3 + $0x40] sm:$0xf] %vm517_vm3, %v8131_v46  ;;  %4739 = vrot.lane.b32.xlu1 %v8316_v13, %s8512_s23  ;;  %v4359_v57 = vld [vmem:[#allocation2 + $0x62] sm:$0xff]  ;;  %v4360_v23 = vld [vmem:[#allocation2 + $0x6a] sm:$0xff]  ;;  %v9776_v46 = vpack.c.bf16 %v4868_v26, %v4868_v26 }
 0x200   : > { %2342 = vst.msk [vmem:[#allocation3 + $0xc0] sm:$0xf] %vm2317_vm10, %v2270_v8  ;;  %v9708_v6 = vpack.c.bf16 %v4359_v57, %v4359_v57  ;;  %v3146_v15 = vld [vmem:[#allocation2 + $0x68] sm:$0xff]  ;;  %3461 = vrot.lane.b32.xlu0 %v9657_v61, %s8506_s25  ;;  %v9714_v44 = vpack.c.bf16 %v4360_v23, %v4360_v23 }
 0x201   : > { %v2015_v18 = vpop.permute.xlu1 %2014  ;;  %v8132_v7 = vpack.c.bf16 %v3146_v15, %v3146_v15  ;;  %v4614_v55 = vld [vmem:[#allocation2 + $0x68] sm:$0xff] }
 0x202   : > { %2086 = vst.msk [vmem:[#allocation3 + $0xc8] sm:$0xf] %vm2060_vm9, %v2015_v18  ;;  %v731_v48 = vpop.permute.xlu0 %730 }
 0x203   : > { %5285 = vst.msk [vmem:[#allocation3 + $0x24] sm:$0xf] %vm517_vm3, %v9708_v6  ;;  %4995 = vrot.lane.b32.xlu1 %v9712_v34, %s8513_s28  ;;  %5286 = vst.msk [vmem:[#allocation3 + $0x2c] sm:$0xf] %vm517_vm3, %v9714_v44 }
 0x204   : > { %3306 = vst.msk [vmem:[#allocation3 + $0x48] sm:$0xf] %vm517_vm3, %v8132_v7  ;;  %3717 = vrot.lane.b32.xlu0 %v9671_v22, %s8508_s9  ;;  %v4867_v22 = vld [vmem:[#allocation2 + $0x49] sm:$0xff] }
 0x205   : > { %801 = vst.msk [vmem:[#allocation3 + $0xd0] sm:$0xf] %vm774_vm4, %v731_v48  ;;  %v2272_v62 = vpop.permute.xlu1 %2271  ;;  %v2904_v24 = vpop.f32.mrf.mxu0 }
 0x206   : > { %2343 = vst.msk [vmem:[#allocation3 + $0xc8] sm:$0xf] %vm2317_vm10, %v2272_v62  ;;  %v3009_v30 = vmax.f32 %v2904_v24, 0.0  ;;  %v988_v45 = vpop.permute.xlu0 %987 }
 0x207   : > { %3463 = vrot.lane.b32.xlu1 %v8252_v43, %s8506_s25  ;;  %v2906_v38 = vpop.f32.mrf.mxu0  ;;  %1058 = vst.msk [vmem:[#allocation3 + $0xd0] sm:$0xf] %vm1031_vm5, %v988_v45  ;;  %v2566_v42 = vld [vmem:[#allocation3 + $0xc0] sm:$0xff]  ;;  %v9757_v43 = vpack.c.bf16 %v4867_v22, %v4867_v22  ;;  %v8320_v22 = vpack.c.bf16 %v4614_v55, %v4614_v55 }
 0x208   : > { %v3045_v58 = vmul.f32 %v9477_v49, %v3009_v30  ;;  %3973 = vrot.lane.b32.xlu0 %v8315_v33, %s8509_s12 }
 0x209   : > { %v733_v5 = vpop.permute.xlu1 %732  ;;  %v2907_v12 = vpop.f32.mrf.mxu0 }
 0x20a   : > { %v3081_v63 = vadd.f32 %v9487_v29, %v3045_v58  ;;  %802 = vst.msk [vmem:[#allocation3 + $0xd8] sm:$0xf] %vm774_vm4, %v733_v5  ;;  %v3010_v31 = vmax.f32 %v2907_v12, 0.0  ;;  %v1245_v61 = vpop.permute.xlu0 %1244 }
 0x20b   : > { %3719 = vrot.lane.b32.xlu1 %v8284_v54, %s8508_s9  ;;  %v2909_v3 = vpop.f32.mrf.mxu0  ;;  %1315 = vst.msk [vmem:[#allocation3 + $0xd0] sm:$0xf] %vm1288_vm6, %v1245_v61 }
 0x20c   : > { %3113 = vst.msk [vmem:[#allocation2 + $0x79] sm:$0xff] %vm246_vm0, %v3081_v63  ;;  %v3046_v25 = vmul.f32 %v9477_v49, %v3010_v31  ;;  %4229 = vrot.lane.b32.xlu0 %v9695_v39, %s8510_s15 }
 0x20d   : > { %v2567_v35 = vld [vmem:[#allocation3 + $0xc8] sm:$0xff]  ;;  %v990_v36 = vpop.permute.xlu1 %989 }
 0x20e   : > { %v3082_v47 = vadd.f32 %v9487_v29, %v3046_v25  ;;  %1059 = vst.msk [vmem:[#allocation3 + $0xd8] sm:$0xf] %vm1031_vm5, %v990_v36  ;;  %v7450_v16 = vcombine.high %v2566_v42, %v2567_v35  ;;  %v7449_v37 = vcombine.low %v2566_v42, %v2567_v35  ;;  %v1502_v9 = vpop.permute.xlu0 %1501  ;;  %v4869_v25 = vld [vmem:[#allocation2 + $0x61] sm:$0xff] }
 0x20f   : > { %3975 = vrot.lane.b32.xlu1 %v8316_v13, %s8509_s12  ;;  %1572 = vst.msk [vmem:[#allocation3 + $0xd0] sm:$0xf] %vm1545_vm7, %v1502_v9 }
 0x210   : > { %3114 = vst.msk [vmem:[#allocation2 + $0x81] sm:$0xff] %vm246_vm0, %v3082_v47  ;;  %7478 = vmatprep.mubr.msk.bf16.mxu0 %vm246_vm0, %v7450_v16  ;;  %4485 = vrot.lane.b32.xlu0 %v9575_v56, %s8511_s20 }
 0x211   : > { %v1247_v17 = vpop.permute.xlu1 %1246  ;;  %2967 = vmatmul.mubr.bf16.gmra.mxu0 %v7449_v37 }
 0x212   : > { %1316 = vst.msk [vmem:[#allocation3 + $0xd8] sm:$0xf] %vm1288_vm6, %v1247_v17  ;;  %v1759_v14 = vpop.permute.xlu0 %1758 }
 0x213   : > { %4231 = vrot.lane.b32.xlu1 %v9712_v34, %s8510_s15  ;;  %v3147_v0 = vld [vmem:[#allocation2 + $0x78] sm:$0xff]  ;;  %1829 = vst.msk [vmem:[#allocation3 + $0xd0] sm:$0xf] %vm1802_vm8, %v1759_v14  ;;  %v9822_v14 = vpack.c.bf16 %v4869_v25, %v4869_v25 }
 0x214   : > { %v8133_v2 = vpack.c.bf16 %v3147_v0, %v3147_v0  ;;  %4741 = vrot.lane.b32.xlu0 %v8317_v1, %s8512_s23 }
 0x215   : > { %v1504_v4 = vpop.permute.xlu1 %1503 }
 0x216   : > { %1573 = vst.msk [vmem:[#allocation3 + $0xd8] sm:$0xf] %vm1545_vm7, %v1504_v4  ;;  %v2017_v60 = vpop.permute.xlu0 %2016  ;;  %v4870_v4 = vld [vmem:[#allocation2 + $0x69] sm:$0xff] }
 0x217   : > { %3307 = vst.msk [vmem:[#allocation3 + $0x50] sm:$0xf] %vm517_vm3, %v8133_v2  ;;  %4487 = vrot.lane.b32.xlu1 %v9577_v50, %s8511_s20  ;;  %v4361_v11 = vld [vmem:[#allocation2 + $0x7a] sm:$0xff]  ;;  %v4362_v21 = vld [vmem:[#allocation2 + $0x82] sm:$0xff] }
 0x218   : > { %2087 = vst.msk [vmem:[#allocation3 + $0xd0] sm:$0xf] %vm2060_vm9, %v2017_v60  ;;  %v9760_v41 = vpack.c.bf16 %v4361_v11, %v4361_v11  ;;  %v3148_v33 = vld [vmem:[#allocation2 + $0x80] sm:$0xff]  ;;  %4997 = vrot.lane.b32.xlu0 %v9757_v43, %s8513_s28  ;;  %v9764_v19 = vpack.c.bf16 %v4362_v21, %v4362_v21 }
 0x219   : > { %v1761_v59 = vpop.permute.xlu1 %1760  ;;  %v8134_v54 = vpack.c.bf16 %v3148_v33, %v3148_v33  ;;  %v4872_v55 = vld [vmem:[#allocation2 + $0x81] sm:$0xff] }
 0x21a   : > { %1830 = vst.msk [vmem:[#allocation3 + $0xd8] sm:$0xf] %vm1802_vm8, %v1761_v59  ;;  %v2274_v27 = vpop.permute.xlu0 %2273  ;;  %v9836_v59 = vpack.c.bf16 %v4870_v4, %v4870_v4 }
 0x21b   : > { %5287 = vst.msk [vmem:[#allocation3 + $0x34] sm:$0xf] %vm517_vm3, %v9760_v41  ;;  %4743 = vrot.lane.b32.xlu1 %v8318_v20, %s8512_s23  ;;  %5288 = vst.msk [vmem:[#allocation3 + $0x3c] sm:$0xf] %vm517_vm3, %v9764_v19 }
 0x21c   : > { %3308 = vst.msk [vmem:[#allocation3 + $0x58] sm:$0xf] %vm517_vm3, %v8134_v54  ;;  %3465 = vrot.lane.b32.xlu0 %v9695_v39, %s8506_s25 }
 0x21d   : > { %2344 = vst.msk [vmem:[#allocation3 + $0xd0] sm:$0xf] %vm2317_vm10, %v2274_v27  ;;  %v2019_v28 = vpop.permute.xlu1 %2018  ;;  %v2912_v32 = vpop.f32.mrf.mxu0 }
 0x21e   : > { %2088 = vst.msk [vmem:[#allocation3 + $0xd8] sm:$0xf] %vm2060_vm9, %v2019_v28  ;;  %v3011_v40 = vmax.f32 %v2912_v32, 0.0  ;;  %v735_v13 = vpop.permute.xlu0 %734 }
 0x21f   : > { %4999 = vrot.lane.b32.xlu1 %v9776_v46, %s8513_s28  ;;  %v2914_v51 = vpop.f32.mrf.mxu0  ;;  %803 = vst.msk [vmem:[#allocation3 + $0xe0] sm:$0xf] %vm774_vm4, %v735_v13 }
 0x220   : > { %v3047_v8 = vmul.f32 %v9477_v49, %v3011_v40  ;;  %3721 = vrot.lane.b32.xlu0 %v9575_v56, %s8508_s9 }
 0x221   : > { %v2276_v57 = vpop.permute.xlu1 %2275  ;;  %v2915_v39 = vpop.f32.mrf.mxu0 }
 0x222   : > { %v3083_v23 = vadd.f32 %v9487_v29, %v3047_v8  ;;  %2345 = vst.msk [vmem:[#allocation3 + $0xd8] sm:$0xf] %vm2317_vm10, %v2276_v57  ;;  %v3012_v15 = vmax.f32 %v2915_v39, 0.0  ;;  %v992_v18 = vpop.permute.xlu0 %991 }
 0x223   : > { %3467 = vrot.lane.b32.xlu1 %v9712_v34, %s8506_s25  ;;  %v2917_v7 = vpop.f32.mrf.mxu0  ;;  %1060 = vst.msk [vmem:[#allocation3 + $0xe0] sm:$0xf] %vm1031_vm5, %v992_v18 }
 0x224   : > { %3115 = vst.msk [vmem:[#allocation2 + $0x91] sm:$0xff] %vm246_vm0, %v3083_v23  ;;  %v3048_v48 = vmul.f32 %v9477_v49, %v3012_v15  ;;  %3977 = vrot.lane.b32.xlu0 %v8317_v1, %s8509_s12  ;;  %v2568_v24 = vld [vmem:[#allocation3 + $0xd0] sm:$0xff] }
 0x225   : > { %v737_v62 = vpop.permute.xlu1 %736 }
 0x226   : > { %v3084_v56 = vadd.f32 %v9487_v29, %v3048_v48  ;;  %804 = vst.msk [vmem:[#allocation3 + $0xe8] sm:$0xf] %vm774_vm4, %v737_v62  ;;  %v1249_v30 = vpop.permute.xlu0 %1248 }
 0x227   : > { %3723 = vrot.lane.b32.xlu1 %v9577_v50, %s8508_s9  ;;  %1317 = vst.msk [vmem:[#allocation3 + $0xe0] sm:$0xf] %vm1288_vm6, %v1249_v30  ;;  %v4613_v50 = vld [vmem:[#allocation2 + $0x60] sm:$0xff] }
 0x228   : > { %3116 = vst.msk [vmem:[#allocation2 + $0x99] sm:$0xff] %vm246_vm0, %v3084_v56  ;;  %4233 = vrot.lane.b32.xlu0 %v9757_v43, %s8510_s15  ;;  %v8319_v61 = vpack.c.bf16 %v4613_v50, %v4613_v50 }
 0x229   : > { %v2569_v34 = vld [vmem:[#allocation3 + $0xd8] sm:$0xff]  ;;  %v994_v45 = vpop.permute.xlu1 %993 }
 0x22a   : > { %1061 = vst.msk [vmem:[#allocation3 + $0xe8] sm:$0xf] %vm1031_vm5, %v994_v45  ;;  %v7452_v38 = vcombine.high %v2568_v24, %v2569_v34  ;;  %v7451_v58 = vcombine.low %v2568_v24, %v2569_v34  ;;  %v1506_v5 = vpop.permute.xlu0 %1505  ;;  %v4871_v45 = vld [vmem:[#allocation2 + $0x79] sm:$0xff] }
 0x22b   : > { %3979 = vrot.lane.b32.xlu1 %v8318_v20, %s8509_s12  ;;  %v3149_v12 = vld [vmem:[#allocation2 + $0x90] sm:$0xff]  ;;  %1574 = vst.msk [vmem:[#allocation3 + $0xe0] sm:$0xf] %vm1545_vm7, %v1506_v5 }
 0x22c   : > { %7479 = vmatprep.mubr.msk.bf16.mxu0 %vm246_vm0, %v7452_v38  ;;  %v8135_v63 = vpack.c.bf16 %v3149_v12, %v3149_v12  ;;  %4489 = vrot.lane.b32.xlu0 %v9633_v53, %s8511_s20  ;;  %v4616_v12 = vld [vmem:[#allocation2 + $0x80] sm:$0xff] }
 0x22d   : > { %v1251_v31 = vpop.permute.xlu1 %1250  ;;  %2975 = vmatmul.mubr.bf16.gmra.mxu0 %v7451_v58 }
 0x22e   : > { %1318 = vst.msk [vmem:[#allocation3 + $0xe8] sm:$0xf] %vm1288_vm6, %v1251_v31  ;;  %v1763_v42 = vpop.permute.xlu0 %1762  ;;  %v9884_v31 = vpack.c.bf16 %v4871_v45, %v4871_v45 }
 0x22f   : > { %3309 = vst.msk [vmem:[#allocation3 + $0x60] sm:$0xf] %vm517_vm3, %v8135_v63  ;;  %4235 = vrot.lane.b32.xlu1 %v9776_v46, %s8510_s15  ;;  %v4363_v3 = vld [vmem:[#allocation2 + $0x92] sm:$0xff]  ;;  %v4364_v36 = vld [vmem:[#allocation2 + $0x9a] sm:$0xff] }
 0x230   : > { %1831 = vst.msk [vmem:[#allocation3 + $0xe0] sm:$0xf] %vm1802_vm8, %v1763_v42  ;;  %v9812_v35 = vpack.c.bf16 %v4363_v3, %v4363_v3  ;;  %v3150_v47 = vld [vmem:[#allocation2 + $0x98] sm:$0xff]  ;;  %4745 = vrot.lane.b32.xlu0 %v8319_v61, %s8512_s23  ;;  %v9815_v37 = vpack.c.bf16 %v4364_v36, %v4364_v36  ;;  %v9889_v42 = vld [vmem:[%s11150_s4] ss:$0 sm:$0xff]  ;;  %v8322_v36 = vpack.c.bf16 %v4616_v12, %v4616_v12 }
 0x231   : > { %v1508_v16 = vpop.permute.xlu1 %1507  ;;  %v8136_v9 = vpack.c.bf16 %v3150_v47, %v3150_v47  ;;  %v9898_v47 = vld [vmem:[%s11150_s4 + $0x1] ss:$0 sm:$0xff] }
 0x232   : > { %1575 = vst.msk [vmem:[#allocation3 + $0xe8] sm:$0xf] %vm1545_vm7, %v1508_v16  ;;  %v2021_v17 = vpop.permute.xlu0 %2020 }
 0x233   : > { %5289 = vst.msk [vmem:[#allocation3 + $0x44] sm:$0xf] %vm517_vm3, %v9812_v35  ;;  %4491 = vrot.lane.b32.xlu1 %v9639_v52, %s8511_s20  ;;  %5290 = vst.msk [vmem:[#allocation3 + $0x4c] sm:$0xf] %vm517_vm3, %v9815_v37 }
 0x234   : > { %3310 = vst.msk [vmem:[#allocation3 + $0x68] sm:$0xf] %vm517_vm3, %v8136_v9  ;;  %5001 = vrot.lane.b32.xlu0 %v9822_v14, %s8513_s28 }
 0x235   : > { %2089 = vst.msk [vmem:[#allocation3 + $0xe0] sm:$0xf] %vm2060_vm9, %v2021_v17  ;;  %v1765_v1 = vpop.permute.xlu1 %1764  ;;  %v2920_v0 = vpop.f32.mrf.mxu0 }
 0x236   : > { %1832 = vst.msk [vmem:[#allocation3 + $0xe8] sm:$0xf] %vm1802_vm8, %v1765_v1  ;;  %v3013_v2 = vmax.f32 %v2920_v0, 0.0  ;;  %v2278_v10 = vpop.permute.xlu0 %2277 }
 0x237   : > { %4747 = vrot.lane.b32.xlu1 %v8320_v22, %s8512_s23  ;;  %v2922_v60 = vpop.f32.mrf.mxu0  ;;  %2346 = vst.msk [vmem:[#allocation3 + $0xe0] sm:$0xf] %vm2317_vm10, %v2278_v10 }
 0x238   : > { %v3049_v11 = vmul.f32 %v9477_v49, %v3013_v2  ;;  %3469 = vrot.lane.b32.xlu0 %v9757_v43, %s8506_s25  ;;  %v9908_v2 = vpack.c.bf16 %v4872_v55, %v4872_v55 }
 0x239   : > { %v2023_v21 = vpop.permute.xlu1 %2022  ;;  %v2923_v33 = vpop.f32.mrf.mxu0 }
 0x23a   : > { %v3085_v20 = vadd.f32 %v9487_v29, %v3049_v11  ;;  %2090 = vst.msk [vmem:[#allocation3 + $0xe8] sm:$0xf] %vm2060_vm9, %v2023_v21  ;;  %v3014_v54 = vmax.f32 %v2923_v33, 0.0  ;;  %v739_v26 = vpop.permute.xlu0 %738 }
 0x23b   : > { %5003 = vrot.lane.b32.xlu1 %v9836_v59, %s8513_s28  ;;  %v2925_v27 = vpop.f32.mrf.mxu0  ;;  %805 = vst.msk [vmem:[#allocation3 + $0xf0] sm:$0xf] %vm774_vm4, %v739_v26 }
 0x23c   : > { %3117 = vst.msk [vmem:[#allocation2 + $0xa9] sm:$0xff] %vm246_vm0, %v3085_v20  ;;  %v3050_v28 = vmul.f32 %v9477_v49, %v3014_v54  ;;  %3725 = vrot.lane.b32.xlu0 %v9633_v53, %s8508_s9 }
 0x23d   : > { %v2280_v43 = vpop.permute.xlu1 %2279 }
 0x23e   : > { %v3086_v32 = vadd.f32 %v9487_v29, %v3050_v28  ;;  %2347 = vst.msk [vmem:[#allocation3 + $0xe8] sm:$0xf] %vm2317_vm10, %v2280_v43  ;;  %v996_v40 = vpop.permute.xlu0 %995  ;;  %v2570_v49 = vld [vmem:[#allocation3 + $0xe0] sm:$0xff] }
 0x23f   : > { %3471 = vrot.lane.b32.xlu1 %v9776_v46, %s8506_s25  ;;  %1062 = vst.msk [vmem:[#allocation3 + $0xf0] sm:$0xf] %vm1031_vm5, %v996_v40 }
 0x240   : > { %3118 = vst.msk [vmem:[#allocation2 + $0xb1] sm:$0xff] %vm246_vm0, %v3086_v32  ;;  %3981 = vrot.lane.b32.xlu0 %v8319_v61, %s8509_s12 }
 0x241   : > { %v741_v13 = vpop.permute.xlu1 %740 }
 0x242   : > { %806 = vst.msk [vmem:[#allocation3 + $0xf8] sm:$0xf] %vm774_vm4, %v741_v13  ;;  %v1253_v51 = vpop.permute.xlu0 %1252 }
 0x243   : > { %3727 = vrot.lane.b32.xlu1 %v9639_v52, %s8508_s9  ;;  %v3151_v29 = vld [vmem:[#allocation2 + $0xa8] sm:$0xff]  ;;  %1319 = vst.msk [vmem:[#allocation3 + $0xf0] sm:$0xf] %vm1288_vm6, %v1253_v51  ;;  %v4615_v52 = vld [vmem:[#allocation2 + $0x78] sm:$0xff]  ;;  %v4617_v51 = vld [vmem:[#allocation2 + $0x90] sm:$0xff] }
 0x244   : > { %v8137_v53 = vpack.c.bf16 %v3151_v29, %v3151_v29  ;;  %4237 = vrot.lane.b32.xlu0 %v9822_v14, %s8510_s15  ;;  %v8321_v34 = vpack.c.bf16 %v4615_v52, %v4615_v52 }
 0x245   : > { %v2571_v8 = vld [vmem:[#allocation3 + $0xe8] sm:$0xff]  ;;  %v998_v46 = vpop.permute.xlu1 %997 }
 0x246   : > { %1063 = vst.msk [vmem:[#allocation3 + $0xf8] sm:$0xf] %vm1031_vm5, %v998_v46  ;;  %v7454_v57 = vcombine.high %v2570_v49, %v2571_v8  ;;  %v7453_v39 = vcombine.low %v2570_v49, %v2571_v8  ;;  %v1510_v23 = vpop.permute.xlu0 %1509 }
 0x247   : > { %3311 = vst.msk [vmem:[#allocation3 + $0x70] sm:$0xf] %vm517_vm3, %v8137_v53  ;;  %3983 = vrot.lane.b32.xlu1 %v8320_v22, %s8509_s12  ;;  %v4365_v15 = vld [vmem:[#allocation2 + $0xaa] sm:$0xff]  ;;  %v4366_v7 = vld [vmem:[#allocation2 + $0xb2] sm:$0xff] }
 0x248   : > { %1576 = vst.msk [vmem:[#allocation3 + $0xf0] sm:$0xf] %vm1545_vm7, %v1510_v23  ;;  %7480 = vmatprep.mubr.msk.bf16.mxu0 %vm246_vm0, %v7454_v57  ;;  %v9865_v18 = vpack.c.bf16 %v4365_v15, %v4365_v15  ;;  %v3152_v48 = vld [vmem:[#allocation2 + $0xb0] sm:$0xff]  ;;  %4493 = vrot.lane.b32.xlu0 %v9708_v6, %s8511_s20  ;;  %v9869_v56 = vpack.c.bf16 %v4366_v7, %v4366_v7 }
 0x249   : > { %v1255_v62 = vpop.permute.xlu1 %1254  ;;  %2983 = vmatmul.mubr.bf16.gmra.mxu0 %v7453_v39  ;;  %v8138_v24 = vpack.c.bf16 %v3152_v48, %v3152_v48  ;;  %v8323_v39 = vpack.c.bf16 %v4617_v51, %v4617_v51  ;;  %v4873_v15 = vld [vmem:[#allocation2 + $0x91] sm:$0xff] }
 0x24a   : > { %1320 = vst.msk [vmem:[#allocation3 + $0xf8] sm:$0xf] %vm1288_vm6, %v1255_v62  ;;  %v1767_v30 = vpop.permute.xlu0 %1766  ;;  %v9955_v45 = vpack.c.bf16 %v4873_v15, %v4873_v15 }
 0x24b   : > { %5291 = vst.msk [vmem:[#allocation3 + $0x54] sm:$0xf] %vm517_vm3, %v9865_v18  ;;  %4239 = vrot.lane.b32.xlu1 %v9836_v59, %s8510_s15  ;;  %5292 = vst.msk [vmem:[#allocation3 + $0x5c] sm:$0xf] %vm517_vm3, %v9869_v56 }
 0x24c   : > { %3312 = vst.msk [vmem:[#allocation3 + $0x78] sm:$0xf] %vm517_vm3, %v8138_v24  ;;  %4749 = vrot.lane.b32.xlu0 %v8321_v34, %s8512_s23  ;;  %v4618_v24 = vld [vmem:[#allocation2 + $0x98] sm:$0xff] }
 0x24d   : > { %1833 = vst.msk [vmem:[#allocation3 + $0xf0] sm:$0xf] %vm1802_vm8, %v1767_v30  ;;  %v1512_v38 = vpop.permute.xlu1 %1511  ;;  %v2928_v58 = vpop.f32.mrf.mxu0 }
 0x24e   : > { %1577 = vst.msk [vmem:[#allocation3 + $0xf8] sm:$0xf] %vm1545_vm7, %v1512_v38  ;;  %v3015_v5 = vmax.f32 %v2928_v58, 0.0  ;;  %v2025_v50 = vpop.permute.xlu0 %2024 }
 0x24f   : > { %4495 = vrot.lane.b32.xlu1 %v9714_v44, %s8511_s20  ;;  %v2930_v63 = vpop.f32.mrf.mxu0  ;;  %2091 = vst.msk [vmem:[#allocation3 + $0xf0] sm:$0xf] %vm2060_vm9, %v2025_v50  ;;  %v4874_v50 = vld [vmem:[#allocation2 + $0x99] sm:$0xff] }
 0x250   : > { %v3051_v61 = vmul.f32 %v9889_v42, %v3015_v5  ;;  %5005 = vrot.lane.b32.xlu0 %v9884_v31, %s8513_s28  ;;  %v8324_v5 = vpack.c.bf16 %v4618_v24, %v4618_v24 }
 0x251   : > { %v1769_v3 = vpop.permute.xlu1 %1768  ;;  %v2931_v25 = vpop.f32.mrf.mxu0 }
 0x252   : > { %v3087_v16 = vadd.f32 %v9898_v47, %v3051_v61  ;;  %1834 = vst.msk [vmem:[#allocation3 + $0xf8] sm:$0xf] %vm1802_vm8, %v1769_v3  ;;  %v3016_v9 = vmax.f32 %v2931_v25, 0.0  ;;  %v2282_v17 = vpop.permute.xlu0 %2281  ;;  %v9969_v3 = vpack.c.bf16 %v4874_v50, %v4874_v50 }
 0x253   : > { %4751 = vrot.lane.b32.xlu1 %v8322_v36, %s8512_s23  ;;  %v2933_v1 = vpop.f32.mrf.mxu0  ;;  %2348 = vst.msk [vmem:[#allocation3 + $0xf0] sm:$0xf] %vm2317_vm10, %v2282_v17 }
 0x254   : > { %3119 = vst.msk [vmem:[#allocation2 + $0xc1] sm:$0xff] %vm246_vm0, %v3087_v16  ;;  %v3052_v0 = vmul.f32 %v9889_v42, %v3016_v9  ;;  %3473 = vrot.lane.b32.xlu0 %v9822_v14, %s8506_s25 }
 0x255   : > { %v2027_v22 = vpop.permute.xlu1 %2026 }
 0x256   : > { %v3088_v4 = vadd.f32 %v9898_v47, %v3052_v0  ;;  %2092 = vst.msk [vmem:[#allocation3 + $0xf8] sm:$0xf] %vm2060_vm9, %v2027_v22  ;;  %v3458_v10 = vpop.permute.xlu0 %3457 }
 0x257   : > { %5007 = vrot.lane.b32.xlu1 %v9908_v2, %s8513_s28  ;;  %3553 = vst.msk [vmem:[#allocation3] sm:$0xf] %vm774_vm4, %v3458_v10 }
 0x258   : > { %3120 = vst.msk [vmem:[#allocation2 + $0xc9] sm:$0xff] %vm246_vm0, %v3088_v4  ;;  %3729 = vrot.lane.b32.xlu0 %v9708_v6, %s8508_s9 }
 0x259   : > { %v2284_v60 = vpop.permute.xlu1 %2283 }
 0x25a   : > { %2349 = vst.msk [vmem:[#allocation3 + $0xf8] sm:$0xf] %vm2317_vm10, %v2284_v60  ;;  %v3714_v14 = vpop.permute.xlu0 %3713  ;;  %v2572_v20 = vld [vmem:[#allocation3 + $0xf0] sm:$0xff] }
 0x25b   : > { %3475 = vrot.lane.b32.xlu1 %v9836_v59, %s8506_s25  ;;  %3809 = vst.msk [vmem:[#allocation3] sm:$0xf] %vm1031_vm5, %v3714_v14  ;;  %v3153_v11 = vld [vmem:[#allocation2 + $0xc0] sm:$0xff] }
 0x25c   : > { %3985 = vrot.lane.b32.xlu0 %v8321_v34, %s8509_s12  ;;  %v8139_v33 = vpack.c.bf16 %v3153_v11, %v3153_v11  ;;  %v8450_v11 = vld [vmem:[#allocation3 + $0x4] ss:$8 sps:$4 sm:$0xff]  }
 0x25d   : > { %v3460_v21 = vpop.permute.xlu1 %3459  ;;  %7813 = vmatprep.mubr.msk.bf16.mxu1 %vm246_vm0, %v8450_v11  ;;  %v4877_v11 = vld [vmem:[#allocation2 + $0xc1] sm:$0xff] }
 0x25e   : > { %3554 = vst.msk [vmem:[#allocation3 + $0x8] sm:$0xf] %vm774_vm4, %v3460_v21  ;;  %v3970_v54 = vpop.permute.xlu0 %3969 }
 0x25f   : > { %3731 = vrot.lane.b32.xlu1 %v9714_v44, %s8508_s9  ;;  %v4367_v6 = vld [vmem:[#allocation2 + $0xc2] sm:$0xff]  ;;  %3313 = vst.msk [vmem:[#allocation3 + $0x80] sm:$0xf] %vm517_vm3, %v8139_v33  ;;  %v4368_v26 = vld [vmem:[#allocation2 + $0xca] sm:$0xff] }
 0x260   : > { %4065 = vst.msk [vmem:[#allocation3] sm:$0xf] %vm1288_vm6, %v3970_v54  ;;  %v9928_v59 = vpack.c.bf16 %v4367_v6, %v4367_v6  ;;  %v3154_v27 = vld [vmem:[#allocation2 + $0xc8] sm:$0xff]  ;;  %4241 = vrot.lane.b32.xlu0 %v9884_v31, %s8510_s15  ;;  %v9932_v32 = vpack.c.bf16 %v4368_v26, %v4368_v26 }
 0x261   : > { %v2573_v28 = vld [vmem:[#allocation3 + $0xf8] sm:$0xff]  ;;  %v3716_v43 = vpop.permute.xlu1 %3715  ;;  %v8140_v40 = vpack.c.bf16 %v3154_v27, %v3154_v27 }
 0x262   : > { %3810 = vst.msk [vmem:[#allocation3 + $0x8] sm:$0xf] %vm1031_vm5, %v3716_v43  ;;  %v7456_v44 = vcombine.high %v2572_v20, %v2573_v28  ;;  %v7455_v13 = vcombine.low %v2572_v20, %v2573_v28  ;;  %v4226_v49 = vpop.permute.xlu0 %4225  ;;  %v4619_v54 = vld [vmem:[#allocation2 + $0xa8] sm:$0xff] }
 0x263   : > { %5293 = vst.msk [vmem:[#allocation3 + $0x64] sm:$0xf] %vm517_vm3, %v9928_v59  ;;  %3987 = vrot.lane.b32.xlu1 %v8322_v36, %s8509_s12  ;;  %5294 = vst.msk [vmem:[#allocation3 + $0x6c] sm:$0xf] %vm517_vm3, %v9932_v32 }
 0x264   : > { %3314 = vst.msk [vmem:[#allocation3 + $0x88] sm:$0xf] %vm517_vm3, %v8140_v40  ;;  %7481 = vmatprep.mubr.msk.bf16.mxu0 %vm246_vm0, %v7456_v44  ;;  %4497 = vrot.lane.b32.xlu0 %v9760_v41, %s8511_s20  ;;  %v8325_v44 = vpack.c.bf16 %v4619_v54, %v4619_v54  ;;  %v10076_v54 = vpack.c.bf16 %v4877_v11, %v4877_v11 }
 0x265   : > { %4321 = vst.msk [vmem:[#allocation3] sm:$0xf] %vm1545_vm7, %v4226_v49  ;;  %v3972_v29 = vpop.permute.xlu1 %3971  ;;  %2991 = vmatmul.mubr.bf16.gmra.mxu0 %v7455_v13  ;;  %v2936_v53 = vpop.f32.mrf.mxu0  ;;  %v4875_v49 = vld [vmem:[#allocation2 + $0xa9] sm:$0xff] }
 0x266   : > { %4066 = vst.msk [vmem:[#allocation3 + $0x8] sm:$0xf] %vm1288_vm6, %v3972_v29  ;;  %v3017_v8 = vmax.f32 %v2936_v53, 0.0  ;;  %v4482_v46 = vpop.permute.xlu0 %4481  ;;  %v4620_v53 = vld [vmem:[#allocation2 + $0xb0] sm:$0xff] }
 0x267   : > { %4243 = vrot.lane.b32.xlu1 %v9908_v2, %s8510_s15  ;;  %v2938_v57 = vpop.f32.mrf.mxu0  ;;  %4577 = vst.msk [vmem:[#allocation3] sm:$0xf] %vm1802_vm8, %v4482_v46  ;;  %v10017_v46 = vpack.c.bf16 %v4875_v49, %v4875_v49 }
 0x268   : > { %v3053_v23 = vmul.f32 %v9889_v42, %v3017_v8  ;;  %4753 = vrot.lane.b32.xlu0 %v8323_v39, %s8512_s23 }
 0x269   : > { %v4228_v52 = vpop.permute.xlu1 %4227  ;;  %v2939_v7 = vpop.f32.mrf.mxu0 }
 0x26a   : > { %v3089_v48 = vadd.f32 %v9898_v47, %v3053_v23  ;;  %4322 = vst.msk [vmem:[#allocation3 + $0x8] sm:$0xf] %vm1545_vm7, %v4228_v52  ;;  %v3018_v62 = vmax.f32 %v2939_v7, 0.0  ;;  %v4738_v30 = vpop.permute.xlu0 %4737  ;;  %v4876_v23 = vld [vmem:[#allocation2 + $0xb1] sm:$0xff] }
 0x26b   : > { %4499 = vrot.lane.b32.xlu1 %v9764_v19, %s8511_s20  ;;  %v2941_v34 = vpop.f32.mrf.mxu0  ;;  %4833 = vst.msk [vmem:[#allocation3] sm:$0xf] %vm2060_vm9, %v4738_v30 }
 0x26c   : > { %3121 = vst.msk [vmem:[#allocation2 + $0xd9] sm:$0xff] %vm246_vm0, %v3089_v48  ;;  %v3054_v38 = vmul.f32 %v9889_v42, %v3018_v62  ;;  %5009 = vrot.lane.b32.xlu0 %v9955_v45, %s8513_s28  ;;  %v10028_v62 = vpack.c.bf16 %v4876_v23, %v4876_v23 }
 0x26d   : > { %v4484_v58 = vpop.permute.xlu1 %4483 }
 0x26e   : > { %v3090_v12 = vadd.f32 %v9898_v47, %v3054_v38  ;;  %4578 = vst.msk [vmem:[#allocation3 + $0x8] sm:$0xf] %vm1802_vm8, %v4484_v58  ;;  %v4994_v63 = vpop.permute.xlu0 %4993 }
 0x26f   : > { %4755 = vrot.lane.b32.xlu1 %v8324_v5, %s8512_s23  ;;  %5089 = vst.msk [vmem:[#allocation3] sm:$0xf] %vm2317_vm10, %v4994_v63 }
 0x270   : > { %3122 = vst.msk [vmem:[#allocation2 + $0xe1] sm:$0xff] %vm246_vm0, %v3090_v12  ;;  %3477 = vrot.lane.b32.xlu0 %v9884_v31, %s8506_s25 }
 0x271   : > { %v4740_v61 = vpop.permute.xlu1 %4739 }
 0x272   : > { %4834 = vst.msk [vmem:[#allocation3 + $0x8] sm:$0xf] %vm2060_vm9, %v4740_v61  ;;  %v3462_v25 = vpop.permute.xlu0 %3461 }
 0x273   : > { %5011 = vrot.lane.b32.xlu1 %v9969_v3, %s8513_s28  ;;  %v3155_v36 = vld [vmem:[#allocation2 + $0xd8] sm:$0xff]  ;;  %3555 = vst.msk [vmem:[#allocation3 + $0x10] sm:$0xf] %vm774_vm4, %v3462_v25  ;;  %v8451_v25 = vld [vmem:[#allocation3 + $0x14] ss:$8 sps:$4 sm:$0xff]  }
 0x274   : > { %v8141_v16 = vpack.c.bf16 %v3155_v36, %v3155_v36  ;;  %3733 = vrot.lane.b32.xlu0 %v9760_v41, %s8508_s9 }
 0x275   : > { %v4996_v9 = vpop.permute.xlu1 %4995 }
 0x276   : > { %5090 = vst.msk [vmem:[#allocation3 + $0x8] sm:$0xf] %vm2317_vm10, %v4996_v9  ;;  %v3718_v31 = vpop.permute.xlu0 %3717 }
 0x277   : > { %3315 = vst.msk [vmem:[#allocation3 + $0x90] sm:$0xf] %vm517_vm3, %v8141_v16  ;;  %3479 = vrot.lane.b32.xlu1 %v9908_v2, %s8506_s25  ;;  %v4369_v55 = vld [vmem:[#allocation2 + $0xda] sm:$0xff]  ;;  %v4370_v17 = vld [vmem:[#allocation2 + $0xe2] sm:$0xff] }
 0x278   : > { %3811 = vst.msk [vmem:[#allocation3 + $0x10] sm:$0xf] %vm1031_vm5, %v3718_v31  ;;  %v3156_v1 = vld [vmem:[#allocation2 + $0xe0] sm:$0xff]  ;;  %3989 = vrot.lane.b32.xlu0 %v8323_v39, %s8509_s12  ;;  %v9983_v22 = vpack.c.bf16 %v4369_v55, %v4369_v55  ;;  %v9985_v4 = vpack.c.bf16 %v4370_v17, %v4370_v17  ;;  %v8326_v39 = vpack.c.bf16 %v4620_v53, %v4620_v53 }
 0x279   : > { %v3464_v0 = vpop.permute.xlu1 %3463  ;;  %v8142_v41 = vpack.c.bf16 %v3156_v1, %v3156_v1  ;;  %v4621_v55 = vld [vmem:[#allocation2 + $0xc0] sm:$0xff] }
 0x27a   : > { %3556 = vst.msk [vmem:[#allocation3 + $0x18] sm:$0xf] %vm774_vm4, %v3464_v0  ;;  %v3974_v10 = vpop.permute.xlu0 %3973 }
 0x27b   : > { %3735 = vrot.lane.b32.xlu1 %v9764_v19, %s8508_s9  ;;  %5295 = vst.msk [vmem:[#allocation3 + $0x74] sm:$0xf] %vm517_vm3, %v9983_v22  ;;  %5296 = vst.msk [vmem:[#allocation3 + $0x7c] sm:$0xf] %vm517_vm3, %v9985_v4 }
 0x27c   : > { %3316 = vst.msk [vmem:[#allocation3 + $0x98] sm:$0xf] %vm517_vm3, %v8142_v41  ;;  %4245 = vrot.lane.b32.xlu0 %v9955_v45, %s8510_s15 }
 0x27d   : > { %4067 = vst.msk [vmem:[#allocation3 + $0x10] sm:$0xf] %vm1288_vm6, %v3974_v10  ;;  %v3720_v2 = vpop.permute.xlu1 %3719  ;;  %v2944_v60 = vpop.f32.mrf.mxu0  ;;  %v8448_v14 = vld [vmem:[#allocation3] ss:$8 sps:$4 sm:$0xff]  }
 0x27e   : > { %3812 = vst.msk [vmem:[#allocation3 + $0x18] sm:$0xf] %vm1031_vm5, %v3720_v2  ;;  %v3019_v19 = vmax.f32 %v2944_v60, 0.0  ;;  %v4230_v21 = vpop.permute.xlu0 %4229  ;;  %5642 = vmatmul.mubr.bf16.vlgmr.msra.gmra.mxu1 %v8448_v14  ;;  %v8327_v60 = vpack.c.bf16 %v4621_v55, %v4621_v55 }
 0x27f   : > { %3991 = vrot.lane.b32.xlu1 %v8324_v5, %s8509_s12  ;;  %v2946_v33 = vpop.f32.mrf.mxu0  ;;  %4323 = vst.msk [vmem:[#allocation3 + $0x10] sm:$0xf] %vm1545_vm7, %v4230_v21  ;;  %7814 = vmatprep.mubr.msk.bf16.mxu1 %vm246_vm0, %v8451_v25 }
 0x280   : > { %v3055_v20 = vmul.f32 %v9889_v42, %v3019_v19  ;;  %4501 = vrot.lane.b32.xlu0 %v9812_v35, %s8511_s20  ;;  %v4622_v33 = vld [vmem:[#allocation2 + $0xc8] sm:$0xff] }
 0x281   : > { %v3976_v6 = vpop.permute.xlu1 %3975  ;;  %v2947_v26 = vpop.f32.mrf.mxu0 }
 0x282   : > { %v3091_v27 = vadd.f32 %v9898_v47, %v3055_v20  ;;  %4068 = vst.msk [vmem:[#allocation3 + $0x18] sm:$0xf] %vm1288_vm6, %v3976_v6  ;;  %v3020_v28 = vmax.f32 %v2947_v26, 0.0  ;;  %v4486_v43 = vpop.permute.xlu0 %4485  ;;  %v8328_v26 = vpack.c.bf16 %v4622_v33, %v4622_v33 }
 0x283   : > { %4247 = vrot.lane.b32.xlu1 %v9969_v3, %s8510_s15  ;;  %v2949_v40 = vpop.f32.mrf.mxu0  ;;  %4579 = vst.msk [vmem:[#allocation3 + $0x10] sm:$0xf] %vm1802_vm8, %v4486_v43 }
 0x284   : > { %3123 = vst.msk [vmem:[#allocation2 + $0xf1] sm:$0xff] %vm246_vm0, %v3091_v27  ;;  %v3056_v13 = vmul.f32 %v9889_v42, %v3020_v28  ;;  %4757 = vrot.lane.b32.xlu0 %v8325_v44, %s8512_s23  ;;  %v4878_v27 = vld [vmem:[#allocation2 + $0xc9] sm:$0xff] }
 0x285   : > { %v4232_v51 = vpop.permute.xlu1 %4231 }
 0x286   : > { %v3092_v29 = vadd.f32 %v9898_v47, %v3056_v13  ;;  %4324 = vst.msk [vmem:[#allocation3 + $0x18] sm:$0xf] %vm1545_vm7, %v4232_v51  ;;  %v4742_v8 = vpop.permute.xlu0 %4741  ;;  %v10087_v13 = vpack.c.bf16 %v4878_v27, %v4878_v27 }
 0x287   : > { %4503 = vrot.lane.b32.xlu1 %v9815_v37, %s8511_s20  ;;  %4835 = vst.msk [vmem:[#allocation3 + $0x10] sm:$0xf] %vm2060_vm9, %v4742_v8 }
 0x288   : > { %3124 = vst.msk [vmem:[#allocation2 + $0xf9] sm:$0xff] %vm246_vm0, %v3092_v29  ;;  %5013 = vrot.lane.b32.xlu0 %v10017_v46, %s8513_s28 }
 0x289   : > { %v4488_v57 = vpop.permute.xlu1 %4487 }
 0x28a   : > { %4580 = vst.msk [vmem:[#allocation3 + $0x18] sm:$0xf] %vm1802_vm8, %v4488_v57  ;;  %v4998_v15 = vpop.permute.xlu0 %4997 }
 0x28b   : > { %4759 = vrot.lane.b32.xlu1 %v8326_v39, %s8512_s23  ;;  %v3157_v52 = vld [vmem:[#allocation2 + $0xf0] sm:$0xff]  ;;  %5091 = vst.msk [vmem:[#allocation3 + $0x10] sm:$0xf] %vm2317_vm10, %v4998_v15 }
 0x28c   : > { %v8143_v7 = vpack.c.bf16 %v3157_v52, %v3157_v52  ;;  %3481 = vrot.lane.b32.xlu0 %v9955_v45, %s8506_s25 }
 0x28d   : > { %v4744_v48 = vpop.permute.xlu1 %4743 }
 0x28e   : > { %4836 = vst.msk [vmem:[#allocation3 + $0x18] sm:$0xf] %vm2060_vm9, %v4744_v48  ;;  %v3466_v24 = vpop.permute.xlu0 %3465  ;;  %v8454_v48 = vld [vmem:[#allocation3 + $0x24] ss:$8 sps:$4 sm:$0xff]  }
 0x28f   : > { %3317 = vst.msk [vmem:[#allocation3 + $0xa0] sm:$0xf] %vm517_vm3, %v8143_v7  ;;  %5015 = vrot.lane.b32.xlu1 %v10028_v62, %s8513_s28  ;;  %v4371_v30 = vld [vmem:[#allocation2 + $0xf2] sm:$0xff]  ;;  %v4372_v38 = vld [vmem:[#allocation2 + $0xfa] sm:$0xff] }
 0x290   : > { %3557 = vst.msk [vmem:[#allocation3 + $0x20] sm:$0xf] %vm774_vm4, %v3466_v24  ;;  %v10035_v34 = vpack.c.bf16 %v4371_v30, %v4371_v30  ;;  %v3158_v58 = vld [vmem:[#allocation2 + $0xf8] sm:$0xff]  ;;  %3737 = vrot.lane.b32.xlu0 %v9812_v35, %s8508_s9  ;;  %v10039_v45 = vpack.c.bf16 %v4372_v38, %v4372_v38 }
 0x291   : > { %v5000_v5 = vpop.permute.xlu1 %4999  ;;  %v8144_v12 = vpack.c.bf16 %v3158_v58, %v3158_v58  ;;  %v4623_v58 = vld [vmem:[#allocation2 + $0xd8] sm:$0xff] }
 0x292   : > { %5092 = vst.msk [vmem:[#allocation3 + $0x18] sm:$0xf] %vm2317_vm10, %v5000_v5  ;;  %v3722_v50 = vpop.permute.xlu0 %3721 }
 0x293   : > { %5297 = vst.msk [vmem:[#allocation3 + $0x84] sm:$0xf] %vm517_vm3, %v10035_v34  ;;  %3483 = vrot.lane.b32.xlu1 %v9969_v3, %s8506_s25  ;;  %5298 = vst.msk [vmem:[#allocation3 + $0x8c] sm:$0xf] %vm517_vm3, %v10039_v45 }
 0x294   : > { %3318 = vst.msk [vmem:[#allocation3 + $0xa8] sm:$0xf] %vm517_vm3, %v8144_v12  ;;  %3993 = vrot.lane.b32.xlu0 %v8325_v44, %s8509_s12 }
 0x295   : > { %3813 = vst.msk [vmem:[#allocation3 + $0x20] sm:$0xf] %vm1031_vm5, %v3722_v50  ;;  %v3468_v35 = vpop.permute.xlu1 %3467 }
 0x296   : > { %3558 = vst.msk [vmem:[#allocation3 + $0x28] sm:$0xf] %vm774_vm4, %v3468_v35  ;;  %v3978_v63 = vpop.permute.xlu0 %3977 }
 0x297   : > { %3739 = vrot.lane.b32.xlu1 %v9815_v37, %s8508_s9  ;;  %4069 = vst.msk [vmem:[#allocation3 + $0x20] sm:$0xf] %vm1288_vm6, %v3978_v63 }
 0x298   : > { %4249 = vrot.lane.b32.xlu0 %v10017_v46, %s8510_s15 }
 0x299   : > { %v3724_v61 = vpop.permute.xlu1 %3723  ;;  %v2952_v3 = vpop.f32.mrf.mxu0  ;;  %v8453_v36 = vld [vmem:[#allocation3 + $0x10] ss:$8 sps:$4 sm:$0xff]  }
 0x29a   : > { %3814 = vst.msk [vmem:[#allocation3 + $0x28] sm:$0xf] %vm1031_vm5, %v3724_v61  ;;  %v3021_v16 = vmax.f32 %v2952_v3, 0.0  ;;  %v4234_v9 = vpop.permute.xlu0 %4233  ;;  %5650 = vmatmul.mubr.bf16.gmra.mxu1 %v8453_v36  ;;  %v8329_v3 = vpack.c.bf16 %v4623_v58, %v4623_v58  ;;  %v4879_v36 = vld [vmem:[#allocation2 + $0xd9] sm:$0xff] }
 0x29b   : > { %3995 = vrot.lane.b32.xlu1 %v8326_v39, %s8509_s12  ;;  %v2954_v31 = vpop.f32.mrf.mxu0  ;;  %4325 = vst.msk [vmem:[#allocation3 + $0x20] sm:$0xf] %vm1545_vm7, %v4234_v9  ;;  %7815 = vmatprep.mubr.msk.bf16.mxu1 %vm246_vm0, %v8454_v48  ;;  %v10135_v55 = vpack.c.bf16 %v4879_v36, %v4879_v36 }
 0x29c   : > { %v3057_v37 = vmul.f32 %v9889_v42, %v3021_v16  ;;  %4505 = vrot.lane.b32.xlu0 %v9865_v18, %s8511_s20  ;;  %v4624_v31 = vld [vmem:[#allocation2 + $0xe0] sm:$0xff] }
 0x29d   : > { %v3980_v17 = vpop.permute.xlu1 %3979  ;;  %v2955_v1 = vpop.f32.mrf.mxu0 }
 0x29e   : > { %v3093_v0 = vadd.f32 %v9898_v47, %v3057_v37  ;;  %4070 = vst.msk [vmem:[#allocation3 + $0x28] sm:$0xf] %vm1288_vm6, %v3980_v17  ;;  %v3022_v41 = vmax.f32 %v2955_v1, 0.0  ;;  %v4490_v10 = vpop.permute.xlu0 %4489  ;;  %v8330_v1 = vpack.c.bf16 %v4624_v31, %v4624_v31 }
 0x29f   : > { %4251 = vrot.lane.b32.xlu1 %v10028_v62, %s8510_s15  ;;  %v2957_v2 = vpop.f32.mrf.mxu0  ;;  %4581 = vst.msk [vmem:[#allocation3 + $0x20] sm:$0xf] %vm1802_vm8, %v4490_v10 }
 0x2a0   : > { %3125 = vst.msk [vmem:[#allocation2 + $0x109] sm:$0xff] %vm246_vm0, %v3093_v0  ;;  %v3058_v14 = vmul.f32 %v9889_v42, %v3022_v41  ;;  %4761 = vrot.lane.b32.xlu0 %v8327_v60, %s8512_s23  ;;  %v4880_v0 = vld [vmem:[#allocation2 + $0xe1] sm:$0xff] }
 0x2a1   : > { %v4236_v19 = vpop.permute.xlu1 %4235 }
 0x2a2   : > { %v3094_v21 = vadd.f32 %v9898_v47, %v3058_v14  ;;  %4326 = vst.msk [vmem:[#allocation3 + $0x28] sm:$0xf] %vm1545_vm7, %v4236_v19  ;;  %v4746_v20 = vpop.permute.xlu0 %4745  ;;  %v10148_v14 = vpack.c.bf16 %v4880_v0, %v4880_v0 }
 0x2a3   : > { %4507 = vrot.lane.b32.xlu1 %v9869_v56, %s8511_s20  ;;  %4837 = vst.msk [vmem:[#allocation3 + $0x20] sm:$0xf] %vm2060_vm9, %v4746_v20 }
 0x2a4   : > { %3126 = vst.msk [vmem:[#allocation2 + $0x111] sm:$0xff] %vm246_vm0, %v3094_v21  ;;  %5017 = vrot.lane.b32.xlu0 %v10076_v54, %s8513_s28 }
 0x2a5   : > { %v4492_v6 = vpop.permute.xlu1 %4491 }
 0x2a6   : > { %4582 = vst.msk [vmem:[#allocation3 + $0x28] sm:$0xf] %vm1802_vm8, %v4492_v6  ;;  %v5002_v28 = vpop.permute.xlu0 %5001 }
 0x2a7   : > { %4763 = vrot.lane.b32.xlu1 %v8328_v26, %s8512_s23  ;;  %v3159_v43 = vld [vmem:[#allocation2 + $0x108] sm:$0xff]  ;;  %5093 = vst.msk [vmem:[#allocation3 + $0x20] sm:$0xf] %vm2317_vm10, %v5002_v28 }
 0x2a8   : > { %v8145_v40 = vpack.c.bf16 %v3159_v43, %v3159_v43  ;;  %3485 = vrot.lane.b32.xlu0 %v10017_v46, %s8506_s25 }
 0x2a9   : > { %v4748_v44 = vpop.permute.xlu1 %4747 }
 0x2aa   : > { %4838 = vst.msk [vmem:[#allocation3 + $0x28] sm:$0xf] %vm2060_vm9, %v4748_v44  ;;  %v3470_v49 = vpop.permute.xlu0 %3469  ;;  %v8457_v44 = vld [vmem:[#allocation3 + $0x34] ss:$8 sps:$4 sm:$0xff]  }
 0x2ab   : > { %3319 = vst.msk [vmem:[#allocation3 + $0xb0] sm:$0xf] %vm517_vm3, %v8145_v40  ;;  %5019 = vrot.lane.b32.xlu1 %v10087_v13, %s8513_s28  ;;  %v4373_v51 = vld [vmem:[#allocation2 + $0x10a] sm:$0xff]  ;;  %v4374_v53 = vld [vmem:[#allocation2 + $0x112] sm:$0xff] }
 0x2ac   : > { %3559 = vst.msk [vmem:[#allocation3 + $0x30] sm:$0xf] %vm774_vm4, %v3470_v49  ;;  %v10094_v29 = vpack.c.bf16 %v4373_v51, %v4373_v51  ;;  %v3160_v8 = vld [vmem:[#allocation2 + $0x110] sm:$0xff]  ;;  %3741 = vrot.lane.b32.xlu0 %v9865_v18, %s8508_s9  ;;  %v10098_v46 = vpack.c.bf16 %v4374_v53, %v4374_v53 }
 0x2ad   : > { %v5004_v57 = vpop.permute.xlu1 %5003  ;;  %v8146_v39 = vpack.c.bf16 %v3160_v8, %v3160_v8  ;;  %v4625_v8 = vld [vmem:[#allocation2 + $0xf0] sm:$0xff] }
 0x2ae   : > { %5094 = vst.msk [vmem:[#allocation3 + $0x28] sm:$0xf] %vm2317_vm10, %v5004_v57  ;;  %v3726_v23 = vpop.permute.xlu0 %3725 }
 0x2af   : > { %5299 = vst.msk [vmem:[#allocation3 + $0x94] sm:$0xf] %vm517_vm3, %v10094_v29  ;;  %3487 = vrot.lane.b32.xlu1 %v10028_v62, %s8506_s25  ;;  %5300 = vst.msk [vmem:[#allocation3 + $0x9c] sm:$0xf] %vm517_vm3, %v10098_v46 }
 0x2b0   : > { %3320 = vst.msk [vmem:[#allocation3 + $0xb8] sm:$0xf] %vm517_vm3, %v8146_v39  ;;  %3997 = vrot.lane.b32.xlu0 %v8327_v60, %s8509_s12 }
 0x2b1   : > { %3815 = vst.msk [vmem:[#allocation3 + $0x30] sm:$0xf] %vm1031_vm5, %v3726_v23  ;;  %v3472_v18 = vpop.permute.xlu1 %3471 }
 0x2b2   : > { %3560 = vst.msk [vmem:[#allocation3 + $0x38] sm:$0xf] %vm774_vm4, %v3472_v18  ;;  %v3982_v15 = vpop.permute.xlu0 %3981 }
 0x2b3   : > { %3743 = vrot.lane.b32.xlu1 %v9869_v56, %s8508_s9  ;;  %4071 = vst.msk [vmem:[#allocation3 + $0x30] sm:$0xf] %vm1288_vm6, %v3982_v15 }
 0x2b4   : > { %4253 = vrot.lane.b32.xlu0 %v10076_v54, %s8510_s15 }
 0x2b5   : > { %v3728_v52 = vpop.permute.xlu1 %3727  ;;  %v2960_v7 = vpop.f32.mrf.mxu0  ;;  %v8456_v62 = vld [vmem:[#allocation3 + $0x20] ss:$8 sps:$4 sm:$0xff]  }
 0x2b6   : > { %3816 = vst.msk [vmem:[#allocation3 + $0x38] sm:$0xf] %vm1031_vm5, %v3728_v52  ;;  %v3023_v24 = vmax.f32 %v2960_v7, 0.0  ;;  %v4238_v30 = vpop.permute.xlu0 %4237  ;;  %5658 = vmatmul.mubr.bf16.gmra.mxu1 %v8456_v62  ;;  %v8331_v7 = vpack.c.bf16 %v4625_v8, %v4625_v8  ;;  %v4881_v62 = vld [vmem:[#allocation2 + $0xf1] sm:$0xff] }
 0x2b7   : > { %3999 = vrot.lane.b32.xlu1 %v8328_v26, %s8509_s12  ;;  %v2962_v38 = vpop.f32.mrf.mxu0  ;;  %4327 = vst.msk [vmem:[#allocation3 + $0x30] sm:$0xf] %vm1545_vm7, %v4238_v30  ;;  %7816 = vmatprep.mubr.msk.bf16.mxu1 %vm246_vm0, %v8457_v44  ;;  %v10200_v58 = vpack.c.bf16 %v4881_v62, %v4881_v62  ;;  %v4628_v8 = vld [vmem:[#allocation2 + $0x110] sm:$0xff] }
 0x2b8   : > { %v3059_v56 = vmul.f32 %v9889_v42, %v3023_v24  ;;  %4509 = vrot.lane.b32.xlu0 %v9928_v59, %s8511_s20  ;;  %v4626_v38 = vld [vmem:[#allocation2 + $0xf8] sm:$0xff] }
 0x2b9   : > { %v3984_v5 = vpop.permute.xlu1 %3983  ;;  %v2963_v12 = vpop.f32.mrf.mxu0 }
 0x2ba   : > { %v3095_v50 = vadd.f32 %v9898_v47, %v3059_v56  ;;  %4072 = vst.msk [vmem:[#allocation3 + $0x38] sm:$0xf] %vm1288_vm6, %v3984_v5  ;;  %v3024_v35 = vmax.f32 %v2963_v12, 0.0  ;;  %v4494_v63 = vpop.permute.xlu0 %4493  ;;  %v8332_v12 = vpack.c.bf16 %v4626_v38, %v4626_v38 }
 0x2bb   : > { %4255 = vrot.lane.b32.xlu1 %v10087_v13, %s8510_s15  ;;  %v2965_v61 = vpop.f32.mrf.mxu0  ;;  %4583 = vst.msk [vmem:[#allocation3 + $0x30] sm:$0xf] %vm1802_vm8, %v4494_v63 }
 0x2bc   : > { %3127 = vst.msk [vmem:[#allocation2 + $0x121] sm:$0xff] %vm246_vm0, %v3095_v50  ;;  %v3060_v25 = vmul.f32 %v9889_v42, %v3024_v35  ;;  %4765 = vrot.lane.b32.xlu0 %v8329_v3, %s8512_s23  ;;  %v4882_v50 = vld [vmem:[#allocation2 + $0xf9] sm:$0xff] }
 0x2bd   : > { %v4240_v16 = vpop.permute.xlu1 %4239 }
 0x2be   : > { %v3096_v9 = vadd.f32 %v9898_v47, %v3060_v25  ;;  %4328 = vst.msk [vmem:[#allocation3 + $0x38] sm:$0xf] %vm1545_vm7, %v4240_v16  ;;  %v4750_v37 = vpop.permute.xlu0 %4749  ;;  %v10213_v25 = vpack.c.bf16 %v4882_v50, %v4882_v50 }
 0x2bf   : > { %4511 = vrot.lane.b32.xlu1 %v9932_v32, %s8511_s20  ;;  %4839 = vst.msk [vmem:[#allocation3 + $0x30] sm:$0xf] %vm2060_vm9, %v4750_v37 }
 0x2c0   : > { %3128 = vst.msk [vmem:[#allocation2 + $0x129] sm:$0xff] %vm246_vm0, %v3096_v9  ;;  %5021 = vrot.lane.b32.xlu0 %v10135_v55, %s8513_s28 }
 0x2c1   : > { %v4496_v17 = vpop.permute.xlu1 %4495 }
 0x2c2   : > { %4584 = vst.msk [vmem:[#allocation3 + $0x38] sm:$0xf] %vm1802_vm8, %v4496_v17  ;;  %v5006_v41 = vpop.permute.xlu0 %5005 }
 0x2c3   : > { %4767 = vrot.lane.b32.xlu1 %v8330_v1, %s8512_s23  ;;  %v4629_v10 = vld [vmem:[#allocation2 + $0x120] sm:$0xff]  ;;  %5095 = vst.msk [vmem:[#allocation3 + $0x30] sm:$0xf] %vm2317_vm10, %v5006_v41 }
 0x2c4   : > { %v10144_v2 = vpack.c.bf16 %v4629_v10, %v4629_v10  ;;  %3489 = vrot.lane.b32.xlu0 %v10076_v54, %s8506_s25 }
 0x2c5   : > { %v4752_v60 = vpop.permute.xlu1 %4751 }
 0x2c6   : > { %4840 = vst.msk [vmem:[#allocation3 + $0x38] sm:$0xf] %vm2060_vm9, %v4752_v60  ;;  %v3474_v11 = vpop.permute.xlu0 %3473 }
 0x2c7   : > { %3321 = vst.msk [vmem:[#allocation3 + $0xc0] sm:$0xf] %vm517_vm3, %v10144_v2  ;;  %5023 = vrot.lane.b32.xlu1 %v10148_v14, %s8513_s28  ;;  %v4630_v19 = vld [vmem:[#allocation2 + $0x128] sm:$0xff] }
 0x2c8   : > { %v4375_v21 = vld [vmem:[#allocation2 + $0x122] sm:$0xff]  ;;  %3561 = vst.msk [vmem:[#allocation3 + $0x40] sm:$0xf] %vm774_vm4, %v3474_v11  ;;  %v10156_v33 = vpack.c.bf16 %v4630_v19, %v4630_v19  ;;  %v4376_v54 = vld [vmem:[#allocation2 + $0x12a] sm:$0xff]  ;;  %3745 = vrot.lane.b32.xlu0 %v9928_v59, %s8508_s9 }
 0x2c9   : > { %v10158_v20 = vpack.c.bf16 %v4375_v21, %v4375_v21  ;;  %v5008_v6 = vpop.permute.xlu1 %5007  ;;  %v10162_v26 = vpack.c.bf16 %v4376_v54, %v4376_v54 }
 0x2ca   : > { %5096 = vst.msk [vmem:[#allocation3 + $0x38] sm:$0xf] %vm2317_vm10, %v5008_v6  ;;  %v3730_v27 = vpop.permute.xlu0 %3729  ;;  %v4627_v6 = vld [vmem:[#allocation2 + $0x108] sm:$0xff] }
 0x2cb   : > { %5301 = vst.msk [vmem:[#allocation3 + $0xa4] sm:$0xf] %vm517_vm3, %v10158_v20  ;;  %3322 = vst.msk [vmem:[#allocation3 + $0xc8] sm:$0xf] %vm517_vm3, %v10156_v33  ;;  %3491 = vrot.lane.b32.xlu1 %v10087_v13, %s8506_s25 }
 0x2cc   : > { %5302 = vst.msk [vmem:[#allocation3 + $0xac] sm:$0xf] %vm517_vm3, %v10162_v26  ;;  %4001 = vrot.lane.b32.xlu0 %v8329_v3, %s8509_s12 }
 0x2cd   : > { %3817 = vst.msk [vmem:[#allocation3 + $0x40] sm:$0xf] %vm1031_vm5, %v3730_v27  ;;  %v3476_v59 = vpop.permute.xlu1 %3475 }
 0x2ce   : > { %3562 = vst.msk [vmem:[#allocation3 + $0x48] sm:$0xf] %vm774_vm4, %v3476_v59  ;;  %v3986_v28 = vpop.permute.xlu0 %3985 }
 0x2cf   : > { %3747 = vrot.lane.b32.xlu1 %v9932_v32, %s8508_s9  ;;  %4073 = vst.msk [vmem:[#allocation3 + $0x40] sm:$0xf] %vm1288_vm6, %v3986_v28 }
 0x2d0   : > { %4257 = vrot.lane.b32.xlu0 %v10135_v55, %s8510_s15 }
 0x2d1   : > { %v3732_v43 = vpop.permute.xlu1 %3731  ;;  %v2968_v40 = vpop.f32.mrf.mxu0  ;;  %v8459_v13 = vld [vmem:[#allocation3 + $0x30] ss:$8 sps:$4 sm:$0xff]  }
 0x2d2   : > { %3818 = vst.msk [vmem:[#allocation3 + $0x48] sm:$0xf] %vm1031_vm5, %v3732_v43  ;;  %v3025_v49 = vmax.f32 %v2968_v40, 0.0  ;;  %v4242_v51 = vpop.permute.xlu0 %4241  ;;  %5666 = vmatmul.mubr.bf16.gmra.mxu1 %v8459_v13  ;;  %v8333_v13 = vpack.c.bf16 %v4627_v6, %v4627_v6 }
 0x2d3   : > { %4003 = vrot.lane.b32.xlu1 %v8330_v1, %s8509_s12  ;;  %v2970_v53 = vpop.f32.mrf.mxu0  ;;  %4329 = vst.msk [vmem:[#allocation3 + $0x40] sm:$0xf] %vm1545_vm7, %v4242_v51  ;;  %v4883_v51 = vld [vmem:[#allocation2 + $0x109] sm:$0xff] }
 0x2d4   : > { %v3061_v32 = vmul.f32 %v9889_v42, %v3025_v49  ;;  %4513 = vrot.lane.b32.xlu0 %v9983_v22, %s8511_s20 }
 0x2d5   : > { %v3988_v57 = vpop.permute.xlu1 %3987  ;;  %v2971_v39 = vpop.f32.mrf.mxu0 }
 0x2d6   : > { %v3097_v23 = vadd.f32 %v9898_v47, %v3061_v32  ;;  %4074 = vst.msk [vmem:[#allocation3 + $0x48] sm:$0xf] %vm1288_vm6, %v3988_v57  ;;  %v3026_v18 = vmax.f32 %v2971_v39, 0.0  ;;  %v4498_v15 = vpop.permute.xlu0 %4497  ;;  %v10265_v39 = vpack.c.bf16 %v4883_v51, %v4883_v51 }
 0x2d7   : > { %4259 = vrot.lane.b32.xlu1 %v10148_v14, %s8510_s15  ;;  %v2973_v52 = vpop.f32.mrf.mxu0  ;;  %4585 = vst.msk [vmem:[#allocation3 + $0x40] sm:$0xf] %vm1802_vm8, %v4498_v15 }
 0x2d8   : > { %3129 = vst.msk [vmem:[#allocation2 + $0x139] sm:$0xff] %vm246_vm0, %v3097_v23  ;;  %v3062_v48 = vmul.f32 %v9889_v42, %v3026_v18  ;;  %4769 = vrot.lane.b32.xlu0 %v8331_v7, %s8512_s23  ;;  %v8334_v23 = vpack.c.bf16 %v4628_v8, %v4628_v8 }
 0x2d9   : > { %v4244_v24 = vpop.permute.xlu1 %4243 }
 0x2da   : > { %v3098_v30 = vadd.f32 %v9898_v47, %v3062_v48  ;;  %4330 = vst.msk [vmem:[#allocation3 + $0x48] sm:$0xf] %vm1545_vm7, %v4244_v24  ;;  %v4754_v56 = vpop.permute.xlu0 %4753 }
 0x2db   : > { %4515 = vrot.lane.b32.xlu1 %v9985_v4, %s8511_s20  ;;  %4841 = vst.msk [vmem:[#allocation3 + $0x40] sm:$0xf] %vm2060_vm9, %v4754_v56 }
 0x2dc   : > { %3130 = vst.msk [vmem:[#allocation2 + $0x141] sm:$0xff] %vm246_vm0, %v3098_v30  ;;  %5025 = vrot.lane.b32.xlu0 %v10200_v58, %s8513_s28 }
 0x2dd   : > { %v4500_v5 = vpop.permute.xlu1 %4499 }
 0x2de   : > { %4586 = vst.msk [vmem:[#allocation3 + $0x48] sm:$0xf] %vm1802_vm8, %v4500_v5  ;;  %v5010_v35 = vpop.permute.xlu0 %5009 }
 0x2df   : > { %4771 = vrot.lane.b32.xlu1 %v8332_v12, %s8512_s23  ;;  %v4631_v63 = vld [vmem:[#allocation2 + $0x138] sm:$0xff]  ;;  %5097 = vst.msk [vmem:[#allocation3 + $0x40] sm:$0xf] %vm2317_vm10, %v5010_v35 }
 0x2e0   : > { %v10209_v61 = vpack.c.bf16 %v4631_v63, %v4631_v63  ;;  %3493 = vrot.lane.b32.xlu0 %v10135_v55, %s8506_s25 }
 0x2e1   : > { %v4756_v3 = vpop.permute.xlu1 %4755 }
 0x2e2   : > { %4842 = vst.msk [vmem:[#allocation3 + $0x48] sm:$0xf] %vm2060_vm9, %v4756_v3  ;;  %v3478_v36 = vpop.permute.xlu0 %3477 }
 0x2e3   : > { %3323 = vst.msk [vmem:[#allocation3 + $0xd0] sm:$0xf] %vm517_vm3, %v10209_v61  ;;  %5027 = vrot.lane.b32.xlu1 %v10213_v25, %s8513_s28  ;;  %v4632_v16 = vld [vmem:[#allocation2 + $0x140] sm:$0xff] }
 0x2e4   : > { %v4377_v9 = vld [vmem:[#allocation2 + $0x13a] sm:$0xff]  ;;  %3563 = vst.msk [vmem:[#allocation3 + $0x50] sm:$0xf] %vm774_vm4, %v3478_v36  ;;  %v10221_v31 = vpack.c.bf16 %v4632_v16, %v4632_v16  ;;  %v4378_v55 = vld [vmem:[#allocation2 + $0x142] sm:$0xff]  ;;  %3749 = vrot.lane.b32.xlu0 %v9983_v22, %s8508_s9 }
 0x2e5   : > { %v10223_v37 = vpack.c.bf16 %v4377_v9, %v4377_v9  ;;  %v5012_v17 = vpop.permute.xlu1 %5011  ;;  %v10227_v1 = vpack.c.bf16 %v4378_v55, %v4378_v55 }
 0x2e6   : > { %5098 = vst.msk [vmem:[#allocation3 + $0x48] sm:$0xf] %vm2317_vm10, %v5012_v17  ;;  %v3734_v0 = vpop.permute.xlu0 %3733 }
 0x2e7   : > { %5303 = vst.msk [vmem:[#allocation3 + $0xb4] sm:$0xf] %vm517_vm3, %v10223_v37  ;;  %3324 = vst.msk [vmem:[#allocation3 + $0xd8] sm:$0xf] %vm517_vm3, %v10221_v31  ;;  %3495 = vrot.lane.b32.xlu1 %v10148_v14, %s8506_s25  ;;  %v8460_v14 = vld [vmem:[#allocation3 + $0x44] ss:$8 sps:$4 sm:$0xff]  }
 0x2e8   : > { %5304 = vst.msk [vmem:[#allocation3 + $0xbc] sm:$0xf] %vm517_vm3, %v10227_v1  ;;  %4005 = vrot.lane.b32.xlu0 %v8331_v7, %s8509_s12  ;;  %7817 = vmatprep.mubr.msk.bf16.mxu1 %vm246_vm0, %v8460_v14 }
 0x2e9   : > { %3819 = vst.msk [vmem:[#allocation3 + $0x50] sm:$0xf] %vm1031_vm5, %v3734_v0  ;;  %v3480_v22 = vpop.permute.xlu1 %3479 }
 0x2ea   : > { %3564 = vst.msk [vmem:[#allocation3 + $0x58] sm:$0xf] %vm774_vm4, %v3480_v22  ;;  %v3990_v41 = vpop.permute.xlu0 %3989 }
 0x2eb   : > { %3751 = vrot.lane.b32.xlu1 %v9985_v4, %s8508_s9  ;;  %4075 = vst.msk [vmem:[#allocation3 + $0x50] sm:$0xf] %vm1288_vm6, %v3990_v41  ;;  %v10326_v41 = vld [vmem:[%s11150_s4 + $0x1] ss:$0 sm:$0xff] }
 0x2ec   : > { %4261 = vrot.lane.b32.xlu0 %v10200_v58, %s8510_s15 }
 0x2ed   : > { %v3736_v10 = vpop.permute.xlu1 %3735  ;;  %v2976_v60 = vpop.f32.mrf.mxu0  ;;  %v8462_v11 = vld [vmem:[#allocation3 + $0x40] ss:$8 sps:$4 sm:$0xff]  }
 0x2ee   : > { %3820 = vst.msk [vmem:[#allocation3 + $0x58] sm:$0xf] %vm1031_vm5, %v3736_v10  ;;  %v3027_v19 = vmax.f32 %v2976_v60, 0.0  ;;  %v4246_v21 = vpop.permute.xlu0 %4245  ;;  %5674 = vmatmul.mubr.bf16.gmra.mxu1 %v8462_v11 }
 0x2ef   : > { %4007 = vrot.lane.b32.xlu1 %v8332_v12, %s8509_s12  ;;  %v2978_v54 = vpop.f32.mrf.mxu0  ;;  %4331 = vst.msk [vmem:[#allocation3 + $0x50] sm:$0xf] %vm1545_vm7, %v4246_v21  ;;  %v4885_v21 = vld [vmem:[#allocation2 + $0x121] sm:$0xff] }
 0x2f0   : > { %v3063_v4 = vmul.f32 %v9889_v42, %v3027_v19  ;;  %4517 = vrot.lane.b32.xlu0 %v10035_v34, %s8511_s20 }
 0x2f1   : > { %v3992_v27 = vpop.permute.xlu1 %3991  ;;  %v2979_v59 = vpop.f32.mrf.mxu0 }
 0x2f2   : > { %v3099_v28 = vadd.f32 %v9898_v47, %v3063_v4  ;;  %4076 = vst.msk [vmem:[#allocation3 + $0x58] sm:$0xf] %vm1288_vm6, %v3992_v27  ;;  %v3028_v43 = vmax.f32 %v2979_v59, 0.0  ;;  %v4502_v40 = vpop.permute.xlu0 %4501  ;;  %v10341_v27 = vpack.c.bf16 %v4885_v21, %v4885_v21 }
 0x2f3   : > { %4263 = vrot.lane.b32.xlu1 %v10213_v25, %s8510_s15  ;;  %v2981_v44 = vpop.f32.mrf.mxu0  ;;  %4587 = vst.msk [vmem:[#allocation3 + $0x50] sm:$0xf] %vm1802_vm8, %v4502_v40 }
 0x2f4   : > { %3131 = vst.msk [vmem:[#allocation2 + $0x151] sm:$0xff] %vm246_vm0, %v3099_v28  ;;  %v3064_v49 = vmul.f32 %v9889_v42, %v3028_v43  ;;  %4773 = vrot.lane.b32.xlu0 %v8333_v13, %s8512_s23  ;;  %v4886_v28 = vld [vmem:[#allocation2 + $0x129] sm:$0xff] }
 0x2f5   : > { %v4248_v53 = vpop.permute.xlu1 %4247 }
 0x2f6   : > { %v3100_v32 = vadd.f32 %v9898_v47, %v3064_v49  ;;  %4332 = vst.msk [vmem:[#allocation3 + $0x58] sm:$0xf] %vm1545_vm7, %v4248_v53  ;;  %v4758_v57 = vpop.permute.xlu0 %4757  ;;  %v4884_v47 = vld [vmem:[#allocation2 + $0x111] sm:$0xff]  ;;  %v10355_v49 = vpack.c.bf16 %v4886_v28, %v4886_v28  ;;  %v8469_v28 = vld [vmem:[#allocation3 + $0x74] ss:$8 sps:$4 sm:$0xff]  }
 0x2f7   : > { %4519 = vrot.lane.b32.xlu1 %v10039_v45, %s8511_s20  ;;  %4843 = vst.msk [vmem:[#allocation3 + $0x50] sm:$0xf] %vm2060_vm9, %v4758_v57  ;;  %v10278_v48 = vpack.c.bf16 %v4884_v47, %v4884_v47 }
 0x2f8   : > { %3132 = vst.msk [vmem:[#allocation2 + $0x159] sm:$0xff] %vm246_vm0, %v3100_v32  ;;  %5029 = vrot.lane.b32.xlu0 %v10265_v39, %s8513_s28 }
 0x2f9   : > { %v4504_v42 = vpop.permute.xlu1 %4503 }
 0x2fa   : > { %4588 = vst.msk [vmem:[#allocation3 + $0x58] sm:$0xf] %vm1802_vm8, %v4504_v42  ;;  %v5014_v18 = vpop.permute.xlu0 %5013 }
 0x2fb   : > { %4775 = vrot.lane.b32.xlu1 %v8334_v23, %s8512_s23  ;;  %v4633_v15 = vld [vmem:[#allocation2 + $0x150] sm:$0xff]  ;;  %5099 = vst.msk [vmem:[#allocation3 + $0x50] sm:$0xf] %vm2317_vm10, %v5014_v18 }
 0x2fc   : > { %v10274_v52 = vpack.c.bf16 %v4633_v15, %v4633_v15  ;;  %3497 = vrot.lane.b32.xlu0 %v10200_v58, %s8506_s25 }
 0x2fd   : > { %v4760_v7 = vpop.permute.xlu1 %4759 }
 0x2fe   : > { %4844 = vst.msk [vmem:[#allocation3 + $0x58] sm:$0xf] %vm2060_vm9, %v4760_v7  ;;  %v3482_v62 = vpop.permute.xlu0 %3481 }
 0x2ff   : > { %3325 = vst.msk [vmem:[#allocation3 + $0xe0] sm:$0xf] %vm517_vm3, %v10274_v52  ;;  %5031 = vrot.lane.b32.xlu1 %v10278_v48, %s8513_s28  ;;  %v4634_v24 = vld [vmem:[#allocation2 + $0x158] sm:$0xff] }
 0x300   : > { %v4379_v30 = vld [vmem:[#allocation2 + $0x152] sm:$0xff]  ;;  %3565 = vst.msk [vmem:[#allocation3 + $0x60] sm:$0xf] %vm774_vm4, %v3482_v62  ;;  %v10286_v38 = vpack.c.bf16 %v4634_v24, %v4634_v24  ;;  %v4380_v58 = vld [vmem:[#allocation2 + $0x15a] sm:$0xff]  ;;  %3753 = vrot.lane.b32.xlu0 %v10035_v34, %s8508_s9 }
 0x301   : > { %v10288_v56 = vpack.c.bf16 %v4379_v30, %v4379_v30  ;;  %v5016_v5 = vpop.permute.xlu1 %5015  ;;  %v10292_v12 = vpack.c.bf16 %v4380_v58, %v4380_v58 }
 0x302   : > { %5100 = vst.msk [vmem:[#allocation3 + $0x58] sm:$0xf] %vm2317_vm10, %v5016_v5  ;;  %v3738_v50 = vpop.permute.xlu0 %3737 }
 0x303   : > { %5305 = vst.msk [vmem:[#allocation3 + $0xc4] sm:$0xf] %vm517_vm3, %v10288_v56  ;;  %3326 = vst.msk [vmem:[#allocation3 + $0xe8] sm:$0xf] %vm517_vm3, %v10286_v38  ;;  %3499 = vrot.lane.b32.xlu1 %v10213_v25, %s8506_s25  ;;  %v8463_v25 = vld [vmem:[#allocation3 + $0x54] ss:$8 sps:$4 sm:$0xff]  }
 0x304   : > { %5306 = vst.msk [vmem:[#allocation3 + $0xcc] sm:$0xf] %vm517_vm3, %v10292_v12  ;;  %4009 = vrot.lane.b32.xlu0 %v8333_v13, %s8509_s12  ;;  %7818 = vmatprep.mubr.msk.bf16.mxu1 %vm246_vm0, %v8463_v25 }
 0x305   : > { %3821 = vst.msk [vmem:[#allocation3 + $0x60] sm:$0xf] %vm1031_vm5, %v3738_v50  ;;  %v3484_v34 = vpop.permute.xlu1 %3483 }
 0x306   : > { %3566 = vst.msk [vmem:[#allocation3 + $0x68] sm:$0xf] %vm774_vm4, %v3484_v34  ;;  %v3994_v35 = vpop.permute.xlu0 %3993 }
 0x307   : > { %3755 = vrot.lane.b32.xlu1 %v10039_v45, %s8508_s9  ;;  %4077 = vst.msk [vmem:[#allocation3 + $0x60] sm:$0xf] %vm1288_vm6, %v3994_v35  ;;  %v10317_v45 = vld [vmem:[%s11150_s4] ss:$0 sm:$0xff] }
 0x308   : > { %4265 = vrot.lane.b32.xlu0 %v10265_v39, %s8510_s15 }
 0x309   : > { %v3740_v63 = vpop.permute.xlu1 %3739  ;;  %v2984_v3 = vpop.f32.mrf.mxu0  ;;  %v8465_v36 = vld [vmem:[#allocation3 + $0x50] ss:$8 sps:$4 sm:$0xff]  }
 0x30a   : > { %3822 = vst.msk [vmem:[#allocation3 + $0x68] sm:$0xf] %vm1031_vm5, %v3740_v63  ;;  %v3029_v16 = vmax.f32 %v2984_v3, 0.0  ;;  %v4250_v9 = vpop.permute.xlu0 %4249  ;;  %5682 = vmatmul.mubr.bf16.gmra.mxu1 %v8465_v36  ;;  %v4887_v3 = vld [vmem:[#allocation2 + $0x139] sm:$0xff] }
 0x30b   : > { %4011 = vrot.lane.b32.xlu1 %v8334_v23, %s8509_s12  ;;  %v2986_v55 = vpop.f32.mrf.mxu0  ;;  %4333 = vst.msk [vmem:[#allocation3 + $0x60] sm:$0xf] %vm1545_vm7, %v4250_v9  ;;  %v10410_v9 = vpack.c.bf16 %v4887_v3, %v4887_v3 }
 0x30c   : > { %v3065_v17 = vmul.f32 %v10317_v45, %v3029_v16  ;;  %4521 = vrot.lane.b32.xlu0 %v10094_v29, %s8511_s20 }
 0x30d   : > { %v3996_v0 = vpop.permute.xlu1 %3995  ;;  %v2987_v22 = vpop.f32.mrf.mxu0 }
 0x30e   : > { %v3101_v10 = vadd.f32 %v10326_v41, %v3065_v17  ;;  %4078 = vst.msk [vmem:[#allocation3 + $0x68] sm:$0xf] %vm1288_vm6, %v3996_v0  ;;  %v3030_v60 = vmax.f32 %v2987_v22, 0.0  ;;  %v4506_v14 = vpop.permute.xlu0 %4505 }
 0x30f   : > { %4267 = vrot.lane.b32.xlu1 %v10278_v48, %s8510_s15  ;;  %v2989_v11 = vpop.f32.mrf.mxu0  ;;  %4589 = vst.msk [vmem:[#allocation3 + $0x60] sm:$0xf] %vm1802_vm8, %v4506_v14 }
 0x310   : > { %3133 = vst.msk [vmem:[#allocation2 + $0x169] sm:$0xff] %vm246_vm0, %v3101_v10  ;;  %v3066_v19 = vmul.f32 %v10317_v45, %v3030_v60  ;;  %4777 = vrot.lane.b32.xlu0 %v10144_v2, %s8512_s23 }
 0x311   : > { %v4252_v54 = vpop.permute.xlu1 %4251 }
 0x312   : > { %v3102_v4 = vadd.f32 %v10326_v41, %v3066_v19  ;;  %4334 = vst.msk [vmem:[#allocation3 + $0x68] sm:$0xf] %vm1545_vm7, %v4252_v54  ;;  %v4762_v6 = vpop.permute.xlu0 %4761 }
 0x313   : > { %4523 = vrot.lane.b32.xlu1 %v10098_v46, %s8511_s20  ;;  %4845 = vst.msk [vmem:[#allocation3 + $0x60] sm:$0xf] %vm2060_vm9, %v4762_v6 }
 0x314   : > { %3134 = vst.msk [vmem:[#allocation2 + $0x171] sm:$0xff] %vm246_vm0, %v3102_v4  ;;  %5033 = vrot.lane.b32.xlu0 %v10341_v27, %s8513_s28 }
 0x315   : > { %v4508_v59 = vpop.permute.xlu1 %4507 }
 0x316   : > { %4590 = vst.msk [vmem:[#allocation3 + $0x68] sm:$0xf] %vm1802_vm8, %v4508_v59  ;;  %v5018_v43 = vpop.permute.xlu0 %5017 }
 0x317   : > { %4779 = vrot.lane.b32.xlu1 %v10156_v33, %s8512_s23  ;;  %v4635_v40 = vld [vmem:[#allocation2 + $0x168] sm:$0xff]  ;;  %5101 = vst.msk [vmem:[#allocation3 + $0x60] sm:$0xf] %vm2317_vm10, %v5018_v43 }
 0x318   : > { %v10351_v44 = vpack.c.bf16 %v4635_v40, %v4635_v40  ;;  %3501 = vrot.lane.b32.xlu0 %v10265_v39, %s8506_s25 }
 0x319   : > { %v4764_v13 = vpop.permute.xlu1 %4763 }
 0x31a   : > { %4846 = vst.msk [vmem:[#allocation3 + $0x68] sm:$0xf] %vm2060_vm9, %v4764_v13  ;;  %v3486_v51 = vpop.permute.xlu0 %3485 }
 0x31b   : > { %3327 = vst.msk [vmem:[#allocation3 + $0xf0] sm:$0xf] %vm517_vm3, %v10351_v44  ;;  %5035 = vrot.lane.b32.xlu1 %v10355_v49, %s8513_s28  ;;  %v4636_v53 = vld [vmem:[#allocation2 + $0x170] sm:$0xff] }
 0x31c   : > { %v4381_v32 = vld [vmem:[#allocation2 + $0x16a] sm:$0xff]  ;;  %3567 = vst.msk [vmem:[#allocation3 + $0x70] sm:$0xf] %vm774_vm4, %v3486_v51  ;;  %v10363_v8 = vpack.c.bf16 %v4636_v53, %v4636_v53  ;;  %v4382_v39 = vld [vmem:[#allocation2 + $0x172] sm:$0xff]  ;;  %3757 = vrot.lane.b32.xlu0 %v10094_v29, %s8508_s9 }
 0x31d   : > { %v10365_v57 = vpack.c.bf16 %v4381_v32, %v4381_v32  ;;  %v5020_v42 = vpop.permute.xlu1 %5019  ;;  %v10369_v23 = vpack.c.bf16 %v4382_v39, %v4382_v39  ;;  %v4889_v39 = vld [vmem:[#allocation2 + $0x151] sm:$0xff] }
 0x31e   : > { %5102 = vst.msk [vmem:[#allocation3 + $0x68] sm:$0xf] %vm2317_vm10, %v5020_v42  ;;  %v3742_v47 = vpop.permute.xlu0 %3741 }
 0x31f   : > { %5307 = vst.msk [vmem:[#allocation3 + $0xd4] sm:$0xf] %vm517_vm3, %v10365_v57  ;;  %3328 = vst.msk [vmem:[#allocation3 + $0xf8] sm:$0xf] %vm517_vm3, %v10363_v8  ;;  %3503 = vrot.lane.b32.xlu1 %v10278_v48, %s8506_s25  ;;  %v8466_v48 = vld [vmem:[#allocation3 + $0x64] ss:$8 sps:$4 sm:$0xff]  }
 0x320   : > { %5308 = vst.msk [vmem:[#allocation3 + $0xdc] sm:$0xf] %vm517_vm3, %v10369_v23  ;;  %4013 = vrot.lane.b32.xlu0 %v10144_v2, %s8509_s12  ;;  %7819 = vmatprep.mubr.msk.bf16.mxu1 %vm246_vm0, %v8466_v48 }
 0x321   : > { %3823 = vst.msk [vmem:[#allocation3 + $0x70] sm:$0xf] %vm1031_vm5, %v3742_v47  ;;  %v3488_v29 = vpop.permute.xlu1 %3487 }
 0x322   : > { %3568 = vst.msk [vmem:[#allocation3 + $0x78] sm:$0xf] %vm774_vm4, %v3488_v29  ;;  %v3998_v18 = vpop.permute.xlu0 %3997  ;;  %v10470_v29 = vpack.c.bf16 %v4889_v39, %v4889_v39 }
 0x323   : > { %3759 = vrot.lane.b32.xlu1 %v10098_v46, %s8508_s9  ;;  %4079 = vst.msk [vmem:[#allocation3 + $0x70] sm:$0xf] %vm1288_vm6, %v3998_v18 }
 0x324   : > { %4269 = vrot.lane.b32.xlu0 %v10341_v27, %s8510_s15 }
 0x325   : > { %v3744_v15 = vpop.permute.xlu1 %3743  ;;  %v2992_v7 = vpop.f32.mrf.mxu0  ;;  %v8468_v62 = vld [vmem:[#allocation3 + $0x60] ss:$8 sps:$4 sm:$0xff]  }
 0x326   : > { %3824 = vst.msk [vmem:[#allocation3 + $0x78] sm:$0xf] %vm1031_vm5, %v3744_v15  ;;  %v3031_v24 = vmax.f32 %v2992_v7, 0.0  ;;  %v4254_v30 = vpop.permute.xlu0 %4253  ;;  %5690 = vmatmul.mubr.bf16.gmra.mxu1 %v8468_v62  ;;  %v4890_v15 = vld [vmem:[#allocation2 + $0x159] sm:$0xff] }
 0x327   : > { %4015 = vrot.lane.b32.xlu1 %v10156_v33, %s8509_s12  ;;  %v2994_v2 = vpop.f32.mrf.mxu0  ;;  %4335 = vst.msk [vmem:[#allocation3 + $0x70] sm:$0xf] %vm1545_vm7, %v4254_v30  ;;  %7820 = vmatprep.mubr.msk.bf16.mxu1 %vm246_vm0, %v8469_v28  ;;  %v10481_v62 = vpack.c.bf16 %v4890_v15, %v4890_v15 }
 0x328   : > { %v3067_v46 = vmul.f32 %v10317_v45, %v3031_v24  ;;  %4525 = vrot.lane.b32.xlu0 %v10158_v20, %s8511_s20 }
 0x329   : > { %v4000_v58 = vpop.permute.xlu1 %3999  ;;  %v2995_v5 = vpop.f32.mrf.mxu0 }
 0x32a   : > { %v3103_v50 = vadd.f32 %v10326_v41, %v3067_v46  ;;  %4080 = vst.msk [vmem:[#allocation3 + $0x78] sm:$0xf] %vm1288_vm6, %v4000_v58  ;;  %v3032_v34 = vmax.f32 %v2995_v5, 0.0  ;;  %v4510_v35 = vpop.permute.xlu0 %4509 }
 0x32b   : > { %4271 = vrot.lane.b32.xlu1 %v10355_v49, %s8510_s15  ;;  %v2997_v33 = vpop.f32.mrf.mxu0  ;;  %4591 = vst.msk [vmem:[#allocation3 + $0x70] sm:$0xf] %vm1802_vm8, %v4510_v35 }
 0x32c   : > { %3135 = vst.msk [vmem:[#allocation2 + $0x181] sm:$0xff] %vm246_vm0, %v3103_v50  ;;  %v3068_v63 = vmul.f32 %v10317_v45, %v3032_v34  ;;  %4781 = vrot.lane.b32.xlu0 %v10209_v61, %s8512_s23  ;;  %v4888_v45 = vld [vmem:[#allocation2 + $0x141] sm:$0xff] }
 0x32d   : > { %v4256_v25 = vpop.permute.xlu1 %4255  ;;  %v10422_v22 = vpack.c.bf16 %v4888_v45, %v4888_v45 }
 0x32e   : > { %v3104_v36 = vadd.f32 %v10326_v41, %v3068_v63  ;;  %4336 = vst.msk [vmem:[#allocation3 + $0x78] sm:$0xf] %vm1545_vm7, %v4256_v25  ;;  %v4766_v16 = vpop.permute.xlu0 %4765 }
 0x32f   : > { %4527 = vrot.lane.b32.xlu1 %v10162_v26, %s8511_s20  ;;  %4847 = vst.msk [vmem:[#allocation3 + $0x70] sm:$0xf] %vm2060_vm9, %v4766_v16 }
 0x330   : > { %3136 = vst.msk [vmem:[#allocation2 + $0x189] sm:$0xff] %vm246_vm0, %v3104_v36  ;;  %5037 = vrot.lane.b32.xlu0 %v10410_v9, %s8513_s28 }
 0x331   : > { %v4512_v55 = vpop.permute.xlu1 %4511 }
 0x332   : > { %4592 = vst.msk [vmem:[#allocation3 + $0x78] sm:$0xf] %vm1802_vm8, %v4512_v55  ;;  %v5022_v17 = vpop.permute.xlu0 %5021 }
 0x333   : > { %4783 = vrot.lane.b32.xlu1 %v10221_v31, %s8512_s23  ;;  %5103 = vst.msk [vmem:[#allocation3 + $0x70] sm:$0xf] %vm2317_vm10, %v5022_v17 }
 0x334   : > { %3505 = vrot.lane.b32.xlu0 %v10341_v27, %s8506_s25 }
 0x335   : > { %v4768_v0 = vpop.permute.xlu1 %4767 }
 0x336   : > { %4848 = vst.msk [vmem:[#allocation3 + $0x78] sm:$0xf] %vm2060_vm9, %v4768_v0  ;;  %v3490_v41 = vpop.permute.xlu0 %3489 }
 0x337   : > { %5039 = vrot.lane.b32.xlu1 %v10422_v22, %s8513_s28  ;;  %v4383_v10 = vld [vmem:[#allocation2 + $0x182] sm:$0xff]  ;;  %3569 = vst.msk [vmem:[#allocation3 + $0x80] sm:$0xf] %vm774_vm4, %v3490_v41  ;;  %v4384_v14 = vld [vmem:[#allocation2 + $0x18a] sm:$0xff] }
 0x338   : > { %v10428_v60 = vpack.c.bf16 %v4383_v10, %v4383_v10  ;;  %3761 = vrot.lane.b32.xlu0 %v10158_v20, %s8508_s9  ;;  %v10432_v19 = vpack.c.bf16 %v4384_v14, %v4384_v14  ;;  %v4892_v10 = vld [vmem:[#allocation2 + $0x171] sm:$0xff] }
 0x339   : > { %v5024_v11 = vpop.permute.xlu1 %5023 }
 0x33a   : > { %5104 = vst.msk [vmem:[#allocation3 + $0x78] sm:$0xf] %vm2317_vm10, %v5024_v11  ;;  %v3746_v21 = vpop.permute.xlu0 %3745  ;;  %v5327_v27 = vld [vmem:[#allocation3 + $0x70] sm:$0xff] }
 0x33b   : > { %5309 = vst.msk [vmem:[#allocation3 + $0xe4] sm:$0xf] %vm517_vm3, %v10428_v60  ;;  %3507 = vrot.lane.b32.xlu1 %v10355_v49, %s8506_s25  ;;  %5310 = vst.msk [vmem:[#allocation3 + $0xec] sm:$0xf] %vm517_vm3, %v10432_v19 }
 0x33c   : > { %3825 = vst.msk [vmem:[#allocation3 + $0x80] sm:$0xf] %vm1031_vm5, %v3746_v21  ;;  %4017 = vrot.lane.b32.xlu0 %v10209_v61, %s8509_s12  ;;  %v10532_v21 = vpack.c.bf16 %v4892_v10, %v4892_v10 }
 0x33d   : > { %v3492_v54 = vpop.permute.xlu1 %3491 }
 0x33e   : > { %3570 = vst.msk [vmem:[#allocation3 + $0x88] sm:$0xf] %vm774_vm4, %v3492_v54  ;;  %v4002_v20 = vpop.permute.xlu0 %4001  ;;  %v5643_v4 = vpop.f32.mrf.mxu1 }
 0x33f   : > { %3763 = vrot.lane.b32.xlu1 %v10162_v26, %s8508_s9  ;;  %4081 = vst.msk [vmem:[#allocation3 + $0x80] sm:$0xf] %vm1288_vm6, %v4002_v20  ;;  %v5803_v13 = vsel %vm246_vm0, %v5643_v4, 0.0 }
 0x340   : > { %5770 = vst.msk [vmem:[#allocation4] sm:$0xff] %vm246_vm0, %v5643_v4  ;;  %4273 = vrot.lane.b32.xlu0 %v10410_v9, %s8510_s15  ;;  %v5645_v61 = vpop.f32.mrf.mxu1 }
 0x341   : > { %v3748_v6 = vpop.permute.xlu1 %3747  ;;  %v5328_v59 = vld [vmem:[#allocation3 + $0x78] sm:$0xff] }
 0x342   : > { %3826 = vst.msk [vmem:[#allocation3 + $0x88] sm:$0xf] %vm1031_vm5, %v3748_v6  ;;  %v7786_v43 = vcombine.low %v5327_v27, %v5328_v59  ;;  %v4258_v40 = vpop.permute.xlu0 %4257  ;;  %v5646_v26 = vpop.f32.mrf.mxu1 }
 0x343   : > { %4019 = vrot.lane.b32.xlu1 %v10221_v31, %s8509_s12  ;;  %4337 = vst.msk [vmem:[#allocation3 + $0x80] sm:$0xf] %vm1545_vm7, %v4258_v40  ;;  %v5804_v49 = vsel %vm246_vm0, %v5646_v26, 0.0 }
 0x344   : > { %5698 = vmatmul.mubr.bf16.gmra.mxu1 %v7786_v43  ;;  %5771 = vst.msk [vmem:[#allocation4 + $0x8] sm:$0xff] %vm246_vm0, %v5646_v26  ;;  %4529 = vrot.lane.b32.xlu0 %v10223_v37, %s8511_s20  ;;  %v5805_v53 = vadd.f32 %v5804_v49, %v5803_v13  ;;  %v5648_v31 = vpop.f32.mrf.mxu1 }
 0x345   : > { %v4004_v51 = vpop.permute.xlu1 %4003 }
 0x346   : > { %4082 = vst.msk [vmem:[#allocation3 + $0x88] sm:$0xf] %vm1288_vm6, %v4004_v51  ;;  %v4514_v32 = vpop.permute.xlu0 %4513  ;;  %v4637_v51 = vld [vmem:[#allocation2 + $0x180] sm:$0xff] }
 0x347   : > { %4275 = vrot.lane.b32.xlu1 %v10422_v22, %s8510_s15  ;;  %4593 = vst.msk [vmem:[#allocation3 + $0x80] sm:$0xf] %vm1802_vm8, %v4514_v32 }
 0x348   : > { %4785 = vrot.lane.b32.xlu0 %v10274_v52, %s8512_s23 }
 0x349   : > { %v4260_v42 = vpop.permute.xlu1 %4259 }
 0x34a   : > { %4338 = vst.msk [vmem:[#allocation3 + $0x88] sm:$0xf] %vm1545_vm7, %v4260_v42  ;;  %v4770_v47 = vpop.permute.xlu0 %4769  ;;  %v8343_v42 = vpack.c.bf16 %v4637_v51, %v4637_v51 }
 0x34b   : > { %4531 = vrot.lane.b32.xlu1 %v10227_v1, %s8511_s20  ;;  %4849 = vst.msk [vmem:[#allocation3 + $0x80] sm:$0xf] %vm2060_vm9, %v4770_v47  ;;  %v4893_v47 = vld [vmem:[#allocation2 + $0x181] sm:$0xff] }
 0x34c   : > { %5041 = vrot.lane.b32.xlu0 %v10470_v29, %s8513_s28 }
 0x34d   : > { %v4516_v18 = vpop.permute.xlu1 %4515 }
 0x34e   : > { %4594 = vst.msk [vmem:[#allocation3 + $0x88] sm:$0xf] %vm1802_vm8, %v4516_v18  ;;  %v5026_v7 = vpop.permute.xlu0 %5025  ;;  %v4638_v18 = vld [vmem:[#allocation2 + $0x188] sm:$0xff] }
 0x34f   : > { %4787 = vrot.lane.b32.xlu1 %v10286_v38, %s8512_s23  ;;  %5105 = vst.msk [vmem:[#allocation3 + $0x80] sm:$0xf] %vm2317_vm10, %v5026_v7  ;;  %v8375_v7 = vpack.c.bf16 %v4893_v47, %v4893_v47 }
 0x350   : > { %3509 = vrot.lane.b32.xlu0 %v10410_v9, %s8506_s25 }
 0x351   : > { %v4772_v48 = vpop.permute.xlu1 %4771 }
 0x352   : > { %4850 = vst.msk [vmem:[#allocation3 + $0x88] sm:$0xf] %vm2060_vm9, %v4772_v48  ;;  %v3494_v24 = vpop.permute.xlu0 %3493 }
 0x353   : > { %5043 = vrot.lane.b32.xlu1 %v10481_v62, %s8513_s28  ;;  %3571 = vst.msk [vmem:[#allocation3 + $0x90] sm:$0xf] %vm774_vm4, %v3494_v24  ;;  %v4894_v24 = vld [vmem:[#allocation2 + $0x189] sm:$0xff] }
 0x354   : > { %3765 = vrot.lane.b32.xlu0 %v10223_v37, %s8508_s9 }
 0x355   : > { %v5028_v30 = vpop.permute.xlu1 %5027 }
 0x356   : > { %5106 = vst.msk [vmem:[#allocation3 + $0x88] sm:$0xf] %vm2317_vm10, %v5028_v30  ;;  %v3750_v2 = vpop.permute.xlu0 %3749  ;;  %v5329_v34 = vld [vmem:[#allocation3 + $0x80] sm:$0xff] }
 0x357   : > { %3511 = vrot.lane.b32.xlu1 %v10422_v22, %s8506_s25  ;;  %3827 = vst.msk [vmem:[#allocation3 + $0x90] sm:$0xf] %vm1031_vm5, %v3750_v2 }
 0x358   : > { %4021 = vrot.lane.b32.xlu0 %v10274_v52, %s8509_s12  ;;  %v8471_v52 = vld [vmem:[#allocation3 + $0x84] ss:$8 sps:$4 sm:$0xff]  }
 0x359   : > { %v3496_v46 = vpop.permute.xlu1 %3495  ;;  %7821 = vmatprep.mubr.msk.bf16.mxu1 %vm246_vm0, %v8471_v52 }
 0x35a   : > { %3572 = vst.msk [vmem:[#allocation3 + $0x98] sm:$0xf] %vm774_vm4, %v3496_v46  ;;  %v4006_v58 = vpop.permute.xlu0 %4005  ;;  %v5651_v37 = vpop.f32.mrf.mxu1  ;;  %v8376_v46 = vpack.c.bf16 %v4894_v24, %v4894_v24 }
 0x35b   : > { %3767 = vrot.lane.b32.xlu1 %v10227_v1, %s8508_s9  ;;  %4083 = vst.msk [vmem:[#allocation3 + $0x90] sm:$0xf] %vm1288_vm6, %v4006_v58  ;;  %v5806_v5 = vsel %vm246_vm0, %v5651_v37, 0.0 }
 0x35c   : > { %5772 = vst.msk [vmem:[#allocation4 + $0x10] sm:$0xff] %vm246_vm0, %v5651_v37  ;;  %4277 = vrot.lane.b32.xlu0 %v10470_v29, %s8510_s15  ;;  %v5807_v33 = vadd.f32 %v5806_v5, %v5805_v53  ;;  %v5653_v63 = vpop.f32.mrf.mxu1 }
 0x35d   : > { %v3752_v50 = vpop.permute.xlu1 %3751  ;;  %v5330_v35 = vld [vmem:[#allocation3 + $0x88] sm:$0xff] }
 0x35e   : > { %3828 = vst.msk [vmem:[#allocation3 + $0x98] sm:$0xf] %vm1031_vm5, %v3752_v50  ;;  %v7788_v3 = vcombine.low %v5329_v34, %v5330_v35  ;;  %v4262_v1 = vpop.permute.xlu0 %4261  ;;  %v5654_v25 = vpop.f32.mrf.mxu1 }
 0x35f   : > { %4023 = vrot.lane.b32.xlu1 %v10286_v38, %s8509_s12  ;;  %4339 = vst.msk [vmem:[#allocation3 + $0x90] sm:$0xf] %vm1545_vm7, %v4262_v1  ;;  %v5808_v36 = vsel %vm246_vm0, %v5654_v25, 0.0  ;;  %v4891_v38 = vld [vmem:[#allocation2 + $0x169] sm:$0xff] }
 0x360   : > { %5706 = vmatmul.mubr.bf16.gmra.mxu1 %v7788_v3  ;;  %5773 = vst.msk [vmem:[#allocation4 + $0x18] sm:$0xff] %vm246_vm0, %v5654_v25  ;;  %4533 = vrot.lane.b32.xlu0 %v10288_v56, %s8511_s20  ;;  %v5809_v9 = vadd.f32 %v5808_v36, %v5807_v33  ;;  %v5656_v55 = vpop.f32.mrf.mxu1  ;;  %v10521_v22 = vpack.c.bf16 %v4891_v38, %v4891_v38  ;;  %v8475_v3 = vld [vmem:[#allocation3 + $0xa4] ss:$8 sps:$4 sm:$0xff]  }
 0x361   : > { %v4008_v16 = vpop.permute.xlu1 %4007  ;;  %v5151_v55 = vld [vmem:[#allocation2 + $0x19a] sm:$0xff] }
 0x362   : > { %4084 = vst.msk [vmem:[#allocation3 + $0x98] sm:$0xf] %vm1288_vm6, %v4008_v16  ;;  %v4518_v45 = vpop.permute.xlu0 %4517  ;;  %v4639_v16 = vld [vmem:[#allocation2 + $0x198] sm:$0xff] }
 0x363   : > { %4279 = vrot.lane.b32.xlu1 %v10481_v62, %s8510_s15  ;;  %4595 = vst.msk [vmem:[#allocation3 + $0x90] sm:$0xf] %vm1802_vm8, %v4518_v45  ;;  %v5152_v45 = vld [vmem:[#allocation2 + $0x1a2] sm:$0xff] }
 0x364   : > { %4789 = vrot.lane.b32.xlu0 %v10351_v44, %s8512_s23 }
 0x365   : > { %v4264_v17 = vpop.permute.xlu1 %4263 }
 0x366   : > { %4340 = vst.msk [vmem:[#allocation3 + $0x98] sm:$0xf] %vm1545_vm7, %v4264_v17  ;;  %v4774_v0 = vpop.permute.xlu0 %4773 }
 0x367   : > { %4535 = vrot.lane.b32.xlu1 %v10292_v12, %s8511_s20  ;;  %4851 = vst.msk [vmem:[#allocation3 + $0x90] sm:$0xf] %vm2060_vm9, %v4774_v0  ;;  %v8345_v0 = vpack.c.bf16 %v4639_v16, %v4639_v16 }
 0x368   : > { %5045 = vrot.lane.b32.xlu0 %v10521_v22, %s8513_s28 }
 0x369   : > { %v4520_v41 = vpop.permute.xlu1 %4519 }
 0x36a   : > { %4596 = vst.msk [vmem:[#allocation3 + $0x98] sm:$0xf] %vm1802_vm8, %v4520_v41  ;;  %v5030_v14 = vpop.permute.xlu0 %5029  ;;  %v8410_v41 = vpack.c.bf16 %v5152_v45, %v5152_v45 }
 0x36b   : > { %4791 = vrot.lane.b32.xlu1 %v10363_v8, %s8512_s23  ;;  %5107 = vst.msk [vmem:[#allocation3 + $0x90] sm:$0xf] %vm2317_vm10, %v5030_v14 }
 0x36c   : > { %3513 = vrot.lane.b32.xlu0 %v10470_v29, %s8506_s25  ;;  %5312 = vst.msk [vmem:[#allocation3 + $0xfc] sm:$0xf] %vm517_vm3, %v8410_v41 }
 0x36d   : > { %v4776_v11 = vpop.permute.xlu1 %4775 }
 0x36e   : > { %4852 = vst.msk [vmem:[#allocation3 + $0x98] sm:$0xf] %vm2060_vm9, %v4776_v11  ;;  %v3498_v54 = vpop.permute.xlu0 %3497  ;;  %v4895_v11 = vld [vmem:[#allocation2 + $0x199] sm:$0xff] }
 0x36f   : > { %5047 = vrot.lane.b32.xlu1 %v10532_v21, %s8513_s28  ;;  %3573 = vst.msk [vmem:[#allocation3 + $0xa0] sm:$0xf] %vm774_vm4, %v3498_v54  ;;  %v4640_v54 = vld [vmem:[#allocation2 + $0x1a0] sm:$0xff] }
 0x370   : > { %3769 = vrot.lane.b32.xlu0 %v10288_v56, %s8508_s9 }
 0x371   : > { %v5032_v20 = vpop.permute.xlu1 %5031 }
 0x372   : > { %5108 = vst.msk [vmem:[#allocation3 + $0x98] sm:$0xf] %vm2317_vm10, %v5032_v20  ;;  %v3754_v4 = vpop.permute.xlu0 %3753  ;;  %v5331_v61 = vld [vmem:[#allocation3 + $0x90] sm:$0xff] }
 0x373   : > { %3515 = vrot.lane.b32.xlu1 %v10481_v62, %s8506_s25  ;;  %3829 = vst.msk [vmem:[#allocation3 + $0xa0] sm:$0xf] %vm1031_vm5, %v3754_v4  ;;  %v8344_v62 = vpack.c.bf16 %v4638_v18, %v4638_v18 }
 0x374   : > { %4025 = vrot.lane.b32.xlu0 %v10351_v44, %s8509_s12  ;;  %v8473_v44 = vld [vmem:[#allocation3 + $0x94] ss:$8 sps:$4 sm:$0xff]  }
 0x375   : > { %v3500_v6 = vpop.permute.xlu1 %3499  ;;  %7822 = vmatprep.mubr.msk.bf16.mxu1 %vm246_vm0, %v8473_v44 }
 0x376   : > { %3574 = vst.msk [vmem:[#allocation3 + $0xa8] sm:$0xf] %vm774_vm4, %v3500_v6  ;;  %v4010_v27 = vpop.permute.xlu0 %4009  ;;  %v5659_v56 = vpop.f32.mrf.mxu1  ;;  %v8346_v6 = vpack.c.bf16 %v4640_v54, %v4640_v54 }
 0x377   : > { %3771 = vrot.lane.b32.xlu1 %v10292_v12, %s8508_s9  ;;  %4085 = vst.msk [vmem:[#allocation3 + $0xa0] sm:$0xf] %vm1288_vm6, %v4010_v27  ;;  %v5810_v59 = vsel %vm246_vm0, %v5659_v56, 0.0  ;;  %v4896_v27 = vld [vmem:[#allocation2 + $0x1a1] sm:$0xff] }
 0x378   : > { %5774 = vst.msk [vmem:[#allocation4 + $0x20] sm:$0xff] %vm246_vm0, %v5659_v56  ;;  %4281 = vrot.lane.b32.xlu0 %v10521_v22, %s8510_s15  ;;  %v5811_v40 = vadd.f32 %v5810_v59, %v5809_v9  ;;  %v5661_v26 = vpop.f32.mrf.mxu1 }
 0x379   : > { %v3756_v28 = vpop.permute.xlu1 %3755  ;;  %v5332_v43 = vld [vmem:[#allocation3 + $0x98] sm:$0xff] }
 0x37a   : > { %3830 = vst.msk [vmem:[#allocation3 + $0xa8] sm:$0xf] %vm1031_vm5, %v3756_v28  ;;  %v7790_v13 = vcombine.low %v5331_v61, %v5332_v43  ;;  %v4266_v12 = vpop.permute.xlu0 %4265  ;;  %v5662_v49 = vpop.f32.mrf.mxu1  ;;  %v8378_v28 = vpack.c.bf16 %v4896_v27, %v4896_v27 }
 0x37b   : > { %4027 = vrot.lane.b32.xlu1 %v10363_v8, %s8509_s12  ;;  %4341 = vst.msk [vmem:[#allocation3 + $0xa0] sm:$0xf] %vm1545_vm7, %v4266_v12  ;;  %v5812_v53 = vsel %vm246_vm0, %v5662_v49, 0.0 }
 0x37c   : > { %5714 = vmatmul.mubr.bf16.gmra.mxu1 %v7790_v13  ;;  %5775 = vst.msk [vmem:[#allocation4 + $0x28] sm:$0xff] %vm246_vm0, %v5662_v49  ;;  %4537 = vrot.lane.b32.xlu0 %v10365_v57, %s8511_s20  ;;  %v5813_v32 = vadd.f32 %v5812_v53, %v5811_v40  ;;  %v5664_v39 = vpop.f32.mrf.mxu1 }
 0x37d   : > { %v4012_v31 = vpop.permute.xlu1 %4011  ;;  %7823 = vmatprep.mubr.msk.bf16.mxu1 %vm246_vm0, %v8475_v3  ;;  %v8479_v3 = vld [vmem:[#allocation3 + $0xc4] ss:$8 sps:$4 sm:$0xff]  }
 0x37e   : > { %4086 = vst.msk [vmem:[#allocation3 + $0xa8] sm:$0xf] %vm1288_vm6, %v4012_v31  ;;  %v4522_v8 = vpop.permute.xlu0 %4521  ;;  %v8477_v31 = vld [vmem:[#allocation3 + $0xb4] ss:$8 sps:$4 sm:$0xff]  }
 0x37f   : > { %4283 = vrot.lane.b32.xlu1 %v10532_v21, %s8510_s15  ;;  %4597 = vst.msk [vmem:[#allocation3 + $0xa0] sm:$0xf] %vm1802_vm8, %v4522_v8 }
 0x380   : > { %4793 = vrot.lane.b32.xlu0 %v8343_v42, %s8512_s23 }
 0x381   : > { %v4268_v29 = vpop.permute.xlu1 %4267 }
 0x382   : > { %4342 = vst.msk [vmem:[#allocation3 + $0xa8] sm:$0xf] %vm1545_vm7, %v4268_v29  ;;  %v4778_v15 = vpop.permute.xlu0 %4777 }
 0x383   : > { %4539 = vrot.lane.b32.xlu1 %v10369_v23, %s8511_s20  ;;  %4853 = vst.msk [vmem:[#allocation3 + $0xa0] sm:$0xf] %vm2060_vm9, %v4778_v15 }
 0x384   : > { %5049 = vrot.lane.b32.xlu0 %v8375_v7, %s8513_s28 }
 0x385   : > { %v4524_v48 = vpop.permute.xlu1 %4523 }
 0x386   : > { %4598 = vst.msk [vmem:[#allocation3 + $0xa8] sm:$0xf] %vm1802_vm8, %v4524_v48  ;;  %v5034_v30 = vpop.permute.xlu0 %5033 }
 0x387   : > { %4795 = vrot.lane.b32.xlu1 %v8344_v62, %s8512_s23  ;;  %5109 = vst.msk [vmem:[#allocation3 + $0xa0] sm:$0xf] %vm2317_vm10, %v5034_v30 }
 0x388   : > { %3517 = vrot.lane.b32.xlu0 %v10521_v22, %s8506_s25  ;;  %v8409_v22 = vpack.c.bf16 %v5151_v55, %v5151_v55 }
 0x389   : > { %v4780_v2 = vpop.permute.xlu1 %4779 }
 0x38a   : > { %4854 = vst.msk [vmem:[#allocation3 + $0xa8] sm:$0xf] %vm2060_vm9, %v4780_v2  ;;  %v3502_v58 = vpop.permute.xlu0 %3501 }
 0x38b   : > { %5051 = vrot.lane.b32.xlu1 %v8376_v46, %s8513_s28  ;;  %3575 = vst.msk [vmem:[#allocation3 + $0xb0] sm:$0xf] %vm774_vm4, %v3502_v58 }
 0x38c   : > { %3773 = vrot.lane.b32.xlu0 %v10365_v57, %s8508_s9  ;;  %5311 = vst.msk [vmem:[#allocation3 + $0xf4] sm:$0xf] %vm517_vm3, %v8409_v22  ;;  %vm6216_vm3 = vcmask 1047559  }
 0x38d   : > { %v5036_v37 = vpop.permute.xlu1 %5035 }
 0x38e   : > { %5110 = vst.msk [vmem:[#allocation3 + $0xa8] sm:$0xf] %vm2317_vm10, %v5036_v37  ;;  %v3758_v5 = vpop.permute.xlu0 %3757  ;;  %v5333_v33 = vld [vmem:[#allocation3 + $0xa0] sm:$0xff] }
 0x38f   : > { %3519 = vrot.lane.b32.xlu1 %v10532_v21, %s8506_s25  ;;  %3831 = vst.msk [vmem:[#allocation3 + $0xb0] sm:$0xf] %vm1031_vm5, %v3758_v5 }
 0x390   : > { %4029 = vrot.lane.b32.xlu0 %v8343_v42, %s8509_s12 }
 0x391   : > { %v3504_v50 = vpop.permute.xlu1 %3503 }
 0x392   : > { %3576 = vst.msk [vmem:[#allocation3 + $0xb8] sm:$0xf] %vm774_vm4, %v3504_v50  ;;  %v4014_v34 = vpop.permute.xlu0 %4013  ;;  %v5667_v57 = vpop.f32.mrf.mxu1 }
 0x393   : > { %3775 = vrot.lane.b32.xlu1 %v10369_v23, %s8508_s9  ;;  %4087 = vst.msk [vmem:[#allocation3 + $0xb0] sm:$0xf] %vm1288_vm6, %v4014_v34  ;;  %v5814_v35 = vsel %vm246_vm0, %v5667_v57, 0.0 }
 0x394   : > { %5776 = vst.msk [vmem:[#allocation4 + $0x30] sm:$0xff] %vm246_vm0, %v5667_v57  ;;  %4285 = vrot.lane.b32.xlu0 %v8375_v7, %s8510_s15  ;;  %v5815_v1 = vadd.f32 %v5814_v35, %v5813_v32  ;;  %v5669_v25 = vpop.f32.mrf.mxu1 }
 0x395   : > { %v3760_v52 = vpop.permute.xlu1 %3759  ;;  %v5334_v63 = vld [vmem:[#allocation3 + $0xa8] sm:$0xff] }
 0x396   : > { %3832 = vst.msk [vmem:[#allocation3 + $0xb8] sm:$0xf] %vm1031_vm5, %v3760_v52  ;;  %v7792_v36 = vcombine.low %v5333_v33, %v5334_v63  ;;  %v4270_v23 = vpop.permute.xlu0 %4269  ;;  %v5670_v9 = vpop.f32.mrf.mxu1 }
 0x397   : > { %4031 = vrot.lane.b32.xlu1 %v8344_v62, %s8509_s12  ;;  %4343 = vst.msk [vmem:[#allocation3 + $0xb0] sm:$0xf] %vm1545_vm7, %v4270_v23  ;;  %v5816_v38 = vsel %vm246_vm0, %v5670_v9, 0.0 }
 0x398   : > { %5722 = vmatmul.mubr.bf16.gmra.mxu1 %v7792_v36  ;;  %5777 = vst.msk [vmem:[#allocation4 + $0x38] sm:$0xff] %vm246_vm0, %v5670_v9  ;;  %4541 = vrot.lane.b32.xlu0 %v10428_v60, %s8511_s20  ;;  %v5817_v10 = vadd.f32 %v5816_v38, %v5815_v1  ;;  %v5672_v14 = vpop.f32.mrf.mxu1  ;;  %v8377_v60 = vpack.c.bf16 %v4895_v11, %v4895_v11 }
 0x399   : > { %v4016_v17 = vpop.permute.xlu1 %4015  ;;  %7824 = vmatprep.mubr.msk.bf16.mxu1 %vm246_vm0, %v8477_v31 }
 0x39a   : > { %4088 = vst.msk [vmem:[#allocation3 + $0xb8] sm:$0xf] %vm1288_vm6, %v4016_v17  ;;  %v4526_v21 = vpop.permute.xlu0 %4525 }
 0x39b   : > { %4287 = vrot.lane.b32.xlu1 %v8376_v46, %s8510_s15  ;;  %4599 = vst.msk [vmem:[#allocation3 + $0xb0] sm:$0xf] %vm1802_vm8, %v4526_v21 }
 0x39c   : > { %4797 = vrot.lane.b32.xlu0 %v8345_v0, %s8512_s23 }
 0x39d   : > { %v4272_v20 = vpop.permute.xlu1 %4271 }
 0x39e   : > { %4344 = vst.msk [vmem:[#allocation3 + $0xb8] sm:$0xf] %vm1545_vm7, %v4272_v20  ;;  %v4782_v4 = vpop.permute.xlu0 %4781 }
 0x39f   : > { %4543 = vrot.lane.b32.xlu1 %v10432_v19, %s8511_s20  ;;  %4855 = vst.msk [vmem:[#allocation3 + $0xb0] sm:$0xf] %vm2060_vm9, %v4782_v4 }
 0x3a0   : > { %5053 = vrot.lane.b32.xlu0 %v8377_v60, %s8513_s28 }
 0x3a1   : > { %v4528_v56 = vpop.permute.xlu1 %4527 }
 0x3a2   : > { %4600 = vst.msk [vmem:[#allocation3 + $0xb8] sm:$0xf] %vm1802_vm8, %v4528_v56  ;;  %v5038_v59 = vpop.permute.xlu0 %5037 }
 0x3a3   : > { %4799 = vrot.lane.b32.xlu1 %v8346_v6, %s8512_s23  ;;  %5111 = vst.msk [vmem:[#allocation3 + $0xb0] sm:$0xf] %vm2317_vm10, %v5038_v59 }
 0x3a5   : > { %v4784_v61 = vpop.permute.xlu1 %4783 }
 0x3a6   : > { %4856 = vst.msk [vmem:[#allocation3 + $0xb8] sm:$0xf] %vm2060_vm9, %v4784_v61  ;;  %v3506_v43 = vpop.permute.xlu0 %3505 }
 0x3a7   : > { %5055 = vrot.lane.b32.xlu1 %v8378_v28, %s8513_s28  ;;  %3577 = vst.msk [vmem:[#allocation3 + $0xc0] sm:$0xf] %vm774_vm4, %v3506_v43  ;;  %v8481_v28 = vld [vmem:[#allocation3 + $0xd4] ss:$8 sps:$4 sm:$0xff]  }
 0x3a9   : > { %v5040_v19 = vpop.permute.xlu1 %5039 }
 0x3aa   : > { %5112 = vst.msk [vmem:[#allocation3 + $0xb8] sm:$0xf] %vm2317_vm10, %v5040_v19  ;;  %v3762_v44 = vpop.permute.xlu0 %3761  ;;  %v5335_v51 = vld [vmem:[#allocation3 + $0xb0] sm:$0xff] }
 0x3ab   : > { %3833 = vst.msk [vmem:[#allocation3 + $0xc0] sm:$0xf] %vm1031_vm5, %v3762_v44 }
 0x3ad   : > { %v3508_v40 = vpop.permute.xlu1 %3507 }
 0x3ae   : > { %3578 = vst.msk [vmem:[#allocation3 + $0xc8] sm:$0xf] %vm774_vm4, %v3508_v40  ;;  %v4018_v26 = vpop.permute.xlu0 %4017  ;;  %v5675_v13 = vpop.f32.mrf.mxu1 }
 0x3af   : > { %4089 = vst.msk [vmem:[#allocation3 + $0xc0] sm:$0xf] %vm1288_vm6, %v4018_v26  ;;  %v5818_v12 = vsel %vm246_vm0, %v5675_v13, 0.0 }
 0x3b0   : > { %5778 = vst.msk [vmem:[#allocation4 + $0x40] sm:$0xff] %vm246_vm0, %v5675_v13  ;;  %v5819_v32 = vadd.f32 %v5818_v12, %v5817_v10  ;;  %v5677_v39 = vpop.f32.mrf.mxu1 }
 0x3b1   : > { %v3764_v49 = vpop.permute.xlu1 %3763  ;;  %v5336_v53 = vld [vmem:[#allocation3 + $0xb8] sm:$0xff] }
 0x3b2   : > { %3834 = vst.msk [vmem:[#allocation3 + $0xc8] sm:$0xf] %vm1031_vm5, %v3764_v49  ;;  %v7794_v8 = vcombine.low %v5335_v51, %v5336_v53  ;;  %v4274_v42 = vpop.permute.xlu0 %4273  ;;  %v5678_v47 = vpop.f32.mrf.mxu1 }
 0x3b3   : > { %4345 = vst.msk [vmem:[#allocation3 + $0xc0] sm:$0xf] %vm1545_vm7, %v4274_v42  ;;  %v5820_v29 = vsel %vm246_vm0, %v5678_v47, 0.0 }
 0x3b4   : > { %5730 = vmatmul.mubr.bf16.gmra.mxu1 %v7794_v8  ;;  %5779 = vst.msk [vmem:[#allocation4 + $0x48] sm:$0xff] %vm246_vm0, %v5678_v47  ;;  %v5821_v15 = vadd.f32 %v5820_v29, %v5819_v32  ;;  %v5680_v7 = vpop.f32.mrf.mxu1 }
 0x3b5   : > { %v4020_v18 = vpop.permute.xlu1 %4019  ;;  %7825 = vmatprep.mubr.msk.bf16.mxu1 %vm246_vm0, %v8479_v3 }
 0x3b6   : > { %4090 = vst.msk [vmem:[#allocation3 + $0xc8] sm:$0xf] %vm1288_vm6, %v4020_v18  ;;  %v4530_v48 = vpop.permute.xlu0 %4529 }
 0x3b7   : > { %4601 = vst.msk [vmem:[#allocation3 + $0xc0] sm:$0xf] %vm1802_vm8, %v4530_v48 }
 0x3b9   : > { %v4276_v62 = vpop.permute.xlu1 %4275 }
 0x3ba   : > { %4346 = vst.msk [vmem:[#allocation3 + $0xc8] sm:$0xf] %vm1545_vm7, %v4276_v62  ;;  %v4786_v24 = vpop.permute.xlu0 %4785 }
 0x3bb   : > { %4857 = vst.msk [vmem:[#allocation3 + $0xc0] sm:$0xf] %vm2060_vm9, %v4786_v24 }
 0x3bd   : > { %v4532_v30 = vpop.permute.xlu1 %4531 }
 0x3be   : > { %4602 = vst.msk [vmem:[#allocation3 + $0xc8] sm:$0xf] %vm1802_vm8, %v4532_v30  ;;  %v5042_v2 = vpop.permute.xlu0 %5041 }
 0x3bf   : > { %5113 = vst.msk [vmem:[#allocation3 + $0xc0] sm:$0xf] %vm2317_vm10, %v5042_v2  ;;  %v8483_v2 = vld [vmem:[#allocation3 + $0xe4] ss:$8 sps:$4 sm:$0xff]  }
 0x3c1   : > { %v4788_v46 = vpop.permute.xlu1 %4787 }
 0x3c2   : > { %4858 = vst.msk [vmem:[#allocation3 + $0xc8] sm:$0xf] %vm2060_vm9, %v4788_v46  ;;  %v3510_v58 = vpop.permute.xlu0 %3509 }
 0x3c3   : > { %3579 = vst.msk [vmem:[#allocation3 + $0xd0] sm:$0xf] %vm774_vm4, %v3510_v58 }
 0x3c5   : > { %v5044_v37 = vpop.permute.xlu1 %5043 }
 0x3c6   : > { %5114 = vst.msk [vmem:[#allocation3 + $0xc8] sm:$0xf] %vm2317_vm10, %v5044_v37  ;;  %v3766_v5 = vpop.permute.xlu0 %3765  ;;  %v5337_v33 = vld [vmem:[#allocation3 + $0xc0] sm:$0xff] }
 0x3c7   : > { %3835 = vst.msk [vmem:[#allocation3 + $0xd0] sm:$0xf] %vm1031_vm5, %v3766_v5 }
 0x3c9   : > { %v3512_v50 = vpop.permute.xlu1 %3511 }
 0x3ca   : > { %3580 = vst.msk [vmem:[#allocation3 + $0xd8] sm:$0xf] %vm774_vm4, %v3512_v50  ;;  %v4022_v34 = vpop.permute.xlu0 %4021  ;;  %v5683_v57 = vpop.f32.mrf.mxu1 }
 0x3cb   : > { %4091 = vst.msk [vmem:[#allocation3 + $0xd0] sm:$0xf] %vm1288_vm6, %v4022_v34  ;;  %v5822_v35 = vsel %vm246_vm0, %v5683_v57, 0.0 }
 0x3cc   : > { %5780 = vst.msk [vmem:[#allocation4 + $0x50] sm:$0xff] %vm246_vm0, %v5683_v57  ;;  %v5823_v1 = vadd.f32 %v5822_v35, %v5821_v15  ;;  %v5685_v25 = vpop.f32.mrf.mxu1 }
 0x3cd   : > { %v3768_v52 = vpop.permute.xlu1 %3767  ;;  %v5338_v63 = vld [vmem:[#allocation3 + $0xc8] sm:$0xff] }
 0x3ce   : > { %3836 = vst.msk [vmem:[#allocation3 + $0xd8] sm:$0xf] %vm1031_vm5, %v3768_v52  ;;  %v7796_v36 = vcombine.low %v5337_v33, %v5338_v63  ;;  %v4278_v16 = vpop.permute.xlu0 %4277  ;;  %v5686_v23 = vpop.f32.mrf.mxu1 }
 0x3cf   : > { %4347 = vst.msk [vmem:[#allocation3 + $0xd0] sm:$0xf] %vm1545_vm7, %v4278_v16  ;;  %v5824_v9 = vsel %vm246_vm0, %v5686_v23, 0.0 }
 0x3d0   : > { %5738 = vmatmul.mubr.bf16.gmra.mxu1 %v7796_v36  ;;  %5781 = vst.msk [vmem:[#allocation4 + $0x58] sm:$0xff] %vm246_vm0, %v5686_v23  ;;  %v5825_v45 = vadd.f32 %v5824_v9, %v5823_v1  ;;  %v5688_v38 = vpop.f32.mrf.mxu1 }
 0x3d1   : > { %v4024_v55 = vpop.permute.xlu1 %4023  ;;  %7826 = vmatprep.mubr.msk.bf16.mxu1 %vm246_vm0, %v8481_v28  ;;  %v8485_v38 = vld [vmem:[#allocation3 + $0xf4] ss:$8 sps:$4 sm:$0xff]  }
 0x3d2   : > { %4092 = vst.msk [vmem:[#allocation3 + $0xd8] sm:$0xf] %vm1288_vm6, %v4024_v55  ;;  %v4534_v17 = vpop.permute.xlu0 %4533 }
 0x3d3   : > { %4603 = vst.msk [vmem:[#allocation3 + $0xd0] sm:$0xf] %vm1802_vm8, %v4534_v17 }
 0x3d5   : > { %v4280_v0 = vpop.permute.xlu1 %4279 }
 0x3d6   : > { %4348 = vst.msk [vmem:[#allocation3 + $0xd8] sm:$0xf] %vm1545_vm7, %v4280_v0  ;;  %v4790_v22 = vpop.permute.xlu0 %4789 }
 0x3d7   : > { %4859 = vst.msk [vmem:[#allocation3 + $0xd0] sm:$0xf] %vm2060_vm9, %v4790_v22 }
 0x3d9   : > { %v4536_v41 = vpop.permute.xlu1 %4535 }
 0x3da   : > { %4604 = vst.msk [vmem:[#allocation3 + $0xd8] sm:$0xf] %vm1802_vm8, %v4536_v41  ;;  %v5046_v10 = vpop.permute.xlu0 %5045 }
 0x3db   : > { %5115 = vst.msk [vmem:[#allocation3 + $0xd0] sm:$0xf] %vm2317_vm10, %v5046_v10 }
 0x3dd   : > { %v4792_v14 = vpop.permute.xlu1 %4791 }
 0x3de   : > { %4860 = vst.msk [vmem:[#allocation3 + $0xd8] sm:$0xf] %vm2060_vm9, %v4792_v14  ;;  %v3514_v11 = vpop.permute.xlu0 %3513 }
 0x3df   : > { %3581 = vst.msk [vmem:[#allocation3 + $0xe0] sm:$0xf] %vm774_vm4, %v3514_v11 }
 0x3e1   : > { %v5048_v21 = vpop.permute.xlu1 %5047 }
 0x3e2   : > { %5116 = vst.msk [vmem:[#allocation3 + $0xd8] sm:$0xf] %vm2317_vm10, %v5048_v21  ;;  %v3770_v54 = vpop.permute.xlu0 %3769  ;;  %v5339_v56 = vld [vmem:[#allocation3 + $0xd0] sm:$0xff] }
 0x3e3   : > { %3837 = vst.msk [vmem:[#allocation3 + $0xe0] sm:$0xf] %vm1031_vm5, %v3770_v54 }
 0x3e5   : > { %v3516_v20 = vpop.permute.xlu1 %3515 }
 0x3e6   : > { %3582 = vst.msk [vmem:[#allocation3 + $0xe8] sm:$0xf] %vm774_vm4, %v3516_v20  ;;  %v4026_v60 = vpop.permute.xlu0 %4025  ;;  %v5691_v4 = vpop.f32.mrf.mxu1 }
 0x3e7   : > { %4093 = vst.msk [vmem:[#allocation3 + $0xe0] sm:$0xf] %vm1288_vm6, %v4026_v60  ;;  %v5826_v6 = vsel %vm246_vm0, %v5691_v4, 0.0 }
 0x3e8   : > { %5782 = vst.msk [vmem:[#allocation4 + $0x60] sm:$0xff] %vm246_vm0, %v5691_v4  ;;  %v5827_v61 = vadd.f32 %v5826_v6, %v5825_v45  ;;  %v5693_v43 = vpop.f32.mrf.mxu1 }
 0x3e9   : > { %v3772_v27 = vpop.permute.xlu1 %3771  ;;  %v5340_v59 = vld [vmem:[#allocation3 + $0xd8] sm:$0xff] }
 0x3ea   : > { %3838 = vst.msk [vmem:[#allocation3 + $0xe8] sm:$0xf] %vm1031_vm5, %v3772_v27  ;;  %v7798_v19 = vcombine.low %v5339_v56, %v5340_v59  ;;  %v4282_v44 = vpop.permute.xlu0 %4281  ;;  %v5694_v40 = vpop.f32.mrf.mxu1 }
 0x3eb   : > { %4349 = vst.msk [vmem:[#allocation3 + $0xe0] sm:$0xf] %vm1545_vm7, %v4282_v44  ;;  %v5828_v26 = vsel %vm246_vm0, %v5694_v40, 0.0 }
 0x3ec   : > { %5746 = vmatmul.mubr.bf16.gmra.mxu1 %v7798_v19  ;;  %5783 = vst.msk [vmem:[#allocation4 + $0x68] sm:$0xff] %vm246_vm0, %v5694_v40  ;;  %v5829_v12 = vadd.f32 %v5828_v26, %v5827_v61  ;;  %v5696_v49 = vpop.f32.mrf.mxu1 }
 0x3ed   : > { %v4028_v13 = vpop.permute.xlu1 %4027  ;;  %7827 = vmatprep.mubr.msk.bf16.mxu1 %vm246_vm0, %v8483_v2 }
 0x3ee   : > { %4094 = vst.msk [vmem:[#allocation3 + $0xe8] sm:$0xf] %vm1288_vm6, %v4028_v13  ;;  %v4538_v51 = vpop.permute.xlu0 %4537 }
 0x3ef   : > { %4605 = vst.msk [vmem:[#allocation3 + $0xe0] sm:$0xf] %vm1802_vm8, %v4538_v51 }
 0x3f1   : > { %v4284_v53 = vpop.permute.xlu1 %4283 }
 0x3f2   : > { %4350 = vst.msk [vmem:[#allocation3 + $0xe8] sm:$0xf] %vm1545_vm7, %v4284_v53  ;;  %v4794_v31 = vpop.permute.xlu0 %4793 }
 0x3f3   : > { %4861 = vst.msk [vmem:[#allocation3 + $0xe0] sm:$0xf] %vm2060_vm9, %v4794_v31 }
 0x3f5   : > { %v4540_v32 = vpop.permute.xlu1 %4539 }
 0x3f6   : > { %4606 = vst.msk [vmem:[#allocation3 + $0xe8] sm:$0xf] %vm1802_vm8, %v4540_v32  ;;  %v5050_v39 = vpop.permute.xlu0 %5049 }
 0x3f7   : > { %5117 = vst.msk [vmem:[#allocation3 + $0xe0] sm:$0xf] %vm2317_vm10, %v5050_v39 }
 0x3f9   : > { %v4796_v8 = vpop.permute.xlu1 %4795 }
 0x3fa   : > { %4862 = vst.msk [vmem:[#allocation3 + $0xe8] sm:$0xf] %vm2060_vm9, %v4796_v8  ;;  %v3518_v42 = vpop.permute.xlu0 %3517 }
 0x3fb   : > { %3583 = vst.msk [vmem:[#allocation3 + $0xf0] sm:$0xf] %vm774_vm4, %v3518_v42 }
 0x3fd   : > { %v5052_v47 = vpop.permute.xlu1 %5051 }
 0x3fe   : > { %5118 = vst.msk [vmem:[#allocation3 + $0xe8] sm:$0xf] %vm2317_vm10, %v5052_v47  ;;  %v3774_v29 = vpop.permute.xlu0 %3773  ;;  %v5341_v24 = vld [vmem:[#allocation3 + $0xe0] sm:$0xff] }
 0x3ff   : > { %3839 = vst.msk [vmem:[#allocation3 + $0xf0] sm:$0xf] %vm1031_vm5, %v3774_v29 }
 0x401   : > { %v3520_v18 = vpop.permute.xlu1 %3519 }
 0x402   : > { %3584 = vst.msk [vmem:[#allocation3 + $0xf8] sm:$0xf] %vm774_vm4, %v3520_v18  ;;  %v4030_v15 = vpop.permute.xlu0 %4029  ;;  %vm6973_vm4 = vcmask 392192  }
 0x403   : > { %4095 = vst.msk [vmem:[#allocation3 + $0xf0] sm:$0xf] %vm1288_vm6, %v4030_v15 }
 0x404   : > { %v5699_v7 = vpop.f32.mrf.mxu1 }
 0x405   : > { %5784 = vst.msk [vmem:[#allocation4 + $0x70] sm:$0xff] %vm246_vm0, %v5699_v7  ;;  %v5830_v48 = vsel %vm246_vm0, %v5699_v7, 0.0  ;;  %v3776_v62 = vpop.permute.xlu1 %3775  ;;  %v5342_v30 = vld [vmem:[#allocation3 + $0xe8] sm:$0xff] }
 0x406   : > { %v5831_v46 = vadd.f32 %v5830_v48, %v5829_v12  ;;  %3840 = vst.msk [vmem:[#allocation3 + $0xf8] sm:$0xf] %vm1031_vm5, %v3776_v62  ;;  %v5701_v58 = vpop.f32.mrf.mxu1  ;;  %v7800_v37 = vcombine.low %v5341_v24, %v5342_v30  ;;  %v4286_v5 = vpop.permute.xlu0 %4285  ;;  %vm6978_vm5 = vcmask 523264  }
 0x407   : > { %4351 = vst.msk [vmem:[#allocation3 + $0xf0] sm:$0xf] %vm1545_vm7, %v4286_v5 }
 0x408   : > { %v5702_v50 = vpop.f32.mrf.mxu1  ;;  %5754 = vmatmul.mubr.bf16.gmra.mxu1 %v7800_v37 }
 0x409   : > { %5785 = vst.msk [vmem:[#allocation4 + $0x78] sm:$0xff] %vm246_vm0, %v5702_v50  ;;  %v5832_v34 = vsel %vm246_vm0, %v5702_v50, 0.0  ;;  %v4032_v57 = vpop.permute.xlu1 %4031  ;;  %7828 = vmatprep.mubr.msk.bf16.mxu1 %vm246_vm0, %v8485_v38 }
 0x40a   : > { %v5833_v35 = vadd.f32 %v5832_v34, %v5831_v46  ;;  %4096 = vst.msk [vmem:[#allocation3 + $0xf8] sm:$0xf] %vm1288_vm6, %v4032_v57  ;;  %v5704_v52 = vpop.f32.mrf.mxu1  ;;  %v4542_v33 = vpop.permute.xlu0 %4541  ;;  %vm6983_vm6 = vcmask 654336  }
 0x40b   : > { %4607 = vst.msk [vmem:[#allocation3 + $0xf0] sm:$0xf] %vm1802_vm8, %v4542_v33 }
 0x40d   : > { %v4288_v63 = vpop.permute.xlu1 %4287 }
 0x40e   : > { %4352 = vst.msk [vmem:[#allocation3 + $0xf8] sm:$0xf] %vm1545_vm7, %v4288_v63  ;;  %v4798_v3 = vpop.permute.xlu0 %4797  ;;  %vm6988_vm7 = vcmask 785408  }
 0x40f   : > { %4863 = vst.msk [vmem:[#allocation3 + $0xf0] sm:$0xf] %vm2060_vm9, %v4798_v3 }
 0x411   : > { %v4544_v1 = vpop.permute.xlu1 %4543 }
 0x412   : > { %4608 = vst.msk [vmem:[#allocation3 + $0xf8] sm:$0xf] %vm1802_vm8, %v4544_v1  ;;  %v5054_v25 = vpop.permute.xlu0 %5053 }
 0x413   : > { %5119 = vst.msk [vmem:[#allocation3 + $0xf0] sm:$0xf] %vm2317_vm10, %v5054_v25 }
 0x415   : > { %v4800_v36 = vpop.permute.xlu1 %4799 }
 0x416   : > { %4864 = vst.msk [vmem:[#allocation3 + $0xf8] sm:$0xf] %vm2060_vm9, %v4800_v36 }
 0x419   : > { %v5056_v16 = vpop.permute.xlu1 %5055 }
 0x41a   : > { %5120 = vst.msk [vmem:[#allocation3 + $0xf8] sm:$0xf] %vm2317_vm10, %v5056_v16  ;;  %v5343_v23 = vld [vmem:[#allocation3 + $0xf0] sm:$0xff] }
 0x420   : > { %v5707_v9 = vpop.f32.mrf.mxu1 }
 0x421   : > { %5786 = vst.msk [vmem:[#allocation4 + $0x80] sm:$0xff] %vm246_vm0, %v5707_v9  ;;  %v5834_v55 = vsel %vm246_vm0, %v5707_v9, 0.0  ;;  %v5344_v45 = vld [vmem:[#allocation3 + $0xf8] sm:$0xff] }
 0x422   : > { %v5835_v17 = vadd.f32 %v5834_v55, %v5833_v35  ;;  %v5709_v0 = vpop.f32.mrf.mxu1  ;;  %v7802_v22 = vcombine.low %v5343_v23, %v5344_v45 }
 0x424   : > { %v5710_v41 = vpop.f32.mrf.mxu1  ;;  %5762 = vmatmul.mubr.bf16.gmra.mxu1 %v7802_v22  ;;  %v5879_v22 = vlaneseq }
 0x425   : > { %5787 = vst.msk [vmem:[#allocation4 + $0x88] sm:$0xff] %vm246_vm0, %v5710_v41  ;;  %v5836_v10 = vsel %vm246_vm0, %v5710_v41, 0.0 }
 0x426   : > { %v5837_v14 = vadd.f32 %v5836_v10, %v5835_v17  ;;  %v5712_v11 = vpop.f32.mrf.mxu1 }
 0x43c   : > { %v5715_v21 = vpop.f32.mrf.mxu1 }
 0x43d   : > { %5788 = vst.msk [vmem:[#allocation4 + $0x90] sm:$0xff] %vm246_vm0, %v5715_v21  ;;  %v5838_v54 = vsel %vm246_vm0, %v5715_v21, 0.0  ;;  %v5802_v21 = vld [vmem:[%s11150_s4 + $0x2] sm:$0x1] }
 0x43e   : > { %v5839_v20 = vadd.f32 %v5838_v54, %v5837_v14  ;;  %v5717_v60 = vpop.f32.mrf.mxu1  ;;  %v10729_v14 = vshrl.u32 %v5879_v22, 7  ;;  %v6072_v22 = vld [vmem:[#allocation4 + $0x1d] sm:$0x1] }
 0x440   : > { %v5718_v4 = vpop.f32.mrf.mxu1 }
 0x441   : > { %5789 = vst.msk [vmem:[#allocation4 + $0x98] sm:$0xff] %vm246_vm0, %v5718_v4  ;;  %v5840_v6 = vsel %vm246_vm0, %v5718_v4, 0.0  ;;  %v5875_v4 = vld [vmem:[%s11150_s4 + $0x4] sm:$0x3] }
 0x442   : > { %v5841_v27 = vadd.f32 %v5840_v6, %v5839_v20  ;;  %v5720_v56 = vpop.f32.mrf.mxu1  ;;  %v5881_v20 = vsub.s32 0, %v10729_v14 }
 0x458   : > { %v5723_v59 = vpop.f32.mrf.mxu1 }
 0x459   : > { %5790 = vst.msk [vmem:[#allocation4 + $0xa0] sm:$0xff] %vm246_vm0, %v5723_v59  ;;  %v5842_v28 = vsel %vm246_vm0, %v5723_v59, 0.0  ;;  %v5990_v59 = vld [vmem:[#allocation4 + $0x8a] sm:$0x1] }
 0x45a   : > { %v5843_v61 = vadd.f32 %v5842_v28, %v5841_v27  ;;  %v5725_v43 = vpop.f32.mrf.mxu1  ;;  %v5991_v28 = vld [vmem:[#allocation4 + $0x92] sm:$0x1] }
 0x45c   : > { %v5726_v19 = vpop.f32.mrf.mxu1 }
 0x45d   : > { %5791 = vst.msk [vmem:[#allocation4 + $0xa8] sm:$0xff] %vm246_vm0, %v5726_v19  ;;  %v5844_v44 = vsel %vm246_vm0, %v5726_v19, 0.0  ;;  %v6424_v19 = vrot.slane %v5990_v59, 7 }
 0x45e   : > { %v5845_v40 = vadd.f32 %v5844_v44, %v5843_v61  ;;  %v5728_v26 = vpop.f32.mrf.mxu1  ;;  %v5992_v61 = vld [vmem:[#allocation4 + $0x9a] sm:$0x1]  ;;  %v6046_v44 = vld [vmem:[#allocation4 + $0x4c] sm:$0x1] }
 0x45f   : > { %v6426_v26 = vrot.slane %v5991_v28, 6 }
 0x460   : > { %v5993_v43 = vld [vmem:[#allocation4 + $0xa2] sm:$0x1] }
 0x474   : > { %v5731_v13 = vpop.f32.mrf.mxu1 }
 0x475   : > { %5792 = vst.msk [vmem:[#allocation4 + $0xb0] sm:$0xff] %vm246_vm0, %v5731_v13  ;;  %v5846_v12 = vsel %vm246_vm0, %v5731_v13, 0.0  ;;  %v6047_v13 = vld [vmem:[#allocation4 + $0x54] sm:$0x1] }
 0x476   : > { %v5847_v49 = vadd.f32 %v5846_v12, %v5845_v40  ;;  %v5733_v51 = vpop.f32.mrf.mxu1  ;;  %v5994_v40 = vld [vmem:[#allocation4 + $0xaa] sm:$0x1] }
 0x477   : > { %v6048_v51 = vld [vmem:[#allocation4 + $0x5c] sm:$0x1] }
 0x478   : > { %v5734_v53 = vpop.f32.mrf.mxu1 }
 0x479   : > { %5793 = vst.msk [vmem:[#allocation4 + $0xb8] sm:$0xff] %vm246_vm0, %v5734_v53  ;;  %v5848_v31 = vsel %vm246_vm0, %v5734_v53, 0.0  ;;  %v5989_v53 = vld [vmem:[#allocation4 + $0x82] sm:$0x1] }
 0x47a   : > { %v5849_v32 = vadd.f32 %v5848_v31, %v5847_v49  ;;  %v5736_v39 = vpop.f32.mrf.mxu1  ;;  %v6428_v49 = vrot.slane %v5992_v61, 5  ;;  %v6069_v61 = vld [vmem:[#allocation4 + $0x5] sm:$0x1] }
 0x47b   : > { %v6425_v39 = vsel %vm6198_vm11, %v6424_v19, %v5989_v53 }
 0x47c   : > { %v5995_v12 = vld [vmem:[#allocation4 + $0xb2] sm:$0x1] }
 0x480   : > { %v5996_v31 = vld [vmem:[#allocation4 + $0xba] sm:$0x1] }
 0x490   : > { %v5739_v8 = vpop.f32.mrf.mxu1 }
 0x491   : > { %5794 = vst.msk [vmem:[#allocation4 + $0xc0] sm:$0xff] %vm246_vm0, %v5739_v8  ;;  %v5850_v42 = vsel %vm246_vm0, %v5739_v8, 0.0  ;;  %v6432_v8 = vrot.slane %v5994_v40, 3 }
 0x492   : > { %v5851_v47 = vadd.f32 %v5850_v42, %v5849_v32  ;;  %v5741_v29 = vpop.f32.mrf.mxu1  ;;  %v6430_v32 = vrot.slane %v5993_v43, 4  ;;  %v6049_v42 = vld [vmem:[#allocation4 + $0x64] sm:$0x1]  ;;  %v6074_v43 = vld [vmem:[#allocation4 + $0x2d] sm:$0x1] }
 0x493   : > { %v6427_v29 = vsel %vm6201_vm12, %v6426_v26, %v6425_v39  ;;  %v6088_v39 = vld [vmem:[#allocation4 + $0x9d] sm:$0x1] }
 0x494   : > { %v5742_v18 = vpop.f32.mrf.mxu1 }
 0x495   : > { %5795 = vst.msk [vmem:[#allocation4 + $0xc8] sm:$0xff] %vm246_vm0, %v5742_v18  ;;  %v5852_v15 = vsel %vm246_vm0, %v5742_v18, 0.0  ;;  %v6434_v18 = vrot.slane %v5995_v12, 2  ;;  %v6075_v12 = vld [vmem:[#allocation4 + $0x35] sm:$0x1] }
 0x496   : > { %v5853_v7 = vadd.f32 %v5852_v15, %v5851_v47  ;;  %v5744_v48 = vpop.f32.mrf.mxu1  ;;  %v6610_v47 = vrot.slane %v6046_v44, 7  ;;  %v6045_v15 = vld [vmem:[#allocation4 + $0x44] sm:$0x1]  ;;  %v6086_v44 = vld [vmem:[#allocation4 + $0x8d] sm:$0x1] }
 0x497   : > { %v6612_v48 = vrot.slane %v6047_v13, 6 }
 0x4ac   : > { %v5747_v62 = vpop.f32.mrf.mxu1 }
 0x4ad   : > { %5796 = vst.msk [vmem:[#allocation4 + $0xd0] sm:$0xff] %vm246_vm0, %v5747_v62  ;;  %v5854_v50 = vsel %vm246_vm0, %v5747_v62, 0.0  ;;  %v6062_v62 = vld [vmem:[#allocation4 + $0xcc] sm:$0x1] }
 0x4ae   : > { %v5749_v24 = vpop.f32.mrf.mxu1  ;;  %v5855_v57 = vadd.f32 %v5854_v50, %v5853_v7  ;;  %v6050_v7 = vld [vmem:[#allocation4 + $0x6c] sm:$0x1]  ;;  %v6616_v50 = vrot.slane %v6049_v42, 4 }
 0x4af   : > { %v6429_v24 = vsel %vm6204_vm13, %v6428_v49, %v6427_v29  ;;  %v6700_v49 = vrot.slane %v6072_v22, 5  ;;  %v6089_v29 = vld [vmem:[#allocation4 + $0xa5] sm:$0x1] }
 0x4b0   : > { %v5750_v30 = vpop.f32.mrf.mxu1 }
 0x4b1   : > { %5797 = vst.msk [vmem:[#allocation4 + $0xd8] sm:$0xff] %vm246_vm0, %v5750_v30  ;;  %v5856_v34 = vsel %vm246_vm0, %v5750_v30, 0.0  ;;  %v6436_v30 = vrot.slane %v5996_v31, 1  ;;  %v6076_v31 = vld [vmem:[#allocation4 + $0x3d] sm:$0x1] }
 0x4b2   : > { %v5752_v2 = vpop.f32.mrf.mxu1  ;;  %v5857_v52 = vadd.f32 %v5856_v34, %v5855_v57 }
 0x4b3   : > { %v6051_v2 = vld [vmem:[#allocation4 + $0x74] sm:$0x1] }
 0x4b8   : > { %v6064_v34 = vld [vmem:[#allocation4 + $0xdc] sm:$0x1] }
 0x4c8   : > { %v5755_v46 = vpop.f32.mrf.mxu1 }
 0x4c9   : > { %5798 = vst.msk [vmem:[#allocation4 + $0xe0] sm:$0xff] %vm246_vm0, %v5755_v46  ;;  %v5858_v35 = vsel %vm246_vm0, %v5755_v46, 0.0  ;;  %v6614_v46 = vrot.slane %v6048_v51, 5  ;;  %v6087_v51 = vld [vmem:[#allocation4 + $0x95] sm:$0x1] }
 0x4ca   : > { %v5757_v58 = vpop.f32.mrf.mxu1  ;;  %v5859_v63 = vadd.f32 %v5858_v35, %v5857_v52  ;;  %v6611_v35 = vsel %vm6198_vm11, %v6610_v47, %v6045_v15  ;;  %v6618_v52 = vrot.slane %v6050_v7, 3  ;;  %v6704_v47 = vrot.slane %v6074_v43, 3  ;;  %v6110_v15 = vld [vmem:[#allocation4 + $0x4e] sm:$0x1]  ;;  %v6134_v43 = vld [vmem:[#allocation4 + $0xf] sm:$0x1] }
 0x4cb   : > { %v6063_v58 = vld [vmem:[#allocation4 + $0xd4] sm:$0x1] }
 0x4cc   : > { %v5758_v37 = vpop.f32.mrf.mxu1 }
 0x4cd   : > { %5799 = vst.msk [vmem:[#allocation4 + $0xe8] sm:$0xff] %vm246_vm0, %v5758_v37  ;;  %v5860_v33 = vsel %vm246_vm0, %v5758_v37, 0.0  ;;  %v6431_v37 = vsel %vm6207_vm14, %v6430_v32, %v6429_v24  ;;  %v6090_v24 = vld [vmem:[#allocation4 + $0xad] sm:$0x1] }
 0x4ce   : > { %v5760_v5 = vpop.f32.mrf.mxu1  ;;  %v5861_v25 = vadd.f32 %v5860_v33, %v5859_v63  ;;  %v6433_v57 = vsel %vm6210_vm15, %v6432_v8, %v6431_v37  ;;  %v6638_v63 = vrot.slane %v6062_v62, 7  ;;  %v6706_v62 = vrot.slane %v6075_v12, 2  ;;  %v6135_v12 = vld [vmem:[#allocation4 + $0x17] sm:$0x1] }
 0x4cf   : > { %v6052_v5 = vld [vmem:[#allocation4 + $0x7c] sm:$0x1]  ;;  %v6708_v37 = vrot.slane %v6076_v31, 1 }
 0x4d0   : > { %v6065_v33 = vld [vmem:[#allocation4 + $0xe4] sm:$0x1] }
 0x4e4   : > { %v5763_v3 = vpop.f32.mrf.mxu1 }
 0x4e5   : > { %5800 = vst.msk [vmem:[#allocation4 + $0xf0] sm:$0xff] %vm246_vm0, %v5763_v3  ;;  %v5862_v1 = vsel %vm246_vm0, %v5763_v3, 0.0  ;;  %v6070_v3 = vld [vmem:[#allocation4 + $0xd] sm:$0x1] }
 0x4e6   : > { %v5765_v36 = vpop.f32.mrf.mxu1  ;;  %v5863_v16 = vadd.f32 %v5862_v1, %v5861_v25  ;;  %v6435_v1 = vsel %vm6213_vm2, %v6434_v18, %v6433_v57  ;;  %v6613_v25 = vsel %vm6201_vm12, %v6612_v48, %v6611_v35  ;;  %v6724_v18 = vrot.slane %v6086_v44, 7  ;;  %v6085_v35 = vld [vmem:[#allocation4 + $0x85] sm:$0x1] }
 0x4e7   : > { %v6620_v36 = vrot.slane %v6051_v2, 2  ;;  %v6111_v2 = vld [vmem:[#allocation4 + $0x56] sm:$0x1] }
 0x4e8   : > { %v5766_v23 = vpop.f32.mrf.mxu1 }
 0x4e9   : > { %5801 = vst.msk [vmem:[#allocation4 + $0xf8] sm:$0xff] %vm246_vm0, %v5766_v23  ;;  %v5864_v9 = vsel %vm246_vm0, %v5766_v23, 0.0  ;;  %v6640_v23 = vrot.slane %v6063_v58, 6 }
 0x4ea   : > { %v5865_v55 = vadd.f32 %v5864_v9, %v5863_v16  ;;  %v5768_v45 = vpop.f32.mrf.mxu1  ;;  %v6066_v16 = vld [vmem:[#allocation4 + $0xec] sm:$0x1]  ;;  %v6071_v9 = vld [vmem:[#allocation4 + $0x15] sm:$0x1] }
 0x4eb   : > { %v6615_v45 = vsel %vm6204_vm13, %v6614_v46, %v6613_v25  ;;  %v6698_v19 = vrot.slane %v6071_v9, 6  ;;  %v6113_v25 = vld [vmem:[#allocation4 + $0x66] sm:$0x1] }
 0x4ec   : > { %v5866_v38 = vrot.slane %v5865_v55, 4  ;;  %v6131_v31 = vld [vmem:[#allocation4 + $0xf6] sm:$0x1] }
 0x4ee   : > { %v5867_v17 = vadd.f32 %v5866_v38, %v5865_v55  ;;  %v6437_v55 = vsel %vm6216_vm3, %v6436_v30, %v6435_v1  ;;  %v6622_v38 = vrot.slane %v6052_v5, 1  ;;  %v6726_v30 = vrot.slane %v6087_v51, 6  ;;  %v6091_v5 = vld [vmem:[#allocation4 + $0xb5] sm:$0x1] }
 0x4ef   : > { %v6732_v1 = vrot.slane %v6090_v24, 3  ;;  %v6734_v9 = vrot.slane %v6091_v5, 2  ;;  %v6150_v5 = vld [vmem:[#allocation4 + $0x8f] sm:$0x1] }
 0x4f0   : > { %v5868_v0 = vrot.slane %v5867_v17, 2 }
 0x4f2   : > { %v5869_v41 = vadd.f32 %v5868_v0, %v5867_v17  ;;  %v6067_v17 = vld [vmem:[#allocation4 + $0xf4] sm:$0x1]  ;;  %v6642_v0 = vrot.slane %v6064_v34, 5  ;;  %v6112_v34 = vld [vmem:[#allocation4 + $0x5e] sm:$0x1] }
 0x4f3   : > { %v6648_v28 = vrot.slane %v6067_v17, 2  ;;  %v6126_v17 = vld [vmem:[#allocation4 + $0xce] sm:$0x1] }
 0x4f4   : > { %v5870_v10 = vrot.slane %v5869_v41, 1 }
 0x4f6   : > { %v5871_v11 = vadd.f32 %v5870_v10, %v5869_v41  ;;  %v6617_v41 = vsel %vm6207_vm14, %v6616_v50, %v6615_v45  ;;  %v6061_v10 = vld [vmem:[#allocation4 + $0xc4] sm:$0x1]  ;;  %v6728_v50 = vrot.slane %v6088_v39, 5  ;;  %v6114_v45 = vld [vmem:[#allocation4 + $0x6e] sm:$0x1] }
 0x4f7   : > { %v6136_v39 = vld [vmem:[#allocation4 + $0x1f] sm:$0x1] }
 0x4f8   : > { %v5873_v54 = vmul.f32 0.00390625, %v5871_v11  ;;  %v6068_v11 = vld [vmem:[#allocation4 + $0xfc] sm:$0x1] }
 0x4f9   : > { %v6650_v13 = vrot.slane %v6068_v11, 1  ;;  %v6814_v11 = vrot.slane %v6112_v34, 5 }
 0x4fa   : > { %v5874_v60 = vadd.f32 %v5873_v54, %v5802_v21  ;;  %v6644_v21 = vrot.slane %v6065_v33, 4  ;;  %v6619_v54 = vsel %vm6210_vm15, %v6618_v52, %v6617_v41  ;;  %v6092_v52 = vld [vmem:[#allocation4 + $0xbd] sm:$0x1]  ;;  %v6730_v33 = vrot.slane %v6089_v29, 4 }
 0x4fb   : > { %v6736_v41 = vrot.slane %v6092_v52, 1  ;;  %v6900_v52 = vrot.slane %v6136_v39, 5  ;;  %v5876_v39 = vld [vmem:[%s11150_s4 + $0x6] sm:$0x3] }
 0x4fc   : > { %v5882_v6 = vrot.slane %v5874_v60, %v5881_v20  ;;  %v6639_v60 = vsel %vm6198_vm11, %v6638_v63, %v6061_v10  ;;  %v6115_v10 = vld [vmem:[#allocation4 + $0x76] sm:$0x1] }
 0x4fd   : > { %v6641_v59 = vsel %vm6201_vm12, %v6640_v23, %v6639_v60  ;;  %v6116_v60 = vld [vmem:[#allocation4 + $0x7e] sm:$0x1] }
 0x4fe   : > { %v5883_v27 = vmul.f32 %v5882_v6, %v5875_v4  ;;  %v6646_v4 = vrot.slane %v6066_v16, 3  ;;  %v6073_v6 = vld [vmem:[#allocation4 + $0x25] sm:$0x1]  ;;  %v6643_v26 = vsel %vm6204_vm13, %v6642_v0, %v6641_v59  ;;  %v6818_v59 = vrot.slane %v6114_v45, 3 }
 0x4ff   : > { %v6645_v53 = vsel %vm6207_vm14, %v6644_v21, %v6643_v26  ;;  %v6702_v32 = vrot.slane %v6073_v6, 4  ;;  %v6127_v21 = vld [vmem:[#allocation4 + $0xd6] sm:$0x1]  ;;  %v6128_v6 = vld [vmem:[#allocation4 + $0xde] sm:$0x1] }
 0x500   : > { %v5884_v56 = vsel %vm249_vm1, %v5883_v27, 0.0  ;;  %v6696_v27 = vrot.slane %v6070_v3, 7  ;;  %v6647_v8 = vsel %vm6210_vm15, %v6646_v4, %v6645_v53  ;;  %v6725_v3 = vsel %vm6198_vm11, %v6724_v18, %v6085_v35  ;;  %v6130_v26 = vld [vmem:[#allocation4 + $0xee] sm:$0x1]  ;;  %v6139_v35 = vld [vmem:[#allocation4 + $0x37] sm:$0x1] }
 0x501   : > { %5885 = vadd.xlane.f32.xlu0 %v5884_v56  ;;  %v6621_v56 = vsel %vm6213_vm2, %v6620_v36, %v6619_v54  ;;  %v6649_v7 = vsel %vm6213_vm2, %v6648_v28, %v6647_v8  ;;  %v6810_v36 = vrot.slane %v6110_v15, 7  ;;  %v6727_v23 = vsel %vm6201_vm12, %v6726_v30, %v6725_v3  ;;  %v6129_v28 = vld [vmem:[#allocation4 + $0xe6] sm:$0x1]  ;;  %v6140_v3 = vld [vmem:[#allocation4 + $0x3f] sm:$0x1] }
 0x502   : > { %v6623_v40 = vsel %vm6216_vm3, %v6622_v38, %v6621_v56  ;;  %v6697_v42 = vsel %vm6198_vm11, %v6696_v27, %v6069_v61  ;;  %v6651_v46 = vsel %vm6216_vm3, %v6650_v13, %v6649_v7  ;;  %v6812_v38 = vrot.slane %v6111_v2, 6 }
 0x503   : > { %v6699_v48 = vsel %vm6201_vm12, %v6698_v19, %v6697_v42  ;;  %v6729_v22 = vsel %vm6204_vm13, %v6728_v50, %v6727_v23  ;;  %v6816_v4 = vrot.slane %v6113_v25, 4  ;;  %v6838_v61 = vrot.slane %v6126_v17, 7  ;;  %v6125_v42 = vld [vmem:[#allocation4 + $0xc6] sm:$0x1]  ;;  %v6152_v25 = vld [vmem:[#allocation4 + $0x9f] sm:$0x1] }
 0x504   : > { %v6701_v58 = vsel %vm6204_vm13, %v6700_v49, %v6699_v48  ;;  %v6731_v54 = vsel %vm6207_vm14, %v6730_v33, %v6729_v22  ;;  %v6840_v13 = vrot.slane %v6127_v21, 6  ;;  %v6822_v53 = vrot.slane %v6116_v60, 1  ;;  %v6137_v48 = vld [vmem:[#allocation4 + $0x27] sm:$0x1]  ;;  %v6151_v33 = vld [vmem:[#allocation4 + $0x97] sm:$0x1] }
 0x505   : > { %v6703_v57 = vsel %vm6207_vm14, %v6702_v32, %v6701_v58  ;;  %v6733_v27 = vsel %vm6210_vm15, %v6732_v1, %v6731_v54  ;;  %v6842_v32 = vrot.slane %v6128_v6, 5  ;;  %v6844_v29 = vrot.slane %v6129_v28, 4  ;;  %v6138_v58 = vld [vmem:[#allocation4 + $0x2f] sm:$0x1]  ;;  %v6155_v21 = vld [vmem:[#allocation4 + $0xb7] sm:$0x1] }
 0x506   : > { %v6705_v63 = vsel %vm6210_vm15, %v6704_v47, %v6703_v57  ;;  %v6735_v19 = vsel %vm6213_vm2, %v6734_v9, %v6733_v27  ;;  %v6132_v47 = vld [vmem:[#allocation4 + $0xfe] sm:$0x1]  ;;  %v6839_v15 = vsel %vm6198_vm11, %v6838_v61, %v6125_v42  ;;  %v6846_v7 = vrot.slane %v6130_v26, 3  ;;  %v6153_v9 = vld [vmem:[#allocation4 + $0xa7] sm:$0x1] }
 0x507   : > { %v6707_v16 = vsel %vm6213_vm2, %v6706_v62, %v6705_v63  ;;  %v6737_v49 = vsel %vm6216_vm3, %v6736_v41, %v6735_v19  ;;  %v6896_v62 = vrot.slane %v6134_v43, 7  ;;  %v6841_v30 = vsel %vm6201_vm12, %v6840_v13, %v6839_v15  ;;  %v6156_v6 = vld [vmem:[#allocation4 + $0xbf] sm:$0x1]  ;;  %v5950_v15 = vld [vmem:[#allocation4 + $0x49] sm:$0x1] }
 0x508   : > { %v6709_v0 = vsel %vm6216_vm3, %v6708_v37, %v6707_v16  ;;  %v6848_v2 = vrot.slane %v6131_v31, 2  ;;  %v6898_v37 = vrot.slane %v6135_v12, 6  ;;  %v6843_v34 = vsel %vm6204_vm13, %v6842_v32, %v6841_v30  ;;  %v5943_v31 = vld [vmem:[#allocation4 + $0x11] sm:$0x1]  ;;  %v5944_v32 = vld [vmem:[#allocation4 + $0x19] sm:$0x1] }
 0x509   : > { %v6850_v57 = vrot.slane %v6132_v47, 1  ;;  %v6845_v63 = vsel %vm6207_vm14, %v6844_v29, %v6843_v34  ;;  %v6902_v1 = vrot.slane %v6137_v48, 4  ;;  %v6904_v23 = vrot.slane %v6138_v58, 3  ;;  %v5946_v29 = vld [vmem:[#allocation4 + $0x29] sm:$0x1] }
 0x50a   : > { %v6906_v17 = vrot.slane %v6139_v35, 2  ;;  %v6926_v22 = vrot.slane %v6151_v33, 6  ;;  %v6928_v54 = vrot.slane %v6152_v25, 5  ;;  %v6930_v27 = vrot.slane %v6153_v9, 4  ;;  %v5941_v48 = vld [vmem:[#allocation4 + $0x1] sm:$0x1] }
 0x50b   : > { %v6934_v19 = vrot.slane %v6155_v21, 2  ;;  %v6936_v26 = vrot.slane %v6156_v6, 1  ;;  %v6298_v47 = vrot.slane %v5943_v31, 6  ;;  %v5952_v58 = vld [vmem:[#allocation4 + $0x59] sm:$0x1] }
 0x50c   : > { %v5953_v34 = vld [vmem:[#allocation4 + $0x61] sm:$0x1]  ;;  %v5959_v9 = vld [vmem:[#allocation4 + $0x91] sm:$0x1]  ;;  %v5962_v6 = vld [vmem:[#allocation4 + $0xa9] sm:$0x1] }
 0x50d   : > { %v5949_v33 = vld [vmem:[#allocation4 + $0x41] sm:$0x1] }
 0x50e   : > { %v5969_v31 = vld [vmem:[#allocation4 + $0xe1] sm:$0x1] }
 0x517   : > { %6456 = vrot.lane.b32.xlu0 %v6437_v55, %s8508_s9  ;;  %v6109_v55 = vld [vmem:[#allocation4 + $0x46] sm:$0x1] }
 0x518   : > { %v6811_v56 = vsel %vm6198_vm11, %v6810_v36, %v6109_v55  ;;  %v6847_v36 = vsel %vm6210_vm15, %v6846_v7, %v6845_v63  ;;  %v6924_v55 = vrot.slane %v6150_v5, 7  ;;  %v6304_v5 = vrot.slane %v5946_v29, 3  ;;  %v5954_v63 = vld [vmem:[#allocation4 + $0x69] sm:$0x1] }
 0x519   : > { %v6813_v44 = vsel %vm6201_vm12, %v6812_v38, %v6811_v56  ;;  %v6849_v45 = vsel %vm6213_vm2, %v6848_v2, %v6847_v36  ;;  %v5948_v2 = vld [vmem:[#allocation4 + $0x39] sm:$0x1]  ;;  %v5970_v29 = vld [vmem:[#allocation4 + $0xe9] sm:$0x1] }
 0x51a   : > { %v6815_v51 = vsel %vm6204_vm13, %v6814_v11, %v6813_v44  ;;  %v6851_v41 = vsel %vm6216_vm3, %v6850_v57, %v6849_v45  ;;  %v6908_v11 = vrot.slane %v6140_v3, 1  ;;  %v6310_v57 = vrot.slane %v5950_v15, 7  ;;  %v5956_v45 = vld [vmem:[#allocation4 + $0x79] sm:$0x1]  ;;  %v5975_v15 = vld [vmem:[#allocation4 + $0x12] sm:$0x1] }
 0x51b   : > { %6654 = vrot.lane.b32.xlu0 %v6623_v40, %s8510_s15  ;;  %v6820_v40 = vrot.slane %v6115_v10, 2  ;;  %v6817_v8 = vsel %vm6207_vm14, %v6816_v4, %v6815_v51  ;;  %v6149_v4 = vld [vmem:[#allocation4 + $0x87] sm:$0x1]  ;;  %v6308_v36 = vrot.slane %v5948_v2, 1  ;;  %v5976_v2 = vld [vmem:[#allocation4 + $0x1a] sm:$0x1] }
 0x51c   : > { %v6819_v18 = vsel %vm6210_vm15, %v6818_v59, %v6817_v8  ;;  %v6925_v59 = vsel %vm6198_vm11, %v6924_v55, %v6149_v4  ;;  %v5945_v8 = vld [vmem:[#allocation4 + $0x21] sm:$0x1] }
 0x51d   : > { %v6821_v24 = vsel %vm6213_vm2, %v6820_v40, %v6819_v18  ;;  %v6927_v43 = vsel %vm6201_vm12, %v6926_v22, %v6925_v59  ;;  %v5947_v18 = vld [vmem:[#allocation4 + $0x31] sm:$0x1]  ;;  %v6311_v22 = vsel %vm6198_vm11, %v6310_v57, %v5949_v33  ;;  %v5957_v4 = vld [vmem:[#allocation4 + $0x81] sm:$0x1]  ;;  %v6346_v57 = vrot.slane %v5970_v29, 3 }
 0x51e   : > { %v6823_v50 = vsel %vm6216_vm3, %v6822_v53, %v6821_v24  ;;  %v6929_v40 = vsel %vm6204_vm13, %v6928_v54, %v6927_v43  ;;  %v5942_v53 = vld [vmem:[#allocation4 + $0x9] sm:$0x1]  ;;  %v5951_v24 = vld [vmem:[#allocation4 + $0x51] sm:$0x1]  ;;  %v6006_v29 = vld [vmem:[#allocation4 + $0xb] sm:$0x1] }
 0x51f   : > { %6658 = vrot.lane.b32.xlu0 %v6651_v46, %s8510_s15  ;;  %v6133_v46 = vld [vmem:[#allocation4 + $0x7] sm:$0x1]  ;;  %v6931_v13 = vsel %vm6207_vm14, %v6930_v27, %v6929_v40  ;;  %v6296_v42 = vrot.slane %v5942_v53, 7  ;;  %v6312_v3 = vrot.slane %v5951_v24, 6  ;;  %v6326_v27 = vrot.slane %v5959_v9, 6 }
 0x520   : > { %v6897_v16 = vsel %vm6198_vm11, %v6896_v62, %v6133_v46  ;;  %v6300_v62 = vrot.slane %v5944_v32, 5  ;;  %v6302_v46 = vrot.slane %v5945_v8, 4  ;;  %v5963_v43 = vld [vmem:[#allocation4 + $0xb1] sm:$0x1]  ;;  %v6332_v53 = vrot.slane %v5962_v6, 3 }
 0x521   : > { %v6899_v38 = vsel %vm6201_vm12, %v6898_v37, %v6897_v16  ;;  %v6297_v37 = vsel %vm6198_vm11, %v6296_v42, %v5941_v48  ;;  %v5955_v16 = vld [vmem:[#allocation4 + $0x71] sm:$0x1]  ;;  %v6313_v54 = vsel %vm6201_vm12, %v6312_v3, %v6311_v22  ;;  %v5980_v22 = vld [vmem:[#allocation4 + $0x3a] sm:$0x1] }
 0x522   : > { %v6901_v10 = vsel %vm6204_vm13, %v6900_v52, %v6899_v38  ;;  %v6299_v52 = vsel %vm6201_vm12, %v6298_v47, %v6297_v37  ;;  %v6316_v38 = vrot.slane %v5953_v34, 4  ;;  %v6334_v47 = vrot.slane %v5963_v43, 2  ;;  %v5971_v24 = vld [vmem:[#allocation4 + $0xf1] sm:$0x1]  ;;  %v5972_v37 = vld [vmem:[#allocation4 + $0xf9] sm:$0x1] }
 0x523   : > { %6752 = vrot.lane.b32.xlu0 %v6709_v0, %s8511_s20  ;;  %v6154_v0 = vld [vmem:[#allocation4 + $0xaf] sm:$0x1]  ;;  %v6903_v60 = vsel %vm6207_vm14, %v6902_v1, %v6901_v10  ;;  %v5958_v1 = vld [vmem:[#allocation4 + $0x89] sm:$0x1]  ;;  %v6301_v25 = vsel %vm6204_vm13, %v6300_v62, %v6299_v52  ;;  %v5961_v10 = vld [vmem:[#allocation4 + $0xa1] sm:$0x1] }
 0x524   : > { %v6905_v56 = vsel %vm6210_vm15, %v6904_v23, %v6903_v60  ;;  %v6932_v28 = vrot.slane %v6154_v0, 3  ;;  %v6314_v23 = vrot.slane %v5952_v58, 5  ;;  %v6303_v55 = vsel %vm6207_vm14, %v6302_v46, %v6301_v25  ;;  %v5965_v58 = vld [vmem:[#allocation4 + $0xc1] sm:$0x1]  ;;  %v5978_v25 = vld [vmem:[#allocation4 + $0x2a] sm:$0x1] }
 0x525   : > { %v6907_v61 = vsel %vm6213_vm2, %v6906_v17, %v6905_v56  ;;  %v5960_v17 = vld [vmem:[#allocation4 + $0x99] sm:$0x1]  ;;  %v6305_v0 = vsel %vm6210_vm15, %v6304_v5, %v6303_v55  ;;  %v6320_v60 = vrot.slane %v5955_v16, 2  ;;  %v5966_v56 = vld [vmem:[#allocation4 + $0xc9] sm:$0x1]  ;;  %v6344_v5 = vrot.slane %v5969_v31, 4 }
 0x526   : > { %v6909_v44 = vsel %vm6216_vm3, %v6908_v11, %v6907_v61  ;;  %v6933_v12 = vsel %vm6210_vm15, %v6932_v28, %v6931_v13  ;;  %v6324_v11 = vrot.slane %v5958_v1, 7  ;;  %v6315_v28 = vsel %vm6204_vm13, %v6314_v23, %v6313_v54  ;;  %v5973_v1 = vld [vmem:[#allocation4 + $0x2] sm:$0x1]  ;;  %v5982_v16 = vld [vmem:[#allocation4 + $0x4a] sm:$0x1] }
 0x527   : > { %6756 = vrot.lane.b32.xlu0 %v6737_v49, %s8511_s20  ;;  %v6935_v49 = vsel %vm6213_vm2, %v6934_v19, %v6933_v12  ;;  %v6322_v61 = vrot.slane %v5956_v45, 1  ;;  %v6328_v19 = vrot.slane %v5960_v17, 5  ;;  %v6317_v40 = vsel %vm6207_vm14, %v6316_v38, %v6315_v28  ;;  %v5968_v12 = vld [vmem:[#allocation4 + $0xd9] sm:$0x1]  ;;  %v5979_v45 = vld [vmem:[#allocation4 + $0x32] sm:$0x1] }
 0x528   : > { %v6937_v51 = vsel %vm6216_vm3, %v6936_v26, %v6935_v49  ;;  %v5964_v26 = vld [vmem:[#allocation4 + $0xb9] sm:$0x1]  ;;  %v6330_v13 = vrot.slane %v5961_v10, 4  ;;  %v6338_v32 = vrot.slane %v5966_v56, 7  ;;  %v6348_v3 = vrot.slane %v5971_v24, 2 }
 0x529   : > { %v6336_v62 = vrot.slane %v5964_v26, 1  ;;  %v6350_v55 = vrot.slane %v5972_v37, 1  ;;  %v6400_v38 = vrot.slane %v5976_v2, 5  ;;  %v5983_v17 = vld [vmem:[#allocation4 + $0x52] sm:$0x1]  ;;  %v6404_v54 = vrot.slane %v5978_v25, 3 }
 0x52a   : > { %v6339_v34 = vsel %vm6198_vm11, %v6338_v32, %v5965_v58  ;;  %v5984_v10 = vld [vmem:[#allocation4 + $0x5a] sm:$0x1]  ;;  %v6406_v56 = vrot.slane %v5979_v45, 2  ;;  %v5986_v28 = vld [vmem:[#allocation4 + $0x6a] sm:$0x1] }
 0x52b   : > { %6854 = vrot.lane.b32.xlu0 %v6823_v50, %s8512_s23  ;;  %v6306_v50 = vrot.slane %v5947_v18, 2  ;;  %v5998_v43 = vld [vmem:[#allocation4 + $0xca] sm:$0x1]  ;;  %v5987_v26 = vld [vmem:[#allocation4 + $0x72] sm:$0x1] }
 0x52c   : > { %v6000_v31 = vld [vmem:[#allocation4 + $0xda] sm:$0x1]  ;;  %v6007_v24 = vld [vmem:[#allocation4 + $0x13] sm:$0x1]  ;;  %v6003_v58 = vld [vmem:[#allocation4 + $0xf2] sm:$0x1] }
 0x52d   : > { %v6307_v21 = vsel %vm6213_vm2, %v6306_v50, %v6305_v0  ;;  %v6442_v37 = vrot.slane %v6000_v31, 5  ;;  %v6014_v45 = vld [vmem:[#allocation4 + $0x4b] sm:$0x1]  ;;  %v6023_v31 = vld [vmem:[#allocation4 + $0x93] sm:$0x1] }
 0x52e   : > { %v6309_v59 = vsel %vm6216_vm3, %v6308_v36, %v6307_v21  ;;  %v6398_v36 = vrot.slane %v5975_v15, 6 }
 0x52f   : > { %6858 = vrot.lane.b32.xlu0 %v6851_v41, %s8512_s23  ;;  %v6318_v41 = vrot.slane %v5954_v63, 3 }
 0x531   : > { %v6319_v49 = vsel %vm6210_vm15, %v6318_v41, %v6317_v40  ;;  %v6408_v40 = vrot.slane %v5980_v22, 1  ;;  %v6011_v22 = vld [vmem:[#allocation4 + $0x33] sm:$0x1] }
 0x532   : > { %v6321_v8 = vsel %vm6213_vm2, %v6320_v60, %v6319_v49  ;;  %v5985_v60 = vld [vmem:[#allocation4 + $0x62] sm:$0x1] }
 0x533   : > { %6952 = vrot.lane.b32.xlu0 %v6909_v44, %s8513_s28  ;;  %v5967_v44 = vld [vmem:[#allocation4 + $0xd1] sm:$0x1] }
 0x534   : > { %v6340_v18 = vrot.slane %v5967_v44, 6 }
 0x536   : > { %v6341_v63 = vsel %vm6201_vm12, %v6340_v18, %v6339_v34  ;;  %v5997_v34 = vld [vmem:[#allocation4 + $0xc2] sm:$0x1] }
 0x537   : > { %6956 = vrot.lane.b32.xlu0 %v6937_v51, %s8513_s28  ;;  %v6325_v51 = vsel %vm6198_vm11, %v6324_v11, %v5957_v4  ;;  %v6410_v4 = vrot.slane %v5982_v16, 7  ;;  %v6448_v16 = vrot.slane %v6003_v58, 2  ;;  %v6030_v58 = vld [vmem:[#allocation4 + $0xcb] sm:$0x1] }
 0x538   : > { %v6327_v42 = vsel %vm6201_vm12, %v6326_v27, %v6325_v51  ;;  %v5988_v51 = vld [vmem:[#allocation4 + $0x7a] sm:$0x1] }
 0x539   : > { %v6329_v48 = vsel %vm6204_vm13, %v6328_v19, %v6327_v42  ;;  %v6001_v42 = vld [vmem:[#allocation4 + $0xe2] sm:$0x1] }
 0x53a   : > { %v6331_v46 = vsel %vm6207_vm14, %v6330_v13, %v6329_v48  ;;  %v6414_v13 = vrot.slane %v5984_v10, 5  ;;  %v6002_v48 = vld [vmem:[#allocation4 + $0xea] sm:$0x1]  ;;  %v6015_v10 = vld [vmem:[#allocation4 + $0x53] sm:$0x1] }
 0x53b   : > { %v6333_v50 = vsel %vm6210_vm15, %v6332_v53, %v6331_v46  ;;  %v6416_v53 = vrot.slane %v5985_v60, 4  ;;  %v6422_v46 = vrot.slane %v5988_v51, 1  ;;  %v6016_v60 = vld [vmem:[#allocation4 + $0x5b] sm:$0x1]  ;;  %v6019_v51 = vld [vmem:[#allocation4 + $0x73] sm:$0x1] }
 0x53c   : > { %v6335_v33 = vsel %vm6213_vm2, %v6334_v47, %v6333_v50  ;;  %v6438_v47 = vrot.slane %v5998_v43, 7  ;;  %v6506_v43 = vrot.slane %v6011_v22, 2  ;;  %v6039_v22 = vld [vmem:[#allocation4 + $0x14] sm:$0x1] }
 0x53d   : > { %v6337_v23 = vsel %vm6216_vm3, %v6336_v62, %v6335_v33 }
 0x53e   : > { %v6439_v33 = vsel %vm6198_vm11, %v6438_v47, %v5997_v34  ;;  %v6027_v34 = vld [vmem:[#allocation4 + $0xb3] sm:$0x1] }
 0x58a   : > { %v5886_v7 = vpop.xlane.xlu0 %5885 }
 0x58b   : > { %v5887_v30 = vadd.f32 %v5886_v7, %v5876_v39  ;;  %v5974_v39 = vld [vmem:[#allocation4 + $0xa] sm:$0x1]  ;;  %v6323_v7 = vsel %vm6216_vm3, %v6322_v61, %v6321_v8  ;;  %v6412_v61 = vrot.slane %v5983_v17, 6  ;;  %v6418_v8 = vrot.slane %v5986_v28, 3 }
 0x58c   : > { %v6396_v52 = vrot.slane %v5974_v39, 7 }
 0x58d   : > { %v5888_v35 = vmax.f32 %v5887_v30, 0.0  ;;  %v6342_v30 = vrot.slane %v5968_v12, 5  ;;  %v5999_v12 = vld [vmem:[#allocation4 + $0xd2] sm:$0x1] }
 0x58e   : > { %v6397_v21 = vsel %vm6198_vm11, %v6396_v52, %v5973_v1  ;;  %v6440_v62 = vrot.slane %v5999_v12, 6  ;;  %v6496_v1 = vrot.slane %v6006_v29, 7 }
 0x58f   : > { %5891 = vperm.xlu1 %8428, %v5888_v35   ;;  %v5977_v35 = vld [vmem:[#allocation4 + $0x22] sm:$0x1]  ;;  %v6343_v9 = vsel %vm6204_vm13, %v6342_v30, %v6341_v63  ;;  %v6399_v27 = vsel %vm6201_vm12, %v6398_v36, %v6397_v21  ;;  %v6446_v63 = vrot.slane %v6002_v48, 3  ;;  %v6012_v21 = vld [vmem:[#allocation4 + $0x3b] sm:$0x1] }
 0x590   : > { %v6345_v0 = vsel %vm6207_vm14, %v6344_v5, %v6343_v9  ;;  %v6402_v41 = vrot.slane %v5977_v35, 4  ;;  %v6401_v44 = vsel %vm6204_vm13, %v6400_v38, %v6399_v27  ;;  %v6008_v5 = vld [vmem:[#allocation4 + $0x1b] sm:$0x1]  ;;  %v6444_v35 = vrot.slane %v6001_v42, 4  ;;  %v6010_v9 = vld [vmem:[#allocation4 + $0x2b] sm:$0x1] }
 0x591   : > { %v6347_v11 = vsel %vm6210_vm15, %v6346_v57, %v6345_v0  ;;  %v6004_v57 = vld [vmem:[#allocation4 + $0xfa] sm:$0x1]  ;;  %v6441_v36 = vsel %vm6201_vm12, %v6440_v62, %v6439_v33  ;;  %v6504_v27 = vrot.slane %v6010_v9, 3  ;;  %v6024_v42 = vld [vmem:[#allocation4 + $0x9b] sm:$0x1] }
 0x592   : > { %v6349_v6 = vsel %vm6213_vm2, %v6348_v3, %v6347_v11  ;;  %v6403_v49 = vsel %vm6207_vm14, %v6402_v41, %v6401_v44  ;;  %v6009_v3 = vld [vmem:[#allocation4 + $0x23] sm:$0x1]  ;;  %v6443_v17 = vsel %vm6204_vm13, %v6442_v37, %v6441_v36  ;;  %v6450_v0 = vrot.slane %v6004_v57, 1  ;;  %v6018_v44 = vld [vmem:[#allocation4 + $0x6b] sm:$0x1] }
 0x593   : > { %6352 = vrot.lane.b32.xlu1 %v6309_v59, %s8506_s25  ;;  %v5981_v59 = vld [vmem:[#allocation4 + $0x42] sm:$0x1]  ;;  %v6351_v19 = vsel %vm6216_vm3, %v6350_v55, %v6349_v6  ;;  %v6405_v32 = vsel %vm6210_vm15, %v6404_v54, %v6403_v49  ;;  %v6498_v55 = vrot.slane %v6007_v24, 6  ;;  %v6500_v41 = vrot.slane %v6008_v5, 5  ;;  %v6028_v33 = vld [vmem:[#allocation4 + $0xbb] sm:$0x1] }
 0x594   : > { %v6411_v39 = vsel %vm6198_vm11, %v6410_v4, %v5981_v59  ;;  %v6407_v18 = vsel %vm6213_vm2, %v6406_v56, %v6405_v32  ;;  %v6445_v11 = vsel %vm6207_vm14, %v6444_v35, %v6443_v17  ;;  %v6502_v54 = vrot.slane %v6009_v3, 4  ;;  %v6017_v56 = vld [vmem:[#allocation4 + $0x63] sm:$0x1]  ;;  %v6031_v35 = vld [vmem:[#allocation4 + $0xd3] sm:$0x1] }
 0x595   : > { %v6413_v15 = vsel %vm6201_vm12, %v6412_v61, %v6411_v39  ;;  %v6409_v30 = vsel %vm6216_vm3, %v6408_v40, %v6407_v18  ;;  %v6447_v4 = vsel %vm6210_vm15, %v6446_v63, %v6445_v11  ;;  %v6510_v59 = vrot.slane %v6014_v45, 7  ;;  %v6020_v39 = vld [vmem:[#allocation4 + $0x7b] sm:$0x1]  ;;  %v6038_v9 = vld [vmem:[#allocation4 + $0xc] sm:$0x1] }
 0x596   : > { %v6415_v2 = vsel %vm6204_vm13, %v6414_v13, %v6413_v15  ;;  %v6449_v28 = vsel %vm6213_vm2, %v6448_v16, %v6447_v4  ;;  %v6512_v40 = vrot.slane %v6015_v10, 6  ;;  %v6508_v49 = vrot.slane %v6012_v21, 1  ;;  %v6025_v15 = vld [vmem:[#allocation4 + $0xa3] sm:$0x1]  ;;  %v6032_v3 = vld [vmem:[#allocation4 + $0xdb] sm:$0x1] }
 0x597   : > { %6354 = vrot.lane.b32.xlu1 %v6323_v7, %s8506_s25  ;;  %v6420_v7 = vrot.slane %v5987_v26, 2  ;;  %v6417_v50 = vsel %vm6207_vm14, %v6416_v53, %v6415_v2  ;;  %v6022_v26 = vld [vmem:[#allocation4 + $0x8b] sm:$0x1]  ;;  %v6451_v13 = vsel %vm6216_vm3, %v6450_v0, %v6449_v28  ;;  %v6514_v53 = vrot.slane %v6016_v60, 5  ;;  %v6033_v16 = vld [vmem:[#allocation4 + $0xe3] sm:$0x1] }
 0x598   : > { %v6419_v52 = vsel %vm6210_vm15, %v6418_v8, %v6417_v50  ;;  %v6516_v8 = vrot.slane %v6017_v56, 4  ;;  %v6518_v18 = vrot.slane %v6018_v44, 3  ;;  %v6520_v24 = vrot.slane %v6019_v51, 2  ;;  %v6026_v2 = vld [vmem:[#allocation4 + $0xab] sm:$0x1] }
 0x599   : > { %v6421_v25 = vsel %vm6213_vm2, %v6420_v7, %v6419_v52  ;;  %v6524_v7 = vrot.slane %v6022_v26, 7  ;;  %v6522_v50 = vrot.slane %v6020_v39, 1  ;;  %v6528_v57 = vrot.slane %v6024_v42, 5  ;;  %v6034_v17 = vld [vmem:[#allocation4 + $0xeb] sm:$0x1] }
 0x59a   : > { %v6423_v38 = vsel %vm6216_vm3, %v6422_v46, %v6421_v25  ;;  %v6526_v46 = vrot.slane %v6023_v31, 6  ;;  %v6530_v63 = vrot.slane %v6025_v15, 4  ;;  %v6532_v36 = vrot.slane %v6026_v2, 3  ;;  %v6035_v21 = vld [vmem:[#allocation4 + $0xf3] sm:$0x1] }
 0x59b   : > { %6356 = vrot.lane.b32.xlu1 %v6337_v23, %s8506_s25  ;;  %v6005_v23 = vld [vmem:[#allocation4 + $0x3] sm:$0x1]  ;;  %v6540_v0 = vrot.slane %v6031_v35, 6  ;;  %v6536_v11 = vrot.slane %v6028_v33, 1  ;;  %v6040_v60 = vld [vmem:[#allocation4 + $0x1c] sm:$0x1] }
 0x59c   : > { %v6497_v6 = vsel %vm6198_vm11, %v6496_v1, %v6005_v23  ;;  %v6538_v23 = vrot.slane %v6030_v58, 7  ;;  %v6544_v56 = vrot.slane %v6033_v16, 4  ;;  %v6548_v26 = vrot.slane %v6035_v21, 2  ;;  %v6054_v51 = vld [vmem:[#allocation4 + $0x8c] sm:$0x1] }
 0x59d   : > { %v6499_v61 = vsel %vm6201_vm12, %v6498_v55, %v6497_v6  ;;  %v6029_v6 = vld [vmem:[#allocation4 + $0xc3] sm:$0x1]  ;;  %v6043_v39 = vld [vmem:[#allocation4 + $0x34] sm:$0x1]  ;;  %v6056_v15 = vld [vmem:[#allocation4 + $0x9c] sm:$0x1] }
 0x59e   : > { %v6501_v12 = vsel %vm6204_vm13, %v6500_v41, %v6499_v61  ;;  %v6539_v28 = vsel %vm6198_vm11, %v6538_v23, %v6029_v6  ;;  %v6546_v61 = vrot.slane %v6034_v17, 3  ;;  %v6055_v42 = vld [vmem:[#allocation4 + $0x94] sm:$0x1]  ;;  %v6078_v2 = vld [vmem:[#allocation4 + $0x4d] sm:$0x1] }
 0x59f   : > { %6358 = vrot.lane.b32.xlu1 %v6351_v19, %s8506_s25  ;;  %v6013_v19 = vld [vmem:[#allocation4 + $0x43] sm:$0x1]  ;;  %v6503_v32 = vsel %vm6207_vm14, %v6502_v54, %v6501_v12  ;;  %v6542_v54 = vrot.slane %v6032_v3, 5  ;;  %v6042_v12 = vld [vmem:[#allocation4 + $0x2c] sm:$0x1] }
 0x5a0   : > { %v6505_v47 = vsel %vm6210_vm15, %v6504_v27, %v6503_v32  ;;  %v6511_v29 = vsel %vm6198_vm11, %v6510_v59, %v6013_v19  ;;  %v6036_v27 = vld [vmem:[#allocation4 + $0xfb] sm:$0x1]  ;;  %v6596_v19 = vrot.slane %v6038_v9, 7  ;;  %v6059_v33 = vld [vmem:[#allocation4 + $0xb4] sm:$0x1] }
 0x5a1   : > { %v6507_v48 = vsel %vm6213_vm2, %v6506_v43, %v6505_v47  ;;  %v6513_v62 = vsel %vm6201_vm12, %v6512_v40, %v6511_v29  ;;  %v6041_v43 = vld [vmem:[#allocation4 + $0x24] sm:$0x1]  ;;  %v6541_v40 = vsel %vm6201_vm12, %v6540_v0, %v6539_v28  ;;  %v6550_v32 = vrot.slane %v6036_v27, 1  ;;  %v6044_v29 = vld [vmem:[#allocation4 + $0x3c] sm:$0x1] }
 0x5a2   : > { %v6509_v37 = vsel %vm6216_vm3, %v6508_v49, %v6507_v48  ;;  %v6515_v5 = vsel %vm6204_vm13, %v6514_v53, %v6513_v62  ;;  %v6598_v49 = vrot.slane %v6039_v22, 6  ;;  %v6543_v31 = vsel %vm6204_vm13, %v6542_v54, %v6541_v40  ;;  %v6080_v3 = vld [vmem:[#allocation4 + $0x5d] sm:$0x1]  ;;  %v6094_v21 = vld [vmem:[#allocation4 + $0xcd] sm:$0x1] }
 0x5a3   : > { %6452 = vrot.lane.b32.xlu1 %v6409_v30, %s8508_s9  ;;  %v6021_v30 = vld [vmem:[#allocation4 + $0x83] sm:$0x1]  ;;  %v6517_v52 = vsel %vm6207_vm14, %v6516_v8, %v6515_v5  ;;  %v6600_v8 = vrot.slane %v6040_v60, 5  ;;  %v6545_v47 = vsel %vm6207_vm14, %v6544_v56, %v6543_v31  ;;  %v6604_v62 = vrot.slane %v6042_v12, 3  ;;  %v6058_v5 = vld [vmem:[#allocation4 + $0xac] sm:$0x1] }
 0x5a4   : > { %v6519_v1 = vsel %vm6210_vm15, %v6518_v18, %v6517_v52  ;;  %v6525_v25 = vsel %vm6198_vm11, %v6524_v7, %v6021_v30  ;;  %v6602_v18 = vrot.slane %v6041_v43, 4  ;;  %v6547_v7 = vsel %vm6210_vm15, %v6546_v61, %v6545_v47  ;;  %v6083_v6 = vld [vmem:[#allocation4 + $0x75] sm:$0x1]  ;;  %v6084_v28 = vld [vmem:[#allocation4 + $0x7d] sm:$0x1] }
 0x5a5   : > { %v6521_v55 = vsel %vm6213_vm2, %v6520_v24, %v6519_v1  ;;  %v6527_v45 = vsel %vm6201_vm12, %v6526_v46, %v6525_v25  ;;  %v6057_v24 = vld [vmem:[#allocation4 + $0xa4] sm:$0x1]  ;;  %v6624_v30 = vrot.slane %v6054_v51, 7  ;;  %v6549_v46 = vsel %vm6213_vm2, %v6548_v26, %v6547_v7  ;;  %v6095_v56 = vld [vmem:[#allocation4 + $0xd5] sm:$0x1] }
 0x5a6   : > { %v6523_v41 = vsel %vm6216_vm3, %v6522_v50, %v6521_v55  ;;  %v6529_v10 = vsel %vm6204_vm13, %v6528_v57, %v6527_v45  ;;  %v6626_v50 = vrot.slane %v6055_v42, 6  ;;  %v6551_v57 = vsel %vm6216_vm3, %v6550_v32, %v6549_v46  ;;  %v6053_v25 = vld [vmem:[#allocation4 + $0x84] sm:$0x1]  ;;  %v6081_v45 = vld [vmem:[#allocation4 + $0x65] sm:$0x1] }
 0x5a7   : > { %6454 = vrot.lane.b32.xlu1 %v6423_v38, %s8508_s9  ;;  %v6534_v38 = vrot.slane %v6027_v34, 2  ;;  %v6531_v4 = vsel %vm6207_vm14, %v6530_v63, %v6529_v10  ;;  %v6079_v34 = vld [vmem:[#allocation4 + $0x55] sm:$0x1]  ;;  %v6608_v52 = vrot.slane %v6044_v29, 1  ;;  %v6628_v63 = vrot.slane %v6056_v15, 5 }
 0x5a8   : > { %v6533_v59 = vsel %vm6210_vm15, %v6532_v36, %v6531_v4  ;;  %v6060_v36 = vld [vmem:[#allocation4 + $0xbc] sm:$0x1]  ;;  %v6630_v16 = vrot.slane %v6057_v24, 4  ;;  %v6625_v9 = vsel %vm6198_vm11, %v6624_v30, %v6053_v25  ;;  %v6632_v55 = vrot.slane %v6058_v5, 3  ;;  %v6082_v10 = vld [vmem:[#allocation4 + $0x6d] sm:$0x1] }
 0x5a9   : > { %v6535_v44 = vsel %vm6213_vm2, %v6534_v38, %v6533_v59  ;;  %v6710_v38 = vrot.slane %v6078_v2, 7  ;;  %v6627_v0 = vsel %vm6201_vm12, %v6626_v50, %v6625_v9  ;;  %v6634_v22 = vrot.slane %v6059_v33, 2  ;;  %v6096_v43 = vld [vmem:[#allocation4 + $0xdd] sm:$0x1]  ;;  %v6097_v26 = vld [vmem:[#allocation4 + $0xe5] sm:$0x1] }
 0x5aa   : > { %v6537_v53 = vsel %vm6216_vm3, %v6536_v11, %v6535_v44  ;;  %v6712_v11 = vrot.slane %v6079_v34, 6  ;;  %v6629_v60 = vsel %vm6204_vm13, %v6628_v63, %v6627_v0  ;;  %v6636_v4 = vrot.slane %v6060_v36, 1  ;;  %v6102_v12 = vld [vmem:[#allocation4 + $0xe] sm:$0x1]  ;;  %v6098_v31 = vld [vmem:[#allocation4 + $0xed] sm:$0x1] }
 0x5ab   : > { %6458 = vrot.lane.b32.xlu1 %v6451_v13, %s8508_s9  ;;  %v6037_v13 = vld [vmem:[#allocation4 + $0x4] sm:$0x1]  ;;  %v6714_v27 = vrot.slane %v6080_v3, 5  ;;  %v6631_v59 = vsel %vm6207_vm14, %v6630_v16, %v6629_v60  ;;  %v6716_v61 = vrot.slane %v6081_v45, 4  ;;  %v6718_v40 = vrot.slane %v6082_v10, 3 }
 0x5ac   : > { %v6597_v48 = vsel %vm6198_vm11, %v6596_v19, %v6037_v13  ;;  %v6633_v19 = vsel %vm6210_vm15, %v6632_v55, %v6631_v59  ;;  %v6738_v13 = vrot.slane %v6094_v21, 7  ;;  %v6740_v32 = vrot.slane %v6095_v56, 6  ;;  %v6099_v29 = vld [vmem:[#allocation4 + $0xf5] sm:$0x1]  ;;  %v6104_v15 = vld [vmem:[#allocation4 + $0x1e] sm:$0x1] }
 0x5ad   : > { %v6599_v58 = vsel %vm6201_vm12, %v6598_v49, %v6597_v48  ;;  %v6635_v49 = vsel %vm6213_vm2, %v6634_v22, %v6633_v19  ;;  %v6722_v47 = vrot.slane %v6084_v28, 1  ;;  %v6093_v48 = vld [vmem:[#allocation4 + $0xc5] sm:$0x1]  ;;  %v6744_v24 = vrot.slane %v6097_v26, 4  ;;  %v6118_v33 = vld [vmem:[#allocation4 + $0x8e] sm:$0x1] }
 0x5ae   : > { %v6601_v35 = vsel %vm6204_vm13, %v6600_v8, %v6599_v58  ;;  %v6637_v8 = vsel %vm6216_vm3, %v6636_v4, %v6635_v49  ;;  %v6739_v2 = vsel %vm6198_vm11, %v6738_v13, %v6093_v48  ;;  %v6746_v46 = vrot.slane %v6098_v31, 3  ;;  %v6105_v58 = vld [vmem:[#allocation4 + $0x26] sm:$0x1]  ;;  %v6107_v25 = vld [vmem:[#allocation4 + $0x36] sm:$0x1] }
 0x5af   : > { %6552 = vrot.lane.b32.xlu1 %v6509_v37, %s8509_s12  ;;  %v6606_v37 = vrot.slane %v6043_v39, 2  ;;  %v6603_v1 = vsel %vm6207_vm14, %v6602_v18, %v6601_v35  ;;  %v6103_v39 = vld [vmem:[#allocation4 + $0x16] sm:$0x1]  ;;  %v6742_v18 = vrot.slane %v6096_v43, 5  ;;  %v6741_v50 = vsel %vm6201_vm12, %v6740_v32, %v6739_v2  ;;  %v6106_v35 = vld [vmem:[#allocation4 + $0x2e] sm:$0x1] }
 0x5b0   : > { %v6605_v23 = vsel %vm6210_vm15, %v6604_v62, %v6603_v1  ;;  %v6100_v62 = vld [vmem:[#allocation4 + $0xfd] sm:$0x1]  ;;  %v6748_v34 = vrot.slane %v6099_v29, 2  ;;  %v6800_v36 = vrot.slane %v6104_v15, 5  ;;  %v6119_v16 = vld [vmem:[#allocation4 + $0x96] sm:$0x1] }
 0x5b1   : > { %v6607_v17 = vsel %vm6213_vm2, %v6606_v37, %v6605_v23  ;;  %v6796_v37 = vrot.slane %v6102_v12, 7  ;;  %v6743_v3 = vsel %vm6204_vm13, %v6742_v18, %v6741_v50  ;;  %v6750_v1 = vrot.slane %v6100_v62, 1  ;;  %v6108_v9 = vld [vmem:[#allocation4 + $0x3e] sm:$0x1]  ;;  %v6121_v22 = vld [vmem:[#allocation4 + $0xa6] sm:$0x1] }
 0x5b2   : > { %v6609_v54 = vsel %vm6216_vm3, %v6608_v52, %v6607_v17  ;;  %v6798_v52 = vrot.slane %v6103_v39, 6  ;;  %v6745_v23 = vsel %vm6207_vm14, %v6744_v24, %v6743_v3  ;;  %v6802_v55 = vrot.slane %v6105_v58, 4  ;;  %v6120_v45 = vld [vmem:[#allocation4 + $0x9e] sm:$0x1]  ;;  %v6142_v10 = vld [vmem:[#allocation4 + $0x4f] sm:$0x1] }
 0x5b3   : > { %6554 = vrot.lane.b32.xlu1 %v6523_v41, %s8509_s12  ;;  %v6077_v41 = vld [vmem:[#allocation4 + $0x45] sm:$0x1]  ;;  %v6804_v0 = vrot.slane %v6106_v35, 3  ;;  %v6122_v60 = vld [vmem:[#allocation4 + $0xae] sm:$0x1]  ;;  %v6826_v4 = vrot.slane %v6119_v16, 6 }
 0x5b4   : > { %v6711_v44 = vsel %vm6198_vm11, %v6710_v38, %v6077_v41  ;;  %v6747_v38 = vsel %vm6210_vm15, %v6746_v46, %v6745_v23  ;;  %v6824_v41 = vrot.slane %v6118_v33, 7  ;;  %v6808_v59 = vrot.slane %v6108_v9, 1  ;;  %v6123_v28 = vld [vmem:[#allocation4 + $0xb6] sm:$0x1]  ;;  %v6144_v43 = vld [vmem:[#allocation4 + $0x5f] sm:$0x1] }
 0x5b5   : > { %v6713_v51 = vsel %vm6201_vm12, %v6712_v11, %v6711_v44  ;;  %v6749_v11 = vsel %vm6213_vm2, %v6748_v34, %v6747_v38  ;;  %v6117_v44 = vld [vmem:[#allocation4 + $0x86] sm:$0x1]  ;;  %v6830_v26 = vrot.slane %v6121_v22, 4  ;;  %v6832_v49 = vrot.slane %v6122_v60, 3  ;;  %v6147_v15 = vld [vmem:[#allocation4 + $0x77] sm:$0x1] }
 0x5b6   : > { %v6715_v42 = vsel %vm6204_vm13, %v6714_v27, %v6713_v51  ;;  %v6751_v27 = vsel %vm6216_vm3, %v6750_v1, %v6749_v11  ;;  %v6825_v12 = vsel %vm6198_vm11, %v6824_v41, %v6117_v44  ;;  %v6145_v51 = vld [vmem:[#allocation4 + $0x67] sm:$0x1]  ;;  %v6834_v39 = vrot.slane %v6123_v28, 2  ;;  %v6148_v24 = vld [vmem:[#allocation4 + $0x7f] sm:$0x1] }
 0x5b7   : > { %6556 = vrot.lane.b32.xlu1 %v6537_v53, %s8509_s12  ;;  %v6720_v53 = vrot.slane %v6083_v6, 2  ;;  %v6717_v7 = vsel %vm6207_vm14, %v6716_v61, %v6715_v42  ;;  %v6143_v6 = vld [vmem:[#allocation4 + $0x57] sm:$0x1]  ;;  %v6828_v61 = vrot.slane %v6120_v45, 5  ;;  %v6827_v32 = vsel %vm6201_vm12, %v6826_v4, %v6825_v12  ;;  %v6141_v62 = vld [vmem:[#allocation4 + $0x47] sm:$0x1] }
 0x5b8   : > { %v6719_v30 = vsel %vm6210_vm15, %v6718_v40, %v6717_v7  ;;  %v6124_v40 = vld [vmem:[#allocation4 + $0xbe] sm:$0x1]  ;;  %v6912_v42 = vrot.slane %v6143_v6, 6  ;;  %v6914_v7 = vrot.slane %v6144_v43, 5  ;;  %v6920_v50 = vrot.slane %v6147_v15, 2 }
 0x5b9   : > { %v6721_v5 = vsel %vm6213_vm2, %v6720_v53, %v6719_v30  ;;  %v6910_v53 = vrot.slane %v6142_v10, 7  ;;  %v6829_v29 = vsel %vm6204_vm13, %v6828_v61, %v6827_v32  ;;  %v6836_v18 = vrot.slane %v6124_v40, 1  ;;  %v5877_v1 = vld [vmem:[%s11150_s4 + $0x8] sm:$0x3]  ;;  %v5910_v45 = vld [vmem:[#allocation4 + $0x8] sm:$0x1] }
 0x5ba   : > { %v6723_v63 = vsel %vm6216_vm3, %v6722_v47, %v6721_v5  ;;  %v6831_v48 = vsel %vm6207_vm14, %v6830_v26, %v6829_v29  ;;  %v6916_v30 = vrot.slane %v6145_v51, 4  ;;  %v6922_v35 = vrot.slane %v6148_v24, 1  ;;  %v5911_v38 = vld [vmem:[#allocation4 + $0x10] sm:$0x1]  ;;  %v5913_v41 = vld [vmem:[#allocation4 + $0x20] sm:$0x1] }
 0x5bb   : > { %6558 = vrot.lane.b32.xlu1 %v6551_v57, %s8509_s12  ;;  %v6101_v57 = vld [vmem:[#allocation4 + $0x6] sm:$0x1]  ;;  %v6833_v2 = vsel %vm6210_vm15, %v6832_v49, %v6831_v48  ;;  %v6911_v46 = vsel %vm6198_vm11, %v6910_v53, %v6141_v62  ;;  %v6197_v10 = vrot.slane %v5910_v45, 7  ;;  %v5915_v60 = vld [vmem:[#allocation4 + $0x30] sm:$0x1] }
 0x5bc   : > { %v6797_v17 = vsel %vm6198_vm11, %v6796_v37, %v6101_v57  ;;  %v6835_v37 = vsel %vm6213_vm2, %v6834_v39, %v6833_v2  ;;  %v6913_v5 = vsel %vm6201_vm12, %v6912_v42, %v6911_v46  ;;  %v5878_v61 = vld [vmem:[%s11150_s4 + $0x3] sm:$0x1]  ;;  %v6212_v26 = vrot.slane %v5915_v60, 2  ;;  %v6158_v48 = vld [vmem:[#allocation4 + $0xcf] sm:$0x1] }
 0x5bd   : > { %v6799_v21 = vsel %vm6201_vm12, %v6798_v52, %v6797_v17  ;;  %v6837_v34 = vsel %vm6216_vm3, %v6836_v18, %v6835_v37  ;;  %v6915_v57 = vsel %vm6204_vm13, %v6914_v7, %v6913_v5  ;;  %v6159_v62 = vld [vmem:[#allocation4 + $0xd7] sm:$0x1]  ;;  %v6160_v24 = vld [vmem:[#allocation4 + $0xdf] sm:$0x1]  ;;  %v6938_v2 = vrot.slane %v6158_v48, 7 }
 0x5be   : > { %v6801_v56 = vsel %vm6204_vm13, %v6800_v36, %v6799_v21  ;;  %v6917_v52 = vsel %vm6207_vm14, %v6916_v30, %v6915_v57  ;;  %v5914_v21 = vld [vmem:[#allocation4 + $0x28] sm:$0x1]  ;;  %v6161_v30 = vld [vmem:[#allocation4 + $0xe7] sm:$0x1]  ;;  %v6162_v46 = vld [vmem:[#allocation4 + $0xef] sm:$0x1] }
 0x5bf   : > { %6652 = vrot.lane.b32.xlu1 %v6609_v54, %s8510_s15  ;;  %v6806_v54 = vrot.slane %v6107_v25, 2  ;;  %v6803_v19 = vsel %vm6207_vm14, %v6802_v55, %v6801_v56  ;;  %v5916_v56 = vld [vmem:[#allocation4 + $0x38] sm:$0x1]  ;;  %v6163_v37 = vld [vmem:[#allocation4 + $0xf7] sm:$0x1]  ;;  %v6942_v5 = vrot.slane %v6160_v24, 5 }
 0x5c0   : > { %v6805_v13 = vsel %vm6210_vm15, %v6804_v0, %v6803_v19  ;;  %v5912_v0 = vld [vmem:[#allocation4 + $0x18] sm:$0x1]  ;;  %v6209_v19 = vrot.slane %v5914_v21, 3  ;;  %v6215_v12 = vrot.slane %v5916_v56, 1  ;;  %v6944_v57 = vrot.slane %v6161_v30, 4 }
 0x5c1   : > { %v6807_v31 = vsel %vm6213_vm2, %v6806_v54, %v6805_v13  ;;  %v6200_v54 = vrot.slane %v5911_v38, 6  ;;  %v6203_v4 = vrot.slane %v5912_v0, 5  ;;  %v11018_v0 = vpop.permute.xlu0 %6456  ;;  %v5930_v48 = vld [vmem:[#allocation4 + $0xa8] sm:$0x1]  ;;  %v5935_v24 = vld [vmem:[#allocation4 + $0xd0] sm:$0x1] }
 0x5c2   : > { %v6809_v47 = vsel %vm6216_vm3, %v6808_v59, %v6807_v31  ;;  %v6206_v59 = vrot.slane %v5913_v41, 4 }
 0x5c3   : > { %6656 = vrot.lane.b32.xlu1 %v6637_v8, %s8510_s15  ;;  %v6146_v8 = vld [vmem:[#allocation4 + $0x6f] sm:$0x1] }
 0x5c4   : > { %v6918_v58 = vrot.slane %v6146_v8, 3 }
 0x5c6   : > { %v6919_v33 = vsel %vm6210_vm15, %v6918_v58, %v6917_v52  ;;  %v6940_v58 = vrot.slane %v6159_v62, 6  ;;  %v6946_v52 = vrot.slane %v6162_v46, 3 }
 0x5c7   : > { %6754 = vrot.lane.b32.xlu1 %v6723_v63, %s8511_s20  ;;  %v6921_v63 = vsel %vm6213_vm2, %v6920_v50, %v6919_v33  ;;  %v6157_v50 = vld [vmem:[#allocation4 + $0xc7] sm:$0x1] }
 0x5c8   : > { %v6923_v3 = vsel %vm6216_vm3, %v6922_v35, %v6921_v63  ;;  %v6939_v35 = vsel %vm6198_vm11, %v6938_v2, %v6157_v50  ;;  %v6948_v63 = vrot.slane %v6163_v37, 2  ;;  %v5932_v50 = vld [vmem:[#allocation4 + $0xb8] sm:$0x1] }
 0x5c9   : > { %v6941_v33 = vsel %vm6201_vm12, %v6940_v58, %v6939_v35  ;;  %v5931_v58 = vld [vmem:[#allocation4 + $0xb0] sm:$0x1] }
 0x5cb   : > { %6758 = vrot.lane.b32.xlu1 %v6751_v27, %s8511_s20  ;;  %v5909_v27 = vld [vmem:[#allocation4] sm:$0x1] }
 0x5cc   : > { %v6199_v43 = vsel %vm6198_vm11, %v6197_v10, %v5909_v27  ;;  %v11022_v10 = vpop.permute.xlu0 %6654 }
 0x5cd   : > { %v6202_v40 = vsel %vm6201_vm12, %v6200_v54, %v6199_v43  ;;  %v5918_v43 = vld [vmem:[#allocation4 + $0x48] sm:$0x1] }
 0x5ce   : > { %v6205_v13 = vsel %vm6204_vm13, %v6203_v4, %v6202_v40  ;;  %v5926_v40 = vld [vmem:[#allocation4 + $0x88] sm:$0x1] }
 0x5cf   : > { %6852 = vrot.lane.b32.xlu1 %v6809_v47, %s8512_s23  ;;  %v6208_v51 = vsel %vm6207_vm14, %v6206_v59, %v6205_v13  ;;  %v5927_v13 = vld [vmem:[#allocation4 + $0x90] sm:$0x1] }
 0x5d0   : > { %v6211_v31 = vsel %vm6210_vm15, %v6209_v19, %v6208_v51  ;;  %v11026_v21 = vpop.permute.xlu0 %6658  ;;  %v5919_v19 = vld [vmem:[#allocation4 + $0x50] sm:$0x1]  ;;  %v6234_v62 = vrot.slane %v5927_v13, 6  ;;  %v6244_v13 = vrot.slane %v5932_v50, 1 }
 0x5d1   : > { %v6214_v39 = vsel %vm6213_vm2, %v6212_v26, %v6211_v31  ;;  %v5921_v26 = vld [vmem:[#allocation4 + $0x60] sm:$0x1]  ;;  %v6220_v51 = vrot.slane %v5919_v19, 6  ;;  %v5928_v31 = vld [vmem:[#allocation4 + $0x98] sm:$0x1] }
 0x5d2   : > { %v6217_v8 = vsel %vm6216_vm3, %v6215_v12, %v6214_v39  ;;  %v5922_v12 = vld [vmem:[#allocation4 + $0x68] sm:$0x1]  ;;  %v5929_v39 = vld [vmem:[#allocation4 + $0xa0] sm:$0x1]  ;;  %v6236_v37 = vrot.slane %v5928_v31, 5 }
 0x5d3   : > { %6856 = vrot.lane.b32.xlu1 %v6837_v34, %s8512_s23  ;;  %v6164_v34 = vld [vmem:[#allocation4 + $0xff] sm:$0x1]  ;;  %v6226_v46 = vrot.slane %v5922_v12, 3  ;;  %v5939_v19 = vld [vmem:[#allocation4 + $0xf0] sm:$0x1] }
 0x5d4   : > { %v11030_v60 = vpop.permute.xlu0 %6752  ;;  %v5933_v12 = vld [vmem:[#allocation4 + $0xc0] sm:$0x1]  ;;  %v5940_v31 = vld [vmem:[#allocation4 + $0xf8] sm:$0x1] }
 0x5d5   : > { %v6258_v50 = vrot.slane %v5940_v31, 1 }
 0x5d7   : > { %6954 = vrot.lane.b32.xlu1 %v6923_v3, %s8513_s28  ;;  %v6943_v3 = vsel %vm6204_vm13, %v6942_v5, %v6941_v33  ;;  %v5936_v5 = vld [vmem:[#allocation4 + $0xd8] sm:$0x1] }
 0x60a   : > { %v5892_v25 = vpop.permute.xlu1 %5891 }
 0x60b   : > { %v5894_v36 = vmul.f32 %v5892_v25, %v5877_v1  ;;  %v6950_v1 = vrot.slane %v6164_v34, 1  ;;  %v6945_v25 = vsel %vm6207_vm14, %v6944_v57, %v6943_v3  ;;  %v6238_v34 = vrot.slane %v5929_v39, 4  ;;  %v5937_v57 = vld [vmem:[#allocation4 + $0xe0] sm:$0x1] }
 0x60c   : > { %v6240_v3 = vrot.slane %v5930_v48, 3 }
 0x60d   : > { %v5895_v16 = vsel %vm249_vm1, %v5894_v36, 0.0  ;;  %vm6968_vm1 = vcmask 261120   ;;  %v6947_v36 = vsel %vm6210_vm15, %v6946_v52, %v6945_v25  ;;  %v5923_v52 = vld [vmem:[#allocation4 + $0x70] sm:$0x1]  ;;  %v6248_v25 = vrot.slane %v5935_v24, 6 }
 0x60e   : > { %v5896_v23 = vrot.slane %v5895_v16, 4  ;;  %v6353_v9 = vpop.permute.xlu1 %6352  ;;  %v6228_v39 = vrot.slane %v5923_v52, 2 }
 0x60f   : > { %v6964_v42 = vsel %vm246_vm0, %v6217_v8, %v6353_v9  ;;  %v6232_v8 = vrot.slane %v5926_v40, 7 }
 0x610   : > { %v5897_v55 = vadd.f32 %v5896_v23, %v5895_v16  ;;  %v6949_v16 = vsel %vm6213_vm2, %v6948_v63, %v6947_v36  ;;  %v5924_v36 = vld [vmem:[#allocation4 + $0x78] sm:$0x1] }
 0x611   : > { %v6951_v23 = vsel %vm6216_vm3, %v6950_v1, %v6949_v16  ;;  %v5938_v1 = vld [vmem:[#allocation4 + $0xe8] sm:$0x1]  ;;  %v6230_v48 = vrot.slane %v5924_v36, 1 }
 0x612   : > { %v5898_v17 = vrot.slane %v5897_v55, 2  ;;  %v10964_v22 = vpop.permute.xlu1 %6354 }
 0x614   : > { %v5899_v11 = vadd.f32 %v5898_v17, %v5897_v55 }
 0x616   : > { %v5900_v6 = vrot.slane %v5899_v11, 1  ;;  %v10966_v28 = vpop.permute.xlu1 %6356 }
 0x618   : > { %v5901_v44 = vadd.f32 %v5900_v6, %v5899_v11  ;;  %v11034_v6 = vpop.permute.xlu0 %6756 }
 0x61a   : > { %v5902_v49 = vadd.f32 %v5901_v44, %v5878_v61  ;;  %v10975_v53 = vpop.permute.xlu1 %6358  ;;  %v5920_v44 = vld [vmem:[#allocation4 + $0x58] sm:$0x1] }
 0x61c   : > { %v7829_v32 = vmul.f32 -1.442695, %v5902_v49  ;;  %v11038_v56 = vpop.permute.xlu0 %6854  ;;  %v6218_v49 = vrot.slane %v5918_v43, 7  ;;  %v6242_v43 = vrot.slane %v5931_v58, 2 }
 0x61e   : > { %8487 = vpow2.f32 %v7829_v32  ;;  %v6453_v47 = vpop.permute.xlu1 %6452  ;;  %v6222_v32 = vrot.slane %v5920_v44, 5  ;;  %v6250_v44 = vrot.slane %v5936_v5, 5 }
 0x61f   : > { %v10982_v29 = vsel %vm6968_vm1, %v6964_v42, %v6453_v47  ;;  %v5934_v42 = vld [vmem:[#allocation4 + $0xc8] sm:$0x1]  ;;  %v5917_v47 = vld [vmem:[#allocation4 + $0x40] sm:$0x1] }
 0x620   : > { %v11042_v61 = vpop.permute.xlu0 %6858  ;;  %v6246_v35 = vrot.slane %v5934_v42, 7  ;;  %v6219_v33 = vsel %vm6198_vm11, %v6218_v49, %v5917_v47  ;;  %v6252_v49 = vrot.slane %v5937_v57, 4  ;;  %v6254_v47 = vrot.slane %v5938_v1, 3 }
 0x621   : > { %v6221_v16 = vsel %vm6201_vm12, %v6220_v51, %v6219_v33 }
 0x622   : > { %v11008_v9 = vpop.permute.xlu1 %6454  ;;  %v6223_v40 = vsel %vm6204_vm13, %v6222_v32, %v6221_v16  ;;  %v6247_v42 = vsel %vm6198_vm11, %v6246_v35, %v5933_v12  ;;  %v6256_v32 = vrot.slane %v5939_v19, 2 }
 0x623   : > { %v6249_v24 = vsel %vm6201_vm12, %v6248_v25, %v6247_v42 }
 0x624   : > { %v11046_v2 = vpop.permute.xlu0 %6952  ;;  %v6251_v5 = vsel %vm6204_vm13, %v6250_v44, %v6249_v24 }
 0x625   : > { %v6253_v35 = vsel %vm6207_vm14, %v6252_v49, %v6251_v5 }
 0x626   : > { %v11010_v55 = vpop.permute.xlu1 %6458 }
 0x62a   : > { %v11012_v45 = vpop.permute.xlu1 %6552 }
 0x62b   : > { %v8488_v18 = vpop.eup %8487 }
 0x62c   : > { %v5906_v15 = vadd.f32 1.0, %v8488_v18  ;;  %v6224_v18 = vrot.slane %v5921_v26, 4 }
 0x62e   : > { %8489 = vrcp.f32 %v5906_v15  ;;  %v11014_v38 = vpop.permute.xlu1 %6554  ;;  %v5925_v15 = vld [vmem:[#allocation4 + $0x80] sm:$0x1]  ;;  %v6225_v58 = vsel %vm6207_vm14, %v6224_v18, %v6223_v40 }
 0x62f   : > { %v6233_v63 = vsel %vm6198_vm11, %v6232_v8, %v5925_v15  ;;  %v6957_v15 = vpop.permute.xlu0 %6956 }
 0x632   : > { %v11016_v17 = vpop.permute.xlu1 %6556 }
 0x636   : > { %v11020_v41 = vpop.permute.xlu1 %6558 }
 0x63a   : > { %v11024_v11 = vpop.permute.xlu1 %6652 }
 0x63b   : > { %v10984_v7 = vpop.eup %8489 }
 0x63c   : > { %7005 = vrot.lane.b32.xlu0 %v10984_v7, %s8509_s12  ;;  %6999 = vrot.lane.b32.xlu1 %v10984_v7, %s8506_s25  ;;  %s7833_s25 = sshll.u32 %s11154_s19, 5 }
 0x63d   : > { %s244_s14 = scalar_lea.vmem %s11151_s5, %s7833_s25 }
 0x63e   : > { %v11028_v54 = vpop.permute.xlu1 %6656 }
 0x640   : > { %7011 = vrot.lane.b32.xlu0 %v10984_v7, %s8511_s20  ;;  %7002 = vrot.lane.b32.xlu1 %v10984_v7, %s8508_s9 }
 0x642   : > { %v11032_v4 = vpop.permute.xlu1 %6754 }
 0x644   : > { %7017 = vrot.lane.b32.xlu0 %v10984_v7, %s8513_s28  ;;  %7008 = vrot.lane.b32.xlu1 %v10984_v7, %s8510_s15 }
 0x646   : > { %v11036_v27 = vpop.permute.xlu1 %6758 }
 0x648   : > { %7014 = vrot.lane.b32.xlu1 %v10984_v7, %s8512_s23  ;;  %s239_s23 = scalar_lea.vmem %s11147_s1, %s7833_s25 }
 0x64a   : > { %v11040_v59 = vpop.permute.xlu1 %6852 }
 0x64c   : > { %6958 = vrot.lane.b32.xlu1 %v6951_v23, %s8513_s28  ;;  %v6235_v23 = vsel %vm6201_vm12, %v6234_v62, %v6233_v63  ;;  %v6255_v63 = vsel %vm6210_vm15, %v6254_v47, %v6253_v35 }
 0x64d   : > { %v6237_v26 = vsel %vm6204_vm13, %v6236_v37, %v6235_v23  ;;  %v6257_v1 = vsel %vm6213_vm2, %v6256_v32, %v6255_v63  ;;  %v6974_v23 = vsel %vm6973_vm4, %v10982_v29, %v11012_v45 }
 0x64e   : > { %v11044_v30 = vpop.permute.xlu1 %6856  ;;  %v6239_v8 = vsel %vm6207_vm14, %v6238_v34, %v6237_v26  ;;  %v6227_v34 = vsel %vm6210_vm15, %v6226_v46, %v6225_v58  ;;  %v6259_v36 = vsel %vm6216_vm3, %v6258_v50, %v6257_v1 }
 0x64f   : > { %v6241_v62 = vsel %vm6210_vm15, %v6240_v3, %v6239_v8  ;;  %v6229_v52 = vsel %vm6213_vm2, %v6228_v39, %v6227_v34  ;;  %v7046_v34 = vld [vmem:[%s239_s23 + $0x18] sm:$0xff] }
 0x650   : > { %v6243_v37 = vsel %vm6213_vm2, %v6242_v43, %v6241_v62  ;;  %v6231_v18 = vsel %vm6216_vm3, %v6230_v48, %v6229_v52  ;;  %v7044_v48 = vld [vmem:[%s239_s23 + $0x8] sm:$0xff] }
 0x651   : > { %v6245_v57 = vsel %vm6216_vm3, %v6244_v13, %v6243_v37  ;;  %v6965_v46 = vsel %vm246_vm0, %v6231_v18, %v10964_v22 }
 0x652   : > { %v6955_v51 = vpop.permute.xlu1 %6954  ;;  %v6966_v33 = vsel %vm246_vm0, %v6245_v57, %v10966_v28  ;;  %v6970_v16 = vsel %vm6968_vm1, %v6965_v46, %v11008_v9  ;;  %v6967_v9 = vsel %vm246_vm0, %v6259_v36, %v10975_v53 }
 0x653   : > { %v6971_v28 = vsel %vm6968_vm1, %v6966_v33, %v11018_v0  ;;  %v6975_v43 = vsel %vm6973_vm4, %v6970_v16, %v11014_v38  ;;  %v6979_v0 = vsel %vm6978_vm5, %v6974_v23, %v11024_v11  ;;  %v6972_v45 = vsel %vm6968_vm1, %v6967_v9, %v11010_v55 }
 0x654   : > { %v6976_v22 = vsel %vm6973_vm4, %v6971_v28, %v11016_v17  ;;  %v6977_v38 = vsel %vm6973_vm4, %v6972_v45, %v11020_v41  ;;  %v6984_v11 = vsel %vm6983_vm6, %v6979_v0, %v11030_v60  ;;  %v8496_v60 = vld [vmem:[%s11150_s4 + $0x2] ss:$0 sm:$0xff] }
 0x655   : > { %v6981_v40 = vsel %vm6978_vm5, %v6976_v22, %v11028_v54  ;;  %v6989_v41 = vsel %vm6988_vm7, %v6984_v11, %v11040_v59 }
 0x656   : > { %v6986_v54 = vsel %vm6983_vm6, %v6981_v40, %v11034_v6 }
 0x6ae   : > { %v7000_v3 = vpop.permute.xlu1 %6999  ;;  %v7006_v25 = vpop.permute.xlu0 %7005 }
 0x6af   : > { %v7020_v19 = vsel %vm246_vm0, %v10984_v7, %v7000_v3  ;;  %v6980_v7 = vsel %vm6978_vm5, %v6975_v43, %v11022_v10  ;;  %vm6993_vm0 = vcmask 916480   ;;  %v6991_v10 = vsel %vm6988_vm7, %v6986_v54, %v11044_v30 }
 0x6b0   : > { %v6985_v17 = vsel %vm6983_vm6, %v6980_v7, %v11032_v4  ;;  %v6982_v4 = vsel %vm6978_vm5, %v6977_v38, %v11026_v21  ;;  %v6994_v12 = vsel %vm6993_vm0, %v6989_v41, %v11046_v2  ;;  %v6996_v59 = vsel %vm6993_vm0, %v6991_v10, %v6957_v15  ;;  %v7043_v15 = vld [vmem:[%s239_s23] sm:$0xff] }
 0x6b1   : > { %v6990_v6 = vsel %vm6988_vm7, %v6985_v17, %v11038_v56  ;;  %v6987_v39 = vsel %vm6983_vm6, %v6982_v4, %v11036_v27  ;;  %v7031_v56 = vadd.f32 %v8496_v60, %v6994_v12  ;;  %v7033_v2 = vadd.f32 %v8496_v60, %v6996_v59  ;;  %v7045_v27 = vld [vmem:[%s239_s23 + $0x10] sm:$0xff] }
 0x6b2   : > { %v7003_v44 = vpop.permute.xlu1 %7002  ;;  %v7012_v53 = vpop.permute.xlu0 %7011  ;;  %v6995_v30 = vsel %vm6993_vm0, %v6990_v6, %v6955_v51  ;;  %v6992_v24 = vsel %vm6988_vm7, %v6987_v39, %v11042_v61 }
 0x6b3   : > { %v7021_v29 = vsel %vm6968_vm1, %v7020_v19, %v7003_v44  ;;  %v7032_v47 = vadd.f32 %v8496_v60, %v6995_v30 }
 0x6b4   : > { %v7022_v26 = vsel %vm6973_vm4, %v7021_v29, %v7006_v25 }
 0x6b6   : > { %v7009_v55 = vpop.permute.xlu1 %7008  ;;  %v7018_v8 = vpop.permute.xlu0 %7017 }
 0x6b7   : > { %v7023_v13 = vsel %vm6978_vm5, %v7022_v26, %v7009_v55 }
 0x6b8   : > { %v7024_v49 = vsel %vm6983_vm6, %v7023_v13, %v7012_v53 }
 0x6ba   : > { %v7015_v31 = vpop.permute.xlu1 %7014 }
 0x6bb   : > { %v7025_v42 = vsel %vm6988_vm7, %v7024_v49, %v7015_v31 }
 0x6bc   : > { %v7026_v21 = vsel %vm6993_vm0, %v7025_v42, %v7018_v8 }
 0x6bd   : > { %v7038_v51 = vrot.slane %v7026_v21, %v5881_v20 }
 0x6be   : > { %v6959_v62 = vpop.permute.xlu1 %6958 }
 0x6bf   : > { %v7039_v32 = vmul.f32 %v7038_v51, %v7031_v56  ;;  %v7040_v58 = vmul.f32 %v7038_v51, %v7032_v47  ;;  %v7041_v37 = vmul.f32 %v7038_v51, %v7033_v2  ;;  %v6997_v5 = vsel %vm6993_vm0, %v6992_v24, %v6959_v62 }
 0x6c0   : > { %v7034_v50 = vadd.f32 %v8496_v60, %v6997_v5 }
 0x6c1   : > { %v7047_v57 = vadd.f32 %v7043_v15, %v7039_v32  ;;  %v7048_v35 = vadd.f32 %v7044_v48, %v7040_v58  ;;  %v7049_v52 = vadd.f32 %v7045_v27, %v7041_v37 }
 0x6c2   : > { %v7042_v14 = vmul.f32 %v7038_v51, %v7034_v50 }
 0x6c3   : > { %v7051_v20 = vmax.f32 %v7047_v57, 0.0  ;;  %v7052_v33 = vmax.f32 %v7048_v35, 0.0  ;;  %v7053_v63 = vmax.f32 %v7049_v52, 0.0 }
 0x6c4   : > { %v7050_v61 = vadd.f32 %v7046_v34, %v7042_v14 }
 0x6c5   : > { %7055 = vst [vmem:[%s244_s14] sm:$0xff] %v7051_v20  ;;  %7056 = vst [vmem:[%s244_s14 + $0x8] sm:$0xff] %v7052_v33 }
 0x6c6   : > { %7057 = vst [vmem:[%s244_s14 + $0x10] sm:$0xff] %v7053_v63  ;;  %v7054_v3 = vmax.f32 %v7050_v61, 0.0 }
 0x6c8   : > { %7058 = vst [vmem:[%s244_s14 + $0x18] sm:$0xff] %v7054_v3 }
 0x6c9 PF: > { %s15_s18 = sadd.s32 1, %s8503_s18  }
 0x6ca   : > { %p12_p4 = scmp.ge.s32.totalorder %s15_s18, 4  }
 0x6cc   :  { %14 = sbr.rel (!%p12_p4) target bundleno = 1 (0x1), region = 76 }

</bundles_post_ra>
